<compile_context>
chip_gen: v6e
topology: v6e:2x2x1
jax: 0.10.0
libtpu: 0.0.40
codegen_flags: <defaults>
</compile_context>

<pallas_src>
import jax
import jax.numpy as jnp
from jax.experimental import pallas as pl
from jax.experimental.pallas import tpu as pltpu


def _resblock_head_kernel(im_ref, w1_ref, b1_ref, w2_ref, ws_ref, bout_ref,
                          o_ref, h1pad_ref, rows_ref):
    # im_ref   : (Bt, H*W, Kp)        bf16 im2col LHS (9*Cin taps, zero-padded)
    # w1_ref   : (Kp, Cout)           bf16 conv1 im2col weight
    # b1_ref   : (1, Cout)            f32
    # w2_ref   : (9, Cout, Cout)      bf16 conv2 per-tap weight, pre-scaled by 0.25
    # ws_ref   : (Kp, Cout)           bf16 shortcut weight (center-tap rows), *0.25
    # bout_ref : (1, Cout)            f32  b2 + bs
    # o_ref    : (Bt, H/2, W/2, Cout) f32 output block (lane-dense Cout)
    # h1pad_ref: (Bt, H+2, W+16, Cout) bf16 scratch; interior at cols [8, 8+W)
    # rows_ref : (Bt*H/2, W, Cout)    f32 scratch for the row-pair pool sum
    Bt, Ho, Wo, cout = o_ref.shape
    H, W = 2 * Ho, 2 * Wo
    Hp = H + 2
    M = Bt * H * W
    Kp = im_ref.shape[2]

    im = im_ref[...].reshape(M, Kp)                       # (M, Kp) bf16

    # ---- conv1 (3x3, pad 1): one im2col matmul, K = Kp.
    h1 = jnp.dot(im, w1_ref[...], preferred_element_type=jnp.float32)
    h1 = jnp.maximum(h1 + b1_ref[...], 0.0)               # relu(conv1(x) + b1)
    h1 = h1.astype(jnp.bfloat16).reshape(Bt, H, W, cout)  # single f32->bf16 cast

    # ---- stage h1 into a zero-bordered bf16 scratch for conv2's zero padding.
    # Only the border blocks are zeroed (stores at sublane offsets 0 / 8 / W+8)
    # and the interior store starts at column 8.  No cross-iteration state.
    zer_row = jnp.zeros((Bt, 1, W + 16, cout), jnp.bfloat16)
    h1pad_ref[:, 0:1, :, :] = zer_row
    h1pad_ref[:, H + 1:H + 2, :, :] = zer_row
    zer_col = jnp.zeros((Bt, Hp, 8, cout), jnp.bfloat16)
    h1pad_ref[:, :, 0:8, :] = zer_col
    h1pad_ref[:, :, W + 8:W + 16, :] = zer_col
    h1pad_ref[:, 1:H + 1, 8:8 + W, :] = h1

    # ---- 1x1 shortcut (0.25 pre-folded, commutes with AvgPool2d) initializes
    # the conv2 accumulator; it reuses the conv1 im2col LHS (center-tap rows).
    acc = jnp.dot(im, ws_ref[...], preferred_element_type=jnp.float32)

    # ---- conv2 (3x3, pad 1, bias deferred, 0.25 pre-folded): 9 accumulating
    # (M, Cout) x (Cout, Cout) dots (K = Cout = 128), no cols matrix.
    for t in range(9):
        dy, dx = t // 3, t % 3
        tap = h1pad_ref[:, dy:dy + H, 7 + dx:7 + dx + W, :].reshape(M, cout)
        acc = acc + jnp.dot(tap, w2_ref[t], preferred_element_type=jnp.float32)

    # ---- AvgPool2d(2) as VPU adds (scale already folded into the weights):
    # row pairs via leading-dim indexing, column pairs via a sublane-strided
    # load from VMEM scratch; spatially-constant biases added after pooling.
    t4 = acc.reshape(Bt * Ho, 2, W, cout)
    rows_ref[...] = t4[:, 0] + t4[:, 1]                   # (Bt*Ho, W, Cout)
    even = rows_ref[:, pl.ds(0, Wo, stride=2), :]
    odd = rows_ref[:, pl.ds(1, Wo, stride=2), :]
    pooled = even + odd + bout_ref[...]                   # + (b2 + bs)
    o_ref[...] = pooled.reshape(Bt, Ho, Wo, cout).astype(o_ref.dtype)


def _default_block_b(B):
    """v5e/v6e (single TensorCore): one big grid step (no serial grid loop).
    v7x (2 TensorCores): one grid step per core so the 'parallel' batch axis
    megacore-splits across both cores."""
    kind = ""
    try:
        kind = jax.devices()[0].device_kind.lower()
    except Exception:
        pass
    if "v7" in kind or "7x" in kind:
        bb = max(1, B // 2)
        while B % bb:
            bb -= 1
        return bb
    return B


def residual_block_discriminator_head(x_nchw, w1, b1, w2, b2, ws, bs, *,
                                      block_b=None):
    """Forward of ResidualBlockDiscriminatorHead (kernel_size=3, padding=1,
    relu activation)."""
    B, cin, H, W = x_nchw.shape
    cout = w1.shape[0]
    assert H % 2 == 0 and W % 8 == 0
    if block_b is None:
        block_b = _default_block_b(B)
    assert B % block_b == 0
    Bt = block_b
    Ho, Wo = H // 2, W // 2
    K1 = 9 * cin
    Kp = ((K1 + 7) // 8) * 8                      # zero-pad K (27 -> 32)

    # ---- im2col LHS for conv1 + shortcut, built once in the wrapper (XLA),
    # cast to bf16 so the kernel DMAs half the bytes and casts nothing.
    x_nhwc = jnp.transpose(x_nchw, (0, 2, 3, 1))
    xpad = jnp.pad(x_nhwc, ((0, 0), (1, 1), (1, 1), (0, 0)))
    taps = [xpad[:, dy:dy + H, dx:dx + W, :]
            for dy in range(3) for dx in range(3)]
    im = jnp.concatenate(taps, axis=-1)                            # (B,H,W,9*Cin)
    im = jnp.pad(im, ((0, 0), (0, 0), (0, 0), (0, Kp - K1)))
    im = im.reshape(B, H * W, Kp).astype(jnp.bfloat16)

    # ---- weights: OIHW -> im2col / per-tap layouts, bf16 for the MXU.
    # AvgPool scale 0.25 is folded into w2 and ws (biases survive the pool).
    w1k = jnp.transpose(w1, (2, 3, 1, 0)).reshape(K1, cout)        # (9*Cin,Cout)
    w1k = jnp.pad(w1k, ((0, Kp - K1), (0, 0))).astype(jnp.bfloat16)
    w2k = (0.25 * jnp.transpose(w2, (2, 3, 1, 0))
           ).reshape(9, cout, cout).astype(jnp.bfloat16)
    center = 4 * cin                                               # tap (dy=1,dx=1)
    wsk = jnp.zeros((Kp, cout), jnp.float32)
    wsk = wsk.at[center:center + cin, :].set(
        0.25 * jnp.transpose(ws[:, :, 0, 0], (1, 0)))
    wsk = wsk.astype(jnp.bfloat16)
    b1k = b1[None, :].astype(jnp.float32)
    bok = (b2 + bs)[None, :].astype(jnp.float32)

    out = pl.pallas_call(
        _resblock_head_kernel,
        out_shape=jax.ShapeDtypeStruct((B, Ho, Wo, cout), jnp.float32),
        grid_spec=pltpu.PrefetchScalarGridSpec(
            num_scalar_prefetch=0,
            grid=(B // Bt,),
            in_specs=[
                pl.BlockSpec((Bt, H * W, Kp), lambda g: (g, 0, 0)),
                pl.BlockSpec((Kp, cout), lambda g: (0, 0)),
                pl.BlockSpec((1, cout), lambda g: (0, 0)),
                pl.BlockSpec((9, cout, cout), lambda g: (0, 0, 0)),
                pl.BlockSpec((Kp, cout), lambda g: (0, 0)),
                pl.BlockSpec((1, cout), lambda g: (0, 0)),
            ],
            out_specs=pl.BlockSpec((Bt, Ho, Wo, cout), lambda g: (g, 0, 0, 0)),
            scratch_shapes=[
                pltpu.VMEM((Bt, H + 2, W + 16, cout), jnp.bfloat16),
                pltpu.VMEM((Bt * Ho, W, cout), jnp.float32),
            ],
        ),
        compiler_params=pltpu.CompilerParams(
            dimension_semantics=("parallel",)),   # batch axis -> v7x megacore
    )(im, w1k, b1k, w2k, wsk, bok)

    return jnp.transpose(out, (0, 3, 1, 2))                # back to NCHW


def spectral_normalize(w, key, n_power_iterations=1, eps=1e-12):
    # Mirrors torch.nn.utils.spectral_norm as deterministic host-side weight
    # preprocessing (power iteration).
    w_mat = w.reshape(w.shape[0], -1)
    u = jax.random.normal(key, (w_mat.shape[0],), jnp.float32)
    u = u / (jnp.linalg.norm(u) + eps)
    v = None
    for _ in range(n_power_iterations):
        v = w_mat.T @ u
        v = v / (jnp.linalg.norm(v) + eps)
        u = w_mat @ v
        u = u / (jnp.linalg.norm(u) + eps)
    sigma = u @ (w_mat @ v)
    return w / sigma


def ref_forward(x, w1, b1, w2, b2, ws, bs):
    # Plain-JAX f32 reference of the PyTorch forward (NCHW).
    dn = ('NCHW', 'OIHW', 'NCHW')
    hp = jax.lax.Precision.HIGHEST

    def conv(z, w, b, pad):
        out = jax.lax.conv_general_dilated(
            z, w, (1, 1), [(pad, pad), (pad, pad)],
            dimension_numbers=dn, precision=hp)
        return out + b[None, :, None, None]

    def avgpool(z):
        B, C, H, W = z.shape
        return z.reshape(B, C, H // 2, 2, W // 2, 2).mean(axis=(3, 5))

    h = conv(x, w1, b1, 1)
    h = jnp.maximum(h, 0.0)
    h = conv(h, w2, b2, 1)
    h = avgpool(h)
    return h + conv(avgpool(x), ws, bs, 0)


if __name__ == "__main__":
    # Module defaults: in_ch=3, out_ch=128 (out_ch=128 keeps channels lane-dense).
    B, Cin, Cout, H, W = 2, 3, 128, 16, 16
    key = jax.random.PRNGKey(0)
    ks = jax.random.split(key, 10)
    x = jax.random.normal(ks[0], (B, Cin, H, W), jnp.float32)

    # Deterministic parameter init (PyTorch OIHW conv weight convention).
    w1 = 0.2 * jax.random.normal(ks[1], (Cout, Cin, 3, 3), jnp.float32)
    b1 = 0.1 * jax.random.normal(ks[2], (Cout,), jnp.float32)
    w2 = 0.2 * jax.random.normal(ks[3], (Cout, Cout, 3, 3), jnp.float32)
    b2 = 0.1 * jax.random.normal(ks[4], (Cout,), jnp.float32)
    ws = 0.2 * jax.random.normal(ks[5], (Cout, Cin, 1, 1), jnp.float32)
    bs = 0.1 * jax.random.normal(ks[6], (Cout,), jnp.float32)

    # spectral_norm(conv*) applied as deterministic weight preprocessing.
    w1 = spectral_normalize(w1, ks[7])
    w2 = spectral_normalize(w2, ks[8])
    ws = spectral_normalize(ws, ks[9])

    out = residual_block_discriminator_head(x, w1, b1, w2, b2, ws, bs)
    out = jax.block_until_ready(out)

    ref = ref_forward(x, w1, b1, w2, b2, ws, bs)
    assert out.shape == ref.shape == (B, Cout, H // 2, W // 2), (out.shape, ref.shape)
    max_err = float(jnp.max(jnp.abs(out - ref)))
    # bf16 MXU inputs with f32 accumulation -> a few 1e-3 absolute error.
    assert jnp.allclose(out, ref, atol=3e-2, rtol=3e-2), f"max abs err {max_err}"

    print("KERNEL_OK")
</pallas_src>

<mosaic_0001>
module attributes {stable_mosaic.version = 11 : i64} {
  func.func @_resblock_head_kernel(%arg0: i32, %arg1: memref<2x256x32xbf16, #tpu.memory_space<vmem>>, %arg2: memref<32x128xbf16, #tpu.memory_space<vmem>>, %arg3: memref<1x128xf32, #tpu.memory_space<vmem>>, %arg4: memref<9x128x128xbf16, #tpu.memory_space<vmem>>, %arg5: memref<32x128xbf16, #tpu.memory_space<vmem>>, %arg6: memref<1x128xf32, #tpu.memory_space<vmem>>, %arg7: memref<2x8x8x128xf32, #tpu.memory_space<vmem>>, %arg8: memref<2x18x32x128xbf16, #tpu.memory_space<vmem>>, %arg9: memref<16x16x128xf32, #tpu.memory_space<vmem>>) attributes {dimension_semantics = [#tpu.dimension_semantics<parallel>], iteration_bounds = array<i64: 1>, scalar_prefetch = 0 : i64, scratch_operands = 2 : i64, tpu.core_type = #tpu.core_type<tc>, window_params = [{transform_indices = @transform_0, window_bounds = array<i64: 2, 256, 32>}, {pipeline_mode = #tpu.pipeline_mode<synchronous>, transform_indices = @transform_1, window_bounds = array<i64: 32, 128>}, {pipeline_mode = #tpu.pipeline_mode<synchronous>, transform_indices = @transform_2, window_bounds = array<i64: 1, 128>}, {pipeline_mode = #tpu.pipeline_mode<synchronous>, transform_indices = @transform_3, window_bounds = array<i64: 9, 128, 128>}, {pipeline_mode = #tpu.pipeline_mode<synchronous>, transform_indices = @transform_4, window_bounds = array<i64: 32, 128>}, {pipeline_mode = #tpu.pipeline_mode<synchronous>, transform_indices = @transform_5, window_bounds = array<i64: 1, 128>}, {transform_indices = @transform_6, window_bounds = array<i64: 2, 8, 8, 128>}]} {
    %c0 = arith.constant 0 : index
    %c0_0 = arith.constant 0 : index
    %c0_1 = arith.constant 0 : index
    %0 = vector.load %arg1[%c0, %c0_0, %c0_1] : memref<2x256x32xbf16, #tpu.memory_space<vmem>>, vector<2x256x32xbf16>
    %1 = vector.shape_cast %0 : vector<2x256x32xbf16> to vector<512x32xbf16>
    %c0_2 = arith.constant 0 : index
    %c0_3 = arith.constant 0 : index
    %2 = vector.load %arg2[%c0_2, %c0_3] : memref<32x128xbf16, #tpu.memory_space<vmem>>, vector<32x128xbf16>
    %cst = arith.constant dense<0.000000e+00> : vector<512x128xf32>
    %3 = tpu.matmul %1, %2, %cst {dimension_numbers = #tpu.dot_dimension_numbers<[1], [0], [0], [1], [0, 0, 1, 1], [], []>} : vector<512x32xbf16>, vector<32x128xbf16>, vector<512x128xf32> -> vector<512x128xf32>
    %c0_4 = arith.constant 0 : index
    %c0_5 = arith.constant 0 : index
    %4 = vector.load %arg3[%c0_4, %c0_5] : memref<1x128xf32, #tpu.memory_space<vmem>>, vector<1x128xf32>
    %5 = vector.broadcast %4 : vector<1x128xf32> to vector<512x128xf32>
    %6 = arith.addf %3, %5 : vector<512x128xf32>
    %cst_6 = arith.constant 0.000000e+00 : f32
    %7 = vector.broadcast %cst_6 : f32 to vector<512x128xf32>
    %8 = arith.maximumf %6, %7 : vector<512x128xf32>
    %9 = arith.truncf %8 : vector<512x128xf32> to vector<512x128xbf16>
    %10 = vector.shape_cast %9 : vector<512x128xbf16> to vector<2x16x16x128xbf16>
    %cst_7 = arith.constant 0.000000e+00 : bf16
    %11 = vector.broadcast %cst_7 : bf16 to vector<2x1x32x128xbf16>
    %c0_8 = arith.constant 0 : index
    %c0_9 = arith.constant 0 : index
    %c0_10 = arith.constant 0 : index
    %c0_11 = arith.constant 0 : index
    %12 = vector.load %arg8[%c0_8, %c0_9, %c0_10, %c0_11] : memref<2x18x32x128xbf16, #tpu.memory_space<vmem>>, vector<2x1x32x128xbf16>
    tpu.vector_store %arg8[%c0_8, %c0_9, %c0_10, %c0_11], %11 {strides = array<i32>} : memref<2x18x32x128xbf16, #tpu.memory_space<vmem>>, vector<2x1x32x128xbf16>,
    %c0_12 = arith.constant 0 : index
    %c17 = arith.constant 17 : index
    %c0_13 = arith.constant 0 : index
    %c0_14 = arith.constant 0 : index
    %13 = vector.load %arg8[%c0_12, %c17, %c0_13, %c0_14] : memref<2x18x32x128xbf16, #tpu.memory_space<vmem>>, vector<2x1x32x128xbf16>
    tpu.vector_store %arg8[%c0_12, %c17, %c0_13, %c0_14], %11 {strides = array<i32>} : memref<2x18x32x128xbf16, #tpu.memory_space<vmem>>, vector<2x1x32x128xbf16>,
    %cst_15 = arith.constant 0.000000e+00 : bf16
    %14 = vector.broadcast %cst_15 : bf16 to vector<2x18x8x128xbf16>
    %c0_16 = arith.constant 0 : index
    %c0_17 = arith.constant 0 : index
    %c0_18 = arith.constant 0 : index
    %c0_19 = arith.constant 0 : index
    %15 = vector.load %arg8[%c0_16, %c0_17, %c0_18, %c0_19] : memref<2x18x32x128xbf16, #tpu.memory_space<vmem>>, vector<2x18x8x128xbf16>
    tpu.vector_store %arg8[%c0_16, %c0_17, %c0_18, %c0_19], %14 {strides = array<i32>} : memref<2x18x32x128xbf16, #tpu.memory_space<vmem>>, vector<2x18x8x128xbf16>,
    %c0_20 = arith.constant 0 : index
    %c0_21 = arith.constant 0 : index
    %c24 = arith.constant 24 : index
    %c0_22 = arith.constant 0 : index
    %16 = vector.load %arg8[%c0_20, %c0_21, %c24, %c0_22] : memref<2x18x32x128xbf16, #tpu.memory_space<vmem>>, vector<2x18x8x128xbf16>
    tpu.vector_store %arg8[%c0_20, %c0_21, %c24, %c0_22], %14 {strides = array<i32>} : memref<2x18x32x128xbf16, #tpu.memory_space<vmem>>, vector<2x18x8x128xbf16>,
    %c0_23 = arith.constant 0 : index
    %c1 = arith.constant 1 : index
    %c8 = arith.constant 8 : index
    %c0_24 = arith.constant 0 : index
    %17 = vector.load %arg8[%c0_23, %c1, %c8, %c0_24] : memref<2x18x32x128xbf16, #tpu.memory_space<vmem>>, vector<2x16x16x128xbf16>
    tpu.vector_store %arg8[%c0_23, %c1, %c8, %c0_24], %10 {strides = array<i32>} : memref<2x18x32x128xbf16, #tpu.memory_space<vmem>>, vector<2x16x16x128xbf16>,
    %c0_25 = arith.constant 0 : index
    %c0_26 = arith.constant 0 : index
    %18 = vector.load %arg5[%c0_25, %c0_26] : memref<32x128xbf16, #tpu.memory_space<vmem>>, vector<32x128xbf16>
    %cst_27 = arith.constant dense<0.000000e+00> : vector<512x128xf32>
    %19 = tpu.matmul %1, %18, %cst_27 {dimension_numbers = #tpu.dot_dimension_numbers<[1], [0], [0], [1], [0, 0, 1, 1], [], []>} : vector<512x32xbf16>, vector<32x128xbf16>, vector<512x128xf32> -> vector<512x128xf32>
    %c0_28 = arith.constant 0 : index
    %c0_29 = arith.constant 0 : index
    %c7 = arith.constant 7 : index
    %c0_30 = arith.constant 0 : index
    %20 = vector.load %arg8[%c0_28, %c0_29, %c7, %c0_30] : memref<2x18x32x128xbf16, #tpu.memory_space<vmem>>, vector<2x16x16x128xbf16>
    %21 = vector.shape_cast %20 : vector<2x16x16x128xbf16> to vector<512x128xbf16>
    %c0_31 = arith.constant 0 : index
    %c0_32 = arith.constant 0 : index
    %c0_33 = arith.constant 0 : index
    %22 = vector.load %arg4[%c0_31, %c0_32, %c0_33] : memref<9x128x128xbf16, #tpu.memory_space<vmem>>, vector<1x128x128xbf16>
    %23 = vector.shape_cast %22 : vector<1x128x128xbf16> to vector<128x128xbf16>
    %cst_34 = arith.constant dense<0.000000e+00> : vector<512x128xf32>
    %24 = tpu.matmul %21, %23, %cst_34 {dimension_numbers = #tpu.dot_dimension_numbers<[1], [0], [0], [1], [0, 0, 1, 1], [], []>} : vector<512x128xbf16>, vector<128x128xbf16>, vector<512x128xf32> -> vector<512x128xf32>
    %25 = arith.addf %19, %24 : vector<512x128xf32>
    %c0_35 = arith.constant 0 : index
    %c0_36 = arith.constant 0 : index
    %c8_37 = arith.constant 8 : index
    %c0_38 = arith.constant 0 : index
    %26 = vector.load %arg8[%c0_35, %c0_36, %c8_37, %c0_38] : memref<2x18x32x128xbf16, #tpu.memory_space<vmem>>, vector<2x16x16x128xbf16>
    %27 = vector.shape_cast %26 : vector<2x16x16x128xbf16> to vector<512x128xbf16>
    %c1_39 = arith.constant 1 : index
    %c0_40 = arith.constant 0 : index
    %c0_41 = arith.constant 0 : index
    %28 = vector.load %arg4[%c1_39, %c0_40, %c0_41] : memref<9x128x128xbf16, #tpu.memory_space<vmem>>, vector<1x128x128xbf16>
    %29 = vector.shape_cast %28 : vector<1x128x128xbf16> to vector<128x128xbf16>
    %cst_42 = arith.constant dense<0.000000e+00> : vector<512x128xf32>
    %30 = tpu.matmul %27, %29, %cst_42 {dimension_numbers = #tpu.dot_dimension_numbers<[1], [0], [0], [1], [0, 0, 1, 1], [], []>} : vector<512x128xbf16>, vector<128x128xbf16>, vector<512x128xf32> -> vector<512x128xf32>
    %31 = arith.addf %25, %30 : vector<512x128xf32>
    %c0_43 = arith.constant 0 : index
    %c0_44 = arith.constant 0 : index
    %c9 = arith.constant 9 : index
    %c0_45 = arith.constant 0 : index
    %32 = vector.load %arg8[%c0_43, %c0_44, %c9, %c0_45] : memref<2x18x32x128xbf16, #tpu.memory_space<vmem>>, vector<2x16x16x128xbf16>
    %33 = vector.shape_cast %32 : vector<2x16x16x128xbf16> to vector<512x128xbf16>
    %c2 = arith.constant 2 : index
    %c0_46 = arith.constant 0 : index
    %c0_47 = arith.constant 0 : index
    %34 = vector.load %arg4[%c2, %c0_46, %c0_47] : memref<9x128x128xbf16, #tpu.memory_space<vmem>>, vector<1x128x128xbf16>
    %35 = vector.shape_cast %34 : vector<1x128x128xbf16> to vector<128x128xbf16>
    %cst_48 = arith.constant dense<0.000000e+00> : vector<512x128xf32>
    %36 = tpu.matmul %33, %35, %cst_48 {dimension_numbers = #tpu.dot_dimension_numbers<[1], [0], [0], [1], [0, 0, 1, 1], [], []>} : vector<512x128xbf16>, vector<128x128xbf16>, vector<512x128xf32> -> vector<512x128xf32>
    %37 = arith.addf %31, %36 : vector<512x128xf32>
    %c0_49 = arith.constant 0 : index
    %c1_50 = arith.constant 1 : index
    %c7_51 = arith.constant 7 : index
    %c0_52 = arith.constant 0 : index
    %38 = vector.load %arg8[%c0_49, %c1_50, %c7_51, %c0_52] : memref<2x18x32x128xbf16, #tpu.memory_space<vmem>>, vector<2x16x16x128xbf16>
    %39 = vector.shape_cast %38 : vector<2x16x16x128xbf16> to vector<512x128xbf16>
    %c3 = arith.constant 3 : index
    %c0_53 = arith.constant 0 : index
    %c0_54 = arith.constant 0 : index
    %40 = vector.load %arg4[%c3, %c0_53, %c0_54] : memref<9x128x128xbf16, #tpu.memory_space<vmem>>, vector<1x128x128xbf16>
    %41 = vector.shape_cast %40 : vector<1x128x128xbf16> to vector<128x128xbf16>
    %cst_55 = arith.constant dense<0.000000e+00> : vector<512x128xf32>
    %42 = tpu.matmul %39, %41, %cst_55 {dimension_numbers = #tpu.dot_dimension_numbers<[1], [0], [0], [1], [0, 0, 1, 1], [], []>} : vector<512x128xbf16>, vector<128x128xbf16>, vector<512x128xf32> -> vector<512x128xf32>
    %43 = arith.addf %37, %42 : vector<512x128xf32>
    %c0_56 = arith.constant 0 : index
    %c1_57 = arith.constant 1 : index
    %c8_58 = arith.constant 8 : index
    %c0_59 = arith.constant 0 : index
    %44 = vector.load %arg8[%c0_56, %c1_57, %c8_58, %c0_59] : memref<2x18x32x128xbf16, #tpu.memory_space<vmem>>, vector<2x16x16x128xbf16>
    %45 = vector.shape_cast %44 : vector<2x16x16x128xbf16> to vector<512x128xbf16>
    %c4 = arith.constant 4 : index
    %c0_60 = arith.constant 0 : index
    %c0_61 = arith.constant 0 : index
    %46 = vector.load %arg4[%c4, %c0_60, %c0_61] : memref<9x128x128xbf16, #tpu.memory_space<vmem>>, vector<1x128x128xbf16>
    %47 = vector.shape_cast %46 : vector<1x128x128xbf16> to vector<128x128xbf16>
    %cst_62 = arith.constant dense<0.000000e+00> : vector<512x128xf32>
    %48 = tpu.matmul %45, %47, %cst_62 {dimension_numbers = #tpu.dot_dimension_numbers<[1], [0], [0], [1], [0, 0, 1, 1], [], []>} : vector<512x128xbf16>, vector<128x128xbf16>, vector<512x128xf32> -> vector<512x128xf32>
    %49 = arith.addf %43, %48 : vector<512x128xf32>
    %c0_63 = arith.constant 0 : index
    %c1_64 = arith.constant 1 : index
    %c9_65 = arith.constant 9 : index
    %c0_66 = arith.constant 0 : index
    %50 = vector.load %arg8[%c0_63, %c1_64, %c9_65, %c0_66] : memref<2x18x32x128xbf16, #tpu.memory_space<vmem>>, vector<2x16x16x128xbf16>
    %51 = vector.shape_cast %50 : vector<2x16x16x128xbf16> to vector<512x128xbf16>
    %c5 = arith.constant 5 : index
    %c0_67 = arith.constant 0 : index
    %c0_68 = arith.constant 0 : index
    %52 = vector.load %arg4[%c5, %c0_67, %c0_68] : memref<9x128x128xbf16, #tpu.memory_space<vmem>>, vector<1x128x128xbf16>
    %53 = vector.shape_cast %52 : vector<1x128x128xbf16> to vector<128x128xbf16>
    %cst_69 = arith.constant dense<0.000000e+00> : vector<512x128xf32>
    %54 = tpu.matmul %51, %53, %cst_69 {dimension_numbers = #tpu.dot_dimension_numbers<[1], [0], [0], [1], [0, 0, 1, 1], [], []>} : vector<512x128xbf16>, vector<128x128xbf16>, vector<512x128xf32> -> vector<512x128xf32>
    %55 = arith.addf %49, %54 : vector<512x128xf32>
    %c0_70 = arith.constant 0 : index
    %c2_71 = arith.constant 2 : index
    %c7_72 = arith.constant 7 : index
    %c0_73 = arith.constant 0 : index
    %56 = vector.load %arg8[%c0_70, %c2_71, %c7_72, %c0_73] : memref<2x18x32x128xbf16, #tpu.memory_space<vmem>>, vector<2x16x16x128xbf16>
    %57 = vector.shape_cast %56 : vector<2x16x16x128xbf16> to vector<512x128xbf16>
    %c6 = arith.constant 6 : index
    %c0_74 = arith.constant 0 : index
    %c0_75 = arith.constant 0 : index
    %58 = vector.load %arg4[%c6, %c0_74, %c0_75] : memref<9x128x128xbf16, #tpu.memory_space<vmem>>, vector<1x128x128xbf16>
    %59 = vector.shape_cast %58 : vector<1x128x128xbf16> to vector<128x128xbf16>
    %cst_76 = arith.constant dense<0.000000e+00> : vector<512x128xf32>
    %60 = tpu.matmul %57, %59, %cst_76 {dimension_numbers = #tpu.dot_dimension_numbers<[1], [0], [0], [1], [0, 0, 1, 1], [], []>} : vector<512x128xbf16>, vector<128x128xbf16>, vector<512x128xf32> -> vector<512x128xf32>
    %61 = arith.addf %55, %60 : vector<512x128xf32>
    %c0_77 = arith.constant 0 : index
    %c2_78 = arith.constant 2 : index
    %c8_79 = arith.constant 8 : index
    %c0_80 = arith.constant 0 : index
    %62 = vector.load %arg8[%c0_77, %c2_78, %c8_79, %c0_80] : memref<2x18x32x128xbf16, #tpu.memory_space<vmem>>, vector<2x16x16x128xbf16>
    %63 = vector.shape_cast %62 : vector<2x16x16x128xbf16> to vector<512x128xbf16>
    %c7_81 = arith.constant 7 : index
    %c0_82 = arith.constant 0 : index
    %c0_83 = arith.constant 0 : index
    %64 = vector.load %arg4[%c7_81, %c0_82, %c0_83] : memref<9x128x128xbf16, #tpu.memory_space<vmem>>, vector<1x128x128xbf16>
    %65 = vector.shape_cast %64 : vector<1x128x128xbf16> to vector<128x128xbf16>
    %cst_84 = arith.constant dense<0.000000e+00> : vector<512x128xf32>
    %66 = tpu.matmul %63, %65, %cst_84 {dimension_numbers = #tpu.dot_dimension_numbers<[1], [0], [0], [1], [0, 0, 1, 1], [], []>} : vector<512x128xbf16>, vector<128x128xbf16>, vector<512x128xf32> -> vector<512x128xf32>
    %67 = arith.addf %61, %66 : vector<512x128xf32>
    %c0_85 = arith.constant 0 : index
    %c2_86 = arith.constant 2 : index
    %c9_87 = arith.constant 9 : index
    %c0_88 = arith.constant 0 : index
    %68 = vector.load %arg8[%c0_85, %c2_86, %c9_87, %c0_88] : memref<2x18x32x128xbf16, #tpu.memory_space<vmem>>, vector<2x16x16x128xbf16>
    %69 = vector.shape_cast %68 : vector<2x16x16x128xbf16> to vector<512x128xbf16>
    %c8_89 = arith.constant 8 : index
    %c0_90 = arith.constant 0 : index
    %c0_91 = arith.constant 0 : index
    %70 = vector.load %arg4[%c8_89, %c0_90, %c0_91] : memref<9x128x128xbf16, #tpu.memory_space<vmem>>, vector<1x128x128xbf16>
    %71 = vector.shape_cast %70 : vector<1x128x128xbf16> to vector<128x128xbf16>
    %cst_92 = arith.constant dense<0.000000e+00> : vector<512x128xf32>
    %72 = tpu.matmul %69, %71, %cst_92 {dimension_numbers = #tpu.dot_dimension_numbers<[1], [0], [0], [1], [0, 0, 1, 1], [], []>} : vector<512x128xbf16>, vector<128x128xbf16>, vector<512x128xf32> -> vector<512x128xf32>
    %73 = arith.addf %67, %72 : vector<512x128xf32>
    %74 = vector.shape_cast %73 : vector<512x128xf32> to vector<16x2x16x128xf32>
    %75 = vector.extract_strided_slice %74 {offsets = [0, 0, 0, 0], sizes = [16, 1, 16, 128], strides = [1, 1, 1, 1]} : vector<16x2x16x128xf32> to vector<16x1x16x128xf32>
    %76 = vector.shape_cast %75 : vector<16x1x16x128xf32> to vector<16x16x128xf32>
    %77 = vector.extract_strided_slice %74 {offsets = [0, 1, 0, 0], sizes = [16, 1, 16, 128], strides = [1, 1, 1, 1]} : vector<16x2x16x128xf32> to vector<16x1x16x128xf32>
    %78 = vector.shape_cast %77 : vector<16x1x16x128xf32> to vector<16x16x128xf32>
    %79 = arith.addf %76, %78 : vector<16x16x128xf32>
    %c0_93 = arith.constant 0 : index
    %c0_94 = arith.constant 0 : index
    %c0_95 = arith.constant 0 : index
    %80 = vector.load %arg9[%c0_93, %c0_94, %c0_95] : memref<16x16x128xf32, #tpu.memory_space<vmem>>, vector<16x16x128xf32>
    tpu.vector_store %arg9[%c0_93, %c0_94, %c0_95], %79 {strides = array<i32>} : memref<16x16x128xf32, #tpu.memory_space<vmem>>, vector<16x16x128xf32>,
    %c0_96 = arith.constant 0 : index
    %c0_97 = arith.constant 0 : index
    %c0_98 = arith.constant 0 : index
    %81 = tpu.strided_load %arg9[%c0_96, %c0_97, %c0_98] {strides = array<i32: 1, 2, 1>} : memref<16x16x128xf32, #tpu.memory_space<vmem>>, vector<16x8x128xf32>
    %c0_99 = arith.constant 0 : index
    %c1_100 = arith.constant 1 : index
    %c0_101 = arith.constant 0 : index
    %82 = tpu.strided_load %arg9[%c0_99, %c1_100, %c0_101] {strides = array<i32: 1, 2, 1>} : memref<16x16x128xf32, #tpu.memory_space<vmem>>, vector<16x8x128xf32>
    %83 = arith.addf %81, %82 : vector<16x8x128xf32>
    %c0_102 = arith.constant 0 : index
    %c0_103 = arith.constant 0 : index
    %84 = vector.load %arg6[%c0_102, %c0_103] : memref<1x128xf32, #tpu.memory_space<vmem>>, vector<1x128xf32>
    %85 = vector.shape_cast %84 : vector<1x128xf32> to vector<1x1x128xf32>
    %86 = vector.broadcast %85 : vector<1x1x128xf32> to vector<16x8x128xf32>
    %87 = arith.addf %83, %86 : vector<16x8x128xf32>
    %88 = vector.shape_cast %87 : vector<16x8x128xf32> to vector<2x8x8x128xf32>
    %c0_104 = arith.constant 0 : index
    %c0_105 = arith.constant 0 : index
    %c0_106 = arith.constant 0 : index
    %c0_107 = arith.constant 0 : index
    %89 = vector.load %arg7[%c0_104, %c0_105, %c0_106, %c0_107] : memref<2x8x8x128xf32, #tpu.memory_space<vmem>>, vector<2x8x8x128xf32>
    tpu.vector_store %arg7[%c0_104, %c0_105, %c0_106, %c0_107], %88 {strides = array<i32>} : memref<2x8x8x128xf32, #tpu.memory_space<vmem>>, vector<2x8x8x128xf32>,
    return
  }
  func.func @transform_0(%arg0: i32) -> (i32, i32, i32) {
    %c0_i32 = arith.constant 0 : i32
    %c0_i32_0 = arith.constant 0 : i32
    %c0_i32_1 = arith.constant 0 : i32
    return %arg0, %c0_i32, %c0_i32_0 : i32, i32, i32
  }
  func.func @transform_1(%arg0: i32) -> (i32, i32) {
    %c0_i32 = arith.constant 0 : i32
    %c0_i32_0 = arith.constant 0 : i32
    %c0_i32_1 = arith.constant 0 : i32
    return %c0_i32, %c0_i32_0 : i32, i32
  }
  func.func @transform_2(%arg0: i32) -> (i32, i32) {
    %c0_i32 = arith.constant 0 : i32
    %c0_i32_0 = arith.constant 0 : i32
    %c0_i32_1 = arith.constant 0 : i32
    return %c0_i32, %c0_i32_0 : i32, i32
  }
  func.func @transform_3(%arg0: i32) -> (i32, i32, i32) {
    %c0_i32 = arith.constant 0 : i32
    %c0_i32_0 = arith.constant 0 : i32
    %c0_i32_1 = arith.constant 0 : i32
    %c0_i32_2 = arith.constant 0 : i32
    return %c0_i32, %c0_i32_0, %c0_i32_1 : i32, i32, i32
  }
  func.func @transform_4(%arg0: i32) -> (i32, i32) {
    %c0_i32 = arith.constant 0 : i32
    %c0_i32_0 = arith.constant 0 : i32
    %c0_i32_1 = arith.constant 0 : i32
    return %c0_i32, %c0_i32_0 : i32, i32
  }
  func.func @transform_5(%arg0: i32) -> (i32, i32) {
    %c0_i32 = arith.constant 0 : i32
    %c0_i32_0 = arith.constant 0 : i32
    %c0_i32_1 = arith.constant 0 : i32
    return %c0_i32, %c0_i32_0 : i32, i32
  }
  func.func @transform_6(%arg0: i32) -> (i32, i32, i32, i32) {
    %c0_i32 = arith.constant 0 : i32
    %c0_i32_0 = arith.constant 0 : i32
    %c0_i32_1 = arith.constant 0 : i32
    %c0_i32_2 = arith.constant 0 : i32
    return %arg0, %c0_i32, %c0_i32_0, %c0_i32_1 : i32, i32, i32, i32
  }
}

</mosaic_0001>

<bundles_post_ra>
// kernel: tpu_custom_call.1
= control target key start
LH: loop header
LB: loop body
LE: loop exit
PB: predicated region body
PF: predicated region fallthrough
CT: control target
= control target key end

     0   :  { %11 = vsyncpa [#allocation5], 0  ;;  %s18779_s0 = inlined_call_operand.vmem [shape: bf16[2,256,32], index: 0, kind: input, shape index: {}]   ;;  %s18780_s1 = inlined_call_operand.vmem [shape: bf16[32,128], index: 1, kind: input, shape index: {}]   ;;  %s18781_s2 = inlined_call_operand.vmem [shape: f32[1,128], index: 2, kind: input, shape index: {}]   ;;  %s18782_s3 = inlined_call_operand.hbm [shape: bf16[9,128,128], index: 3, kind: input, shape index: {}]   ;;  %s18783_s4 = inlined_call_operand.vmem [shape: bf16[32,128], index: 4, kind: input, shape index: {}]   ;;  %s18784_s5 = inlined_call_operand.vmem [shape: f32[1,128], index: 5, kind: input, shape index: {}]   ;;  %s18785_s6 = inlined_call_operand.hbm [shape: f32[2,8,8,128], index: 6, kind: output, shape index: {}]  }
   0x1   :  { %12 = vsyncpa [#allocation6], 0  ;;  %s14051_s21 = smov [#allocation4]  }
   0x2   :  { %s24_s22 = sshll.u32 %s14051_s21, 4  ;;  %s25_s22 = int_to_ptr.vmem [resolvable:$true] %s24_s22 }
   0x3   :  { %s14015_s23 = scalar_lea.vmem %s25_s22, 9216  ;;  %p14020_p1 = scmp.lt.s32.totalorder %s25_s22, %s25_s22 }
   0x4   :  { %p14016_p0 = scmp.ne.s32.totalorder %s25_s22, %s14015_s23  ;;  %p14021_p2 = scmp.lt.s32.totalorder %s14015_s23, %s14015_s23 }
   0x6   :  { %p14022_p3 = por %p14021_p2, %p14020_p1 }
   0x8   :  { %p14023_p4 = pnand %p14022_p3, %p14016_p0 }
   0xa   :  { %14026 = shalt.err (!%p14023_p4)
}
   0xb   :  { %s14052_s24 = smov 64   ;;  %s14053_s25 = smov 4  }
   0xc   :  { %30 = dma.hbm_to_vmem [thread:$0]  %s18782_s3, 9216, %s25_s22, [#allocation5], %s14052_s24, %s14052_s24, %s14053_s25  }
   0xd   :  { %14047 = dma.done.wait [#allocation5], 9216  }
   0xe   :  { %14048 = vsyncadd [#allocation5], 4294958080  ;;  %v13671_v0 = vld [vmem:[%s18780_s1 + $0x8] sm:$0xff]   ;;  %v13672_v1 = vld [vmem:[%s18780_s1] sm:$0xff]   ;;  %vm286_vm0 = vcmask 261120   ;;  %v14054_v44 = vmov 0  }
   0xf   :  { %12804 = vmatprep.subr.bf16.mxu0 %v13671_v0  ;;  %v14105_v2 = vld [vmem:[%s18779_s0] sm:$0xff]   ;;  %13660 = vmatprep.subr.bf16.mxu1 %v13671_v0  ;;  %v14112_v3 = vld [vmem:[%s18779_s0 + $0x8] sm:$0xff]   ;;  %v14117_v4 = vld [vmem:[%s18779_s0 + $0x10] sm:$0xff]   ;;  %768 = vst [vmem:[#allocation2] sm:$0xf] %v14054_v44 }
  0x10   :  { %12805 = vmatpush3.bf16.msra.mxu0 %v13671_v0  ;;  %13662 = vmatpush3.bf16.msra.mxu1 %v13671_v0  ;;  %v14126_v5 = vld [vmem:[%s18779_s0 + $0x18] sm:$0xff]   ;;  %v14131_v6 = vld [vmem:[%s18779_s0 + $0x20] sm:$0xff]   ;;  %v14141_v8 = vld [vmem:[%s18779_s0 + $0x88] sm:$0xff]   ;;  %769 = vst [vmem:[#allocation2 + $0x4] sm:$0xf] %v14054_v44 }
  0x11   :  { %12806 = vmatprep.subr.bf16.mxu0 %v13672_v1  ;;  %12808 = vmatprep.mubr.msk.bf16.mxu0 %vm286_vm0, %v14105_v2  ;;  %v14136_v7 = vld [vmem:[%s18779_s0 + $0x80] sm:$0xff]   ;;  %v14154_v9 = vld [vmem:[%s18779_s0 + $0x90] sm:$0xff]   ;;  %v14159_v10 = vld [vmem:[%s18779_s0 + $0x28] sm:$0xff]   ;;  %770 = vst [vmem:[#allocation2 + $0x8] sm:$0xf] %v14054_v44 }
  0x12   :  { %13661 = vmatprep.subr.bf16.mxu1 %v13672_v1  ;;  %12840 = vmatprep.mubr.msk.bf16.mxu1 %vm286_vm0, %v14136_v7  ;;  %v14164_v11 = vld [vmem:[%s18779_s0 + $0x30] sm:$0xff]   ;;  %v14171_v12 = vld [vmem:[%s18779_s0 + $0x98] sm:$0xff]   ;;  %v14176_v13 = vld [vmem:[%s18779_s0 + $0xa0] sm:$0xff]   ;;  %771 = vst [vmem:[#allocation2 + $0xc] sm:$0xf] %v14054_v44 }
  0x13   :  { %v14187_v14 = vld [vmem:[%s18779_s0 + $0x38] sm:$0xff]   ;;  %v13699_v15 = vld [vmem:[%s18783_s4 + $0x8] sm:$0xff]   ;;  %v13700_v16 = vld [vmem:[%s18783_s4] sm:$0xff]   ;;  %772 = vst [vmem:[#allocation2 + $0x120] sm:$0xf] %v14054_v44 }
  0x14   :  { %12807 = vmatpush3.bf16.msra.mxu0 %v13672_v1  ;;  %13663 = vmatpush3.bf16.msra.mxu1 %v13672_v1  ;;  %v14200_v17 = vld [vmem:[%s18779_s0 + $0x40] sm:$0xff]   ;;  %v14205_v18 = vld [vmem:[%s18779_s0 + $0xa8] sm:$0xff]   ;;  %v14210_v19 = vld [vmem:[%s18779_s0 + $0xb0] sm:$0xff]   ;;  %773 = vst [vmem:[#allocation2 + $0x124] sm:$0xf] %v14054_v44  ;;  %v18901_v1 = vmov 0 }
  0x15   :  { %12952 = vmatprep.subr.bf16.mxu0 %v13699_v15  ;;  %v14221_v20 = vld [vmem:[%s18779_s0 + $0x48] sm:$0xff]   ;;  %v13707_v21 = vld [vmem:[#allocation4 + $0x38] sm:$0xff]   ;;  %v14228_v22 = vld [vmem:[%s18779_s0 + $0x50] sm:$0xff]   ;;  %774 = vst [vmem:[#allocation2 + $0x128] sm:$0xf] %v14054_v44 }
  0x16   :  { %v13708_v23 = vld [vmem:[#allocation4 + $0x30] sm:$0xff]   ;;  %v14233_v24 = vld [vmem:[%s18779_s0 + $0xb8] sm:$0xff]   ;;  %12872 = vmatprep.subr.bf16.mxu1 %v13707_v21  ;;  %v14238_v25 = vld [vmem:[%s18779_s0 + $0xc0] sm:$0xff]   ;;  %775 = vst [vmem:[#allocation2 + $0x12c] sm:$0xf] %v14054_v44 }
  0x17   :  { %12809 = vmatmul.mubr.msk.bf16.vlgmr.msra.gmra.mxu0 %vm286_vm0, %v14112_v3  ;;  %12841 = vmatmul.mubr.msk.bf16.vlgmr.msra.gmra.mxu1 %vm286_vm0, %v14141_v8  ;;  %v13709_v26 = vld [vmem:[#allocation4 + $0x28] sm:$0xff]   ;;  %v13710_v27 = vld [vmem:[#allocation4 + $0x20] sm:$0xff]   ;;  %v14249_v28 = vld [vmem:[%s18779_s0 + $0x58] sm:$0xff]   ;;  %777 = vst [vmem:[#allocation2 + $0x110] sm:$0xf] %v14054_v44 }
  0x18   :  { %12812 = vmatprep.mubr.msk.bf16.mxu0 %vm286_vm0, %v14117_v4  ;;  %12844 = vmatprep.mubr.msk.bf16.mxu1 %vm286_vm0, %v14154_v9  ;;  %v14256_v29 = vld [vmem:[%s18779_s0 + $0x60] sm:$0xff]   ;;  %v14261_v30 = vld [vmem:[%s18779_s0 + $0xc8] sm:$0xff]   ;;  %v14266_v31 = vld [vmem:[%s18779_s0 + $0xd0] sm:$0xff]   ;;  %778 = vst [vmem:[#allocation2 + $0x114] sm:$0xf] %v14054_v44 }
  0x19   :  { %12953 = vmatpush3.bf16.msra.mxu0 %v13699_v15  ;;  %12873 = vmatpush3.bf16.msra.mxu1 %v13707_v21  ;;  %v13711_v32 = vld [vmem:[#allocation4 + $0x18] sm:$0xff]   ;;  %v14277_v33 = vld [vmem:[%s18779_s0 + $0x68] sm:$0xff]   ;;  %v14284_v34 = vld [vmem:[%s18779_s0 + $0x70] sm:$0xff]   ;;  %779 = vst [vmem:[#allocation2 + $0x118] sm:$0xf] %v14054_v44 }
  0x1a   :  { %12954 = vmatprep.subr.bf16.mxu0 %v13700_v16  ;;  %12874 = vmatprep.subr.bf16.mxu1 %v13708_v23  ;;  %v14289_v35 = vld [vmem:[%s18779_s0 + $0xd8] sm:$0xff]   ;;  %v14294_v36 = vld [vmem:[%s18779_s0 + $0xe0] sm:$0xff]   ;;  %v14312_v38 = vld [vmem:[%s18779_s0 + $0xe8] sm:$0xff]   ;;  %780 = vst [vmem:[#allocation2 + $0x11c] sm:$0xf] %v14054_v44 }
  0x1b   :  { %v14305_v37 = vld [vmem:[%s18779_s0 + $0x78] sm:$0xff]   ;;  %v14317_v39 = vld [vmem:[%s18779_s0 + $0xf0] sm:$0xff]   ;;  %v14338_v43 = vld [vmem:[#allocation4 + $0xa8] sm:$0xff]   ;;  %781 = vst [vmem:[#allocation2 + $0x230] sm:$0xf] %v14054_v44 }
  0x1c   :  { %v14330_v40 = vld [vmem:[%s18779_s0 + $0xf8] sm:$0xff]   ;;  %v13713_v42 = vld [vmem:[#allocation4 + $0xb0] sm:$0xff]   ;;  %782 = vst [vmem:[#allocation2 + $0x234] sm:$0xf] %v14054_v44  ;;  %783 = vst [vmem:[#allocation2 + $0x238] sm:$0xf] %v14054_v44 }
  0x1d   :  { %12955 = vmatpush3.bf16.msra.mxu0 %v13700_v16  ;;  %12875 = vmatpush3.bf16.msra.mxu1 %v13708_v23  ;;  %v13712_v41 = vld [vmem:[#allocation4 + $0xb8] sm:$0xff]   ;;  %784 = vst [vmem:[#allocation2 + $0x23c] sm:$0xf] %v14054_v44  ;;  %786 = vst [vmem:[#allocation2 + $0x10] sm:$0xf] %v14054_v44  ;;  %v13716_v45 = vld [vmem:[#allocation4 + $0xa0] sm:$0xff]  }
  0x1e   :  { %12876 = vmatprep.subr.bf16.mxu1 %v13709_v26  ;;  %13100 = vmatprep.subr.bf16.mxu0 %v13712_v41  ;;  %787 = vst [vmem:[#allocation2 + $0x20] sm:$0xf] %v14054_v44  ;;  %788 = vst [vmem:[#allocation2 + $0x30] sm:$0xf] %v14054_v44  ;;  %v13714_v46 = vld [vmem:[#allocation4 + $0x10] sm:$0xff]   ;;  %v13718_v47 = vld [vmem:[#allocation4 + $0x98] sm:$0xff]  }
  0x1f   :  { %12813 = vmatmul.mubr.msk.bf16.gmra.mxu0 %vm286_vm0, %v14126_v5  ;;  %12845 = vmatmul.mubr.msk.bf16.gmra.mxu1 %vm286_vm0, %v14171_v12  ;;  %789 = vst [vmem:[#allocation2 + $0x40] sm:$0xf] %v14054_v44  ;;  %790 = vst [vmem:[#allocation2 + $0x50] sm:$0xf] %v14054_v44  ;;  %v13719_v48 = vld [vmem:[#allocation4 + $0x90] sm:$0xff]   ;;  %v13717_v49 = vld [vmem:[#allocation4 + $0x8] sm:$0xff]  }
  0x20   :  { %12816 = vmatprep.mubr.msk.bf16.mxu0 %vm286_vm0, %v14131_v6  ;;  %12848 = vmatprep.mubr.msk.bf16.mxu1 %vm286_vm0, %v14176_v13  ;;  %791 = vst [vmem:[#allocation2 + $0x60] sm:$0xf] %v14054_v44  ;;  %792 = vst [vmem:[#allocation2 + $0x70] sm:$0xf] %v14054_v44  ;;  %v1151_v50 = vld [vmem:[#allocation2 + $0x4] sm:$0xf] }
  0x21   :  { %12877 = vmatpush3.bf16.msra.mxu1 %v13709_v26  ;;  %793 = vst [vmem:[#allocation2 + $0x80] sm:$0xf] %v14054_v44  ;;  %794 = vst [vmem:[#allocation2 + $0x90] sm:$0xf] %v14054_v44  ;;  %v1152_v51 = vld [vmem:[#allocation2 + $0x8] sm:$0xf] }
  0x22   :  { %12878 = vmatprep.subr.bf16.mxu1 %v13710_v27  ;;  %795 = vst [vmem:[#allocation2 + $0xa0] sm:$0xf] %v14054_v44  ;;  %796 = vst [vmem:[#allocation2 + $0xb0] sm:$0xf] %v14054_v44  ;;  %v1255_v52 = vshrl.u32 %v1151_v50, 16  ;;  %v1264_v53 = vshrl.u32 %v1152_v51, 16 }
  0x23   :  { %797 = vst [vmem:[#allocation2 + $0xc0] sm:$0xf] %v14054_v44  ;;  %798 = vst [vmem:[#allocation2 + $0xd0] sm:$0xf] %v14054_v44  ;;  %vm1246_vm1 = vsmask.f32 256 }
  0x24   :  { %799 = vst [vmem:[#allocation2 + $0xe0] sm:$0xf] %v14054_v44  ;;  %800 = vst [vmem:[#allocation2 + $0xf0] sm:$0xf] %v14054_v44  ;;  %vm1247_vm2 = vsmask.f32 4368 }
  0x25   :  { %12879 = vmatpush3.bf16.msra.mxu1 %v13710_v27  ;;  %801 = vst [vmem:[#allocation2 + $0x100] sm:$0xf] %v14054_v44  ;;  %804 = vst [vmem:[#allocation2 + $0x130] sm:$0xf] %v14054_v44  ;;  %v13721_v55 = vld [vmem:[#allocation4 + $0x88] sm:$0xff]   ;;  %v1257_v57 = vrot.slane %v1255_v52, 7 }
  0x26   :  { %12880 = vmatprep.subr.bf16.mxu1 %v13711_v32  ;;  %805 = vst [vmem:[#allocation2 + $0x140] sm:$0xf] %v14054_v44  ;;  %806 = vst [vmem:[#allocation2 + $0x150] sm:$0xf] %v14054_v44  ;;  %v1258_v58 = vshll.u32 %v1151_v50, 16  ;;  %v1266_v59 = vrot.slane %v1264_v53, 7 }
  0x27   :  { %12817 = vmatmul.mubr.msk.bf16.gmra.mxu0 %vm286_vm0, %v14159_v10  ;;  %12849 = vmatmul.mubr.msk.bf16.gmra.mxu1 %vm286_vm0, %v14205_v18  ;;  %807 = vst [vmem:[#allocation2 + $0x160] sm:$0xf] %v14054_v44  ;;  %808 = vst [vmem:[#allocation2 + $0x170] sm:$0xf] %v14054_v44  ;;  %v1267_v60 = vshll.u32 %v1152_v51, 16  ;;  %v13720_v61 = vld [vmem:[#allocation4] sm:$0xff]  }
  0x28   :  { %12820 = vmatprep.mubr.msk.bf16.mxu0 %vm286_vm0, %v14164_v11  ;;  %12852 = vmatprep.mubr.msk.bf16.mxu1 %vm286_vm0, %v14210_v19  ;;  %809 = vst [vmem:[#allocation2 + $0x180] sm:$0xf] %v14054_v44  ;;  %810 = vst [vmem:[#allocation2 + $0x190] sm:$0xf] %v14054_v44  ;;  %v1260_v63 = vor.u32 %v1258_v58, %v1257_v57  ;;  %v1262_v0 = vrot.slane %v1257_v57, 4  ;;  %v18904_v26 = vmov 0 }
  0x29   :  { %12881 = vmatpush3.bf16.msra.mxu1 %v13711_v32  ;;  %811 = vst [vmem:[#allocation2 + $0x1a0] sm:$0xf] %v14054_v44  ;;  %812 = vst [vmem:[#allocation2 + $0x1b0] sm:$0xf] %v14054_v44  ;;  %vm3441_vm4 = vsmask.f32 3328 }
  0x2a   :  { %813 = vst [vmem:[#allocation2 + $0x1c0] sm:$0xf] %v14054_v44  ;;  %814 = vst [vmem:[#allocation2 + $0x1d0] sm:$0xf] %v14054_v44  ;;  %12882 = vmatprep.subr.bf16.mxu1 %v13714_v46  ;;  %vm3442_vm5 = vsmask.f32 7440 }
  0x2b   :  { %815 = vst [vmem:[#allocation2 + $0x1e0] sm:$0xf] %v14054_v44  ;;  %816 = vst [vmem:[#allocation2 + $0x1f0] sm:$0xf] %v14054_v44  ;;  %v1171_v52 = vld [vmem:[#allocation2 + $0x70] sm:$0x8] }
  0x2c   :  { %817 = vst [vmem:[#allocation2 + $0x200] sm:$0xf] %v14054_v44  ;;  %818 = vst [vmem:[#allocation2 + $0x210] sm:$0xf] %v14054_v44  ;;  %v1174_v53 = vld [vmem:[#allocation2 + $0x80] sm:$0x8] }
  0x2d   :  { %819 = vst [vmem:[#allocation2 + $0x220] sm:$0xf] %v14054_v44  ;;  %822 = vst [vmem:[#allocation2 + $0x1c] sm:$0xf] %v14054_v44  ;;  %12883 = vmatpush3.bf16.msra.mxu1 %v13714_v46 }
  0x2e   :  { %823 = vst [vmem:[#allocation2 + $0x2c] sm:$0xf] %v14054_v44  ;;  %824 = vst [vmem:[#allocation2 + $0x3c] sm:$0xf] %v14054_v44  ;;  %12884 = vmatprep.subr.bf16.mxu1 %v13717_v49 }
  0x2f   :  { %12821 = vmatmul.mubr.msk.bf16.gmra.mxu0 %vm286_vm0, %v14187_v14  ;;  %12853 = vmatmul.mubr.msk.bf16.gmra.mxu1 %vm286_vm0, %v14233_v24  ;;  %825 = vst [vmem:[#allocation2 + $0x4c] sm:$0xf] %v14054_v44  ;;  %826 = vst [vmem:[#allocation2 + $0x5c] sm:$0xf] %v14054_v44 }
  0x30   :  { %12824 = vmatprep.mubr.msk.bf16.mxu0 %vm286_vm0, %v14200_v17  ;;  %12856 = vmatprep.mubr.msk.bf16.mxu1 %vm286_vm0, %v14238_v25  ;;  %827 = vst [vmem:[#allocation2 + $0x6c] sm:$0xf] %v14054_v44  ;;  %828 = vst [vmem:[#allocation2 + $0x7c] sm:$0xf] %v14054_v44 }
  0x31   :  { %829 = vst [vmem:[#allocation2 + $0x8c] sm:$0xf] %v14054_v44  ;;  %830 = vst [vmem:[#allocation2 + $0x9c] sm:$0xf] %v14054_v44  ;;  %12885 = vmatpush3.bf16.msra.mxu1 %v13717_v49 }
  0x32   :  { %831 = vst [vmem:[#allocation2 + $0xac] sm:$0xf] %v14054_v44  ;;  %832 = vst [vmem:[#allocation2 + $0xbc] sm:$0xf] %v14054_v44  ;;  %12886 = vmatprep.subr.bf16.mxu1 %v13720_v61 }
  0x33   :  { %833 = vst [vmem:[#allocation2 + $0xcc] sm:$0xf] %v14054_v44  ;;  %834 = vst [vmem:[#allocation2 + $0xdc] sm:$0xf] %v14054_v44 }
  0x34   :  { %835 = vst [vmem:[#allocation2 + $0xec] sm:$0xf] %v14054_v44  ;;  %836 = vst [vmem:[#allocation2 + $0xfc] sm:$0xf] %v14054_v44  ;;  %v3350_v32 = vld [vmem:[#allocation2 + $0x1c] sm:$0x1] }
  0x35   :  { %837 = vst [vmem:[#allocation2 + $0x10c] sm:$0xf] %v14054_v44  ;;  %840 = vst [vmem:[#allocation2 + $0x13c] sm:$0xf] %v14054_v44  ;;  %12887 = vmatpush3.bf16.msra.mxu1 %v13720_v61  ;;  %v1180_v61 = vld [vmem:[#allocation2 + $0xa0] sm:$0x8] }
  0x36   :  { %841 = vst [vmem:[#allocation2 + $0x14c] sm:$0xf] %v14054_v44  ;;  %842 = vst [vmem:[#allocation2 + $0x15c] sm:$0xf] %v14054_v44  ;;  %v3362_v46 = vld [vmem:[#allocation2 + $0x5c] sm:$0x1] }
  0x37   :  { %12825 = vmatmul.mubr.msk.bf16.gmra.mxu0 %vm286_vm0, %v14221_v20  ;;  %12857 = vmatmul.mubr.msk.bf16.gmra.mxu1 %vm286_vm0, %v14261_v30  ;;  %843 = vst [vmem:[#allocation2 + $0x16c] sm:$0xf] %v14054_v44  ;;  %844 = vst [vmem:[#allocation2 + $0x17c] sm:$0xf] %v14054_v44  ;;  %v3365_v51 = vld [vmem:[#allocation2 + $0x6c] sm:$0x1] }
  0x38   :  { %12828 = vmatprep.mubr.msk.bf16.mxu0 %vm286_vm0, %v14228_v22  ;;  %12860 = vmatprep.mubr.msk.bf16.mxu1 %vm286_vm0, %v14266_v31  ;;  %845 = vst [vmem:[#allocation2 + $0x18c] sm:$0xf] %v14054_v44  ;;  %846 = vst [vmem:[#allocation2 + $0x19c] sm:$0xf] %v14054_v44  ;;  %v3368_v57 = vld [vmem:[#allocation2 + $0x7c] sm:$0x1] }
  0x39   :  { %847 = vst [vmem:[#allocation2 + $0x1ac] sm:$0xf] %v14054_v44  ;;  %848 = vst [vmem:[#allocation2 + $0x1bc] sm:$0xf] %v14054_v44 }
  0x3a   :  { %849 = vst [vmem:[#allocation2 + $0x1cc] sm:$0xf] %v14054_v44  ;;  %850 = vst [vmem:[#allocation2 + $0x1dc] sm:$0xf] %v14054_v44 }
  0x3b   :  { %851 = vst [vmem:[#allocation2 + $0x1ec] sm:$0xf] %v14054_v44  ;;  %852 = vst [vmem:[#allocation2 + $0x1fc] sm:$0xf] %v14054_v44 }
  0x3c   :  { %853 = vst [vmem:[#allocation2 + $0x20c] sm:$0xf] %v14054_v44  ;;  %854 = vst [vmem:[#allocation2 + $0x21c] sm:$0xf] %v14054_v44 }
  0x3d   :  { %855 = vst [vmem:[#allocation2 + $0x22c] sm:$0xf] %v14054_v44  ;;  %785 = vst [vmem:[#allocation2] sm:$0xf] %v14054_v44 }
  0x3e   :  { %802 = vst [vmem:[#allocation2 + $0x110] sm:$0xf] %v14054_v44  ;;  %803 = vst [vmem:[#allocation2 + $0x120] sm:$0xf] %v14054_v44 }
  0x3f   :  { %12829 = vmatmul.mubr.msk.bf16.gmra.mxu0 %vm286_vm0, %v14249_v28  ;;  %12861 = vmatmul.mubr.msk.bf16.gmra.mxu1 %vm286_vm0, %v14289_v35  ;;  %820 = vst [vmem:[#allocation2 + $0x230] sm:$0xf] %v14054_v44  ;;  %821 = vst [vmem:[#allocation2 + $0xc] sm:$0xf] %v14054_v44 }
  0x40   :  { %12832 = vmatprep.mubr.msk.bf16.mxu0 %vm286_vm0, %v14256_v29  ;;  %12864 = vmatprep.mubr.msk.bf16.mxu1 %vm286_vm0, %v14294_v36  ;;  %838 = vst [vmem:[#allocation2 + $0x11c] sm:$0xf] %v14054_v44  ;;  %839 = vst [vmem:[#allocation2 + $0x12c] sm:$0xf] %v14054_v44 }
  0x41   :  { %856 = vst [vmem:[#allocation2 + $0x23c] sm:$0xf] %v14054_v44  ;;  %vm14444_vm3 = vmor %vm1246_vm1, %vm1247_vm2 }
  0x42   :  { %v18902_v1 = vsel %vm14444_vm3, 4294967295, %v18901_v1  ;;  %vm14499_vm6 = vmor %vm3441_vm4, %vm3442_vm5 }
  0x43   :  { %18903 = vst [vmem:[#allocation10_spill] sm:$0xff] %v18902_v1  ;;  %v18905_v26 = vsel %vm14499_vm6, 4294967295, %v18904_v26 }
  0x44   :  { %v1150_v54 = vld [vmem:[#allocation2] sm:$0x8]  ;;  %18906 = vst [vmem:[#allocation11_spill] sm:$0xff] %v18905_v26 }
  0x45   :  { %v1250_v56 = vshrl.u32 %v1150_v54, 16 }
  0x47   :  { %12833 = vmatmul.mubr.msk.bf16.gmra.mxu0 %vm286_vm0, %v14277_v33  ;;  %12865 = vmatmul.mubr.msk.bf16.gmra.mxu1 %vm286_vm0, %v14312_v38  ;;  %v11821_v62 = vrot.slane %v1250_v56, 11  ;;  %v3584_v56 = vshll.u32 %v3362_v46, 16 }
  0x48   :  { %12836 = vmatprep.mubr.msk.bf16.mxu0 %vm286_vm0, %v14284_v34  ;;  %12868 = vmatprep.mubr.msk.bf16.mxu1 %vm286_vm0, %v14317_v39 }
  0x4f   :  { %12837 = vmatmul.mubr.msk.bf16.gmra.mxu0 %vm286_vm0, %v14305_v37  ;;  %12869 = vmatmul.mubr.msk.bf16.gmra.mxu1 %vm286_vm0, %v14330_v40 }
  0x50   :  { %12956 = vmatprep.mubr.msk.bf16.mxu0 %vm286_vm0, %v14105_v2  ;;  %v1269_v2 = vor.u32 %v1267_v60, %v1266_v59  ;;  %v3371_v60 = vld [vmem:[#allocation2 + $0x8c] sm:$0x1] }
  0x57   :  { %12957 = vmatmul.mubr.msk.bf16.vlgmr.msra.gmra.mxu0 %vm286_vm0, %v14112_v3  ;;  %v13722_v3 = vld [vmem:[#allocation4 + $0x80] sm:$0xff]  }
  0x58   :  { %12960 = vmatprep.mubr.msk.bf16.mxu0 %vm286_vm0, %v14117_v4  ;;  %13101 = vmatpush3.bf16.msra.mxu0 %v13712_v41  ;;  %v1261_v4 = vsel %vm14444_vm3, %v11821_v62, %v1260_v63  ;;  %v14522_v62 = vld [vmem:[%s18781_s2] ss:$0 sm:$0xff] }
  0x59   :  { %13102 = vmatprep.subr.bf16.mxu0 %v13713_v42 }
  0x5c   :  { %13103 = vmatpush3.bf16.msra.mxu0 %v13713_v42  ;;  %v3488_v42 = vshll.u32 %v3350_v32, 16 }
  0x5d   :  { %13104 = vmatprep.subr.bf16.mxu0 %v14338_v43 }
  0x5f   :  { %12961 = vmatmul.mubr.msk.bf16.gmra.mxu0 %vm286_vm0, %v14126_v5  ;;  %v1270_v5 = vsel %vm14444_vm3, %v1262_v0, %v1269_v2  ;;  %v3608_v0 = vshll.u32 %v3365_v51, 16  ;;  %v1404_v2 = vshrl.u32 %v1171_v52, 16 }
  0x60   :  { %12964 = vmatprep.mubr.msk.bf16.mxu0 %vm286_vm0, %v14131_v6  ;;  %13105 = vmatpush3.bf16.msra.mxu0 %v14338_v43  ;;  %v11853_v6 = vcombine.low %v1261_v4, %v1270_v5 }
  0x61   :  { %13106 = vmatprep.subr.bf16.mxu0 %v13716_v45 }
  0x62   :  { %12888 = vmatprep.mubr.bf16.mxu1 %v11853_v6 }
  0x64   :  { %13107 = vmatpush3.bf16.msra.mxu0 %v13716_v45  ;;  %v1165_v45 = vld [vmem:[#allocation2 + $0x50] sm:$0x8] }
  0x65   :  { %13108 = vmatprep.subr.bf16.mxu0 %v13718_v47 }
  0x67   :  { %12965 = vmatmul.mubr.msk.bf16.gmra.mxu0 %vm286_vm0, %v14159_v10  ;;  %v14456_v10 = vld [vmem:[#allocation4 + $0x78] sm:$0xff]  }
  0x68   :  { %12968 = vmatprep.mubr.msk.bf16.mxu0 %vm286_vm0, %v14164_v11  ;;  %13109 = vmatpush3.bf16.msra.mxu0 %v13718_v47 }
  0x69   :  { %13110 = vmatprep.subr.bf16.mxu0 %v13719_v48  ;;  %13020 = vmatprep.subr.bf16.mxu1 %v14456_v10 }
  0x6c   :  { %13111 = vmatpush3.bf16.msra.mxu0 %v13719_v48 }
  0x6d   :  { %13112 = vmatprep.subr.bf16.mxu0 %v13721_v55 }
  0x6f   :  { %12969 = vmatmul.mubr.msk.bf16.gmra.mxu0 %vm286_vm0, %v14187_v14 }
  0x70   :  { %12972 = vmatprep.mubr.msk.bf16.mxu0 %vm286_vm0, %v14200_v17  ;;  %13113 = vmatpush3.bf16.msra.mxu0 %v13721_v55  ;;  %v14513_v55 = vrot.slane %v3488_v42, 5 }
  0x71   :  { %13114 = vmatprep.subr.bf16.mxu0 %v13722_v3 }
  0x74   :  { %13115 = vmatpush3.bf16.msra.mxu0 %v13722_v3  ;;  %v1426_v3 = vshrl.u32 %v1174_v53, 16  ;;  %v3386_v53 = vld [vmem:[#allocation2 + $0xdc] sm:$0x1] }
  0x77   :  { %12973 = vmatmul.mubr.msk.bf16.gmra.mxu0 %vm286_vm0, %v14221_v20 }
  0x78   :  { %12976 = vmatprep.mubr.msk.bf16.mxu0 %vm286_vm0, %v14228_v22 }
  0x7f   :  { %12977 = vmatmul.mubr.msk.bf16.gmra.mxu0 %vm286_vm0, %v14249_v28 }
  0x80   :  { %12980 = vmatprep.mubr.msk.bf16.mxu0 %vm286_vm0, %v14256_v29 }
  0x87   :  { %12981 = vmatmul.mubr.msk.bf16.gmra.mxu0 %vm286_vm0, %v14277_v33  ;;  %v3353_v33 = vld [vmem:[#allocation2 + $0x2c] sm:$0x1] }
  0x88   :  { %12984 = vmatprep.mubr.msk.bf16.mxu0 %vm286_vm0, %v14284_v34  ;;  %v1159_v34 = vld [vmem:[#allocation2 + $0x30] sm:$0x8]  ;;  %v3512_v43 = vshll.u32 %v3353_v33, 16 }
  0x89   :  { %v1316_v47 = vshrl.u32 %v1159_v34, 16 }
  0x8a   :  { %v14515_v58 = vrot.slane %v3512_v43, 5  ;;  %v1189_v43 = vld [vmem:[#allocation2 + $0xd0] sm:$0x8] }
  0x8b   :  { %v14524_v63 = vrot.slane %v1316_v47, 11 }
  0x8f   :  { %12985 = vmatmul.mubr.msk.bf16.gmra.mxu0 %vm286_vm0, %v14305_v37  ;;  %v3359_v37 = vld [vmem:[#allocation2 + $0x4c] sm:$0x1] }
  0x90   :  { %12988 = vmatprep.mubr.msk.bf16.mxu0 %vm286_vm0, %v14136_v7  ;;  %v3345_v7 = vld [vmem:[#allocation2 + $0x4] sm:$0xf]  ;;  %v3560_v49 = vshll.u32 %v3359_v37, 16 }
  0x91   :  { %v3448_v11 = vshll.u32 %v3345_v7, 16 }
  0x92   :  { %v14528_v5 = vrot.slane %v3560_v49, 5 }
  0x93   :  { %v3450_v15 = vrot.slane %v3448_v11, 5 }
  0x97   :  { %12989 = vmatmul.mubr.msk.bf16.gmra.mxu0 %vm286_vm0, %v14141_v8  ;;  %v3346_v8 = vld [vmem:[#allocation2 + $0x8] sm:$0xf] }
  0x98   :  { %12992 = vmatprep.mubr.msk.bf16.mxu0 %vm286_vm0, %v14154_v9  ;;  %v3445_v9 = vshrl.u32 %v3345_v7, 16  ;;  %v3632_v7 = vshll.u32 %v3368_v57, 16 }
  0x9a   :  { %v3447_v14 = vrot.slane %v3445_v9, 4 }
  0x9f   :  { %12993 = vmatmul.mubr.msk.bf16.gmra.mxu0 %vm286_vm0, %v14171_v12  ;;  %v3454_v12 = vshll.u32 %v3346_v8, 16 }
  0xa0   :  { %12996 = vmatprep.mubr.msk.bf16.mxu0 %vm286_vm0, %v14176_v13  ;;  %v3458_v13 = vshrl.u32 %v3346_v8, 16  ;;  %v1177_v8 = vld [vmem:[#allocation2 + $0x90] sm:$0x8] }
  0xa1   :  { %v3456_v16 = vrot.slane %v3454_v12, 5  ;;  %v14534_v12 = vrot.slane %v3584_v56, 5 }
  0xa2   :  { %v3460_v17 = vrot.slane %v3458_v13, 4  ;;  %v3656_v13 = vshll.u32 %v3371_v60, 16 }
  0xa4   :  { %v3461_v20 = vor.u32 %v3460_v17, %v3456_v16  ;;  %v3377_v17 = vld [vmem:[#allocation2 + $0xac] sm:$0x1]  ;;  %v14546_v32 = vrot.slane %v3656_v13, 5 }
  0xa5   :  { %v3704_v34 = vshll.u32 %v3377_v17, 16 }
  0xa6   :  { %v3462_v23 = vrot.slane %v3461_v20, 4  ;;  %v14537_v20 = vrot.slane %v3608_v0, 5 }
  0xa7   :  { %12997 = vmatmul.mubr.msk.bf16.gmra.mxu0 %vm286_vm0, %v14205_v18  ;;  %v3347_v18 = vld [vmem:[#allocation2 + $0xc] sm:$0x1]  ;;  %v14556_v57 = vrot.slane %v3704_v34, 5 }
  0xa8   :  { %13000 = vmatprep.mubr.msk.bf16.mxu0 %vm286_vm0, %v14210_v19  ;;  %v3451_v19 = vor.u32 %v3450_v15, %v3447_v14  ;;  %v3464_v21 = vshll.u32 %v3347_v18, 16  ;;  %v1470_v14 = vshrl.u32 %v1180_v61, 16  ;;  %v1186_v18 = vld [vmem:[#allocation2 + $0xc0] sm:$0x8]  ;;  %v1536_v61 = vshrl.u32 %v1189_v43, 16 }
  0xaa   :  { %v3452_v22 = vrot.slane %v3451_v19, 4  ;;  %v14549_v42 = vrot.slane %v1470_v14, 11 }
  0xac   :  { %v3457_v27 = vsel %vm14499_vm6, %v3452_v22, %v3456_v16  ;;  %v3374_v16 = vld [vmem:[#allocation2 + $0x9c] sm:$0x1]  ;;  %v14541_v22 = vrot.slane %v1426_v3, 11 }
  0xad   :  { %v3680_v33 = vshll.u32 %v3374_v16, 16 }
  0xaf   :  { %13001 = vmatmul.mubr.msk.bf16.gmra.mxu0 %vm286_vm0, %v14233_v24  ;;  %v3466_v24 = vrot.slane %v3464_v21, 5  ;;  %v14539_v21 = vrot.slane %v1404_v2, 11  ;;  %v14554_v56 = vrot.slane %v3680_v33, 5 }
  0xb0   :  { %13004 = vmatprep.mubr.msk.bf16.mxu0 %vm286_vm0, %v14238_v25  ;;  %v1153_v25 = vld [vmem:[#allocation2 + $0x10] sm:$0x8] }
  0xb1   :  { %v3467_v28 = vsel %vm14499_vm6, %v3462_v23, %v3466_v24  ;;  %v1272_v29 = vshrl.u32 %v1153_v25, 16  ;;  %v1448_v23 = vshrl.u32 %v1177_v8, 16  ;;  %v1183_v24 = vld [vmem:[#allocation2 + $0xb0] sm:$0x8]  ;;  %v3776_v8 = vshll.u32 %v3386_v53, 16 }
  0xb2   :  { %v1492_v46 = vshrl.u32 %v1183_v24, 16 }
  0xb7   :  { %13005 = vmatmul.mubr.msk.bf16.gmra.mxu0 %vm286_vm0, %v14261_v30  ;;  %v1156_v30 = vld [vmem:[#allocation2 + $0x20] sm:$0x8] }
  0xb8   :  { %13008 = vmatprep.mubr.msk.bf16.mxu0 %vm286_vm0, %v14266_v31  ;;  %v11967_v31 = vcombine.low %v3457_v27, %v3467_v28  ;;  %v1294_v41 = vshrl.u32 %v1156_v30, 16  ;;  %v14544_v28 = vrot.slane %v3632_v7, 5  ;;  %v3383_v30 = vld [vmem:[#allocation2 + $0xcc] sm:$0x1] }
  0xba   :  { %v14511_v54 = vrot.slane %v1294_v41, 11 }
  0xbf   :  { %13009 = vmatmul.mubr.msk.bf16.gmra.mxu0 %vm286_vm0, %v14289_v35  ;;  %v1162_v35 = vld [vmem:[#allocation2 + $0x40] sm:$0x8] }
  0xc0   :  { %13012 = vmatprep.mubr.msk.bf16.mxu0 %vm286_vm0, %v14294_v36  ;;  %v3356_v36 = vld [vmem:[#allocation2 + $0x3c] sm:$0x1]  ;;  %v1338_v44 = vshrl.u32 %v1162_v35, 16  ;;  %v1514_v35 = vshrl.u32 %v1186_v18, 16 }
  0xc1   :  { %v3536_v48 = vshll.u32 %v3356_v36, 16  ;;  %v1192_v36 = vld [vmem:[#allocation2 + $0xe0] sm:$0x8] }
  0xc2   :  { %v14517_v59 = vrot.slane %v1338_v44, 11  ;;  %v1558_v52 = vshrl.u32 %v1192_v36, 16  ;;  %v14558_v60 = vrot.slane %v1514_v35, 11 }
  0xc3   :  { %v14526_v4 = vrot.slane %v3536_v48, 5  ;;  %v3752_v48 = vshll.u32 %v3383_v30, 16 }
  0xc5   :  { %v14566_v17 = vrot.slane %v3752_v48, 5 }
  0xc7   :  { %13013 = vmatmul.mubr.msk.bf16.gmra.mxu0 %vm286_vm0, %v14312_v38  ;;  %v1168_v38 = vld [vmem:[#allocation2 + $0x60] sm:$0x8] }
  0xc8   :  { %13016 = vmatprep.mubr.msk.bf16.mxu0 %vm286_vm0, %v14317_v39  ;;  %v14509_v39 = vrot.slane %v1272_v29, 11  ;;  %v1382_v50 = vshrl.u32 %v1168_v38, 16  ;;  %v3380_v29 = vld [vmem:[#allocation2 + $0xbc] sm:$0x1] }
  0xc9   :  { %v3728_v47 = vshll.u32 %v3380_v29, 16 }
  0xca   :  { %v14530_v6 = vrot.slane %v1382_v50, 11 }
  0xcb   :  { %v14564_v16 = vrot.slane %v3728_v47, 5 }
  0xcf   :  { %13017 = vmatmul.mubr.msk.bf16.gmra.mxu0 %vm286_vm0, %v14330_v40  ;;  %v1360_v40 = vshrl.u32 %v1165_v45, 16  ;;  %v14551_v45 = vrot.slane %v1448_v23, 11 }
  0xd0   :  { %13116 = vmatprep.mubr.bf16.mxu0 %v11967_v31 }
  0xd1   :  { %v14532_v11 = vrot.slane %v1360_v40, 11 }
  0xd7   :  { %v12810_v9 = vpop.f32.mrf.mxu0  ;;  %v12842_v7 = vpop.f32.mrf.mxu1 }
  0xd8   :  { %v426_v15 = vadd.f32 %v12810_v9, %v14522_v62  ;;  %v3389_v9 = vld [vmem:[#allocation2 + $0xec] sm:$0x1]  ;;  %v554_v14 = vadd.f32 %v12842_v7, %v14522_v62 }
  0xd9   :  { %v417_v19 = vpop.f32.mrf.mxu0  ;;  %v545_v24 = vpop.f32.mrf.mxu1  ;;  %v3800_v33 = vshll.u32 %v3389_v9, 16 }
  0xda   :  { %v674_v25 = vmax.f32 %v426_v15, 0.0  ;;  %v418_v27 = vadd.f32 %v14522_v62, %v417_v19  ;;  %v14562_v15 = vrot.slane %v1492_v46, 11  ;;  %v706_v29 = vmax.f32 %v554_v14, 0.0 }
  0xdb   :  { %v12811_v31 = vpop.f32.mrf.mxu0  ;;  %v546_v30 = vadd.f32 %v14522_v62, %v545_v24 }
  0xdc   :  { %v12314_v37 = vpack.c.bf16 %v674_v25, %v674_v25  ;;  %v672_v38 = vmax.f32 %v418_v27, 0.0  ;;  %v429_v41 = vadd.f32 %v12811_v31, %v14522_v62  ;;  %v14569_v25 = vrot.slane %v1558_v52, 11 }
  0xdd   :  { %v420_v44 = vpop.f32.mrf.mxu0  ;;  %v14572_v31 = vrot.slane %v1536_v61, 11  ;;  %v12346_v46 = vpack.c.bf16 %v706_v29, %v706_v29  ;;  %v704_v47 = vmax.f32 %v546_v30, 0.0 }
  0xde   :  { %1084 = vst [vmem:[#allocation2 + $0x24] sm:$0xf] %v12314_v37  ;;  %v12312_v49 = vpack.c.bf16 %v672_v38, %v672_v38  ;;  %v675_v50 = vmax.f32 %v429_v41, 0.0  ;;  %v421_v51 = vadd.f32 %v14522_v62, %v420_v44  ;;  %v12843_v37 = vpop.f32.mrf.mxu1  ;;  %v14575_v38 = vrot.slane %v3776_v8, 5 }
  0xdf   :  { %v12814_v40 = vpop.f32.mrf.mxu0  ;;  %v14580_v48 = vadd.f32 %v12843_v37, %v14522_v62  ;;  %1116 = vst [vmem:[#allocation2 + $0x144] sm:$0xf] %v12346_v46  ;;  %v12344_v8 = vpack.c.bf16 %v704_v47, %v704_v47 }
  0xe0   :  { %1082 = vst [vmem:[#allocation2 + $0x14] sm:$0xf] %v12312_v49  ;;  %v12315_v0 = vpack.c.bf16 %v675_v50, %v675_v50  ;;  %v673_v2 = vmax.f32 %v421_v51, 0.0  ;;  %v442_v3 = vadd.f32 %v12814_v40, %v14522_v62  ;;  %v14582_v49 = vrot.slane %v3800_v33, 5  ;;  %v548_v40 = vpop.f32.mrf.mxu1 }
  0xe1   :  { %v433_v13 = vpop.f32.mrf.mxu0  ;;  %v14587_v9 = vadd.f32 %v14522_v62, %v548_v40  ;;  %1114 = vst [vmem:[#allocation2 + $0x134] sm:$0xf] %v12344_v8 }
  0xe2   :  { %1085 = vst [vmem:[#allocation2 + $0x28] sm:$0xf] %v12315_v0  ;;  %v12313_v18 = vpack.c.bf16 %v673_v2, %v673_v2  ;;  %v678_v19 = vmax.f32 %v442_v3, 0.0  ;;  %v434_v23 = vadd.f32 %v14522_v62, %v433_v13  ;;  %18907 = vst [vmem:[#allocation12_spill] sm:$0xff] %v14582_v49 }
  0xe3   :  { %v12815_v27 = vpop.f32.mrf.mxu0 }
  0xe4   :  { %1083 = vst [vmem:[#allocation2 + $0x18] sm:$0xf] %v12313_v18  ;;  %v12318_v34 = vpack.c.bf16 %v678_v19, %v678_v19  ;;  %v676_v35 = vmax.f32 %v434_v23, 0.0  ;;  %v445_v36 = vadd.f32 %v12815_v27, %v14522_v62 }
  0xe5   :  { %v436_v41 = vpop.f32.mrf.mxu0  ;;  %v1157_v43 = vld [vmem:[#allocation2 + $0x24] sm:$0xf] }
  0xe6   :  { %v14577_v44 = vld [vmem:[#allocation2 + $0x24] sm:$0xf]  ;;  %1088 = vst [vmem:[#allocation2 + $0x44] sm:$0xf] %v12318_v34  ;;  %v12316_v50 = vpack.c.bf16 %v676_v35, %v676_v35  ;;  %v679_v51 = vmax.f32 %v445_v36, 0.0  ;;  %v437_v52 = vadd.f32 %v14522_v62, %v436_v41  ;;  %v1299_v53 = vshrl.u32 %v1157_v43, 16 }
  0xe7   :  { %v12818_v61 = vpop.f32.mrf.mxu0  ;;  %v1154_v0 = vld [vmem:[#allocation2 + $0x14] sm:$0xf]  ;;  %v1302_v2 = vshll.u32 %v1157_v43, 16 }
  0xe8   :  { %v3348_v3 = vld [vmem:[#allocation2 + $0x14] sm:$0xf]  ;;  %1086 = vst [vmem:[#allocation2 + $0x34] sm:$0xf] %v12316_v50  ;;  %v12319_v13 = vpack.c.bf16 %v679_v51, %v679_v51  ;;  %v677_v14 = vmax.f32 %v437_v52, 0.0  ;;  %v458_v18 = vadd.f32 %v12818_v61, %v14522_v62  ;;  %v1277_v19 = vshrl.u32 %v1154_v0, 16 }
  0xe9   :  { %v449_v23 = vpop.f32.mrf.mxu0  ;;  %v1280_v24 = vshll.u32 %v1154_v0, 16  ;;  %v1158_v27 = vld [vmem:[#allocation2 + $0x28] sm:$0xf]  ;;  %v1301_v29 = vrot.slane %v1299_v53, 7  ;;  %v3469_v30 = vshrl.u32 %v3348_v3, 16  ;;  %v3472_v33 = vshll.u32 %v3348_v3, 16 }
  0xea   :  { %1089 = vst [vmem:[#allocation2 + $0x48] sm:$0xf] %v12319_v13  ;;  %v12317_v34 = vpack.c.bf16 %v677_v14, %v677_v14  ;;  %v682_v35 = vmax.f32 %v458_v18, 0.0  ;;  %v450_v36 = vadd.f32 %v14522_v62, %v449_v23  ;;  %v1279_v37 = vrot.slane %v1277_v19, 7 }
  0xeb   :  { %v12819_v41 = vpop.f32.mrf.mxu0  ;;  %v1155_v43 = vld [vmem:[#allocation2 + $0x18] sm:$0xf]  ;;  %v1304_v46 = vor.u32 %v1302_v2, %v1301_v29  ;;  %v1306_v47 = vrot.slane %v1301_v29, 4  ;;  %v1308_v50 = vshrl.u32 %v1158_v27, 16  ;;  %v1311_v51 = vshll.u32 %v1158_v27, 16 }
  0xec   :  { %1087 = vst [vmem:[#allocation2 + $0x38] sm:$0xf] %v12317_v34  ;;  %v12322_v52 = vpack.c.bf16 %v682_v35, %v682_v35  ;;  %v680_v40 = vmax.f32 %v450_v36, 0.0  ;;  %v461_v53 = vadd.f32 %v12819_v41, %v14522_v62  ;;  %v1282_v61 = vor.u32 %v1280_v24, %v1279_v37  ;;  %v3349_v18 = vld [vmem:[#allocation2 + $0x18] sm:$0xf] }
  0xed   :  { %v452_v0 = vpop.f32.mrf.mxu0  ;;  %v1284_v3 = vrot.slane %v1279_v37, 4  ;;  %v1286_v8 = vshrl.u32 %v1155_v43, 16  ;;  %v1289_v13 = vshll.u32 %v1155_v43, 16  ;;  %v1305_v14 = vsel %vm14444_vm3, %v14511_v54, %v1304_v46 }
  0xee   :  { %1092 = vst [vmem:[#allocation2 + $0x64] sm:$0xf] %v12322_v52  ;;  %v12320_v2 = vpack.c.bf16 %v680_v40, %v680_v40  ;;  %v683_v19 = vmax.f32 %v461_v53, 0.0  ;;  %v453_v23 = vadd.f32 %v14522_v62, %v452_v0  ;;  %v1283_v27 = vsel %vm14444_vm3, %v14509_v39, %v1282_v61 }
  0xef   :  { %v12822_v29 = vpop.f32.mrf.mxu0  ;;  %v1288_v24 = vrot.slane %v1286_v8, 7  ;;  %v1310_v34 = vrot.slane %v1308_v50, 7  ;;  %v3471_v35 = vrot.slane %v3469_v30, 4  ;;  %v3474_v36 = vrot.slane %v3472_v33, 5 }
  0xf0   :  { %1090 = vst [vmem:[#allocation2 + $0x54] sm:$0xf] %v12320_v2  ;;  %v12323_v37 = vpack.c.bf16 %v683_v19, %v683_v19  ;;  %v681_v41 = vmax.f32 %v453_v23, 0.0  ;;  %v474_v54 = vadd.f32 %v12822_v29, %v14522_v62  ;;  %v3478_v43 = vshll.u32 %v3349_v18, 16  ;;  %v3352_v23 = vld [vmem:[#allocation2 + $0x28] sm:$0xf] }
  0xf1   :  { %v465_v46 = vpop.f32.mrf.mxu0  ;;  %v1291_v52 = vor.u32 %v1289_v13, %v1288_v24  ;;  %v1313_v40 = vor.u32 %v1311_v51, %v1310_v34  ;;  %v3475_v53 = vor.u32 %v3474_v36, %v3471_v35  ;;  %v3482_v0 = vshrl.u32 %v3349_v18, 16  ;;  %v1160_v29 = vld [vmem:[#allocation2 + $0x34] sm:$0xf] }
  0xf2   :  { %1093 = vst [vmem:[#allocation2 + $0x68] sm:$0xf] %v12323_v37  ;;  %v12321_v7 = vpack.c.bf16 %v681_v41, %v681_v41  ;;  %v686_v49 = vmax.f32 %v474_v54, 0.0  ;;  %v466_v39 = vadd.f32 %v14522_v62, %v465_v46  ;;  %v3480_v61 = vrot.slane %v3478_v43, 5  ;;  %v13724_v24 = vld [vmem:[#allocation4 + $0x70] sm:$0xff]  }
  0xf3   :  { %v12823_v50 = vpop.f32.mrf.mxu0  ;;  %v1292_v30 = vsel %vm14444_vm3, %v1284_v3, %v1291_v52  ;;  %v1314_v33 = vsel %vm14444_vm3, %v1306_v47, %v1313_v40  ;;  %v3476_v8 = vrot.slane %v3475_v53, 4  ;;  %v3484_v2 = vrot.slane %v3482_v0, 4 }
  0xf4   :  { %1091 = vst [vmem:[#allocation2 + $0x58] sm:$0xf] %v12321_v7  ;;  %v12326_v13 = vpack.c.bf16 %v686_v49, %v686_v49  ;;  %v684_v51 = vmax.f32 %v466_v39, 0.0  ;;  %v477_v18 = vadd.f32 %v12823_v50, %v14522_v62  ;;  %v11854_v19 = vcombine.low %v1283_v27, %v1292_v30 }
  0xf5   :  { %v468_v34 = vpop.f32.mrf.mxu0  ;;  %v11855_v35 = vcombine.low %v1305_v14, %v1314_v33  ;;  %v3481_v36 = vsel %vm14499_vm6, %v3476_v8, %v3480_v61  ;;  %v3485_v3 = vor.u32 %v3484_v2, %v3480_v61  ;;  %v18908_v37 = vshrl.u32 %v14577_v44, 16  ;;  %v13725_v61 = vld [vmem:[#allocation4 + $0x68] sm:$0xff]   ;;  %v1161_v33 = vld [vmem:[#allocation2 + $0x38] sm:$0xf] }
  0xf6   :  { %1096 = vst [vmem:[#allocation2 + $0x84] sm:$0xf] %v12326_v13  ;;  %v12324_v41 = vpack.c.bf16 %v684_v51, %v684_v51  ;;  %v687_v7 = vmax.f32 %v477_v18, 0.0  ;;  %v469_v49 = vadd.f32 %v14522_v62, %v468_v34  ;;  %12889 = vmatmul.mubr.bf16.vlgmr.msra.gmra.mxu1 %v11854_v19  ;;  %v3496_v27 = vshll.u32 %v14577_v44, 16 }
  0xf7   :  { %v3495_v47 = vrot.slane %v18908_v37, 4  ;;  %13021 = vmatpush3.bf16.msra.mxu1 %v14456_v10  ;;  %12892 = vmatprep.mubr.bf16.mxu1 %v11855_v35  ;;  %v12826_v54 = vpop.f32.mrf.mxu0  ;;  %v3486_v14 = vrot.slane %v3485_v3, 4  ;;  %v3502_v43 = vshll.u32 %v3352_v23, 16  ;;  %v3506_v46 = vshrl.u32 %v3352_v23, 16 }
  0xf8   :  { %v1321_v52 = vshrl.u32 %v1160_v29, 16  ;;  %1094 = vst [vmem:[#allocation2 + $0x74] sm:$0xf] %v12324_v41  ;;  %v12327_v40 = vpack.c.bf16 %v687_v7, %v687_v7  ;;  %v685_v53 = vmax.f32 %v469_v49, 0.0  ;;  %v490_v0 = vadd.f32 %v12826_v54, %v14522_v62  ;;  %13022 = vmatprep.subr.bf16.mxu1 %v13724_v24  ;;  %v1163_v49 = vld [vmem:[#allocation2 + $0x44] sm:$0xf] }
  0xf9   :  { %v3498_v39 = vrot.slane %v3496_v27, 5  ;;  %v3491_v44 = vsel %vm14499_vm6, %v3486_v14, %v14513_v55  ;;  %v3504_v50 = vrot.slane %v3502_v43, 5  ;;  %v3508_v10 = vrot.slane %v3506_v46, 4  ;;  %v481_v30 = vpop.f32.mrf.mxu0  ;;  %v13726_v27 = vld [vmem:[#allocation4 + $0x60] sm:$0xff]  }
  0xfa   :  { %v1323_v8 = vrot.slane %v1321_v52, 7  ;;  %1097 = vst [vmem:[#allocation2 + $0x88] sm:$0xf] %v12327_v40  ;;  %v12325_v2 = vpack.c.bf16 %v685_v53, %v685_v53  ;;  %v690_v13 = vmax.f32 %v490_v0, 0.0  ;;  %v11968_v51 = vcombine.low %v3481_v36, %v3491_v44  ;;  %v1164_v40 = vld [vmem:[#allocation2 + $0x48] sm:$0xf] }
  0xfb   :  { %v3499_v18 = vor.u32 %v3498_v39, %v3495_v47  ;;  %v3509_v19 = vor.u32 %v3508_v10, %v3504_v50  ;;  %v482_v23 = vadd.f32 %v14522_v62, %v481_v30  ;;  %v12827_v34 = vpop.f32.mrf.mxu0  ;;  %v1324_v35 = vshll.u32 %v1160_v29, 16  ;;  %13023 = vmatpush3.bf16.msra.mxu1 %v13724_v24  ;;  %v3354_v30 = vld [vmem:[#allocation2 + $0x34] sm:$0xf] }
  0xfc   :  { %v1328_v3 = vrot.slane %v1323_v8, 4  ;;  %1095 = vst [vmem:[#allocation2 + $0x78] sm:$0xf] %v12325_v2  ;;  %v12330_v37 = vpack.c.bf16 %v690_v13, %v690_v13  ;;  %13117 = vmatmul.mubr.bf16.vlgmr.msra.gmra.mxu0 %v11968_v51  ;;  %v493_v41 = vadd.f32 %v12827_v34, %v14522_v62  ;;  %v1330_v7 = vshrl.u32 %v1161_v33, 16  ;;  %13024 = vmatprep.subr.bf16.mxu1 %v13725_v61  ;;  %v13727_v13 = vld [vmem:[#allocation4 + $0x58] sm:$0xff]  }
  0xfd   :  { %v3500_v55 = vrot.slane %v3499_v18, 4  ;;  %v3510_v54 = vrot.slane %v3509_v19, 4  ;;  %v688_v36 = vmax.f32 %v482_v23, 0.0  ;;  %v484_v47 = vpop.f32.mrf.mxu0  ;;  %v1326_v14 = vor.u32 %v1324_v35, %v1323_v8  ;;  %v3355_v23 = vld [vmem:[#allocation2 + $0x38] sm:$0xf] }
  0xfe   :  { %v1333_v43 = vshll.u32 %v1161_v33, 16  ;;  %1100 = vst [vmem:[#allocation2 + $0xa4] sm:$0xf] %v12330_v37  ;;  %v691_v24 = vmax.f32 %v493_v41, 0.0  ;;  %v485_v46 = vadd.f32 %v14522_v62, %v484_v47  ;;  %v1332_v52 = vrot.slane %v1330_v7, 7 }
  0xff   :  { %v3505_v29 = vsel %vm14499_vm6, %v3500_v55, %v3504_v50  ;;  %v3515_v53 = vsel %vm14499_vm6, %v3510_v54, %v14515_v58  ;;  %v12328_v0 = vpack.c.bf16 %v688_v36, %v688_v36  ;;  %v1327_v39 = vsel %vm14444_vm3, %v14524_v63, %v1326_v14  ;;  %v12830_v10 = vpop.f32.mrf.mxu0  ;;  %13025 = vmatpush3.bf16.msra.mxu1 %v13725_v61  ;;  %v3357_v55 = vld [vmem:[#allocation2 + $0x44] sm:$0xf] }
 0x100   :  { %v1343_v44 = vshrl.u32 %v1163_v49, 16  ;;  %v11969_v33 = vcombine.low %v3505_v29, %v3515_v53  ;;  %v12331_v50 = vpack.c.bf16 %v691_v24, %v691_v24  ;;  %v689_v8 = vmax.f32 %v485_v46, 0.0  ;;  %13026 = vmatprep.subr.bf16.mxu1 %v13726_v27  ;;  %v3358_v24 = vld [vmem:[#allocation2 + $0x48] sm:$0xf] }
 0x101   :  { %v1335_v2 = vor.u32 %v1333_v43, %v1332_v52  ;;  %1098 = vst [vmem:[#allocation2 + $0x94] sm:$0xf] %v12328_v0  ;;  %v1346_v18 = vshll.u32 %v1163_v49, 16  ;;  %v1352_v19 = vshrl.u32 %v1164_v40, 16  ;;  %v1355_v58 = vshll.u32 %v1164_v40, 16  ;;  %v497_v34 = vpop.f32.mrf.mxu0 }
 0x102   :  { %v1345_v51 = vrot.slane %v1343_v44, 7  ;;  %13120 = vmatprep.mubr.bf16.mxu0 %v11969_v33  ;;  %1101 = vst [vmem:[#allocation2 + $0xa8] sm:$0xf] %v12331_v50  ;;  %v12329_v63 = vpack.c.bf16 %v689_v8, %v689_v8  ;;  %v506_v61 = vadd.f32 %v12830_v10, %v14522_v62  ;;  %v3517_v37 = vshrl.u32 %v3354_v30, 16 }
 0x103   :  { %v1336_v35 = vsel %vm14444_vm3, %v1328_v3, %v1335_v2  ;;  %v1354_v36 = vrot.slane %v1352_v19, 7  ;;  %v12831_v47 = vpop.f32.mrf.mxu0  ;;  %13027 = vmatpush3.bf16.msra.mxu1 %v13726_v27  ;;  %v3520_v43 = vshll.u32 %v3354_v30, 16  ;;  %v3526_v29 = vshll.u32 %v3355_v23, 16  ;;  %v1166_v19 = vld [vmem:[#allocation2 + $0x54] sm:$0xf] }
 0x104   :  { %v11856_v41 = vcombine.low %v1327_v39, %v1336_v35  ;;  %v1348_v7 = vor.u32 %v1346_v18, %v1345_v51  ;;  %v1350_v54 = vrot.slane %v1345_v51, 4  ;;  %1099 = vst [vmem:[#allocation2 + $0x98] sm:$0xf] %v12329_v63  ;;  %v694_v49 = vmax.f32 %v506_v61, 0.0  ;;  %13028 = vmatprep.subr.bf16.mxu1 %v13727_v13 }
 0x105   :  { %v3519_v14 = vrot.slane %v3517_v37, 4  ;;  %v1357_v46 = vor.u32 %v1355_v58, %v1354_v36  ;;  %v3530_v52 = vshrl.u32 %v3355_v23, 16  ;;  %v3541_v40 = vshrl.u32 %v3357_v55, 16  ;;  %v500_v53 = vpop.f32.mrf.mxu0 }
 0x106   :  { %12893 = vmatmul.mubr.bf16.gmra.mxu1 %v11856_v41  ;;  %v1349_v3 = vsel %vm14444_vm3, %v14517_v59, %v1348_v7  ;;  %v12334_v0 = vpack.c.bf16 %v694_v49, %v694_v49  ;;  %v3522_v39 = vrot.slane %v3520_v43, 5  ;;  %v3528_v44 = vrot.slane %v3526_v29, 5 }
 0x107   :  { %v3544_v27 = vshll.u32 %v3357_v55, 16  ;;  %v1358_v10 = vsel %vm14444_vm3, %v1350_v54, %v1357_v46  ;;  %v3532_v30 = vrot.slane %v3530_v52, 4  ;;  %v3543_v33 = vrot.slane %v3541_v40, 4  ;;  %v12834_v8 = vpop.f32.mrf.mxu0  ;;  %13029 = vmatpush3.bf16.msra.mxu1 %v13727_v13 }
 0x108   :  { %v3550_v50 = vshll.u32 %v3358_v24, 16  ;;  %v11857_v2 = vcombine.low %v1349_v3, %v1358_v10  ;;  %1104 = vst [vmem:[#allocation2 + $0xc4] sm:$0xf] %v12334_v0  ;;  %v3523_v51 = vor.u32 %v3522_v39, %v3519_v14  ;;  %v3554_v18 = vshrl.u32 %v3358_v24, 16  ;;  %v1167_v24 = vld [vmem:[#allocation2 + $0x58] sm:$0xf] }
 0x109   :  { %v3546_v59 = vrot.slane %v3544_v27, 5  ;;  %v3533_v58 = vor.u32 %v3532_v30, %v3528_v44  ;;  %v498_v63 = vadd.f32 %v14522_v62, %v497_v34  ;;  %v509_v35 = vadd.f32 %v12831_v47, %v14522_v62  ;;  %v14638_v61 = vpop.f32.mrf.mxu0  ;;  %v1170_v0 = vld [vmem:[#allocation2 + $0x68] sm:$0xf] }
 0x10a   :  { %v3552_v23 = vrot.slane %v3550_v50, 5  ;;  %12896 = vmatprep.mubr.bf16.mxu1 %v11857_v2  ;;  %v3524_v37 = vrot.slane %v3523_v51, 4  ;;  %v3556_v41 = vrot.slane %v3554_v18, 4  ;;  %v501_v13 = vadd.f32 %v14522_v62, %v500_v53  ;;  %v1169_v53 = vld [vmem:[#allocation2 + $0x64] sm:$0xf] }
 0x10b   :  { %v3547_v55 = vor.u32 %v3546_v59, %v3543_v33  ;;  %v3534_v7 = vrot.slane %v3533_v58, 4  ;;  %v692_v54 = vmax.f32 %v498_v63, 0.0  ;;  %v695_v36 = vmax.f32 %v509_v35, 0.0  ;;  %v14641_v14 = vpop.f32.mrf.mxu0  ;;  %v3361_v35 = vld [vmem:[#allocation2 + $0x58] sm:$0xf] }
 0x10c   :  { %v1365_v49 = vshrl.u32 %v1166_v19, 16  ;;  %v3529_v43 = vsel %vm14499_vm6, %v3524_v37, %v3528_v44  ;;  %v3557_v29 = vor.u32 %v3556_v41, %v3552_v23  ;;  %v693_v47 = vmax.f32 %v501_v13, 0.0 }
 0x10d   :  { %v3548_v34 = vrot.slane %v3547_v55, 4  ;;  %v3539_v3 = vsel %vm14499_vm6, %v3534_v7, %v14526_v4  ;;  %v12332_v46 = vpack.c.bf16 %v692_v54, %v692_v54  ;;  %v12335_v52 = vpack.c.bf16 %v695_v36, %v695_v36  ;;  %v14648_v39 = vpop.f32.mrf.mxu0  ;;  %v3360_v4 = vld [vmem:[#allocation2 + $0x54] sm:$0xf] }
 0x10e   :  { %v1367_v40 = vrot.slane %v1365_v49, 7  ;;  %v11970_v27 = vcombine.low %v3529_v43, %v3539_v3  ;;  %v3558_v44 = vrot.slane %v3557_v29, 4  ;;  %v12333_v30 = vpack.c.bf16 %v693_v47, %v693_v47 }
 0x10f   :  { %v3553_v10 = vsel %vm14499_vm6, %v3548_v34, %v3552_v23  ;;  %1102 = vst [vmem:[#allocation2 + $0xb4] sm:$0xf] %v12332_v46  ;;  %1105 = vst [vmem:[#allocation2 + $0xc8] sm:$0xf] %v12335_v52  ;;  %v1368_v33 = vshll.u32 %v1166_v19, 16  ;;  %v1374_v2 = vshrl.u32 %v1167_v24, 16  ;;  %v14652_v59 = vpop.f32.mrf.mxu0  ;;  %v522_v36 = vadd.f32 %v12834_v8, %v14522_v62 }
 0x110   :  { %v1372_v50 = vrot.slane %v1367_v40, 4  ;;  %v1377_v51 = vshll.u32 %v1167_v24, 16  ;;  %13121 = vmatmul.mubr.bf16.gmra.mxu0 %v11970_v27  ;;  %v3563_v18 = vsel %vm14499_vm6, %v3558_v44, %v14528_v5  ;;  %1103 = vst [vmem:[#allocation2 + $0xb8] sm:$0xf] %v12333_v30  ;;  %v1387_v58 = vshrl.u32 %v1169_v53, 16 }
 0x111   :  { %v1390_v63 = vshll.u32 %v1169_v53, 16  ;;  %v1396_v23 = vshrl.u32 %v1170_v0, 16  ;;  %v11971_v37 = vcombine.low %v3553_v10, %v3563_v18  ;;  %v1370_v55 = vor.u32 %v1368_v33, %v1367_v40  ;;  %v14657_v13 = vpop.f32.mrf.mxu0  ;;  %v3363_v40 = vld [vmem:[#allocation2 + $0x64] sm:$0xf]  ;;  %v3364_v10 = vld [vmem:[#allocation2 + $0x68] sm:$0xf] }
 0x112   :  { %v1376_v41 = vrot.slane %v1374_v2, 7  ;;  %v1399_v19 = vshll.u32 %v1170_v0, 16  ;;  %v1389_v7 = vrot.slane %v1387_v58, 7  ;;  %v3565_v49 = vshrl.u32 %v3360_v4, 16 }
 0x113   :  { %v1398_v54 = vrot.slane %v1396_v23, 7  ;;  %13124 = vmatprep.mubr.bf16.mxu0 %v11971_v37  ;;  %v1371_v5 = vsel %vm14444_vm3, %v14532_v11, %v1370_v55  ;;  %v3568_v34 = vshll.u32 %v3360_v4, 16  ;;  %v3574_v29 = vshll.u32 %v3361_v35, 16  ;;  %v14663_v47 = vpop.f32.mrf.mxu0 }
 0x114   :  { %v1379_v43 = vor.u32 %v1377_v51, %v1376_v41  ;;  %v1392_v24 = vor.u32 %v1390_v63, %v1389_v7  ;;  %v1394_v3 = vrot.slane %v1389_v7, 4  ;;  %v698_v52 = vmax.f32 %v522_v36, 0.0 }
 0x115   :  { %v1401_v46 = vor.u32 %v1399_v19, %v1398_v54  ;;  %v3567_v8 = vrot.slane %v3565_v49, 4  ;;  %v3570_v0 = vrot.slane %v3568_v34, 5  ;;  %v3576_v27 = vrot.slane %v3574_v29, 5  ;;  %v14667_v44 = vpop.f32.mrf.mxu0  ;;  %v1172_v54 = vld [vmem:[#allocation2 + $0x74] sm:$0xf] }
 0x116   :  { %v1380_v53 = vsel %vm14444_vm3, %v1372_v50, %v1379_v43  ;;  %v1393_v30 = vsel %vm14444_vm3, %v14530_v6, %v1392_v24  ;;  %v12338_v2 = vpack.c.bf16 %v698_v52, %v698_v52  ;;  %v3578_v18 = vshrl.u32 %v3361_v35, 16 }
 0x117   :  { %v11858_v11 = vcombine.low %v1371_v5, %v1380_v53  ;;  %v1402_v33 = vsel %vm14444_vm3, %v1394_v3, %v1401_v46  ;;  %v3571_v4 = vor.u32 %v3570_v0, %v3567_v8  ;;  %v3589_v58 = vshrl.u32 %v3363_v40, 16  ;;  %v14674_v50 = vpop.f32.mrf.mxu0  ;;  %v1173_v3 = vld [vmem:[#allocation2 + $0x78] sm:$0xf]  ;;  %v1175_v8 = vld [vmem:[#allocation2 + $0x84] sm:$0xf] }
 0x118   :  { %v11859_v51 = vcombine.low %v1393_v30, %v1402_v33  ;;  %18909 = vst [vmem:[#allocation13_spill] sm:$0xff] %v14674_v50  ;;  %1108 = vst [vmem:[#allocation2 + $0xe4] sm:$0xf] %v12338_v2  ;;  %v3592_v63 = vshll.u32 %v3363_v40, 16  ;;  %v3598_v23 = vshll.u32 %v3364_v10, 16  ;;  %v3602_v37 = vshrl.u32 %v3364_v10, 16 }
 0x119   :  { %12897 = vmatmul.mubr.bf16.gmra.mxu1 %v11858_v11  ;;  %v514_v55 = vadd.f32 %v14522_v62, %v14638_v61  ;;  %v3572_v6 = vrot.slane %v3571_v4, 4  ;;  %v3580_v41 = vrot.slane %v3578_v18, 4  ;;  %v3591_v19 = vrot.slane %v3589_v58, 4  ;;  %v14680_v35 = vpop.f32.mrf.mxu0 }
 0x11a   :  { %12900 = vmatprep.mubr.bf16.mxu1 %v11859_v51  ;;  %v525_v7 = vadd.f32 %v14641_v14, %v14522_v62  ;;  %18910 = vst [vmem:[#allocation14_spill] sm:$0xff] %v14680_v35  ;;  %v3594_v36 = vrot.slane %v3592_v63, 5  ;;  %v3600_v49 = vrot.slane %v3598_v23, 5  ;;  %v3604_v5 = vrot.slane %v3602_v37, 4  ;;  %v1176_v23 = vld [vmem:[#allocation2 + $0x88] sm:$0xf] }
 0x11b   :  { %v696_v43 = vmax.f32 %v514_v55, 0.0  ;;  %v3577_v34 = vsel %vm14499_vm6, %v3572_v6, %v3576_v27  ;;  %v3581_v29 = vor.u32 %v3580_v41, %v3576_v27  ;;  %v517_v61 = vadd.f32 %v14522_v62, %v14648_v39  ;;  %v14686_v46 = vpop.f32.mrf.mxu0  ;;  %v13728_v39 = vld [vmem:[#allocation4 + $0x50] sm:$0xff]  }
 0x11c   :  { %v699_v24 = vmax.f32 %v525_v7, 0.0  ;;  %18911 = vst [vmem:[#allocation15_spill] sm:$0xff] %v14686_v46  ;;  %v3595_v52 = vor.u32 %v3594_v36, %v3591_v19  ;;  %v3605_v14 = vor.u32 %v3604_v5, %v3600_v49  ;;  %v1409_v53 = vshrl.u32 %v1172_v54, 16  ;;  %13030 = vmatprep.subr.bf16.mxu1 %v13728_v39 }
 0x11d   :  { %v12336_v40 = vpack.c.bf16 %v696_v43, %v696_v43  ;;  %v3582_v0 = vrot.slane %v3581_v29, 4  ;;  %v697_v11 = vmax.f32 %v517_v61, 0.0  ;;  %v1412_v30 = vshll.u32 %v1172_v54, 16  ;;  %v14688_v33 = vpop.f32.mrf.mxu0  ;;  %v3366_v54 = vld [vmem:[#allocation2 + $0x74] sm:$0xf]  ;;  %13031 = vmatpush3.bf16.msra.mxu1 %v13728_v39 }
 0x11e   :  { %v12339_v10 = vpack.c.bf16 %v699_v24, %v699_v24  ;;  %18912 = vst [vmem:[#allocation16_spill] sm:$0xff] %v14688_v33  ;;  %v3596_v2 = vrot.slane %v3595_v52, 4  ;;  %v3606_v27 = vrot.slane %v3605_v14, 4  ;;  %v1411_v51 = vrot.slane %v1409_v53, 7  ;;  %v3367_v29 = vld [vmem:[#allocation2 + $0x78] sm:$0xf] }
 0x11f   :  { %1106 = vst [vmem:[#allocation2 + $0xd4] sm:$0xf] %v12336_v40  ;;  %v1418_v4 = vshrl.u32 %v1173_v3, 16  ;;  %v3587_v18 = vsel %vm14499_vm6, %v3582_v0, %v14534_v12  ;;  %v12337_v58 = vpack.c.bf16 %v697_v11, %v697_v11  ;;  %v1421_v63 = vshll.u32 %v1173_v3, 16  ;;  %v14693_v55 = vpop.f32.mrf.mxu0 }
 0x120   :  { %1109 = vst [vmem:[#allocation2 + $0xe8] sm:$0xf] %v12339_v10  ;;  %v1431_v37 = vshrl.u32 %v1175_v8, 16  ;;  %18913 = vst [vmem:[#allocation17_spill] sm:$0xff] %v14693_v55  ;;  %v11972_v6 = vcombine.low %v3577_v34, %v3587_v18  ;;  %v3601_v41 = vsel %vm14499_vm6, %v3596_v2, %v3600_v49  ;;  %v3611_v19 = vsel %vm14499_vm6, %v3606_v27, %v14537_v20 }
 0x121   :  { %v1414_v7 = vor.u32 %v1412_v30, %v1411_v51  ;;  %v11973_v36 = vcombine.low %v3601_v41, %v3611_v19  ;;  %1107 = vst [vmem:[#allocation2 + $0xd8] sm:$0xf] %v12337_v58  ;;  %v1416_v12 = vrot.slane %v1411_v51, 4  ;;  %v1420_v5 = vrot.slane %v1418_v4, 7  ;;  %v14703_v3 = vpop.f32.mrf.mxu0  ;;  %v3369_v30 = vld [vmem:[#allocation2 + $0x84] sm:$0xf] }
 0x122   :  { %v1433_v43 = vrot.slane %v1431_v37, 7  ;;  %13125 = vmatmul.mubr.bf16.gmra.mxu0 %v11972_v6  ;;  %v1434_v49 = vshll.u32 %v1175_v8, 16  ;;  %v1440_v24 = vshrl.u32 %v1176_v23, 16  ;;  %v1443_v61 = vshll.u32 %v1176_v23, 16  ;;  %18914 = vst [vmem:[#allocation18_spill] sm:$0xff] %v14703_v3 }
 0x123   :  { %v1415_v34 = vsel %vm14444_vm3, %v14539_v21, %v1414_v7  ;;  %13128 = vmatprep.mubr.bf16.mxu0 %v11973_v36  ;;  %v1423_v20 = vor.u32 %v1421_v63, %v1420_v5  ;;  %v538_v14 = vadd.f32 %v14652_v59, %v14522_v62  ;;  %v3613_v40 = vshrl.u32 %v3366_v54, 16  ;;  %v3370_v51 = vld [vmem:[#allocation2 + $0x88] sm:$0xf]  ;;  %v14712_v58 = vpop.f32.mrf.mxu0 }
 0x124   :  { %v1438_v52 = vrot.slane %v1433_v43, 4  ;;  %v1436_v53 = vor.u32 %v1434_v49, %v1433_v43  ;;  %v1442_v0 = vrot.slane %v1440_v24, 7  ;;  %v3616_v10 = vshll.u32 %v3366_v54, 16  ;;  %18915 = vst [vmem:[#allocation19_spill] sm:$0xff] %v14712_v58  ;;  %v12846_v24 = vpop.f32.mrf.mxu1 }
 0x125   :  { %v3622_v11 = vshll.u32 %v3367_v29, 16  ;;  %v1424_v21 = vsel %vm14444_vm3, %v1416_v12, %v1423_v20  ;;  %v702_v8 = vmax.f32 %v538_v14, 0.0  ;;  %v3615_v2 = vrot.slane %v3613_v40, 4 }
 0x126   :  { %v3626_v27 = vshrl.u32 %v3367_v29, 16  ;;  %v11860_v4 = vcombine.low %v1415_v34, %v1424_v21  ;;  %v1437_v39 = vsel %vm14444_vm3, %v14541_v22, %v1436_v53  ;;  %v1445_v18 = vor.u32 %v1443_v61, %v1442_v0  ;;  %v14718_v61 = vpop.f32.mrf.mxu0 }
 0x127   :  { %v3618_v59 = vrot.slane %v3616_v10, 5  ;;  %v12342_v63 = vpack.c.bf16 %v702_v8, %v702_v8  ;;  %v3624_v23 = vrot.slane %v3622_v11, 5  ;;  %v3637_v6 = vshrl.u32 %v3369_v30, 16  ;;  %18916 = vst [vmem:[#allocation20_spill] sm:$0xff] %v14718_v61 }
 0x128   :  { %v3628_v37 = vrot.slane %v3626_v27, 4  ;;  %12901 = vmatmul.mubr.bf16.gmra.mxu1 %v11860_v4  ;;  %v1446_v41 = vsel %vm14444_vm3, %v1438_v52, %v1445_v18  ;;  %v3640_v7 = vshll.u32 %v3369_v30, 16  ;;  %v3646_v54 = vshll.u32 %v3370_v51, 16  ;;  %v1179_v27 = vld [vmem:[#allocation2 + $0x98] sm:$0xf] }
 0x129   :  { %v3619_v19 = vor.u32 %v3618_v59, %v3615_v2  ;;  %v11861_v36 = vcombine.low %v1437_v39, %v1446_v41  ;;  %1112 = vst [vmem:[#allocation2 + $0x104] sm:$0xf] %v12342_v63  ;;  %v3639_v5 = vrot.slane %v3637_v6, 4  ;;  %v3650_v22 = vshrl.u32 %v3370_v51, 16  ;;  %v1178_v2 = vld [vmem:[#allocation2 + $0x94] sm:$0xf]  ;;  %v14729_v39 = vpop.f32.mrf.mxu0 }
 0x12a   :  { %v3629_v12 = vor.u32 %v3628_v37, %v3624_v23  ;;  %v3642_v29 = vrot.slane %v3640_v7, 5  ;;  %v3648_v34 = vrot.slane %v3646_v54, 5  ;;  %v530_v49 = vadd.f32 %v14522_v62, %v14657_v13  ;;  %18917 = vst [vmem:[#allocation21_spill] sm:$0xff] %v14729_v39  ;;  %v1182_v7 = vld [vmem:[#allocation2 + $0xa8] sm:$0xf] }
 0x12b   :  { %v3620_v43 = vrot.slane %v3619_v19, 4  ;;  %12904 = vmatprep.mubr.bf16.mxu1 %v11861_v36  ;;  %v3652_v52 = vrot.slane %v3650_v22, 4  ;;  %v707_v14 = vmax.f32 %v14580_v48, 0.0  ;;  %v541_v40 = vadd.f32 %v14663_v47, %v14522_v62  ;;  %v561_v47 = vpop.f32.mrf.mxu1 }
 0x12c   :  { %v3630_v20 = vrot.slane %v3629_v12, 4  ;;  %v3643_v0 = vor.u32 %v3642_v29, %v3639_v5  ;;  %v700_v10 = vmax.f32 %v530_v49, 0.0  ;;  %v705_v11 = vmax.f32 %v14587_v9, 0.0  ;;  %v14734_v9 = vld [vmem:[%s18781_s2] ss:$0 sm:$0xff] }
 0x12d   :  { %v3625_v53 = vsel %vm14499_vm6, %v3620_v43, %v3624_v23  ;;  %v3653_v30 = vor.u32 %v3652_v52, %v3648_v34  ;;  %v12347_v21 = vpack.c.bf16 %v707_v14, %v707_v14  ;;  %v703_v8 = vmax.f32 %v541_v40, 0.0  ;;  %v1181_v23 = vld [vmem:[#allocation2 + $0xa4] sm:$0xf]  ;;  %v3372_v49 = vld [vmem:[#allocation2 + $0x94] sm:$0xf] }
 0x12e   :  { %v3635_v13 = vsel %vm14499_vm6, %v3630_v20, %v14544_v28  ;;  %v3644_v51 = vrot.slane %v3643_v0, 4  ;;  %v12340_v4 = vpack.c.bf16 %v700_v10, %v700_v10  ;;  %v12345_v62 = vpack.c.bf16 %v705_v11, %v705_v11 }
 0x12f   :  { %v11974_v48 = vcombine.low %v3625_v53, %v3635_v13  ;;  %v3654_v18 = vrot.slane %v3653_v30, 4  ;;  %1117 = vst [vmem:[#allocation2 + $0x148] sm:$0xf] %v12347_v21  ;;  %v12343_v59 = vpack.c.bf16 %v703_v8, %v703_v8  ;;  %v533_v28 = vadd.f32 %v14734_v9, %v14667_v44  ;;  %v3373_v21 = vld [vmem:[#allocation2 + $0x98] sm:$0xf] }
 0x130   :  { %v570_v63 = vadd.f32 %v14734_v9, %v12846_v24  ;;  %v3649_v37 = vsel %vm14499_vm6, %v3644_v51, %v3648_v34  ;;  %1110 = vst [vmem:[#allocation2 + $0xf4] sm:$0xf] %v12340_v4  ;;  %1115 = vst [vmem:[#allocation2 + $0x138] sm:$0xf] %v12345_v62  ;;  %v1453_v6 = vshrl.u32 %v1178_v2, 16  ;;  %v1456_v41 = vshll.u32 %v1178_v2, 16  ;;  %v12847_v34 = vpop.f32.mrf.mxu1  ;;  %v14744_v24 = vpop.f32.mrf.mxu0 }
 0x131   :  { %13129 = vmatmul.mubr.bf16.gmra.mxu0 %v11974_v48  ;;  %v1462_v19 = vshrl.u32 %v1179_v27, 16  ;;  %v3659_v54 = vsel %vm14499_vm6, %v3654_v18, %v14546_v32  ;;  %1113 = vst [vmem:[#allocation2 + $0x108] sm:$0xf] %v12343_v59  ;;  %v701_v36 = vmax.f32 %v533_v28, 0.0  ;;  %v1465_v12 = vshll.u32 %v1179_v27, 16  ;;  %18918 = vst [vmem:[#allocation22_spill] sm:$0xff] %v14744_v24 }
 0x132   :  { %v710_v44 = vmax.f32 %v570_v63, 0.0  ;;  %v11975_v5 = vcombine.low %v3649_v37, %v3659_v54  ;;  %v1455_v22 = vrot.slane %v1453_v6, 7  ;;  %v1475_v29 = vshrl.u32 %v1181_v23, 16  ;;  %v3375_v4 = vld [vmem:[#allocation2 + $0xa4] sm:$0xf]  ;;  %v564_v62 = vpop.f32.mrf.mxu1  ;;  %v14752_v18 = vpop.f32.mrf.mxu0 }
 0x133   :  { %v1464_v43 = vrot.slane %v1462_v19, 7  ;;  %v12341_v20 = vpack.c.bf16 %v701_v36, %v701_v36  ;;  %v1478_v14 = vshll.u32 %v1181_v23, 16  ;;  %v1484_v40 = vshrl.u32 %v1182_v7, 16  ;;  %18919 = vst [vmem:[#allocation23_spill] sm:$0xff] %v14752_v18 }
 0x134   :  { %v12350_v52 = vpack.c.bf16 %v710_v44, %v710_v44  ;;  %13132 = vmatprep.mubr.bf16.mxu0 %v11975_v5  ;;  %v1458_v53 = vor.u32 %v1456_v41, %v1455_v22  ;;  %v1460_v0 = vrot.slane %v1455_v22, 4  ;;  %v1477_v10 = vrot.slane %v1475_v29, 7  ;;  %v3376_v41 = vld [vmem:[#allocation2 + $0xa8] sm:$0xf]  ;;  %v14759_v29 = vpop.f32.mrf.mxu0 }
 0x135   :  { %v1467_v32 = vor.u32 %v1465_v12, %v1464_v43  ;;  %1111 = vst [vmem:[#allocation2 + $0xf8] sm:$0xf] %v12341_v20  ;;  %v1486_v11 = vrot.slane %v1484_v40, 7  ;;  %v1487_v13 = vshll.u32 %v1182_v7, 16  ;;  %v562_v30 = vadd.f32 %v14734_v9, %v561_v47  ;;  %v12850_v43 = vpop.f32.mrf.mxu1  ;;  %18920 = vst [vmem:[#allocation24_spill] sm:$0xff] %v14759_v29 }
 0x136   :  { %1120 = vst [vmem:[#allocation2 + $0x164] sm:$0xf] %v12350_v52  ;;  %v3661_v8 = vshrl.u32 %v3372_v49, 16  ;;  %v1459_v2 = vsel %vm14444_vm3, %v14551_v45, %v1458_v53  ;;  %v1480_v48 = vor.u32 %v1478_v14, %v1477_v10  ;;  %v1482_v51 = vrot.slane %v1477_v10, 4 }
 0x137   :  { %v1468_v27 = vsel %vm14444_vm3, %v1460_v0, %v1467_v32  ;;  %v1489_v28 = vor.u32 %v1487_v13, %v1486_v11  ;;  %v708_v63 = vmax.f32 %v562_v30, 0.0  ;;  %v3664_v37 = vshll.u32 %v3372_v49, 16  ;;  %v1184_v32 = vld [vmem:[#allocation2 + $0xb4] sm:$0xf] }
 0x138   :  { %v11862_v59 = vcombine.low %v1459_v2, %v1468_v27  ;;  %v3663_v23 = vrot.slane %v3661_v8, 4  ;;  %v1481_v47 = vsel %vm14444_vm3, %v14549_v42, %v1480_v48  ;;  %v3670_v6 = vshll.u32 %v3373_v21, 16  ;;  %v577_v48 = vpop.f32.mrf.mxu1 }
 0x139   :  { %v3674_v45 = vshrl.u32 %v3373_v21, 16  ;;  %v1490_v19 = vsel %vm14444_vm3, %v1482_v51, %v1489_v28  ;;  %v12348_v7 = vpack.c.bf16 %v708_v63, %v708_v63  ;;  %v3685_v54 = vshrl.u32 %v3375_v4, 16  ;;  %v14764_v51 = vpop.f32.mrf.mxu0  ;;  %v1185_v63 = vld [vmem:[#allocation2 + $0xb8] sm:$0xf] }
 0x13a   :  { %12905 = vmatmul.mubr.bf16.gmra.mxu1 %v11862_v59  ;;  %v3688_v36 = vshll.u32 %v3375_v4, 16  ;;  %v11863_v44 = vcombine.low %v1481_v47, %v1490_v19  ;;  %v3666_v12 = vrot.slane %v3664_v37, 5  ;;  %v3672_v5 = vrot.slane %v3670_v6, 5  ;;  %v1187_v6 = vld [vmem:[#allocation2 + $0xc4] sm:$0xf] }
 0x13b   :  { %v3676_v22 = vrot.slane %v3674_v45, 4  ;;  %1118 = vst [vmem:[#allocation2 + $0x154] sm:$0xf] %v12348_v7  ;;  %v3687_v42 = vrot.slane %v3685_v54, 4  ;;  %v3694_v20 = vshll.u32 %v3376_v41, 16  ;;  %v3698_v52 = vshrl.u32 %v3376_v41, 16 }
 0x13c   :  { %v3690_v49 = vrot.slane %v3688_v36, 5  ;;  %12908 = vmatprep.mubr.bf16.mxu1 %v11863_v44  ;;  %v3667_v14 = vor.u32 %v3666_v12, %v3663_v23  ;;  %v573_v53 = vadd.f32 %v14734_v9, %v12847_v34  ;;  %v565_v0 = vadd.f32 %v14734_v9, %v564_v62  ;;  %v1188_v45 = vld [vmem:[#allocation2 + $0xc8] sm:$0xf] }
 0x13d   :  { %v3677_v40 = vor.u32 %v3676_v22, %v3672_v5  ;;  %v3696_v11 = vrot.slane %v3694_v20, 5  ;;  %v3700_v13 = vrot.slane %v3698_v52, 4  ;;  %v586_v30 = vadd.f32 %v14734_v9, %v12850_v43  ;;  %v12851_v22 = vpop.f32.mrf.mxu1  ;;  %v14773_v43 = vpop.f32.mrf.mxu0  ;;  %v3378_v52 = vld [vmem:[#allocation2 + $0xb4] sm:$0xf] }
 0x13e   :  { %v3691_v10 = vor.u32 %v3690_v49, %v3687_v42  ;;  %v3668_v21 = vrot.slane %v3667_v14, 4  ;;  %v711_v2 = vmax.f32 %v573_v53, 0.0  ;;  %v709_v27 = vmax.f32 %v565_v0, 0.0  ;;  %v13729_v14 = vld [vmem:[#allocation4 + $0x48] sm:$0xff]  }
 0x13f   :  { %v3678_v8 = vrot.slane %v3677_v40, 4  ;;  %v3701_v59 = vor.u32 %v3700_v13, %v3696_v11  ;;  %v714_v28 = vmax.f32 %v586_v30, 0.0  ;;  %v1497_v34 = vshrl.u32 %v1184_v32, 16  ;;  %13032 = vmatprep.subr.bf16.mxu1 %v13729_v14 }
 0x140   :  { %v3692_v4 = vrot.slane %v3691_v10, 4  ;;  %v3673_v62 = vsel %vm14499_vm6, %v3668_v21, %v3672_v5  ;;  %v12351_v47 = vpack.c.bf16 %v711_v2, %v711_v2  ;;  %v12349_v37 = vpack.c.bf16 %v709_v27, %v709_v27  ;;  %v3379_v21 = vld [vmem:[#allocation2 + $0xb8] sm:$0xf]  ;;  %13033 = vmatpush3.bf16.msra.mxu1 %v13729_v14 }
 0x141   :  { %v3683_v23 = vsel %vm14499_vm6, %v3678_v8, %v14554_v56  ;;  %v3702_v7 = vrot.slane %v3701_v59, 4  ;;  %v12354_v54 = vpack.c.bf16 %v714_v28, %v714_v28  ;;  %v1499_v36 = vrot.slane %v1497_v34, 7  ;;  %v14782_v59 = vpop.f32.mrf.mxu0 }
 0x142   :  { %v11976_v41 = vcombine.low %v3673_v62, %v3683_v23  ;;  %v3697_v19 = vsel %vm14499_vm6, %v3692_v4, %v3696_v11  ;;  %1121 = vst [vmem:[#allocation2 + $0x168] sm:$0xf] %v12351_v47  ;;  %1119 = vst [vmem:[#allocation2 + $0x158] sm:$0xf] %v12349_v37  ;;  %v1500_v44 = vshll.u32 %v1184_v32, 16  ;;  %v1506_v12 = vshrl.u32 %v1185_v63, 16  ;;  %v580_v4 = vpop.f32.mrf.mxu1 }
 0x143   :  { %v1509_v5 = vshll.u32 %v1185_v63, 16  ;;  %v3707_v56 = vsel %vm14499_vm6, %v3702_v7, %v14556_v57  ;;  %1124 = vst [vmem:[#allocation2 + $0x184] sm:$0xf] %v12354_v54  ;;  %v1519_v42 = vshrl.u32 %v1187_v6, 16  ;;  %v1522_v49 = vshll.u32 %v1187_v6, 16 }
 0x144   :  { %13133 = vmatmul.mubr.bf16.gmra.mxu0 %v11976_v41  ;;  %v1528_v20 = vshrl.u32 %v1188_v45, 16  ;;  %v11977_v40 = vcombine.low %v3697_v19, %v3707_v56  ;;  %v1502_v53 = vor.u32 %v1500_v44, %v1499_v36  ;;  %v1504_v0 = vrot.slane %v1499_v36, 4  ;;  %v3381_v23 = vld [vmem:[#allocation2 + $0xc4] sm:$0xf]  ;;  %v14791_v56 = vpop.f32.mrf.mxu0 }
 0x145   :  { %v1508_v32 = vrot.slane %v1506_v12, 7  ;;  %v1521_v10 = vrot.slane %v1519_v42, 7  ;;  %v1531_v13 = vshll.u32 %v1188_v45, 16  ;;  %v578_v30 = vadd.f32 %v14734_v9, %v577_v48  ;;  %v3382_v45 = vld [vmem:[#allocation2 + $0xc8] sm:$0xf]  ;;  %18921 = vst [vmem:[#allocation25_spill] sm:$0xff] %v14791_v56 }
 0x146   :  { %v1530_v11 = vrot.slane %v1528_v20, 7  ;;  %13136 = vmatprep.mubr.bf16.mxu0 %v11977_v40  ;;  %v1503_v57 = vsel %vm14444_vm3, %v14562_v15, %v1502_v53  ;;  %v3709_v2 = vshrl.u32 %v3378_v52, 16  ;;  %v3712_v27 = vshll.u32 %v3378_v52, 16 }
 0x147   :  { %v1511_v8 = vor.u32 %v1509_v5, %v1508_v32  ;;  %v1524_v28 = vor.u32 %v1522_v49, %v1521_v10  ;;  %v1526_v63 = vrot.slane %v1521_v10, 4  ;;  %v712_v62 = vmax.f32 %v578_v30, 0.0  ;;  %v12854_v5 = vpop.f32.mrf.mxu1  ;;  %v13730_v30 = vld [vmem:[#allocation4 + $0x138] sm:$0xff]  }
 0x148   :  { %v1533_v34 = vor.u32 %v1531_v13, %v1530_v11  ;;  %v3711_v47 = vrot.slane %v3709_v2, 4  ;;  %v3714_v37 = vrot.slane %v3712_v27, 5  ;;  %v3718_v6 = vshll.u32 %v3379_v21, 16  ;;  %13260 = vmatprep.subr.bf16.mxu0 %v13730_v30 }
 0x149   :  { %v1512_v48 = vsel %vm14444_vm3, %v1504_v0, %v1511_v8  ;;  %v1525_v41 = vsel %vm14444_vm3, %v14558_v60, %v1524_v28  ;;  %v12352_v7 = vpack.c.bf16 %v712_v62, %v712_v62  ;;  %v3722_v12 = vshrl.u32 %v3379_v21, 16  ;;  %v1190_v0 = vld [vmem:[#allocation2 + $0xd4] sm:$0xf]  ;;  %v593_v27 = vpop.f32.mrf.mxu1  ;;  %v14797_v28 = vpop.f32.mrf.mxu0  ;;  %13261 = vmatpush3.bf16.msra.mxu0 %v13730_v30  ;;  %v1212_v56 = vld [vmem:[#allocation2 + $0x168] sm:$0xf] }
 0x14a   :  { %v11864_v15 = vcombine.low %v1503_v57, %v1512_v48  ;;  %v1534_v19 = vsel %vm14444_vm3, %v1526_v63, %v1533_v34  ;;  %v3715_v36 = vor.u32 %v3714_v37, %v3711_v47  ;;  %v3720_v44 = vrot.slane %v3718_v6, 5  ;;  %v3406_v33 = vld [vmem:[#allocation2 + $0x168] sm:$0xf] }
 0x14b   :  { %v11865_v54 = vcombine.low %v1525_v41, %v1534_v19  ;;  %1122 = vst [vmem:[#allocation2 + $0x174] sm:$0xf] %v12352_v7  ;;  %v3733_v42 = vshrl.u32 %v3381_v23, 16  ;;  %v3736_v49 = vshll.u32 %v3381_v23, 16  ;;  %v3742_v20 = vshll.u32 %v3382_v45, 16 }
 0x14c   :  { %12909 = vmatmul.mubr.bf16.gmra.mxu1 %v11864_v15  ;;  %v3746_v52 = vshrl.u32 %v3382_v45, 16  ;;  %v3716_v14 = vrot.slane %v3715_v36, 4  ;;  %v3724_v60 = vrot.slane %v3722_v12, 4  ;;  %v589_v40 = vadd.f32 %v14734_v9, %v12851_v22  ;;  %v1193_v23 = vld [vmem:[#allocation2 + $0xe4] sm:$0xf] }
 0x14d   :  { %12912 = vmatprep.mubr.bf16.mxu1 %v11865_v54  ;;  %v581_v53 = vadd.f32 %v14734_v9, %v580_v4  ;;  %v3735_v32 = vrot.slane %v3733_v42, 4  ;;  %v3738_v10 = vrot.slane %v3736_v49, 5  ;;  %v3744_v11 = vrot.slane %v3742_v20, 5  ;;  %v1191_v4 = vld [vmem:[#allocation2 + $0xd8] sm:$0xf]  ;;  %v14803_v42 = vpop.f32.mrf.mxu0  ;;  %v13731_v49 = vld [vmem:[#allocation4 + $0x130] sm:$0xff]  }
 0x14e   :  { %v3748_v13 = vrot.slane %v3746_v52, 4  ;;  %v3721_v21 = vsel %vm14499_vm6, %v3716_v14, %v3720_v44  ;;  %v3725_v57 = vor.u32 %v3724_v60, %v3720_v44  ;;  %v715_v8 = vmax.f32 %v589_v40, 0.0  ;;  %v1194_v44 = vld [vmem:[#allocation2 + $0xe8] sm:$0xf]  ;;  %13262 = vmatprep.subr.bf16.mxu0 %v13731_v49 }
 0x14f   :  { %v713_v2 = vmax.f32 %v581_v53, 0.0  ;;  %v3739_v63 = vor.u32 %v3738_v10, %v3735_v32  ;;  %v602_v22 = vadd.f32 %v14734_v9, %v12854_v5  ;;  %v1541_v62 = vshrl.u32 %v1190_v0, 16  ;;  %v12855_v5 = vpop.f32.mrf.mxu1  ;;  %13263 = vmatpush3.bf16.msra.mxu0 %v13731_v49 }
 0x150   :  { %v3749_v34 = vor.u32 %v3748_v13, %v3744_v11  ;;  %v3726_v48 = vrot.slane %v3725_v57, 4  ;;  %v12355_v47 = vpack.c.bf16 %v715_v8, %v715_v8  ;;  %v1544_v6 = vshll.u32 %v1190_v0, 16  ;;  %v3385_v57 = vld [vmem:[#allocation2 + $0xd8] sm:$0xf]  ;;  %v14810_v8 = vpop.f32.mrf.mxu0 }
 0x151   :  { %v12353_v37 = vpack.c.bf16 %v713_v2, %v713_v2  ;;  %v3740_v45 = vrot.slane %v3739_v63, 4  ;;  %v718_v41 = vmax.f32 %v602_v22, 0.0  ;;  %v1543_v19 = vrot.slane %v1541_v62, 7 }
 0x152   :  { %v3750_v15 = vrot.slane %v3749_v34, 4  ;;  %v3731_v7 = vsel %vm14499_vm6, %v3726_v48, %v14564_v16  ;;  %1125 = vst [vmem:[#allocation2 + $0x188] sm:$0xf] %v12355_v47  ;;  %v1550_v54 = vshrl.u32 %v1191_v4, 16  ;;  %v1553_v36 = vshll.u32 %v1191_v4, 16  ;;  %v596_v34 = vpop.f32.mrf.mxu1 }
 0x153   :  { %1123 = vst [vmem:[#allocation2 + $0x178] sm:$0xf] %v12353_v37  ;;  %v1563_v12 = vshrl.u32 %v1193_v23, 16  ;;  %v11978_v20 = vcombine.low %v3721_v21, %v3731_v7  ;;  %v3745_v52 = vsel %vm14499_vm6, %v3740_v45, %v3744_v11  ;;  %v12358_v60 = vpack.c.bf16 %v718_v41, %v718_v41  ;;  %v3384_v16 = vld [vmem:[#allocation2 + $0xd4] sm:$0xf]  ;;  %v14821_v7 = vpop.f32.mrf.mxu0 }
 0x154   :  { %v3755_v14 = vsel %vm14499_vm6, %v3750_v15, %v14566_v17  ;;  %v1546_v53 = vor.u32 %v1544_v6, %v1543_v19  ;;  %v1548_v0 = vrot.slane %v1543_v19, 4  ;;  %v1552_v32 = vrot.slane %v1550_v54, 7  ;;  %v3387_v48 = vld [vmem:[#allocation2 + $0xe4] sm:$0xf]  ;;  %v3388_v15 = vld [vmem:[#allocation2 + $0xe8] sm:$0xf]  ;;  %v12858_v49 = vpop.f32.mrf.mxu1 }
 0x155   :  { %v11979_v40 = vcombine.low %v3745_v52, %v3755_v14  ;;  %13137 = vmatmul.mubr.bf16.gmra.mxu0 %v11978_v20  ;;  %1128 = vst [vmem:[#allocation2 + $0x1a4] sm:$0xf] %v12358_v60  ;;  %v1565_v10 = vrot.slane %v1563_v12, 7  ;;  %v1566_v13 = vshll.u32 %v1193_v23, 16  ;;  %v1572_v30 = vshrl.u32 %v1194_v44, 16  ;;  %18922 = vst [vmem:[#allocation26_spill] sm:$0xff] %v14821_v7 }
 0x156   :  { %v1575_v21 = vshll.u32 %v1194_v44, 16  ;;  %v1547_v17 = vsel %vm14444_vm3, %v14572_v31, %v1546_v53  ;;  %v1555_v11 = vor.u32 %v1553_v36, %v1552_v32  ;;  %v594_v2 = vadd.f32 %v14734_v9, %v593_v27 }
 0x157   :  { %13140 = vmatprep.mubr.bf16.mxu0 %v11979_v40  ;;  %v3757_v63 = vshrl.u32 %v3384_v16, 16  ;;  %v1568_v22 = vor.u32 %v1566_v13, %v1565_v10  ;;  %v1570_v4 = vrot.slane %v1565_v10, 4  ;;  %v1574_v62 = vrot.slane %v1572_v30, 7 }
 0x158   :  { %v3760_v23 = vshll.u32 %v3384_v16, 16  ;;  %v1556_v47 = vsel %vm14444_vm3, %v1548_v0, %v1555_v11  ;;  %v716_v37 = vmax.f32 %v594_v2, 0.0  ;;  %v3766_v45 = vshll.u32 %v3385_v57, 16  ;;  %v1195_v0 = vld [vmem:[#allocation2 + $0xf0] sm:$0x8] }
 0x159   :  { %v3759_v6 = vrot.slane %v3757_v63, 4  ;;  %v11866_v41 = vcombine.low %v1547_v17, %v1556_v47  ;;  %v1569_v31 = vsel %vm14444_vm3, %v14569_v25, %v1568_v22  ;;  %v1577_v27 = vor.u32 %v1575_v21, %v1574_v62  ;;  %v14826_v21 = vpop.f32.mrf.mxu0  ;;  %v1196_v63 = vld [vmem:[#allocation2 + $0xf4] sm:$0xf]  ;;  %v609_v22 = vpop.f32.mrf.mxu1 }
 0x15a   :  { %v3762_v19 = vrot.slane %v3760_v23, 5  ;;  %v12356_v54 = vpack.c.bf16 %v716_v37, %v716_v37  ;;  %v3768_v36 = vrot.slane %v3766_v45, 5  ;;  %v3770_v44 = vshrl.u32 %v3385_v57, 16 }
 0x15b   :  { %v3781_v12 = vshrl.u32 %v3387_v48, 16  ;;  %12913 = vmatmul.mubr.bf16.gmra.mxu1 %v11866_v41  ;;  %v1578_v20 = vsel %vm14444_vm3, %v1570_v4, %v1577_v27  ;;  %v3784_v14 = vshll.u32 %v3387_v48, 16  ;;  %v3790_v60 = vshll.u32 %v3388_v15, 16  ;;  %v13732_v4 = vld [vmem:[#allocation4 + $0x128] sm:$0xff]  }
 0x15c   :  { %v3763_v52 = vor.u32 %v3762_v19, %v3759_v6  ;;  %v11867_v16 = vcombine.low %v1569_v31, %v1578_v20  ;;  %1126 = vst [vmem:[#allocation2 + $0x194] sm:$0xf] %v12356_v54  ;;  %v3772_v40 = vrot.slane %v3770_v44, 4  ;;  %v3794_v53 = vshrl.u32 %v3388_v15, 16  ;;  %v1197_v15 = vld [vmem:[#allocation2 + $0xf8] sm:$0xf]  ;;  %13264 = vmatprep.subr.bf16.mxu0 %v13732_v4  ;;  %v14834_v19 = vpop.f32.mrf.mxu0 }
 0x15d   :  { %v3783_v25 = vrot.slane %v3781_v12, 4  ;;  %v3786_v10 = vrot.slane %v3784_v14, 5  ;;  %v3792_v13 = vrot.slane %v3790_v60, 5  ;;  %v605_v30 = vadd.f32 %v14734_v9, %v12855_v5  ;;  %13265 = vmatpush3.bf16.msra.mxu0 %v13732_v4  ;;  %18923 = vst [vmem:[#allocation27_spill] sm:$0xff] %v14834_v19  ;;  %v13733_v54 = vld [vmem:[#allocation4 + $0x120] sm:$0xff]   ;;  %v12859_v14 = vpop.f32.mrf.mxu1 }
 0x15e   :  { %v3764_v32 = vrot.slane %v3763_v52, 4  ;;  %12916 = vmatprep.mubr.bf16.mxu1 %v11867_v16  ;;  %v3773_v57 = vor.u32 %v3772_v40, %v3768_v36  ;;  %v3796_v17 = vrot.slane %v3794_v53, 4  ;;  %v597_v11 = vadd.f32 %v14734_v9, %v596_v34  ;;  %v13734_v44 = vld [vmem:[#allocation4 + $0x40] sm:$0xff]   ;;  %v3390_v52 = vld [vmem:[#allocation2 + $0xf4] sm:$0xf]  ;;  %13266 = vmatprep.subr.bf16.mxu0 %v13733_v54 }
 0x15f   :  { %v618_v2 = vadd.f32 %v14734_v9, %v12858_v49  ;;  %v3787_v23 = vor.u32 %v3786_v10, %v3783_v25  ;;  %v719_v48 = vmax.f32 %v605_v30, 0.0  ;;  %v1580_v47 = vshrl.u32 %v1195_v0, 16  ;;  %v3391_v53 = vld [vmem:[#allocation2 + $0xf8] sm:$0xf]  ;;  %13034 = vmatprep.subr.bf16.mxu1 %v13734_v44  ;;  %v18924_v0 = vld [vmem:[#allocation12_spill] sm:$0xff] }
 0x160   :  { %v3769_v62 = vsel %vm14499_vm6, %v3764_v32, %v3768_v36  ;;  %v3774_v37 = vrot.slane %v3773_v57, 4  ;;  %v3797_v5 = vor.u32 %v3796_v17, %v3792_v13  ;;  %v717_v6 = vmax.f32 %v597_v11, 0.0  ;;  %v3392_v57 = vld [vmem:[#allocation2 + $0xfc] sm:$0x1]  ;;  %v14845_v17 = vpop.f32.mrf.mxu0  ;;  %13035 = vmatpush3.bf16.msra.mxu1 %v13734_v44 }
 0x161   :  { %v722_v45 = vmax.f32 %v618_v2, 0.0  ;;  %v3788_v41 = vrot.slane %v3787_v23, 4  ;;  %v12359_v31 = vpack.c.bf16 %v719_v48, %v719_v48  ;;  %v14832_v34 = vrot.slane %v1580_v47, 11  ;;  %18925 = vst [vmem:[#allocation12_spill] sm:$0xff] %v14845_v17  ;;  %v612_v47 = vpop.f32.mrf.mxu1  ;;  %13267 = vmatpush3.bf16.msra.mxu0 %v13733_v54  ;;  %v15496_v17 = vld [vmem:[#allocation2 + $0x134] sm:$0xf] }
 0x162   :  { %v1585_v27 = vshrl.u32 %v1196_v63, 16  ;;  %v3779_v36 = vsel %vm14499_vm6, %v3774_v37, %v14575_v38  ;;  %v3798_v12 = vrot.slane %v3797_v5, 4  ;;  %v12357_v49 = vpack.c.bf16 %v717_v6, %v717_v6  ;;  %v1199_v37 = vld [vmem:[#allocation2 + $0x124] sm:$0xf] }
 0x163   :  { %v12362_v20 = vpack.c.bf16 %v722_v45, %v722_v45  ;;  %v11980_v60 = vcombine.low %v3769_v62, %v3779_v36  ;;  %v3793_v16 = vsel %vm14499_vm6, %v3788_v41, %v3792_v13  ;;  %1129 = vst [vmem:[#allocation2 + $0x1a8] sm:$0xf] %v12359_v31  ;;  %v1588_v25 = vshll.u32 %v1196_v63, 16  ;;  %v14850_v36 = vpop.f32.mrf.mxu0 }
 0x164   :  { %v1587_v40 = vrot.slane %v1585_v27, 7  ;;  %v3803_v32 = vsel %vm14499_vm6, %v3798_v12, %v18924_v0  ;;  %1127 = vst [vmem:[#allocation2 + $0x198] sm:$0xf] %v12357_v49  ;;  %v1594_v38 = vshrl.u32 %v1197_v15, 16  ;;  %v1597_v10 = vshll.u32 %v1197_v15, 16  ;;  %18926 = vst [vmem:[#allocation28_spill] sm:$0xff] %v14850_v36 }
 0x165   :  { %1132 = vst [vmem:[#allocation2 + $0x1c4] sm:$0xf] %v12362_v20  ;;  %v610_v30 = vadd.f32 %v14734_v9, %v609_v22  ;;  %13141 = vmatmul.mubr.bf16.gmra.mxu0 %v11980_v60  ;;  %v11981_v13 = vcombine.low %v3793_v16, %v3803_v32  ;;  %v3805_v63 = vshrl.u32 %v3390_v52, 16  ;;  %v3808_v23 = vshll.u32 %v3390_v52, 16  ;;  %v1198_v15 = vld [vmem:[#allocation2 + $0x120] sm:$0x8] }
 0x166   :  { %v1590_v11 = vor.u32 %v1588_v25, %v1587_v40  ;;  %v1592_v2 = vrot.slane %v1587_v40, 4  ;;  %v1596_v4 = vrot.slane %v1594_v38, 7  ;;  %v3814_v48 = vshll.u32 %v3391_v53, 16  ;;  %v1200_v60 = vld [vmem:[#allocation2 + $0x128] sm:$0xf] }
 0x167   :  { %v720_v62 = vmax.f32 %v610_v30, 0.0  ;;  %13144 = vmatprep.mubr.bf16.mxu0 %v11981_v13  ;;  %v3807_v5 = vrot.slane %v3805_v63, 4  ;;  %v3818_v6 = vshrl.u32 %v3391_v53, 16  ;;  %v3824_v45 = vshll.u32 %v3392_v57, 16  ;;  %v1201_v13 = vld [vmem:[#allocation2 + $0x130] sm:$0x8] }
 0x168   :  { %v1591_v22 = vsel %vm14444_vm3, %v14832_v34, %v1590_v11  ;;  %v1599_v41 = vor.u32 %v1597_v10, %v1596_v4  ;;  %v3810_v27 = vrot.slane %v3808_v23, 5  ;;  %v3816_v44 = vrot.slane %v3814_v48, 5  ;;  %v13735_v23 = vld [vmem:[#allocation4 + $0x118] sm:$0xff]  }
 0x169   :  { %v12360_v31 = vpack.c.bf16 %v720_v62, %v720_v62  ;;  %v3820_v12 = vrot.slane %v3818_v6, 4  ;;  %v3826_v49 = vrot.slane %v3824_v45, 5  ;;  %v621_v20 = vadd.f32 %v14734_v9, %v12859_v14  ;;  %v14856_v14 = vpop.f32.mrf.mxu0  ;;  %v1202_v62 = vld [vmem:[#allocation2 + $0x134] sm:$0xf]  ;;  %v12862_v6 = vpop.f32.mrf.mxu1  ;;  %v1203_v45 = vld [vmem:[#allocation2 + $0x138] sm:$0xf]  ;;  %13268 = vmatprep.subr.bf16.mxu0 %v13735_v23 }
 0x16a   :  { %v613_v54 = vadd.f32 %v14734_v9, %v612_v47  ;;  %v1600_v52 = vsel %vm14444_vm3, %v1592_v2, %v1599_v41  ;;  %v3811_v34 = vor.u32 %v3810_v27, %v3807_v5  ;;  %v1602_v16 = vshrl.u32 %v1198_v15, 16  ;;  %18927 = vst [vmem:[#allocation29_spill] sm:$0xff] %v14856_v14  ;;  %v1204_v27 = vld [vmem:[#allocation2 + $0x140] sm:$0x8]  ;;  %13269 = vmatpush3.bf16.msra.mxu0 %v13735_v23 }
 0x16b   :  { %1130 = vst [vmem:[#allocation2 + $0x1b4] sm:$0xf] %v12360_v31  ;;  %v1607_v40 = vshrl.u32 %v1199_v37, 16  ;;  %v11868_v25 = vcombine.low %v1591_v22, %v1600_v52  ;;  %v3821_v53 = vor.u32 %v3820_v12, %v3816_v44  ;;  %v723_v0 = vmax.f32 %v621_v20, 0.0  ;;  %v1205_v12 = vld [vmem:[#allocation2 + $0x144] sm:$0xf] }
 0x16c   :  { %v721_v32 = vmax.f32 %v613_v54, 0.0  ;;  %v3812_v38 = vrot.slane %v3811_v34, 4  ;;  %v11837_v10 = vrot.slane %v1602_v16, 11  ;;  %v1610_v57 = vshll.u32 %v1199_v37, 16  ;;  %v14865_v34 = vpop.f32.mrf.mxu0 }
 0x16d   :  { %v1609_v30 = vrot.slane %v1607_v40, 7  ;;  %12917 = vmatmul.mubr.bf16.gmra.mxu1 %v11868_v25  ;;  %v3822_v11 = vrot.slane %v3821_v53, 4  ;;  %v12363_v63 = vpack.c.bf16 %v723_v0, %v723_v0  ;;  %v1616_v4 = vshrl.u32 %v1200_v60, 16  ;;  %18928 = vst [vmem:[#allocation30_spill] sm:$0xff] %v14865_v34 }
 0x16e   :  { %v12361_v2 = vpack.c.bf16 %v721_v32, %v721_v32  ;;  %v3817_v48 = vsel %vm14499_vm6, %v3812_v38, %v3816_v44  ;;  %v1619_v5 = vshll.u32 %v1200_v60, 16  ;;  %v634_v41 = vadd.f32 %v14734_v9, %v12862_v6  ;;  %v13736_v60 = vld [vmem:[#allocation4 + $0x110] sm:$0xff]   ;;  %v1206_v32 = vld [vmem:[#allocation2 + $0x148] sm:$0xf] }
 0x16f   :  { %v1612_v47 = vor.u32 %v1610_v57, %v1609_v30  ;;  %v1614_v22 = vrot.slane %v1609_v30, 4  ;;  %v3827_v37 = vsel %vm14499_vm6, %v3822_v11, %v3826_v49  ;;  %1133 = vst [vmem:[#allocation2 + $0x1c8] sm:$0xf] %v12363_v63  ;;  %v1618_v15 = vrot.slane %v1616_v4, 7  ;;  %v14867_v57 = vpop.f32.mrf.mxu0  ;;  %13270 = vmatprep.subr.bf16.mxu0 %v13736_v60  ;;  %v3394_v4 = vld [vmem:[#allocation2 + $0x128] sm:$0xf] }
 0x170   :  { %1131 = vst [vmem:[#allocation2 + $0x1b8] sm:$0xf] %v12361_v2  ;;  %v1624_v31 = vshrl.u32 %v1201_v13, 16  ;;  %v11982_v20 = vcombine.low %v3817_v48, %v3827_v37  ;;  %v1629_v54 = vshrl.u32 %v1202_v62, 16  ;;  %v1632_v52 = vshll.u32 %v1202_v62, 16  ;;  %18929 = vst [vmem:[#allocation31_spill] sm:$0xff] %v14867_v57  ;;  %13271 = vmatpush3.bf16.msra.mxu0 %v13736_v60 }
 0x171   :  { %v1613_v44 = vsel %vm14444_vm3, %v11837_v10, %v1612_v47  ;;  %v1621_v49 = vor.u32 %v1619_v5, %v1618_v15  ;;  %v726_v16 = vmax.f32 %v634_v41, 0.0  ;;  %v1638_v25 = vshrl.u32 %v1203_v45, 16  ;;  %v3393_v2 = vld [vmem:[#allocation2 + $0x124] sm:$0xf]  ;;  %v14871_v5 = vpop.f32.mrf.mxu0  ;;  %v3395_v41 = vld [vmem:[#allocation2 + $0x12c] sm:$0x1] }
 0x172   :  { %v11838_v40 = vrot.slane %v1624_v31, 11  ;;  %13145 = vmatmul.mubr.bf16.gmra.mxu0 %v11982_v20  ;;  %v1631_v53 = vrot.slane %v1629_v54, 7  ;;  %v1641_v0 = vshll.u32 %v1203_v45, 16  ;;  %v1646_v38 = vshrl.u32 %v1204_v27, 16  ;;  %18930 = vst [vmem:[#allocation32_spill] sm:$0xff] %v14871_v5 }
 0x173   :  { %v1651_v30 = vshrl.u32 %v1205_v12, 16  ;;  %v1622_v10 = vsel %vm14444_vm3, %v1614_v22, %v1621_v49  ;;  %v12366_v13 = vpack.c.bf16 %v726_v16, %v726_v16  ;;  %v1640_v11 = vrot.slane %v1638_v25, 7  ;;  %v14875_v20 = vpop.f32.mrf.mxu0  ;;  %v625_v49 = vpop.f32.mrf.mxu1  ;;  %v3396_v16 = vld [vmem:[#allocation2 + $0x134] sm:$0xf] }
 0x174   :  { %v1654_v63 = vshll.u32 %v1205_v12, 16  ;;  %v11869_v62 = vcombine.low %v1613_v44, %v1622_v10  ;;  %v1634_v23 = vor.u32 %v1632_v52, %v1631_v53  ;;  %v1636_v48 = vrot.slane %v1631_v53, 4  ;;  %18931 = vst [vmem:[#allocation33_spill] sm:$0xff] %v14875_v20  ;;  %v13816_v20 = vld [vmem:[#allocation4 + $0x188] sm:$0xff]  }
 0x175   :  { %v11839_v47 = vrot.slane %v1646_v38, 11  ;;  %1136 = vst [vmem:[#allocation2 + $0x1e4] sm:$0xf] %v12366_v13  ;;  %v1643_v6 = vor.u32 %v1641_v0, %v1640_v11  ;;  %v1653_v45 = vrot.slane %v1651_v30, 7  ;;  %v1660_v37 = vshrl.u32 %v1206_v32, 16  ;;  %v13737_v11 = vld [vmem:[#allocation4 + $0x108] sm:$0xff]  }
 0x176   :  { %v1663_v15 = vshll.u32 %v1206_v32, 16  ;;  %12920 = vmatprep.mubr.bf16.mxu1 %v11869_v62  ;;  %v1635_v22 = vsel %vm14444_vm3, %v11838_v40, %v1634_v23  ;;  %v3829_v31 = vshrl.u32 %v3393_v2, 16  ;;  %v3832_v27 = vshll.u32 %v3393_v2, 16  ;;  %v3397_v38 = vld [vmem:[#allocation2 + $0x138] sm:$0xf]  ;;  %13272 = vmatprep.subr.bf16.mxu0 %v13737_v11 }
 0x177   :  { %v3838_v12 = vshll.u32 %v3394_v4, 16  ;;  %v1644_v44 = vsel %vm14444_vm3, %v1636_v48, %v1643_v6  ;;  %v1656_v54 = vor.u32 %v1654_v63, %v1653_v45  ;;  %v1658_v52 = vrot.slane %v1653_v45, 4  ;;  %v3398_v62 = vld [vmem:[#allocation2 + $0x13c] sm:$0x1]  ;;  %v14882_v6 = vpop.f32.mrf.mxu0  ;;  %v13739_v45 = vld [vmem:[#allocation4 + $0x100] sm:$0xff]   ;;  %13273 = vmatpush3.bf16.msra.mxu0 %v13737_v11 }
 0x178   :  { %v1662_v60 = vrot.slane %v1660_v37, 7  ;;  %v11870_v25 = vcombine.low %v1635_v22, %v1644_v44  ;;  %v3831_v53 = vrot.slane %v3829_v31, 4  ;;  %v3834_v0 = vrot.slane %v3832_v27, 5  ;;  %18932 = vst [vmem:[#allocation34_spill] sm:$0xff] %v14882_v6  ;;  %v13740_v37 = vld [vmem:[#allocation4 + $0xf8] sm:$0xff]   ;;  %13274 = vmatprep.subr.bf16.mxu0 %v13739_v45 }
 0x179   :  { %v3840_v32 = vrot.slane %v3838_v12, 5  ;;  %v1657_v40 = vsel %vm14444_vm3, %v11839_v47, %v1656_v54  ;;  %v3842_v10 = vshrl.u32 %v3394_v4, 16  ;;  %v3848_v13 = vshll.u32 %v3395_v41, 16  ;;  %v3399_v4 = vld [vmem:[#allocation2 + $0x144] sm:$0xf]  ;;  %v12863_v41 = vpop.f32.mrf.mxu1  ;;  %13180 = vmatprep.subr.bf16.mxu1 %v13740_v37 }
 0x17a   :  { %v1665_v30 = vor.u32 %v1663_v15, %v1662_v60  ;;  %12921 = vmatmul.mubr.bf16.gmra.mxu1 %v11870_v25  ;;  %v3835_v2 = vor.u32 %v3834_v0, %v3831_v53  ;;  %v626_v63 = vadd.f32 %v14734_v9, %v625_v49  ;;  %v3853_v23 = vshrl.u32 %v3396_v16, 16  ;;  %v14886_v60 = vpop.f32.mrf.mxu0  ;;  %v3400_v0 = vld [vmem:[#allocation2 + $0x148] sm:$0xf]  ;;  %v15326_v6 = vld [vmem:[#allocation2 + $0xd8] sm:$0xf] }
 0x17b   :  { %v3856_v48 = vshll.u32 %v3396_v16, 16  ;;  %v3844_v31 = vrot.slane %v3842_v10, 4  ;;  %v3850_v47 = vrot.slane %v3848_v13, 5  ;;  %v3862_v15 = vshll.u32 %v3397_v38, 16  ;;  %18933 = vst [vmem:[#allocation35_spill] sm:$0xff] %v14886_v60  ;;  %13275 = vmatpush3.bf16.msra.mxu0 %v13739_v45  ;;  %19038 = vst [vmem:[#allocation140_spill] sm:$0xff] %v15326_v6 }
 0x17c   :  { %v1666_v22 = vsel %vm14444_vm3, %v1658_v52, %v1665_v30  ;;  %v3836_v12 = vrot.slane %v3835_v2, 4  ;;  %v724_v44 = vmax.f32 %v626_v63, 0.0  ;;  %v3855_v54 = vrot.slane %v3853_v23, 4  ;;  %v14890_v13 = vpop.f32.mrf.mxu0  ;;  %v3401_v23 = vld [vmem:[#allocation2 + $0x14c] sm:$0x1] }
 0x17d   :  { %v11871_v27 = vcombine.low %v1657_v40, %v1666_v22  ;;  %v3845_v49 = vor.u32 %v3844_v31, %v3840_v32  ;;  %v3858_v16 = vrot.slane %v3856_v48, 5  ;;  %v3864_v25 = vrot.slane %v3862_v15, 5  ;;  %18934 = vst [vmem:[#allocation36_spill] sm:$0xff] %v14890_v13  ;;  %v628_v22 = vpop.f32.mrf.mxu1 }
 0x17e   :  { %v3866_v53 = vshrl.u32 %v3397_v38, 16  ;;  %v3841_v52 = vsel %vm14499_vm6, %v3836_v12, %v3840_v32  ;;  %v12364_v30 = vpack.c.bf16 %v724_v44, %v724_v44  ;;  %v3872_v10 = vshll.u32 %v3398_v62, 16 }
 0x17f   :  { %12924 = vmatprep.mubr.bf16.mxu1 %v11871_v27  ;;  %v3877_v40 = vshrl.u32 %v3399_v4, 16  ;;  %v3846_v2 = vrot.slane %v3845_v49, 4  ;;  %v3859_v11 = vor.u32 %v3858_v16, %v3855_v54  ;;  %v3880_v37 = vshll.u32 %v3399_v4, 16  ;;  %v14892_v27 = vpop.f32.mrf.mxu0  ;;  %v1207_v4 = vld [vmem:[#allocation2 + $0x150] sm:$0x8] }
 0x180   :  { %v3868_v63 = vrot.slane %v3866_v53, 4  ;;  %1134 = vst [vmem:[#allocation2 + $0x1d4] sm:$0xf] %v12364_v30  ;;  %v3874_v48 = vrot.slane %v3872_v10, 5  ;;  %v3886_v31 = vshll.u32 %v3400_v0, 16  ;;  %v3890_v15 = vshrl.u32 %v3400_v0, 16 }
 0x181   :  { %v3879_v38 = vrot.slane %v3877_v40, 4  ;;  %18935 = vst [vmem:[#allocation37_spill] sm:$0xff] %v14892_v27  ;;  %v3851_v32 = vsel %vm14499_vm6, %v3846_v2, %v3850_v47  ;;  %v3860_v62 = vrot.slane %v3859_v11, 4  ;;  %v3882_v44 = vrot.slane %v3880_v37, 5  ;;  %v14896_v13 = vpop.f32.mrf.mxu0  ;;  %v12866_v40 = vpop.f32.mrf.mxu1  ;;  %v13890_v27 = vld [vmem:[#allocation2 + $0x68] sm:$0xf] }
 0x182   :  { %v3869_v12 = vor.u32 %v3868_v63, %v3864_v25  ;;  %v11983_v49 = vcombine.low %v3841_v52, %v3851_v32  ;;  %v3888_v54 = vrot.slane %v3886_v31, 5  ;;  %v3892_v16 = vrot.slane %v3890_v15, 4  ;;  %18936 = vst [vmem:[#allocation38_spill] sm:$0xff] %v14896_v13  ;;  %v1208_v63 = vld [vmem:[#allocation2 + $0x154] sm:$0xf] }
 0x183   :  { %v3896_v53 = vshll.u32 %v3401_v23, 16  ;;  %v3865_v30 = vsel %vm14499_vm6, %v3860_v62, %v3864_v25  ;;  %v3883_v45 = vor.u32 %v3882_v44, %v3879_v38  ;;  %v637_v10 = vadd.f32 %v14734_v9, %v12863_v41  ;;  %v14903_v23 = vpop.f32.mrf.mxu0  ;;  %v1210_v38 = vld [vmem:[#allocation2 + $0x160] sm:$0x8]  ;;  %v1209_v44 = vld [vmem:[#allocation2 + $0x158] sm:$0xf] }
 0x184   :  { %v3870_v0 = vrot.slane %v3869_v12, 4  ;;  %13148 = vmatprep.mubr.bf16.mxu0 %v11983_v49  ;;  %v3893_v47 = vor.u32 %v3892_v16, %v3888_v54  ;;  %v629_v11 = vadd.f32 %v14734_v9, %v628_v22  ;;  %v650_v52 = vadd.f32 %v14734_v9, %v12866_v40  ;;  %18937 = vst [vmem:[#allocation39_spill] sm:$0xff] %v14903_v23  ;;  %v1211_v40 = vld [vmem:[#allocation2 + $0x164] sm:$0xf] }
 0x185   :  { %v3898_v2 = vrot.slane %v3896_v53, 5  ;;  %v3884_v31 = vrot.slane %v3883_v45, 4  ;;  %v727_v25 = vmax.f32 %v637_v10, 0.0  ;;  %v1668_v15 = vshrl.u32 %v1207_v4, 16  ;;  %v14907_v49 = vpop.f32.mrf.mxu0  ;;  %v13889_v13 = vld [vmem:[#allocation2 + $0x64] sm:$0xf] }
 0x186   :  { %v3875_v37 = vsel %vm14499_vm6, %v3870_v0, %v3874_v48  ;;  %v3894_v41 = vrot.slane %v3893_v47, 4  ;;  %v725_v62 = vmax.f32 %v629_v11, 0.0  ;;  %v730_v12 = vmax.f32 %v650_v52, 0.0  ;;  %18938 = vst [vmem:[#allocation40_spill] sm:$0xff] %v14907_v49 }
 0x187   :  { %v11984_v32 = vcombine.low %v3865_v30, %v3875_v37  ;;  %v3889_v9 = vsel %vm14499_vm6, %v3884_v31, %v3888_v54  ;;  %v12367_v22 = vpack.c.bf16 %v727_v25, %v727_v25  ;;  %v11840_v16 = vrot.slane %v1668_v15, 11  ;;  %v14913_v45 = vpop.f32.mrf.mxu0  ;;  %v641_v54 = vpop.f32.mrf.mxu1 }
 0x188   :  { %v1673_v53 = vshrl.u32 %v1208_v63, 16  ;;  %v3899_v48 = vsel %vm14499_vm6, %v3894_v41, %v3898_v2  ;;  %v12365_v4 = vpack.c.bf16 %v725_v62, %v725_v62  ;;  %v12370_v30 = vpack.c.bf16 %v730_v12, %v730_v12  ;;  %18939 = vst [vmem:[#allocation41_spill] sm:$0xff] %v14913_v45  ;;  %v13785_v45 = vld [vmem:[#allocation4 + $0xd0] sm:$0xff]  }
 0x189   :  { %13149 = vmatmul.mubr.bf16.gmra.mxu0 %v11984_v32  ;;  %v1676_v0 = vshll.u32 %v1208_v63, 16  ;;  %v11985_v10 = vcombine.low %v3889_v9, %v3899_v48  ;;  %1137 = vst [vmem:[#allocation2 + $0x1e8] sm:$0xf] %v12367_v22  ;;  %v1682_v11 = vshrl.u32 %v1209_v44, 16  ;;  %v1685_v52 = vshll.u32 %v1209_v44, 16  ;;  %v14915_v49 = vpop.f32.mrf.mxu0 }
 0x18a   :  { %v1675_v47 = vrot.slane %v1673_v53, 7  ;;  %1135 = vst [vmem:[#allocation2 + $0x1d8] sm:$0xf] %v12365_v4  ;;  %1140 = vst [vmem:[#allocation2 + $0x204] sm:$0xf] %v12370_v30  ;;  %v1690_v37 = vshrl.u32 %v1210_v38, 16 }
 0x18b   :  { %v1695_v31 = vshrl.u32 %v1211_v40, 16  ;;  %v1698_v25 = vshll.u32 %v1211_v40, 16  ;;  %v1704_v15 = vshrl.u32 %v1212_v56, 16  ;;  %v3402_v32 = vld [vmem:[#allocation2 + $0x154] sm:$0xf]  ;;  %18940 = vst [vmem:[#allocation42_spill] sm:$0xff] %v14915_v49  ;;  %13152 = vmatprep.mubr.bf16.mxu0 %v11985_v10  ;;  %v14923_v40 = vpop.f32.mrf.mxu0 }
 0x18c   :  { %v1678_v2 = vor.u32 %v1676_v0, %v1675_v47  ;;  %v1680_v63 = vrot.slane %v1675_v47, 4  ;;  %v1684_v41 = vrot.slane %v1682_v11, 7  ;;  %v1707_v62 = vshll.u32 %v1212_v56, 16  ;;  %v14920_v44 = vld [vmem:[%s18781_s2] ss:$0 sm:$0xff]  ;;  %18941 = vst [vmem:[#allocation43_spill] sm:$0xff] %v14923_v40  ;;  %v12867_v56 = vpop.f32.mrf.mxu1 }
 0x18d   :  { %v11841_v12 = vrot.slane %v1690_v37, 11  ;;  %v1697_v9 = vrot.slane %v1695_v31, 7  ;;  %v1706_v22 = vrot.slane %v1704_v15, 7  ;;  %v642_v38 = vadd.f32 %v14920_v44, %v641_v54  ;;  %v3403_v53 = vld [vmem:[#allocation2 + $0x158] sm:$0xf]  ;;  %v14927_v29 = vpop.f32.mrf.mxu0 }
 0x18e   :  { %v1679_v48 = vsel %vm14444_vm3, %v11840_v16, %v1678_v2  ;;  %v1687_v4 = vor.u32 %v1685_v52, %v1684_v41  ;;  %v3901_v30 = vshrl.u32 %v3402_v32, 16  ;;  %v3904_v0 = vshll.u32 %v3402_v32, 16  ;;  %v3404_v31 = vld [vmem:[#allocation2 + $0x15c] sm:$0x1]  ;;  %v3405_v15 = vld [vmem:[#allocation2 + $0x164] sm:$0xf] }
 0x18f   :  { %v1700_v10 = vor.u32 %v1698_v25, %v1697_v9  ;;  %v1702_v47 = vrot.slane %v1697_v9, 4  ;;  %v1709_v11 = vor.u32 %v1707_v62, %v1706_v22  ;;  %v728_v37 = vmax.f32 %v642_v38, 0.0  ;;  %18942 = vst [vmem:[#allocation44_spill] sm:$0xff] %v14927_v29  ;;  %v3407_v2 = vld [vmem:[#allocation2 + $0x16c] sm:$0x1]  ;;  %v14935_v41 = vpop.f32.mrf.mxu0 }
 0x190   :  { %v1688_v54 = vsel %vm14444_vm3, %v1680_v63, %v1687_v4  ;;  %v3903_v61 = vrot.slane %v3901_v30, 4  ;;  %v3906_v3 = vrot.slane %v3904_v0, 5  ;;  %v3910_v55 = vshll.u32 %v3403_v53, 16  ;;  %18943 = vst [vmem:[#allocation45_spill] sm:$0xff] %v14935_v41  ;;  %v644_v63 = vpop.f32.mrf.mxu1  ;;  %v13887_v41 = vld [vmem:[#allocation2 + $0x54] sm:$0xf] }
 0x191   :  { %v11872_v16 = vcombine.low %v1679_v48, %v1688_v54  ;;  %v1701_v52 = vsel %vm14444_vm3, %v11841_v12, %v1700_v10  ;;  %v1710_v25 = vsel %vm14444_vm3, %v1702_v47, %v1709_v11  ;;  %v12368_v32 = vpack.c.bf16 %v728_v37, %v728_v37  ;;  %v14937_v54 = vpop.f32.mrf.mxu0  ;;  %v1213_v37 = vld [vmem:[#allocation2 + $0x170] sm:$0x8]  ;;  %v13888_v40 = vld [vmem:[#allocation2 + $0x58] sm:$0xf]  ;;  %v15233_v49 = vld [vmem:[#allocation2 + $0x88] sm:$0xf] }
 0x192   :  { %v11873_v62 = vcombine.low %v1701_v52, %v1710_v25  ;;  %v3907_v9 = vor.u32 %v3906_v3, %v3903_v61  ;;  %v3912_v22 = vrot.slane %v3910_v55, 5  ;;  %v3914_v38 = vshrl.u32 %v3403_v53, 16  ;;  %18944 = vst [vmem:[#allocation46_spill] sm:$0xff] %v14937_v54  ;;  %v1214_v61 = vld [vmem:[#allocation2 + $0x174] sm:$0xf]  ;;  %19015 = vst [vmem:[#allocation117_spill] sm:$0xff] %v15233_v49 }
 0x193   :  { %12925 = vmatmul.mubr.bf16.gmra.mxu1 %v11872_v16  ;;  %1138 = vst [vmem:[#allocation2 + $0x1f4] sm:$0xf] %v12368_v32  ;;  %v3920_v4 = vshll.u32 %v3404_v31, 16  ;;  %v3925_v30 = vshrl.u32 %v3405_v15, 16  ;;  %v3928_v48 = vshll.u32 %v3405_v15, 16  ;;  %v3934_v0 = vshll.u32 %v3406_v33, 16  ;;  %v14939_v53 = vpop.f32.mrf.mxu0  ;;  %v12870_v32 = vpop.f32.mrf.mxu1 }
 0x194   :  { %12928 = vmatprep.mubr.bf16.mxu1 %v11873_v62  ;;  %v3908_v12 = vrot.slane %v3907_v9, 4  ;;  %v3916_v10 = vrot.slane %v3914_v38, 4  ;;  %v3938_v47 = vshrl.u32 %v3406_v33, 16  ;;  %v3944_v11 = vshll.u32 %v3407_v2, 16  ;;  %18945 = vst [vmem:[#allocation47_spill] sm:$0xff] %v14939_v53 }
 0x195   :  { %v3922_v29 = vrot.slane %v3920_v4, 5  ;;  %v3927_v52 = vrot.slane %v3925_v30, 4  ;;  %v3930_v3 = vrot.slane %v3928_v48, 5  ;;  %v3936_v55 = vrot.slane %v3934_v0, 5  ;;  %v14946_v38 = vpop.f32.mrf.mxu0  ;;  %v657_v5 = vpop.f32.mrf.mxu1  ;;  %v15226_v53 = vld [vmem:[#allocation2 + $0x84] sm:$0xf] }
 0x196   :  { %v3913_v31 = vsel %vm14499_vm6, %v3908_v12, %v3912_v22  ;;  %v3917_v15 = vor.u32 %v3916_v10, %v3912_v22  ;;  %v3940_v16 = vrot.slane %v3938_v47, 4  ;;  %v3946_v25 = vrot.slane %v3944_v11, 5  ;;  %18946 = vst [vmem:[#allocation48_spill] sm:$0xff] %v14946_v38  ;;  %v1216_v10 = vld [vmem:[#allocation2 + $0x180] sm:$0x8]  ;;  %19012 = vst [vmem:[#allocation114_spill] sm:$0xff] %v15226_v53 }
 0x197   :  { %v3931_v62 = vor.u32 %v3930_v3, %v3927_v52  ;;  %v653_v9 = vadd.f32 %v14920_v44, %v12867_v56  ;;  %v645_v33 = vadd.f32 %v14920_v44, %v644_v63  ;;  %v666_v2 = vadd.f32 %v14920_v44, %v12870_v32  ;;  %v14948_v47 = vpop.f32.mrf.mxu0  ;;  %v1215_v63 = vld [vmem:[#allocation2 + $0x178] sm:$0xf]  ;;  %v12871_v7 = vpop.f32.mrf.mxu1 }
 0x198   :  { %v3918_v4 = vrot.slane %v3917_v15, 4  ;;  %v3941_v30 = vor.u32 %v3940_v16, %v3936_v55  ;;  %v1712_v48 = vshrl.u32 %v1213_v37, 16  ;;  %v1717_v0 = vshrl.u32 %v1214_v61, 16  ;;  %18947 = vst [vmem:[#allocation49_spill] sm:$0xff] %v14948_v47 }
 0x199   :  { %v3932_v46 = vrot.slane %v3931_v62, 4  ;;  %v731_v35 = vmax.f32 %v653_v9, 0.0  ;;  %v729_v12 = vmax.f32 %v645_v33, 0.0  ;;  %v734_v22 = vmax.f32 %v666_v2, 0.0  ;;  %v1217_v62 = vld [vmem:[#allocation2 + $0x184] sm:$0xf]  ;;  %v14954_v33 = vpop.f32.mrf.mxu0 }
 0x19a   :  { %v3923_v56 = vsel %vm14499_vm6, %v3918_v4, %v3922_v29  ;;  %v3942_v11 = vrot.slane %v3941_v30, 4  ;;  %v11842_v52 = vrot.slane %v1712_v48, 11  ;;  %v1719_v3 = vrot.slane %v1717_v0, 7  ;;  %v1218_v9 = vld [vmem:[#allocation2 + $0x188] sm:$0xf]  ;;  %18948 = vst [vmem:[#allocation50_spill] sm:$0xff] %v14954_v33 }
 0x19b   :  { %v11986_v32 = vcombine.low %v3913_v31, %v3923_v56  ;;  %v3937_v15 = vsel %vm14499_vm6, %v3932_v46, %v3936_v55  ;;  %v12371_v37 = vpack.c.bf16 %v731_v35, %v731_v35  ;;  %v12369_v16 = vpack.c.bf16 %v729_v12, %v729_v12  ;;  %v3408_v46 = vld [vmem:[#allocation2 + $0x174] sm:$0xf]  ;;  %v14958_v35 = vpop.f32.mrf.mxu0  ;;  %v15219_v33 = vld [vmem:[#allocation2 + $0x78] sm:$0xf] }
 0x19c   :  { %v3947_v2 = vsel %vm14499_vm6, %v3942_v11, %v3946_v25  ;;  %v12374_v50 = vpack.c.bf16 %v734_v22, %v734_v22  ;;  %v1720_v38 = vshll.u32 %v1214_v61, 16  ;;  %v1724_v29 = vrot.slane %v1719_v3, 4  ;;  %18949 = vst [vmem:[#allocation51_spill] sm:$0xff] %v14958_v35  ;;  %v3409_v25 = vld [vmem:[#allocation2 + $0x178] sm:$0xf]  ;;  %19011 = vst [vmem:[#allocation113_spill] sm:$0xff] %v15219_v33 }
 0x19d   :  { %13153 = vmatmul.mubr.bf16.gmra.mxu0 %v11986_v32  ;;  %v11987_v4 = vcombine.low %v3937_v15, %v3947_v2  ;;  %1141 = vst [vmem:[#allocation2 + $0x208] sm:$0xf] %v12371_v37  ;;  %1139 = vst [vmem:[#allocation2 + $0x1f8] sm:$0xf] %v12369_v16  ;;  %v1726_v31 = vshrl.u32 %v1215_v63, 16  ;;  %v1729_v30 = vshll.u32 %v1215_v63, 16  ;;  %v658_v32 = vadd.f32 %v14920_v44, %v657_v5  ;;  %v14961_v15 = vpop.f32.mrf.mxu0 }
 0x19e   :  { %v1734_v48 = vshrl.u32 %v1216_v10, 16  ;;  %1144 = vst [vmem:[#allocation2 + $0x224] sm:$0xf] %v12374_v50  ;;  %v1722_v55 = vor.u32 %v1720_v38, %v1719_v3  ;;  %v1739_v0 = vshrl.u32 %v1217_v62, 16  ;;  %v1742_v12 = vshll.u32 %v1217_v62, 16  ;;  %18950 = vst [vmem:[#allocation52_spill] sm:$0xff] %v14961_v15 }
 0x19f   :  { %v1748_v56 = vshrl.u32 %v1218_v9, 16  ;;  %13156 = vmatprep.mubr.bf16.mxu0 %v11987_v4  ;;  %v1728_v61 = vrot.slane %v1726_v31, 7  ;;  %v1751_v11 = vshll.u32 %v1218_v9, 16  ;;  %v3949_v50 = vshrl.u32 %v3408_v46, 16  ;;  %v14965_v2 = vpop.f32.mrf.mxu0  ;;  %v3410_v9 = vld [vmem:[#allocation2 + $0x17c] sm:$0x1] }
 0x1a0   :  { %v11843_v22 = vrot.slane %v1734_v48, 11  ;;  %v1723_v10 = vsel %vm14444_vm3, %v11842_v52, %v1722_v55  ;;  %v1741_v63 = vrot.slane %v1739_v0, 7  ;;  %v732_v3 = vmax.f32 %v658_v32, 0.0  ;;  %18951 = vst [vmem:[#allocation53_spill] sm:$0xff] %v14965_v2  ;;  %v3411_v5 = vld [vmem:[#allocation2 + $0x184] sm:$0xf] }
 0x1a1   :  { %v1750_v37 = vrot.slane %v1748_v56, 7  ;;  %v1731_v38 = vor.u32 %v1729_v30, %v1728_v61  ;;  %v3952_v16 = vshll.u32 %v3408_v46, 16  ;;  %v3958_v62 = vshll.u32 %v3409_v25, 16  ;;  %v3412_v56 = vld [vmem:[#allocation2 + $0x188] sm:$0xf]  ;;  %v14969_v30 = vpop.f32.mrf.mxu0 }
 0x1a2   :  { %v1744_v4 = vor.u32 %v1742_v12, %v1741_v63  ;;  %v1746_v31 = vrot.slane %v1741_v63, 4  ;;  %v3951_v36 = vrot.slane %v3949_v50, 4  ;;  %v12372_v52 = vpack.c.bf16 %v732_v3, %v732_v3  ;;  %18952 = vst [vmem:[#allocation54_spill] sm:$0xff] %v14969_v30  ;;  %v3413_v32 = vld [vmem:[#allocation2 + $0x18c] sm:$0x1]  ;;  %v13776_v30 = vld [vmem:[#allocation4 + $0xd8] sm:$0xff]  }
 0x1a3   :  { %v1753_v48 = vor.u32 %v1751_v11, %v1750_v37  ;;  %v1732_v15 = vsel %vm14444_vm3, %v1724_v29, %v1731_v38  ;;  %v3954_v55 = vrot.slane %v3952_v16, 5  ;;  %v3960_v0 = vrot.slane %v3958_v62, 5  ;;  %v14975_v38 = vpop.f32.mrf.mxu0 }
 0x1a4   :  { %v11874_v46 = vcombine.low %v1723_v10, %v1732_v15  ;;  %v1745_v61 = vsel %vm14444_vm3, %v11843_v22, %v1744_v4  ;;  %v3962_v11 = vshrl.u32 %v3409_v25, 16  ;;  %1142 = vst [vmem:[#allocation2 + $0x214] sm:$0xf] %v12372_v52  ;;  %v3968_v50 = vshll.u32 %v3410_v9, 16  ;;  %18953 = vst [vmem:[#allocation55_spill] sm:$0xff] %v14975_v38  ;;  %v660_v10 = vpop.f32.mrf.mxu1 }
 0x1a5   :  { %v1754_v12 = vsel %vm14444_vm3, %v1746_v31, %v1753_v48  ;;  %v3955_v37 = vor.u32 %v3954_v55, %v3951_v36  ;;  %v3973_v29 = vshrl.u32 %v3411_v5, 16  ;;  %v3976_v16 = vshll.u32 %v3411_v5, 16  ;;  %v1219_v25 = vld [vmem:[#allocation2 + $0x190] sm:$0x8]  ;;  %v14977_v48 = vpop.f32.mrf.mxu0 }
 0x1a6   :  { %v11875_v63 = vcombine.low %v1745_v61, %v1754_v12  ;;  %12929 = vmatmul.mubr.bf16.gmra.mxu1 %v11874_v46  ;;  %v3964_v3 = vrot.slane %v3962_v11, 4  ;;  %v3982_v62 = vshll.u32 %v3412_v56, 16  ;;  %v3986_v15 = vshrl.u32 %v3412_v56, 16  ;;  %18954 = vst [vmem:[#allocation56_spill] sm:$0xff] %v14977_v48  ;;  %v1220_v61 = vld [vmem:[#allocation2 + $0x194] sm:$0xf] }
 0x1a7   :  { %v3956_v22 = vrot.slane %v3955_v37, 4  ;;  %v3970_v4 = vrot.slane %v3968_v50, 5  ;;  %v3975_v18 = vrot.slane %v3973_v29, 4  ;;  %v3992_v31 = vshll.u32 %v3413_v32, 16  ;;  %v14983_v11 = vpop.f32.mrf.mxu0 }
 0x1a8   :  { %12932 = vmatprep.mubr.bf16.mxu1 %v11875_v63  ;;  %v3965_v52 = vor.u32 %v3964_v3, %v3960_v0  ;;  %v3978_v36 = vrot.slane %v3976_v16, 5  ;;  %v3984_v9 = vrot.slane %v3982_v62, 5  ;;  %v3988_v55 = vrot.slane %v3986_v15, 4  ;;  %18955 = vst [vmem:[#allocation57_spill] sm:$0xff] %v14983_v11  ;;  %v1221_v16 = vld [vmem:[#allocation2 + $0x198] sm:$0xf] }
 0x1a9   :  { %v3961_v46 = vsel %vm14499_vm6, %v3956_v22, %v3960_v0  ;;  %v3994_v5 = vrot.slane %v3992_v31, 5  ;;  %v669_v56 = vadd.f32 %v14920_v44, %v12871_v7  ;;  %v661_v12 = vadd.f32 %v14920_v44, %v660_v10  ;;  %v14985_v48 = vpop.f32.mrf.mxu0  ;;  %v1222_v44 = vld [vmem:[#allocation2 + $0x1a0] sm:$0x8] }
 0x1aa   :  { %v3966_v63 = vrot.slane %v3965_v52, 4  ;;  %v3979_v32 = vor.u32 %v3978_v36, %v3975_v18  ;;  %v3989_v37 = vor.u32 %v3988_v55, %v3984_v9  ;;  %v1756_v50 = vshrl.u32 %v1219_v25, 16  ;;  %18956 = vst [vmem:[#allocation58_spill] sm:$0xff] %v14985_v48  ;;  %v1223_v36 = vld [vmem:[#allocation2 + $0x1a4] sm:$0xf] }
 0x1ab   :  { %v735_v29 = vmax.f32 %v669_v56, 0.0  ;;  %v733_v3 = vmax.f32 %v661_v12, 0.0  ;;  %v1761_v62 = vshrl.u32 %v1220_v61, 16  ;;  %v1764_v15 = vshll.u32 %v1220_v61, 16  ;;  %v1224_v25 = vld [vmem:[#allocation2 + $0x1a8] sm:$0xf]  ;;  %v14989_v55 = vpop.f32.mrf.mxu0 }
 0x1ac   :  { %v3971_v0 = vsel %vm14499_vm6, %v3966_v63, %v3970_v4  ;;  %v3980_v22 = vrot.slane %v3979_v32, 4  ;;  %v3990_v7 = vrot.slane %v3989_v37, 4  ;;  %v11844_v31 = vrot.slane %v1756_v50, 11  ;;  %18957 = vst [vmem:[#allocation59_spill] sm:$0xff] %v14989_v55  ;;  %v3414_v63 = vld [vmem:[#allocation2 + $0x194] sm:$0xf] }
 0x1ad   :  { %v11988_v10 = vcombine.low %v3961_v46, %v3971_v0  ;;  %v12375_v24 = vpack.c.bf16 %v735_v29, %v735_v29  ;;  %v12373_v52 = vpack.c.bf16 %v733_v3, %v733_v3  ;;  %v1763_v18 = vrot.slane %v1761_v62, 7  ;;  %v3416_v29 = vld [vmem:[#allocation2 + $0x19c] sm:$0x1]  ;;  %v14995_v3 = vpop.f32.mrf.mxu0 }
 0x1ae   :  { %v3985_v61 = vsel %vm14499_vm6, %v3980_v22, %v3984_v9  ;;  %v3995_v56 = vsel %vm14499_vm6, %v3990_v7, %v3994_v5  ;;  %v1770_v12 = vshrl.u32 %v1221_v16, 16  ;;  %v1773_v4 = vshll.u32 %v1221_v16, 16  ;;  %18958 = vst [vmem:[#allocation60_spill] sm:$0xff] %v14995_v3  ;;  %v3415_v22 = vld [vmem:[#allocation2 + $0x198] sm:$0xf] }
 0x1af   :  { %13157 = vmatmul.mubr.bf16.gmra.mxu0 %v11988_v10  ;;  %v11989_v32 = vcombine.low %v3985_v61, %v3995_v56  ;;  %1145 = vst [vmem:[#allocation2 + $0x228] sm:$0xf] %v12375_v24  ;;  %1143 = vst [vmem:[#allocation2 + $0x218] sm:$0xf] %v12373_v52  ;;  %v1766_v46 = vor.u32 %v1764_v15, %v1763_v18  ;;  %v1768_v37 = vrot.slane %v1763_v18, 4  ;;  %v1778_v50 = vshrl.u32 %v1222_v44, 16  ;;  %v14999_v24 = vpop.f32.mrf.mxu0 }
 0x1b0   :  { %v1772_v62 = vrot.slane %v1770_v12, 7  ;;  %v1783_v0 = vshrl.u32 %v1223_v36, 16  ;;  %v1786_v55 = vshll.u32 %v1223_v36, 16  ;;  %v1792_v9 = vshrl.u32 %v1224_v25, 16  ;;  %18959 = vst [vmem:[#allocation61_spill] sm:$0xff] %v14999_v24 }
 0x1b1   :  { %13160 = vmatprep.mubr.bf16.mxu0 %v11989_v32  ;;  %v1767_v5 = vsel %vm14444_vm3, %v11844_v31, %v1766_v46  ;;  %v11845_v16 = vrot.slane %v1778_v50, 11  ;;  %v1795_v7 = vshll.u32 %v1224_v25, 16  ;;  %v3997_v10 = vshrl.u32 %v3414_v63, 16  ;;  %v3417_v36 = vld [vmem:[#allocation2 + $0x1a4] sm:$0xf]  ;;  %v15001_v39 = vpop.f32.mrf.mxu0 }
 0x1b2   :  { %v1775_v15 = vor.u32 %v1773_v4, %v1772_v62  ;;  %v1785_v52 = vrot.slane %v1783_v0, 7  ;;  %v1794_v44 = vrot.slane %v1792_v9, 7  ;;  %v4000_v18 = vshll.u32 %v3414_v63, 16  ;;  %18960 = vst [vmem:[#allocation62_spill] sm:$0xff] %v15001_v39  ;;  %v3419_v50 = vld [vmem:[#allocation2 + $0x1ac] sm:$0x1] }
 0x1b3   :  { %v3999_v61 = vrot.slane %v3997_v10, 4  ;;  %v4006_v56 = vshll.u32 %v3415_v22, 16  ;;  %v4010_v12 = vshrl.u32 %v3415_v22, 16  ;;  %v4016_v3 = vshll.u32 %v3416_v29, 16  ;;  %v3418_v0 = vld [vmem:[#allocation2 + $0x1a8] sm:$0xf] }
 0x1b4   :  { %v1776_v32 = vsel %vm14444_vm3, %v1768_v37, %v1775_v15  ;;  %v1788_v31 = vor.u32 %v1786_v55, %v1785_v52  ;;  %v1790_v46 = vrot.slane %v1785_v52, 4  ;;  %v1797_v25 = vor.u32 %v1795_v7, %v1794_v44  ;;  %v1225_v10 = vld [vmem:[#allocation2 + $0x1b0] sm:$0x8]  ;;  %v1226_v52 = vld [vmem:[#allocation2 + $0x1b4] sm:$0xf] }
 0x1b5   :  { %v11876_v58 = vcombine.low %v1767_v5, %v1776_v32  ;;  %v4002_v24 = vrot.slane %v4000_v18, 5  ;;  %v4008_v4 = vrot.slane %v4006_v56, 5  ;;  %v4012_v62 = vrot.slane %v4010_v12, 4  ;;  %v15009_v5 = vpop.f32.mrf.mxu0 }
 0x1b6   :  { %v1789_v63 = vsel %vm14444_vm3, %v11845_v16, %v1788_v31  ;;  %v1798_v29 = vsel %vm14444_vm3, %v1790_v46, %v1797_v25  ;;  %v4018_v9 = vrot.slane %v4016_v3, 5  ;;  %v4021_v22 = vshrl.u32 %v3417_v36, 16  ;;  %18961 = vst [vmem:[#allocation63_spill] sm:$0xff] %v15009_v5  ;;  %v1228_v3 = vld [vmem:[#allocation2 + $0x1c0] sm:$0x8] }
 0x1b7   :  { %12933 = vmatmul.mubr.bf16.gmra.mxu1 %v11876_v58  ;;  %v11877_v37 = vcombine.low %v1789_v63, %v1798_v29  ;;  %v4003_v55 = vor.u32 %v4002_v24, %v3999_v61  ;;  %v4013_v15 = vor.u32 %v4012_v62, %v4008_v4  ;;  %v4024_v7 = vshll.u32 %v3417_v36, 16  ;;  %v1227_v63 = vld [vmem:[#allocation2 + $0x1b8] sm:$0xf]  ;;  %v15015_v29 = vpop.f32.mrf.mxu0 }
 0x1b8   :  { %v4023_v44 = vrot.slane %v4021_v22, 4  ;;  %v4030_v18 = vshll.u32 %v3418_v0, 16  ;;  %v4034_v56 = vshrl.u32 %v3418_v0, 16  ;;  %v4040_v12 = vshll.u32 %v3419_v50, 16  ;;  %v1229_v50 = vld [vmem:[#allocation2 + $0x1c4] sm:$0xf] }
 0x1b9   :  { %12936 = vmatprep.mubr.bf16.mxu1 %v11877_v37  ;;  %v4004_v16 = vrot.slane %v4003_v55, 4  ;;  %v4014_v32 = vrot.slane %v4013_v15, 4  ;;  %v4026_v31 = vrot.slane %v4024_v7, 5  ;;  %v1800_v46 = vshrl.u32 %v1225_v10, 16  ;;  %18962 = vst [vmem:[#allocation64_spill] sm:$0xff] %v15015_v29 }
 0x1ba   :  { %v4032_v25 = vrot.slane %v4030_v18, 5  ;;  %v4036_v39 = vrot.slane %v4034_v56, 4  ;;  %v4042_v58 = vrot.slane %v4040_v12, 5  ;;  %v1805_v24 = vshrl.u32 %v1226_v52, 16  ;;  %v1230_v56 = vld [vmem:[#allocation2 + $0x1c8] sm:$0xf] }
 0x1bb   :  { %v4009_v61 = vsel %vm14499_vm6, %v4004_v16, %v4008_v4  ;;  %v4019_v36 = vsel %vm14499_vm6, %v4014_v32, %v4018_v9  ;;  %v4027_v62 = vor.u32 %v4026_v31, %v4023_v44  ;;  %v11846_v0 = vrot.slane %v1800_v46, 11  ;;  %v3420_v9 = vld [vmem:[#allocation2 + $0x1b4] sm:$0xf] }
 0x1bc   :  { %v11990_v22 = vcombine.low %v4009_v61, %v4019_v36  ;;  %v4037_v37 = vor.u32 %v4036_v39, %v4032_v25  ;;  %v1807_v10 = vrot.slane %v1805_v24, 7  ;;  %v1808_v55 = vshll.u32 %v1226_v52, 16  ;;  %v15019_v39 = vpop.f32.mrf.mxu0  ;;  %v3421_v61 = vld [vmem:[#allocation2 + $0x1b8] sm:$0xf] }
 0x1bd   :  { %v4028_v15 = vrot.slane %v4027_v62, 4  ;;  %v1814_v7 = vshrl.u32 %v1227_v63, 16  ;;  %v1817_v18 = vshll.u32 %v1227_v63, 16  ;;  %v1822_v12 = vshrl.u32 %v1228_v3, 16  ;;  %18963 = vst [vmem:[#allocation65_spill] sm:$0xff] %v15019_v39 }
 0x1be   :  { %13161 = vmatmul.mubr.bf16.gmra.mxu0 %v11990_v22  ;;  %v4038_v5 = vrot.slane %v4037_v37, 4  ;;  %v1810_v4 = vor.u32 %v1808_v55, %v1807_v10  ;;  %v1812_v16 = vrot.slane %v1807_v10, 4  ;;  %v1827_v48 = vshrl.u32 %v1229_v50, 16  ;;  %v3422_v37 = vld [vmem:[#allocation2 + $0x1bc] sm:$0x1] }
 0x1bf   :  { %v4033_v44 = vsel %vm14499_vm6, %v4028_v15, %v4032_v25  ;;  %v1816_v32 = vrot.slane %v1814_v7, 7  ;;  %v11847_v31 = vrot.slane %v1822_v12, 11  ;;  %v1830_v46 = vshll.u32 %v1229_v50, 16  ;;  %v3423_v7 = vld [vmem:[#allocation2 + $0x1c4] sm:$0xf] }
 0x1c0   :  { %v4043_v52 = vsel %vm14499_vm6, %v4038_v5, %v4042_v58  ;;  %v1811_v3 = vsel %vm14444_vm3, %v11846_v0, %v1810_v4  ;;  %v1829_v63 = vrot.slane %v1827_v48, 7  ;;  %v1836_v24 = vshrl.u32 %v1230_v56, 16  ;;  %v3424_v48 = vld [vmem:[#allocation2 + $0x1c8] sm:$0xf]  ;;  %v15027_v4 = vpop.f32.mrf.mxu0 }
 0x1c1   :  { %v11991_v36 = vcombine.low %v4033_v44, %v4043_v52  ;;  %v1819_v62 = vor.u32 %v1817_v18, %v1816_v32  ;;  %v1839_v22 = vshll.u32 %v1230_v56, 16  ;;  %v4045_v10 = vshrl.u32 %v3420_v9, 16  ;;  %18964 = vst [vmem:[#allocation66_spill] sm:$0xff] %v15027_v4  ;;  %v1232_v4 = vld [vmem:[#allocation2 + $0x1d4] sm:$0xf] }
 0x1c2   :  { %v1832_v25 = vor.u32 %v1830_v46, %v1829_v63  ;;  %v1834_v55 = vrot.slane %v1829_v63, 4  ;;  %v1838_v15 = vrot.slane %v1836_v24, 7  ;;  %v4048_v50 = vshll.u32 %v3420_v9, 16  ;;  %v3425_v63 = vld [vmem:[#allocation2 + $0x1cc] sm:$0x1] }
 0x1c3   :  { %13164 = vmatprep.mubr.bf16.mxu0 %v11991_v36  ;;  %v1820_v5 = vsel %vm14444_vm3, %v1812_v16, %v1819_v62  ;;  %v4047_v58 = vrot.slane %v4045_v10, 4  ;;  %v4054_v12 = vshll.u32 %v3421_v61, 16  ;;  %v4058_v0 = vshrl.u32 %v3421_v61, 16  ;;  %v1231_v10 = vld [vmem:[#allocation2 + $0x1d0] sm:$0x8] }
 0x1c4   :  { %v11878_v44 = vcombine.low %v1811_v3, %v1820_v5  ;;  %v1833_v18 = vsel %vm14444_vm3, %v11847_v31, %v1832_v25  ;;  %v1841_v56 = vor.u32 %v1839_v22, %v1838_v15  ;;  %v4050_v32 = vrot.slane %v4048_v50, 5  ;;  %v15033_v22 = vpop.f32.mrf.mxu0  ;;  %v15035_v25 = vpop.f32.mrf.mxu1 }
 0x1c5   :  { %v4056_v46 = vrot.slane %v4054_v12, 5  ;;  %v4060_v52 = vrot.slane %v4058_v0, 4  ;;  %v4064_v9 = vshll.u32 %v3422_v37, 16  ;;  %v4069_v24 = vshrl.u32 %v3423_v7, 16  ;;  %18965 = vst [vmem:[#allocation67_spill] sm:$0xff] %v15033_v22  ;;  %18966 = vst [vmem:[#allocation68_spill] sm:$0xff] %v15035_v25 }
 0x1c6   :  { %12937 = vmatmul.mubr.bf16.gmra.mxu1 %v11878_v44  ;;  %v1842_v16 = vsel %vm14444_vm3, %v1834_v55, %v1841_v56  ;;  %v4051_v36 = vor.u32 %v4050_v32, %v4047_v58  ;;  %v4072_v61 = vshll.u32 %v3423_v7, 16  ;;  %v4078_v62 = vshll.u32 %v3424_v48, 16  ;;  %v1233_v58 = vld [vmem:[#allocation2 + $0x1d8] sm:$0xf] }
 0x1c7   :  { %v11879_v3 = vcombine.low %v1833_v18, %v1842_v16  ;;  %v4061_v5 = vor.u32 %v4060_v52, %v4056_v46  ;;  %v4066_v39 = vrot.slane %v4064_v9, 5  ;;  %v4071_v31 = vrot.slane %v4069_v24, 4  ;;  %v1234_v9 = vld [vmem:[#allocation2 + $0x1e0] sm:$0x8] }
 0x1c8   :  { %v4052_v37 = vrot.slane %v4051_v36, 4  ;;  %v4074_v15 = vrot.slane %v4072_v61, 5  ;;  %v4080_v50 = vrot.slane %v4078_v62, 5  ;;  %v4082_v12 = vshrl.u32 %v3424_v48, 16  ;;  %v1235_v48 = vld [vmem:[#allocation2 + $0x1e4] sm:$0xf]  ;;  %v15041_v62 = vpop.f32.mrf.mxu0 }
 0x1c9   :  { %12940 = vmatprep.mubr.bf16.mxu1 %v11879_v3  ;;  %v4062_v0 = vrot.slane %v4061_v5, 4  ;;  %v4088_v55 = vshll.u32 %v3425_v63, 16  ;;  %v1844_v7 = vshrl.u32 %v1231_v10, 16  ;;  %v1849_v44 = vshrl.u32 %v1232_v4, 16  ;;  %18967 = vst [vmem:[#allocation69_spill] sm:$0xff] %v15041_v62  ;;  %v15043_v63 = vpop.f32.mrf.mxu1 }
 0x1ca   :  { %v4057_v18 = vsel %vm14499_vm6, %v4052_v37, %v4056_v46  ;;  %v4075_v56 = vor.u32 %v4074_v15, %v4071_v31  ;;  %v4084_v32 = vrot.slane %v4082_v12, 4  ;;  %v1852_v52 = vshll.u32 %v1232_v4, 16  ;;  %18968 = vst [vmem:[#allocation70_spill] sm:$0xff] %v15043_v63  ;;  %v1236_v46 = vld [vmem:[#allocation2 + $0x1e8] sm:$0xf]  ;;  %v15049_v62 = vpop.f32.mrf.mxu0 }
 0x1cb   :  { %v4067_v24 = vsel %vm14499_vm6, %v4062_v0, %v4066_v39  ;;  %v4090_v16 = vrot.slane %v4088_v55, 5  ;;  %v11848_v36 = vrot.slane %v1844_v7, 11  ;;  %v1851_v61 = vrot.slane %v1849_v44, 7  ;;  %v3426_v7 = vld [vmem:[#allocation2 + $0x1d4] sm:$0xf]  ;;  %18969 = vst [vmem:[#allocation71_spill] sm:$0xff] %v15049_v62 }
 0x1cc   :  { %v11992_v10 = vcombine.low %v4057_v18, %v4067_v24  ;;  %v4076_v3 = vrot.slane %v4075_v56, 4  ;;  %v4085_v5 = vor.u32 %v4084_v32, %v4080_v50  ;;  %v1858_v22 = vshrl.u32 %v1233_v58, 16  ;;  %v3427_v24 = vld [vmem:[#allocation2 + $0x1d8] sm:$0xf]  ;;  %v3429_v62 = vld [vmem:[#allocation2 + $0x1e4] sm:$0xf] }
 0x1cd   :  { %v1854_v31 = vor.u32 %v1852_v52, %v1851_v61  ;;  %v1856_v37 = vrot.slane %v1851_v61, 4  ;;  %v1861_v4 = vshll.u32 %v1233_v58, 16  ;;  %v1866_v15 = vshrl.u32 %v1234_v9, 16  ;;  %v15051_v52 = vpop.f32.mrf.mxu1 }
 0x1ce   :  { %13165 = vmatmul.mubr.bf16.gmra.mxu0 %v11992_v10  ;;  %v4081_v39 = vsel %vm14499_vm6, %v4076_v3, %v4080_v50  ;;  %v4086_v12 = vrot.slane %v4085_v5, 4  ;;  %v1860_v0 = vrot.slane %v1858_v22, 7  ;;  %v1871_v55 = vshrl.u32 %v1235_v48, 16  ;;  %18970 = vst [vmem:[#allocation72_spill] sm:$0xff] %v15051_v52  ;;  %v3428_v3 = vld [vmem:[#allocation2 + $0x1dc] sm:$0x1] }
 0x1cf   :  { %v1855_v44 = vsel %vm14444_vm3, %v11848_v36, %v1854_v31  ;;  %v11849_v18 = vrot.slane %v1866_v15, 11  ;;  %v1874_v56 = vshll.u32 %v1235_v48, 16  ;;  %v1880_v32 = vshrl.u32 %v1236_v46, 16 }
 0x1d0   :  { %v4091_v58 = vsel %vm14499_vm6, %v4086_v12, %v4090_v16  ;;  %v1863_v9 = vor.u32 %v1861_v4, %v1860_v0  ;;  %v1873_v50 = vrot.slane %v1871_v55, 7  ;;  %v1883_v61 = vshll.u32 %v1236_v46, 16  ;;  %v3430_v4 = vld [vmem:[#allocation2 + $0x1e8] sm:$0xf]  ;;  %v15057_v12 = vpop.f32.mrf.mxu0  ;;  %v15059_v46 = vpop.f32.mrf.mxu1 }
 0x1d1   :  { %v11993_v22 = vcombine.low %v4081_v39, %v4091_v58  ;;  %v1882_v10 = vrot.slane %v1880_v32, 7  ;;  %v4093_v5 = vshrl.u32 %v3426_v7, 16  ;;  %v4096_v63 = vshll.u32 %v3426_v7, 16  ;;  %18971 = vst [vmem:[#allocation73_spill] sm:$0xff] %v15057_v12  ;;  %18972 = vst [vmem:[#allocation74_spill] sm:$0xff] %v15059_v46 }
 0x1d2   :  { %v1864_v36 = vsel %vm14444_vm3, %v1856_v37, %v1863_v9  ;;  %v1876_v48 = vor.u32 %v1874_v56, %v1873_v50  ;;  %v1878_v31 = vrot.slane %v1873_v50, 4  ;;  %v4102_v15 = vshll.u32 %v3427_v24, 16 }
 0x1d3   :  { %13168 = vmatprep.mubr.bf16.mxu0 %v11993_v22  ;;  %v11880_v52 = vcombine.low %v1855_v44, %v1864_v36  ;;  %v1885_v25 = vor.u32 %v1883_v61, %v1882_v10  ;;  %v4095_v29 = vrot.slane %v4093_v5, 4  ;;  %v4098_v16 = vrot.slane %v4096_v63, 5  ;;  %v3431_v44 = vld [vmem:[#allocation2 + $0x1ec] sm:$0x1]  ;;  %v1237_v63 = vld [vmem:[#allocation2 + $0x1f0] sm:$0x8] }
 0x1d4   :  { %v1877_v39 = vsel %vm14444_vm3, %v11849_v18, %v1876_v48  ;;  %v4104_v0 = vrot.slane %v4102_v15, 5  ;;  %v4106_v55 = vshrl.u32 %v3427_v24, 16  ;;  %v4112_v37 = vshll.u32 %v3428_v3, 16  ;;  %v1238_v10 = vld [vmem:[#allocation2 + $0x1f4] sm:$0xf]  ;;  %v15065_v24 = vpop.f32.mrf.mxu0 }
 0x1d5   :  { %12941 = vmatmul.mubr.bf16.gmra.mxu1 %v11880_v52  ;;  %v1886_v7 = vsel %vm14444_vm3, %v1878_v31, %v1885_v25  ;;  %v4099_v56 = vor.u32 %v4098_v16, %v4095_v29  ;;  %v4117_v32 = vshrl.u32 %v3429_v62, 16  ;;  %v4120_v58 = vshll.u32 %v3429_v62, 16  ;;  %18973 = vst [vmem:[#allocation75_spill] sm:$0xff] %v15065_v24  ;;  %v15067_v52 = vpop.f32.mrf.mxu1  ;;  %v1239_v31 = vld [vmem:[#allocation2 + $0x1f8] sm:$0xf] }
 0x1d6   :  { %v11881_v9 = vcombine.low %v1877_v39, %v1886_v7  ;;  %v4108_v50 = vrot.slane %v4106_v55, 4  ;;  %v4114_v61 = vrot.slane %v4112_v37, 5  ;;  %v4126_v22 = vshll.u32 %v3430_v4, 16  ;;  %18974 = vst [vmem:[#allocation76_spill] sm:$0xff] %v15067_v52  ;;  %v1240_v37 = vld [vmem:[#allocation2 + $0x200] sm:$0x8] }
 0x1d7   :  { %v4100_v5 = vrot.slane %v4099_v56, 4  ;;  %v4119_v36 = vrot.slane %v4117_v32, 4  ;;  %v4122_v18 = vrot.slane %v4120_v58, 5  ;;  %v4130_v48 = vshrl.u32 %v3430_v4, 16  ;;  %v1241_v7 = vld [vmem:[#allocation2 + $0x204] sm:$0xf] }
 0x1d8   :  { %12944 = vmatprep.mubr.bf16.mxu1 %v11881_v9  ;;  %v4109_v25 = vor.u32 %v4108_v50, %v4104_v0  ;;  %v4128_v29 = vrot.slane %v4126_v22, 5  ;;  %v4136_v3 = vshll.u32 %v3431_v44, 16  ;;  %v1888_v62 = vshrl.u32 %v1237_v63, 16  ;;  %v15071_v22 = vpop.f32.mrf.mxu0  ;;  %v15073_v44 = vpop.f32.mrf.mxu1  ;;  %v3436_v52 = vld [vmem:[#allocation2 + $0x208] sm:$0xf] }
 0x1d9   :  { %v4105_v15 = vsel %vm14499_vm6, %v4100_v5, %v4104_v0  ;;  %v4123_v16 = vor.u32 %v4122_v18, %v4119_v36  ;;  %v4132_v39 = vrot.slane %v4130_v48, 4  ;;  %v1893_v55 = vshrl.u32 %v1238_v10, 16  ;;  %18975 = vst [vmem:[#allocation77_spill] sm:$0xff] %v15071_v22  ;;  %18976 = vst [vmem:[#allocation78_spill] sm:$0xff] %v15073_v44  ;;  %v1242_v5 = vld [vmem:[#allocation2 + $0x208] sm:$0xf] }
 0x1da   :  { %v4110_v56 = vrot.slane %v4109_v25, 4  ;;  %v4138_v4 = vrot.slane %v4136_v3, 5  ;;  %v11850_v32 = vrot.slane %v1888_v62, 11  ;;  %v1896_v58 = vshll.u32 %v1238_v10, 16  ;;  %v3432_v22 = vld [vmem:[#allocation2 + $0x1f4] sm:$0xf] }
 0x1db   :  { %v4124_v24 = vrot.slane %v4123_v16, 4  ;;  %v4133_v12 = vor.u32 %v4132_v39, %v4128_v29  ;;  %v1895_v9 = vrot.slane %v1893_v55, 7  ;;  %v1902_v50 = vshrl.u32 %v1239_v31, 16 }
 0x1dc   :  { %v4115_v0 = vsel %vm14499_vm6, %v4110_v56, %v4114_v61  ;;  %v1905_v63 = vshll.u32 %v1239_v31, 16  ;;  %v1910_v36 = vshrl.u32 %v1240_v37, 16  ;;  %v1915_v18 = vshrl.u32 %v1241_v7, 16  ;;  %v3434_v56 = vld [vmem:[#allocation2 + $0x1fc] sm:$0x1] }
 0x1dd   :  { %v11994_v48 = vcombine.low %v4105_v15, %v4115_v0  ;;  %v4129_v25 = vsel %vm14499_vm6, %v4124_v24, %v4128_v29  ;;  %v4134_v10 = vrot.slane %v4133_v12, 4  ;;  %v1898_v3 = vor.u32 %v1896_v58, %v1895_v9  ;;  %v3433_v15 = vld [vmem:[#allocation2 + $0x1f8] sm:$0xf]  ;;  %v15083_v0 = vpop.f32.mrf.mxu0  ;;  %v15085_v12 = vpop.f32.mrf.mxu1 }
 0x1de   :  { %v1900_v62 = vrot.slane %v1895_v9, 4  ;;  %v1904_v16 = vrot.slane %v1902_v50, 7  ;;  %v11851_v39 = vrot.slane %v1910_v36, 11  ;;  %v1917_v55 = vrot.slane %v1915_v18, 7  ;;  %18977 = vst [vmem:[#allocation79_spill] sm:$0xff] %v15083_v0  ;;  %18978 = vst [vmem:[#allocation80_spill] sm:$0xff] %v15085_v12 }
 0x1df   :  { %13169 = vmatmul.mubr.bf16.gmra.mxu0 %v11994_v48  ;;  %v4139_v44 = vsel %vm14499_vm6, %v4134_v10, %v4138_v4  ;;  %v1899_v61 = vsel %vm14444_vm3, %v11850_v32, %v1898_v3  ;;  %v1918_v31 = vshll.u32 %v1241_v7, 16  ;;  %v1924_v37 = vshrl.u32 %v1242_v5, 16  ;;  %v3435_v4 = vld [vmem:[#allocation2 + $0x204] sm:$0xf]  ;;  %v15089_v0 = vld [vmem:[#allocation4 + $0x1b8] sm:$0xff]  }
 0x1e0   :  { %v11995_v24 = vcombine.low %v4129_v25, %v4139_v44  ;;  %v1907_v29 = vor.u32 %v1905_v63, %v1904_v16  ;;  %v1922_v58 = vrot.slane %v1917_v55, 4  ;;  %v1927_v9 = vshll.u32 %v1242_v5, 16  ;;  %v15093_v25 = vpop.f32.mrf.mxu0  ;;  %13420 = vmatprep.subr.bf16.mxu0 %v15089_v0 }
 0x1e1   :  { %v1920_v50 = vor.u32 %v1918_v31, %v1917_v55  ;;  %v1926_v36 = vrot.slane %v1924_v37, 7  ;;  %v4141_v18 = vshrl.u32 %v3432_v22, 16  ;;  %v4144_v48 = vshll.u32 %v3432_v22, 16  ;;  %18979 = vst [vmem:[#allocation81_spill] sm:$0xff] %v15093_v25  ;;  %v15095_v22 = vpop.f32.mrf.mxu1  ;;  %v3437_v37 = vld [vmem:[#allocation2 + $0x20c] sm:$0x1] }
 0x1e2   :  { %13172 = vmatprep.mubr.bf16.mxu0 %v11995_v24  ;;  %v1908_v7 = vsel %vm14444_vm3, %v1900_v62, %v1907_v29  ;;  %v4150_v32 = vshll.u32 %v3433_v15, 16  ;;  %v4154_v10 = vshrl.u32 %v3433_v15, 16  ;;  %v4160_v3 = vshll.u32 %v3434_v56, 16  ;;  %18980 = vst [vmem:[#allocation82_spill] sm:$0xff] %v15095_v22  ;;  %v1243_v24 = vld [vmem:[#allocation2 + $0x210] sm:$0x8] }
 0x1e3   :  { %v11882_v46 = vcombine.low %v1899_v61, %v1908_v7  ;;  %v1921_v44 = vsel %vm14444_vm3, %v11851_v39, %v1920_v50  ;;  %v1929_v63 = vor.u32 %v1927_v9, %v1926_v36  ;;  %v4143_v5 = vrot.slane %v4141_v18, 4  ;;  %v1244_v18 = vld [vmem:[#allocation2 + $0x214] sm:$0xf]  ;;  %v15102_v25 = vpop.f32.mrf.mxu1 }
 0x1e4   :  { %v4146_v16 = vrot.slane %v4144_v48, 5  ;;  %v4152_v55 = vrot.slane %v4150_v32, 5  ;;  %v4156_v31 = vrot.slane %v4154_v10, 4  ;;  %v4162_v62 = vrot.slane %v4160_v3, 5  ;;  %v15100_v3 = vpop.f32.mrf.mxu0  ;;  %18982 = vst [vmem:[#allocation84_spill] sm:$0xff] %v15102_v25 }
 0x1e5   :  { %12945 = vmatmul.mubr.bf16.gmra.mxu1 %v11882_v46  ;;  %v1930_v61 = vsel %vm14444_vm3, %v1922_v58, %v1929_v63  ;;  %v4165_v15 = vshrl.u32 %v3435_v4, 16  ;;  %v4168_v56 = vshll.u32 %v3435_v4, 16  ;;  %v4174_v39 = vshll.u32 %v3436_v52, 16  ;;  %18981 = vst [vmem:[#allocation83_spill] sm:$0xff] %v15100_v3  ;;  %v1245_v4 = vld [vmem:[#allocation2 + $0x218] sm:$0xf] }
 0x1e6   :  { %v11883_v29 = vcombine.low %v1921_v44, %v1930_v61  ;;  %v4147_v9 = vor.u32 %v4146_v16, %v4143_v5  ;;  %v4157_v50 = vor.u32 %v4156_v31, %v4152_v55  ;;  %v4178_v36 = vshrl.u32 %v3436_v52, 16  ;;  %v3438_v52 = vld [vmem:[#allocation2 + $0x214] sm:$0xf]  ;;  %v13885_v3 = vld [vmem:[#allocation2 + $0x44] sm:$0xf] }
 0x1e7   :  { %v4167_v48 = vrot.slane %v4165_v15, 4  ;;  %v4170_v7 = vrot.slane %v4168_v56, 5  ;;  %v4176_v32 = vrot.slane %v4174_v39, 5  ;;  %v4184_v10 = vshll.u32 %v3437_v37, 16  ;;  %v15174_v25 = vld [vmem:[#allocation2 + $0x58] sm:$0xf] }
 0x1e8   :  { %12948 = vmatprep.mubr.bf16.mxu1 %v11883_v29  ;;  %v4148_v46 = vrot.slane %v4147_v9, 4  ;;  %v4158_v58 = vrot.slane %v4157_v50, 4  ;;  %v4180_v63 = vrot.slane %v4178_v36, 4  ;;  %v1932_v22 = vshrl.u32 %v1243_v24, 16  ;;  %v3439_v50 = vld [vmem:[#allocation2 + $0x218] sm:$0xf]  ;;  %v15108_v36 = vpop.f32.mrf.mxu0  ;;  %v15110_v24 = vpop.f32.mrf.mxu1 }
 0x1e9   :  { %v4171_v12 = vor.u32 %v4170_v7, %v4167_v48  ;;  %v4186_v44 = vrot.slane %v4184_v10, 5  ;;  %v1937_v5 = vshrl.u32 %v1244_v18, 16  ;;  %v1940_v16 = vshll.u32 %v1244_v18, 16  ;;  %18983 = vst [vmem:[#allocation85_spill] sm:$0xff] %v15108_v36  ;;  %18984 = vst [vmem:[#allocation86_spill] sm:$0xff] %v15110_v24 }
 0x1ea   :  { %v4153_v31 = vsel %vm14499_vm6, %v4148_v46, %v4152_v55  ;;  %v4163_v37 = vsel %vm14499_vm6, %v4158_v58, %v4162_v62  ;;  %v4181_v61 = vor.u32 %v4180_v63, %v4176_v32  ;;  %v11852_v15 = vrot.slane %v1932_v22, 11  ;;  %v3440_v58 = vld [vmem:[#allocation2 + $0x21c] sm:$0x1]  ;;  %v15120_v36 = vpop.f32.mrf.mxu1  ;;  %v15172_v24 = vld [vmem:[#allocation2 + $0x54] sm:$0xf]  ;;  %18999 = vst [vmem:[#allocation101_spill] sm:$0xff] %v15174_v25 }
 0x1eb   :  { %v11996_v56 = vcombine.low %v4153_v31, %v4163_v37  ;;  %v4172_v39 = vrot.slane %v4171_v12, 4  ;;  %v1939_v29 = vrot.slane %v1937_v5, 7  ;;  %v1946_v9 = vshrl.u32 %v1245_v4, 16  ;;  %18986 = vst [vmem:[#allocation88_spill] sm:$0xff] %v15120_v36  ;;  %v13886_v36 = vld [vmem:[#allocation2 + $0x48] sm:$0xf] }
 0x1ec   :  { %v4182_v48 = vrot.slane %v4181_v61, 4  ;;  %v1949_v18 = vshll.u32 %v1245_v4, 16  ;;  %v4189_v7 = vshrl.u32 %v3438_v52, 16  ;;  %v4192_v10 = vshll.u32 %v3438_v52, 16  ;;  %18998 = vst [vmem:[#allocation100_spill] sm:$0xff] %v15172_v24 }
 0x1ed   :  { %13173 = vmatmul.mubr.bf16.gmra.mxu0 %v11996_v56  ;;  %v4177_v55 = vsel %vm14499_vm6, %v4172_v39, %v4176_v32  ;;  %v1942_v62 = vor.u32 %v1940_v16, %v1939_v29  ;;  %v1944_v46 = vrot.slane %v1939_v29, 4  ;;  %v1948_v22 = vrot.slane %v1946_v9, 7  ;;  %v15118_v56 = vpop.f32.mrf.mxu0 }
 0x1ee   :  { %v4187_v12 = vsel %vm14499_vm6, %v4182_v48, %v4186_v44  ;;  %v4191_v63 = vrot.slane %v4189_v7, 4  ;;  %v4194_v5 = vrot.slane %v4192_v10, 5  ;;  %v4198_v31 = vshll.u32 %v3439_v50, 16  ;;  %18985 = vst [vmem:[#allocation87_spill] sm:$0xff] %v15118_v56 }
 0x1ef   :  { %v11997_v37 = vcombine.low %v4177_v55, %v4187_v12  ;;  %v1943_v4 = vsel %vm14444_vm3, %v11852_v15, %v1942_v62  ;;  %v1951_v61 = vor.u32 %v1949_v18, %v1948_v22  ;;  %v4202_v52 = vshrl.u32 %v3439_v50, 16  ;;  %v15124_v55 = vpop.f32.mrf.mxu0  ;;  %v15126_v15 = vpop.f32.mrf.mxu1  ;;  %v13876_v50 = vld [vmem:[#allocation2 + $0x4] sm:$0xf]  ;;  %v13877_v18 = vld [vmem:[#allocation2 + $0x8] sm:$0xf] }
 0x1f0   :  { %v4195_v32 = vor.u32 %v4194_v5, %v4191_v63  ;;  %v4200_v16 = vrot.slane %v4198_v31, 5  ;;  %v4208_v39 = vshll.u32 %v3440_v58, 16  ;;  %18987 = vst [vmem:[#allocation89_spill] sm:$0xff] %v15124_v55  ;;  %18988 = vst [vmem:[#allocation90_spill] sm:$0xff] %v15126_v15  ;;  %v11927_v62 = vcombine.low %v13876_v50, %v13877_v18  ;;  %v15130_v12 = vld [vmem:[#allocation2 + $0x18] sm:$0xf] }
 0x1f1   :  { %13176 = vmatprep.mubr.bf16.mxu0 %v11997_v37  ;;  %v1952_v44 = vsel %vm14444_vm3, %v1944_v46, %v1951_v61  ;;  %v4204_v29 = vrot.slane %v4202_v52, 4  ;;  %v15134_v63 = vpop.f32.mrf.mxu0  ;;  %v15136_v5 = vpop.f32.mrf.mxu1  ;;  %v15138_v37 = vld [vmem:[#allocation2 + $0x14] sm:$0xf]  ;;  %v13879_v52 = vld [vmem:[#allocation2 + $0x18] sm:$0xf]  ;;  %v13758_v18 = vld [vmem:[#allocation4 + $0xe8] sm:$0xff]   ;;  %v11932_v47 = vcombine.low %v13887_v41, %v13888_v40 }
 0x1f2   :  { %v11884_v9 = vcombine.low %v1943_v4, %v1952_v44  ;;  %v4196_v48 = vrot.slane %v4195_v32, 4  ;;  %v4210_v10 = vrot.slane %v4208_v39, 5  ;;  %18989 = vst [vmem:[#allocation91_spill] sm:$0xff] %v15134_v63  ;;  %v12079_v4 = vcombine.low %v15138_v37, %v15130_v12  ;;  %v13878_v61 = vld [vmem:[#allocation2 + $0x14] sm:$0xf]  ;;  %v13767_v63 = vld [vmem:[#allocation4 + $0xe0] sm:$0xff]  }
 0x1f3   :  { %v4205_v7 = vor.u32 %v4204_v29, %v4200_v16  ;;  %v11928_v32 = vcombine.low %v13878_v61, %v13879_v52  ;;  %v13880_v39 = vld [vmem:[#allocation2 + $0x24] sm:$0xf]  ;;  %v13881_v44 = vld [vmem:[#allocation2 + $0x28] sm:$0xf]  ;;  %v15148_v50 = vld [vmem:[#allocation2 + $0x38] sm:$0xf] }
 0x1f4   :  { %12949 = vmatmul.mubr.bf16.gmra.mxu1 %v11884_v9  ;;  %v4201_v22 = vsel %vm14499_vm6, %v4196_v48, %v4200_v16  ;;  %v13749_v16 = vld [vmem:[#allocation4 + $0xf0] sm:$0xff]   ;;  %v11929_v29 = vcombine.low %v13880_v39, %v13881_v44  ;;  %v15142_v9 = vpop.f32.mrf.mxu0  ;;  %v15144_v48 = vpop.f32.mrf.mxu1  ;;  %18992 = vst [vmem:[#allocation94_spill] sm:$0xff] %v15148_v50  ;;  %v15164_v39 = vld [vmem:[#allocation2 + $0x44] sm:$0xf]  ;;  %v4913_v56 = vshrl.u32 %v15148_v50, 16  ;;  %v4948_v2 = vshrl.u32 %v15172_v24, 16 }
 0x1f5   :  { %v4206_v58 = vrot.slane %v4205_v7, 4  ;;  %13036 = vmatprep.mubr.bf16.mxu1 %v11927_v62  ;;  %18990 = vst [vmem:[#allocation92_spill] sm:$0xff] %v15142_v9  ;;  %v13882_v7 = vld [vmem:[#allocation4 + $0xf8] sm:$0xff]   ;;  %v15150_v62 = vld [vmem:[#allocation2 + $0x24] sm:$0xf]  ;;  %v13800_v52 = vld [vmem:[#allocation4 + $0x1b0] sm:$0xff]  }
 0x1f6   :  { %18993 = vst [vmem:[#allocation95_spill] sm:$0xff] %v15150_v62  ;;  %v15160_v61 = vld [vmem:[#allocation2 + $0x34] sm:$0xf]  ;;  %18996 = vst [vmem:[#allocation98_spill] sm:$0xff] %v15164_v39  ;;  %v4882_v44 = vshrl.u32 %v15150_v62, 16  ;;  %v15230_v35 = vrot.slane %v4948_v2, 7 }
 0x1f7   :  { %v4211_v46 = vsel %vm14499_vm6, %v4206_v58, %v4210_v10  ;;  %v15146_v10 = vld [vmem:[#allocation2 + $0x28] sm:$0xf]  ;;  %v15154_v58 = vpop.f32.mrf.mxu1  ;;  %18995 = vst [vmem:[#allocation97_spill] sm:$0xff] %v15160_v61  ;;  %v13884_v9 = vld [vmem:[#allocation2 + $0x38] sm:$0xf]  ;;  %v4904_v55 = vshrl.u32 %v15160_v61, 16 }
 0x1f8   :  { %v11998_v31 = vcombine.low %v4201_v22, %v4211_v46  ;;  %18991 = vst [vmem:[#allocation93_spill] sm:$0xff] %v15146_v10  ;;  %v15152_v22 = vpop.f32.mrf.mxu0  ;;  %v4860_v46 = vshrl.u32 %v15138_v37, 16  ;;  %19014 = vst [vmem:[#allocation116_spill] sm:$0xff] %v15230_v35  ;;  %v5001_v2 = vshrl.u32 %v15219_v33, 16  ;;  %v15258_v40 = vld [vmem:[#allocation2 + $0xa4] sm:$0xf] }
 0x1f9   :  { %18994 = vst [vmem:[#allocation96_spill] sm:$0xff] %v15152_v22  ;;  %v15168_v22 = vld [vmem:[#allocation2 + $0x48] sm:$0xf]  ;;  %v15178_v11 = vpop.f32.mrf.mxu1  ;;  %v15201_v26 = vrot.slane %v4904_v55, 7  ;;  %19022 = vst [vmem:[#allocation124_spill] sm:$0xff] %v15258_v40 }
 0x1fa   :  { %13177 = vmatmul.mubr.bf16.gmra.mxu0 %v11998_v31  ;;  %v4869_v31 = vshrl.u32 %v15130_v12, 16  ;;  %18997 = vst [vmem:[#allocation99_spill] sm:$0xff] %v15168_v22  ;;  %19001 = vst [vmem:[#allocation103_spill] sm:$0xff] %v15178_v11  ;;  %v15207_v11 = vld [vmem:[#allocation2 + $0x74] sm:$0xf] }
 0x1fb   :  { %13276 = vmatprep.mubr.bf16.mxu0 %v12079_v4  ;;  %v12080_v4 = vcombine.low %v15150_v62, %v15146_v10  ;;  %19006 = vst [vmem:[#allocation108_spill] sm:$0xff] %v15201_v26  ;;  %19008 = vst [vmem:[#allocation110_spill] sm:$0xff] %v15207_v11  ;;  %v15394_v62 = vld [vmem:[#allocation2 + $0x108] sm:$0xf] }
 0x1fc   :  { %13037 = vmatmul.mubr.bf16.vlgmr.msra.gmra.mxu1 %v11928_v32  ;;  %v12081_v32 = vcombine.low %v15160_v61, %v15148_v50  ;;  %v15184_v38 = vrot.slane %v4869_v31, 7  ;;  %v15195_v31 = vrot.slane %v4882_v44, 7  ;;  %v15211_v44 = vpop.f32.mrf.mxu1  ;;  %v15341_v50 = vld [vmem:[#allocation2 + $0xb8] sm:$0xf]  ;;  %19053 = vst [vmem:[#allocation154_spill] sm:$0xff] %v15394_v62 }
 0x1fd   :  { %13181 = vmatpush3.bf16.msra.mxu1 %v13882_v7  ;;  %13040 = vmatprep.mubr.bf16.mxu1 %v11929_v29  ;;  %v4891_v29 = vshrl.u32 %v15146_v10, 16  ;;  %v13883_v7 = vld [vmem:[#allocation2 + $0x34] sm:$0xf]  ;;  %v15371_v10 = vld [vmem:[#allocation2 + $0xf8] sm:$0xf] }
 0x1fe   :  { %13182 = vmatprep.subr.bf16.mxu1 %v13749_v16  ;;  %v11930_v15 = vcombine.low %v13883_v7, %v13884_v9  ;;  %v15181_v9 = vrot.slane %v4860_v46, 7  ;;  %v15193_v46 = vld [vmem:[#allocation2 + $0x68] sm:$0xf]  ;;  %19004 = vst [vmem:[#allocation106_spill] sm:$0xff] %v15195_v31  ;;  %v4935_v7 = vshrl.u32 %v15168_v22, 16  ;;  %v15243_v60 = vpop.f32.mrf.mxu1  ;;  %19048 = vst [vmem:[#allocation150_spill] sm:$0xff] %v15371_v10 }
 0x1ff   :  { %19003 = vst [vmem:[#allocation105_spill] sm:$0xff] %v15193_v46  ;;  %v15439_v31 = vld [vmem:[#allocation2 + $0xf8] sm:$0xf] }
 0x200   :  { %v15228_v55 = vrot.slane %v4935_v7, 7  ;;  %v4992_v7 = vshrl.u32 %v15207_v11, 16 }
 0x201   :  { %13183 = vmatpush3.bf16.msra.mxu1 %v13749_v16  ;;  %v11931_v16 = vcombine.low %v13885_v3, %v13886_v36  ;;  %v15187_v3 = vld [vmem:[#allocation2 + $0x64] sm:$0xf]  ;;  %v13804_v36 = vld [vmem:[#allocation4 + $0x1a8] sm:$0xff]  }
 0x202   :  { %13277 = vmatmul.mubr.bf16.vlgmr.msra.gmra.mxu0 %v12080_v4  ;;  %13184 = vmatprep.subr.bf16.mxu1 %v13758_v18  ;;  %v15176_v4 = vpop.f32.mrf.mxu0  ;;  %19002 = vst [vmem:[#allocation104_spill] sm:$0xff] %v15187_v3  ;;  %19013 = vst [vmem:[#allocation115_spill] sm:$0xff] %v15228_v55  ;;  %v13807_v55 = vld [vmem:[#allocation4 + $0xc0] sm:$0xff]  }
 0x203   :  { %13280 = vmatprep.mubr.bf16.mxu0 %v12081_v32  ;;  %19000 = vst [vmem:[#allocation102_spill] sm:$0xff] %v15176_v4  ;;  %13421 = vmatpush3.bf16.msra.mxu0 %v15089_v0  ;;  %v4926_v32 = vshrl.u32 %v15164_v39, 16  ;;  %v15203_v4 = vrot.slane %v4913_v56, 7  ;;  %v12082_v56 = vcombine.low %v15164_v39, %v15168_v22  ;;  %v13806_v0 = vld [vmem:[#allocation4 + $0x1a0] sm:$0xff]   ;;  %v15271_v22 = vld [vmem:[#allocation2 + $0xb4] sm:$0xf] }
 0x204   :  { %13041 = vmatmul.mubr.bf16.gmra.mxu1 %v11930_v15  ;;  %13422 = vmatprep.subr.bf16.mxu0 %v13800_v52  ;;  %v15197_v15 = vrot.slane %v4891_v29, 7  ;;  %19026 = vst [vmem:[#allocation128_spill] sm:$0xff] %v15271_v22  ;;  %v15315_v39 = vld [vmem:[#allocation2 + $0xd4] sm:$0xf] }
 0x205   :  { %13044 = vmatprep.mubr.bf16.mxu1 %v11931_v16  ;;  %13185 = vmatpush3.bf16.msra.mxu1 %v13758_v18  ;;  %19007 = vst [vmem:[#allocation109_spill] sm:$0xff] %v15203_v4  ;;  %v4957_v16 = vshrl.u32 %v15174_v25, 16  ;;  %v15209_v18 = vpop.f32.mrf.mxu0  ;;  %v15213_v29 = vrot.slane %v4926_v32, 7  ;;  %v4979_v32 = vshrl.u32 %v15193_v46, 16  ;;  %19035 = vst [vmem:[#allocation137_spill] sm:$0xff] %v15315_v39  ;;  %v5133_v4 = vshrl.u32 %v15326_v6, 16 }
 0x206   :  { %19005 = vst [vmem:[#allocation107_spill] sm:$0xff] %v15197_v15  ;;  %13186 = vmatprep.subr.bf16.mxu1 %v13767_v63  ;;  %19009 = vst [vmem:[#allocation111_spill] sm:$0xff] %v15209_v18  ;;  %v12083_v18 = vcombine.low %v15172_v24, %v15174_v25 }
 0x207   :  { %13423 = vmatpush3.bf16.msra.mxu0 %v13800_v52  ;;  %19010 = vst [vmem:[#allocation112_spill] sm:$0xff] %v15213_v29  ;;  %v4970_v52 = vshrl.u32 %v15187_v3, 16  ;;  %v15235_v23 = vrot.slane %v4957_v16, 7  ;;  %v15241_v54 = vpop.f32.mrf.mxu0  ;;  %v12084_v16 = vcombine.low %v15187_v3, %v15193_v46  ;;  %v12085_v46 = vcombine.low %v15207_v11, %v15219_v33  ;;  %v13891_v3 = vld [vmem:[#allocation2 + $0x74] sm:$0xf] }
 0x208   :  { %13424 = vmatprep.subr.bf16.mxu0 %v13804_v36  ;;  %19018 = vst [vmem:[#allocation120_spill] sm:$0xff] %v15241_v54  ;;  %v15254_v54 = vrot.slane %v4979_v32, 7  ;;  %v13794_v32 = vld [vmem:[#allocation4 + $0xc8] sm:$0xff]  }
 0x209   :  { %13187 = vmatpush3.bf16.msra.mxu1 %v13767_v63  ;;  %19016 = vst [vmem:[#allocation118_spill] sm:$0xff] %v15235_v23  ;;  %v11933_v63 = vcombine.low %v13889_v13, %v13890_v27  ;;  %v5014_v13 = vshrl.u32 %v15226_v53, 16  ;;  %v15250_v27 = vld [vmem:[#allocation2 + $0x98] sm:$0xf]  ;;  %v15252_v25 = vrot.slane %v4970_v52, 7  ;;  %v15273_v33 = vpop.f32.mrf.mxu0 }
 0x20a   :  { %13281 = vmatmul.mubr.bf16.gmra.mxu0 %v12082_v56  ;;  %13188 = vmatprep.subr.bf16.mxu1 %v13776_v30  ;;  %v15239_v56 = vld [vmem:[#allocation2 + $0x94] sm:$0xf]  ;;  %19019 = vst [vmem:[#allocation121_spill] sm:$0xff] %v15250_v27  ;;  %19021 = vst [vmem:[#allocation123_spill] sm:$0xff] %v15254_v54  ;;  %v13892_v23 = vld [vmem:[#allocation2 + $0x78] sm:$0xf] }
 0x20b   :  { %13284 = vmatprep.mubr.bf16.mxu0 %v12083_v18  ;;  %19017 = vst [vmem:[#allocation119_spill] sm:$0xff] %v15239_v56  ;;  %13425 = vmatpush3.bf16.msra.mxu0 %v13804_v36  ;;  %v13811_v18 = vld [vmem:[#allocation4 + $0x198] sm:$0xff]   ;;  %19020 = vst [vmem:[#allocation122_spill] sm:$0xff] %v15252_v25  ;;  %v5023_v36 = vshrl.u32 %v15233_v49, 16  ;;  %v11934_v24 = vcombine.low %v13891_v3, %v13892_v23  ;;  %v5036_v52 = vshrl.u32 %v15239_v56, 16  ;;  %v15268_v54 = vrot.slane %v5001_v2, 7  ;;  %v15275_v23 = vpop.f32.mrf.mxu1 }
 0x20c   :  { %13045 = vmatmul.mubr.bf16.gmra.mxu1 %v11932_v47  ;;  %13426 = vmatprep.subr.bf16.mxu0 %v13806_v0  ;;  %v15266_v47 = vrot.slane %v4992_v7, 7  ;;  %v13893_v25 = vld [vmem:[#allocation2 + $0x84] sm:$0xf]  ;;  %v5045_v41 = vshrl.u32 %v15250_v27, 16  ;;  %19027 = vst [vmem:[#allocation129_spill] sm:$0xff] %v15273_v33  ;;  %v15277_v3 = vrot.slane %v5014_v13, 7  ;;  %v15317_v33 = vpop.f32.mrf.mxu0 }
 0x20d   :  { %13048 = vmatprep.mubr.bf16.mxu1 %v11933_v63  ;;  %13189 = vmatpush3.bf16.msra.mxu1 %v13776_v30  ;;  %v15264_v63 = vld [vmem:[#allocation2 + $0xa8] sm:$0xf]  ;;  %19025 = vst [vmem:[#allocation127_spill] sm:$0xff] %v15268_v54  ;;  %v15283_v54 = vld [vmem:[#allocation2 + $0xb8] sm:$0xf]  ;;  %v15292_v7 = vrot.slane %v5036_v52, 7  ;;  %v15319_v29 = vpop.f32.mrf.mxu1 }
 0x20e   :  { %19023 = vst [vmem:[#allocation125_spill] sm:$0xff] %v15264_v63  ;;  %13190 = vmatprep.subr.bf16.mxu1 %v13785_v45  ;;  %19024 = vst [vmem:[#allocation126_spill] sm:$0xff] %v15266_v47  ;;  %v13894_v30 = vld [vmem:[#allocation2 + $0x88] sm:$0xf]  ;;  %v5058_v47 = vshrl.u32 %v15258_v40, 16  ;;  %v5080_v2 = vshrl.u32 %v15271_v22, 16  ;;  %v15361_v61 = vpop.f32.mrf.mxu0 }
 0x20f   :  { %v11935_v35 = vcombine.low %v13893_v25, %v13894_v30  ;;  %13427 = vmatpush3.bf16.msra.mxu0 %v13806_v0  ;;  %19028 = vst [vmem:[#allocation130_spill] sm:$0xff] %v15277_v3  ;;  %19029 = vst [vmem:[#allocation131_spill] sm:$0xff] %v15283_v54  ;;  %v13813_v25 = vld [vmem:[#allocation4 + $0x190] sm:$0xff]   ;;  %v15285_v30 = vrot.slane %v5023_v36, 7  ;;  %v5067_v0 = vshrl.u32 %v15264_v63, 16  ;;  %v15363_v26 = vpop.f32.mrf.mxu1 }
 0x210   :  { %13428 = vmatprep.subr.bf16.mxu0 %v13811_v18  ;;  %v15290_v13 = vld [vmem:[#allocation2 + $0xc4] sm:$0xf]  ;;  %19032 = vst [vmem:[#allocation134_spill] sm:$0xff] %v15292_v7  ;;  %v15297_v3 = vld [vmem:[#allocation2 + $0x94] sm:$0xf]  ;;  %v5089_v7 = vshrl.u32 %v15283_v54, 16 }
 0x211   :  { %19030 = vst [vmem:[#allocation132_spill] sm:$0xff] %v15285_v30  ;;  %19031 = vst [vmem:[#allocation133_spill] sm:$0xff] %v15290_v13  ;;  %13191 = vmatpush3.bf16.msra.mxu1 %v13785_v45  ;;  %v15299_v36 = vld [vmem:[#allocation2 + $0x98] sm:$0xf]  ;;  %v15303_v30 = vld [vmem:[#allocation2 + $0xc8] sm:$0xf] }
 0x212   :  { %13285 = vmatmul.mubr.bf16.gmra.mxu0 %v12084_v16  ;;  %19033 = vst [vmem:[#allocation135_spill] sm:$0xff] %v15303_v30  ;;  %13192 = vmatprep.subr.bf16.mxu1 %v13794_v32  ;;  %v15305_v45 = vrot.slane %v5045_v41, 7  ;;  %v15307_v16 = vld [vmem:[#allocation2 + $0xa4] sm:$0xf]  ;;  %v15309_v52 = vld [vmem:[#allocation2 + $0xa8] sm:$0xf] }
 0x213   :  { %13288 = vmatprep.mubr.bf16.mxu0 %v12085_v46  ;;  %19036 = vst [vmem:[#allocation138_spill] sm:$0xff] %v15317_v33  ;;  %19037 = vst [vmem:[#allocation139_spill] sm:$0xff] %v15319_v29  ;;  %13429 = vmatpush3.bf16.msra.mxu0 %v13811_v18  ;;  %v5102_v11 = vshrl.u32 %v15290_v13, 16  ;;  %v15328_v57 = vrot.slane %v5058_v47, 7  ;;  %v15330_v33 = vrot.slane %v5067_v0, 7  ;;  %v5111_v18 = vshrl.u32 %v15303_v30, 16 }
 0x214   :  { %19034 = vst [vmem:[#allocation136_spill] sm:$0xff] %v15305_v45  ;;  %13049 = vmatmul.mubr.bf16.gmra.mxu1 %v11934_v24  ;;  %13430 = vmatprep.subr.bf16.mxu0 %v13813_v25  ;;  %v15334_v46 = vld [vmem:[#allocation2 + $0xe4] sm:$0xf]  ;;  %v15339_v29 = vld [vmem:[#allocation2 + $0xb4] sm:$0xf]  ;;  %v5124_v47 = vshrl.u32 %v15315_v39, 16 }
 0x215   :  { %13052 = vmatprep.mubr.bf16.mxu1 %v11935_v35  ;;  %19039 = vst [vmem:[#allocation141_spill] sm:$0xff] %v15328_v57  ;;  %19040 = vst [vmem:[#allocation142_spill] sm:$0xff] %v15330_v33  ;;  %13193 = vmatpush3.bf16.msra.mxu1 %v13794_v32  ;;  %v15346_v0 = vld [vmem:[#allocation2 + $0xe8] sm:$0xf]  ;;  %v13818_v24 = vld [vmem:[#allocation4 + $0x178] sm:$0xff]   ;;  %v15348_v33 = vrot.slane %v5080_v2, 7 }
 0x216   :  { %19041 = vst [vmem:[#allocation143_spill] sm:$0xff] %v15334_v46  ;;  %19042 = vst [vmem:[#allocation144_spill] sm:$0xff] %v15346_v0  ;;  %13194 = vmatprep.subr.bf16.mxu1 %v13807_v55  ;;  %v15350_v32 = vrot.slane %v5089_v7, 7  ;;  %v15352_v41 = vld [vmem:[#allocation2 + $0xc4] sm:$0xf]  ;;  %v15365_v2 = vrot.slane %v5102_v11, 7 }
 0x217   :  { %19043 = vst [vmem:[#allocation145_spill] sm:$0xff] %v15348_v33  ;;  %v15354_v45 = vld [vmem:[#allocation2 + $0xc8] sm:$0xf]  ;;  %v15359_v35 = vld [vmem:[#allocation2 + $0xf4] sm:$0xf]  ;;  %19046 = vst [vmem:[#allocation148_spill] sm:$0xff] %v15361_v61  ;;  %13431 = vmatpush3.bf16.msra.mxu0 %v13813_v25 }
 0x218   :  { %19044 = vst [vmem:[#allocation146_spill] sm:$0xff] %v15350_v32  ;;  %19045 = vst [vmem:[#allocation147_spill] sm:$0xff] %v15359_v35  ;;  %13432 = vmatprep.subr.bf16.mxu0 %v13816_v20  ;;  %v13817_v57 = vld [vmem:[#allocation4 + $0x180] sm:$0xff]   ;;  %v15373_v15 = vrot.slane %v5111_v18, 7  ;;  %v5146_v34 = vshrl.u32 %v15334_v46, 16  ;;  %v5155_v11 = vshrl.u32 %v15346_v0, 16  ;;  %v19051_v32 = vcombine.low %v15226_v53, %v15233_v49  ;;  %v15413_v53 = vpop.f32.mrf.mxu1 }
 0x219   :  { %19047 = vst [vmem:[#allocation149_spill] sm:$0xff] %v15365_v2  ;;  %v15378_v25 = vld [vmem:[#allocation2 + $0x104] sm:$0xf]  ;;  %13195 = vmatpush3.bf16.msra.mxu1 %v13807_v55  ;;  %v15383_v7 = vrot.slane %v5124_v47, 7  ;;  %v15390_v61 = vld [vmem:[#allocation2 + $0xd8] sm:$0xf]  ;;  %v19054_v55 = vcombine.low %v15239_v56, %v15250_v27 }
 0x21a   :  { %19049 = vst [vmem:[#allocation151_spill] sm:$0xff] %v15373_v15  ;;  %19050 = vst [vmem:[#allocation152_spill] sm:$0xff] %v15378_v25  ;;  %13289 = vmatmul.mubr.bf16.gmra.mxu0 %v19051_v32  ;;  %v15388_v15 = vld [vmem:[#allocation2 + $0xd4] sm:$0xf]  ;;  %13340 = vmatprep.subr.bf16.mxu1 %v13818_v24  ;;  %v15399_v47 = vrot.slane %v5133_v4, 7  ;;  %v5177_v2 = vshrl.u32 %v15371_v10, 16  ;;  %v15411_v24 = vpop.f32.mrf.mxu0  ;;  %v19058_v4 = vcombine.low %v15297_v3, %v15299_v36  ;;  %v15458_v14 = vpop.f32.mrf.mxu1 }
 0x21b   :  { %19052 = vst [vmem:[#allocation153_spill] sm:$0xff] %v15383_v7  ;;  %13292 = vmatprep.mubr.bf16.mxu0 %v19054_v55  ;;  %v15401_v32 = vld [vmem:[#allocation2 + $0xe4] sm:$0xf]  ;;  %v15403_v33 = vld [vmem:[#allocation2 + $0xe8] sm:$0xf]  ;;  %v5168_v7 = vshrl.u32 %v15359_v35, 16  ;;  %13433 = vmatpush3.bf16.msra.mxu0 %v13816_v20 }
 0x21c   :  { %19055 = vst [vmem:[#allocation155_spill] sm:$0xff] %v15399_v47  ;;  %v15409_v49 = vld [vmem:[#allocation2 + $0x134] sm:$0xf]  ;;  %19057 = vst [vmem:[#allocation157_spill] sm:$0xff] %v15411_v24  ;;  %13053 = vmatmul.mubr.bf16.gmra.mxu1 %v19058_v4  ;;  %v5190_v27 = vshrl.u32 %v15378_v25, 16  ;;  %13434 = vmatprep.subr.bf16.mxu0 %v13817_v57  ;;  %v19060_v24 = vcombine.low %v15307_v16, %v15309_v52  ;;  %v15428_v20 = vrot.slane %v5146_v34, 7 }
 0x21d   :  { %19056 = vst [vmem:[#allocation156_spill] sm:$0xff] %v15409_v49  ;;  %v15423_v56 = vld [vmem:[#allocation2 + $0x138] sm:$0xf]  ;;  %v15430_v3 = vrot.slane %v5155_v11, 7  ;;  %v5199_v4 = vshrl.u32 %v15394_v62, 16  ;;  %v5212_v34 = vshrl.u32 %v15409_v49, 16 }
 0x21e   :  { %19059 = vst [vmem:[#allocation158_spill] sm:$0xff] %v15423_v56  ;;  %13056 = vmatprep.mubr.bf16.mxu1 %v19060_v24  ;;  %19061 = vst [vmem:[#allocation159_spill] sm:$0xff] %v15428_v20  ;;  %v15437_v18 = vld [vmem:[#allocation2 + $0xf4] sm:$0xf]  ;;  %v15444_v52 = vld [vmem:[#allocation2 + $0x144] sm:$0xf]  ;;  %v15456_v20 = vpop.f32.mrf.mxu0 }
 0x21f   :  { %19062 = vst [vmem:[#allocation160_spill] sm:$0xff] %v15430_v3  ;;  %19063 = vst [vmem:[#allocation161_spill] sm:$0xff] %v15444_v52  ;;  %v15446_v11 = vld [vmem:[#allocation2 + $0x148] sm:$0xf]  ;;  %v15448_v24 = vrot.slane %v5168_v7, 7  ;;  %v15450_v36 = vrot.slane %v5177_v2, 7  ;;  %13435 = vmatpush3.bf16.msra.mxu0 %v13817_v57  ;;  %v19073_v57 = vcombine.low %v15258_v40, %v15264_v63 }
 0x220   :  { %19064 = vst [vmem:[#allocation162_spill] sm:$0xff] %v15446_v11  ;;  %v5221_v55 = vshrl.u32 %v15423_v56, 16  ;;  %v15454_v3 = vld [vmem:[#allocation2 + $0x154] sm:$0xf]  ;;  %19068 = vst [vmem:[#allocation166_spill] sm:$0xff] %v15456_v20  ;;  %v15460_v16 = vrot.slane %v5190_v27, 7 }
 0x221   :  { %19065 = vst [vmem:[#allocation163_spill] sm:$0xff] %v15448_v24  ;;  %19066 = vst [vmem:[#allocation164_spill] sm:$0xff] %v15450_v36  ;;  %v15466_v36 = vld [vmem:[#allocation2 + $0x158] sm:$0xf]  ;;  %v15468_v47 = vrot.slane %v5199_v4, 7  ;;  %v5234_v20 = vshrl.u32 %v15444_v52, 16 }
 0x222   :  { %19067 = vst [vmem:[#allocation165_spill] sm:$0xff] %v15454_v3  ;;  %19069 = vst [vmem:[#allocation167_spill] sm:$0xff] %v15458_v14  ;;  %v5243_v14 = vshrl.u32 %v15446_v11, 16  ;;  %13293 = vmatmul.mubr.bf16.gmra.mxu0 %v19073_v57  ;;  %v15476_v27 = vrot.slane %v5212_v34, 7  ;;  %v15480_v2 = vld [vmem:[#allocation2 + $0x124] sm:$0xf]  ;;  %v19077_v34 = vcombine.low %v15271_v22, %v15283_v54 }
 0x223   :  { %19070 = vst [vmem:[#allocation168_spill] sm:$0xff] %v15460_v16  ;;  %19071 = vst [vmem:[#allocation169_spill] sm:$0xff] %v15466_v36  ;;  %v15482_v7 = vld [vmem:[#allocation2 + $0x128] sm:$0xf]  ;;  %v5256_v24 = vshrl.u32 %v15454_v3, 16  ;;  %v15494_v57 = vrot.slane %v5221_v55, 7  ;;  %v15511_v55 = vpop.f32.mrf.mxu0 }
 0x224   :  { %19072 = vst [vmem:[#allocation170_spill] sm:$0xff] %v15468_v47  ;;  %19074 = vst [vmem:[#allocation171_spill] sm:$0xff] %v15476_v27  ;;  %v15487_v47 = vld [vmem:[#allocation2 + $0x164] sm:$0xf]  ;;  %v15489_v16 = vld [vmem:[#allocation2 + $0x168] sm:$0xf]  ;;  %13296 = vmatprep.mubr.bf16.mxu0 %v19077_v34  ;;  %v15513_v34 = vpop.f32.mrf.mxu1 }
 0x225   :  { %19075 = vst [vmem:[#allocation172_spill] sm:$0xff] %v15487_v47  ;;  %19076 = vst [vmem:[#allocation173_spill] sm:$0xff] %v15489_v16  ;;  %v15498_v27 = vld [vmem:[#allocation2 + $0x138] sm:$0xf]  ;;  %v15502_v4 = vld [vmem:[#allocation2 + $0x144] sm:$0xf] }
 0x226   :  { %19078 = vst [vmem:[#allocation174_spill] sm:$0xff] %v15494_v57  ;;  %19079 = vst [vmem:[#allocation175_spill] sm:$0xff] %v15498_v27  ;;  %v15504_v40 = vld [vmem:[#allocation2 + $0x148] sm:$0xf]  ;;  %v5265_v19 = vshrl.u32 %v15466_v36, 16  ;;  %v19085_v57 = vcombine.low %v15339_v29, %v15341_v50  ;;  %v5278_v50 = vshrl.u32 %v15487_v47, 16  ;;  %v19099_v36 = vcombine.low %v15290_v13, %v15303_v30 }
 0x227   :  { %19080 = vst [vmem:[#allocation176_spill] sm:$0xff] %v15502_v4  ;;  %19081 = vst [vmem:[#allocation177_spill] sm:$0xff] %v15504_v40  ;;  %v15509_v54 = vld [vmem:[#allocation2 + $0x174] sm:$0xf]  ;;  %v15523_v40 = vld [vmem:[#allocation2 + $0x178] sm:$0xf] }
 0x228   :  { %19082 = vst [vmem:[#allocation178_spill] sm:$0xff] %v15509_v54  ;;  %19083 = vst [vmem:[#allocation179_spill] sm:$0xff] %v15511_v55  ;;  %13057 = vmatmul.mubr.bf16.gmra.mxu1 %v19085_v57  ;;  %v19087_v55 = vcombine.low %v15352_v41, %v15354_v45  ;;  %v15530_v4 = vrot.slane %v5243_v14, 7  ;;  %v5287_v29 = vshrl.u32 %v15489_v16, 16  ;;  %v15534_v57 = vld [vmem:[#allocation2 + $0x184] sm:$0xf] }
 0x229   :  { %19084 = vst [vmem:[#allocation180_spill] sm:$0xff] %v15513_v34  ;;  %19086 = vst [vmem:[#allocation181_spill] sm:$0xff] %v15523_v40  ;;  %v15528_v34 = vrot.slane %v5234_v20, 7  ;;  %v15536_v22 = vrot.slane %v5256_v24, 7  ;;  %v5300_v45 = vshrl.u32 %v15509_v54, 16  ;;  %v15544_v20 = vrot.slane %v5265_v19, 7  ;;  %v15561_v19 = vpop.f32.mrf.mxu0 }
 0x22a   :  { %13060 = vmatprep.mubr.bf16.mxu1 %v19087_v55  ;;  %19089 = vst [vmem:[#allocation183_spill] sm:$0xff] %v15530_v4  ;;  %v15542_v41 = vld [vmem:[#allocation2 + $0x188] sm:$0xf]  ;;  %v15546_v14 = vld [vmem:[#allocation2 + $0x154] sm:$0xf]  ;;  %v5309_v63 = vshrl.u32 %v15523_v40, 16  ;;  %13297 = vmatmul.mubr.bf16.gmra.mxu0 %v19099_v36 }
 0x22b   :  { %19088 = vst [vmem:[#allocation182_spill] sm:$0xff] %v15528_v34  ;;  %19090 = vst [vmem:[#allocation184_spill] sm:$0xff] %v15536_v22  ;;  %v15548_v55 = vld [vmem:[#allocation2 + $0x158] sm:$0xf]  ;;  %v15552_v24 = vld [vmem:[#allocation2 + $0x164] sm:$0xf] }
 0x22c   :  { %19091 = vst [vmem:[#allocation185_spill] sm:$0xff] %v15544_v20  ;;  %19092 = vst [vmem:[#allocation186_spill] sm:$0xff] %v15546_v14  ;;  %v15554_v22 = vld [vmem:[#allocation2 + $0x168] sm:$0xf]  ;;  %v15559_v4 = vld [vmem:[#allocation2 + $0x194] sm:$0xf]  ;;  %v15563_v20 = vpop.f32.mrf.mxu1 }
 0x22d   :  { %19093 = vst [vmem:[#allocation187_spill] sm:$0xff] %v15548_v55  ;;  %19094 = vst [vmem:[#allocation188_spill] sm:$0xff] %v15552_v24  ;;  %v15570_v14 = vld [vmem:[#allocation2 + $0x198] sm:$0xf]  ;;  %v15572_v1 = vrot.slane %v5278_v50, 7  ;;  %v5322_v24 = vshrl.u32 %v15534_v57, 16 }
 0x22e   :  { %19095 = vst [vmem:[#allocation189_spill] sm:$0xff] %v15554_v22  ;;  %19096 = vst [vmem:[#allocation190_spill] sm:$0xff] %v15561_v19  ;;  %v15574_v22 = vrot.slane %v5287_v29, 7  ;;  %v5331_v19 = vshrl.u32 %v15542_v41, 16  ;;  %v15578_v3 = vld [vmem:[#allocation2 + $0x1a4] sm:$0xf] }
 0x22f   :  { %19097 = vst [vmem:[#allocation191_spill] sm:$0xff] %v15572_v1  ;;  %v15583_v34 = vrot.slane %v5300_v45, 7  ;;  %v5344_v29 = vshrl.u32 %v15559_v4, 16  ;;  %v15589_v27 = vld [vmem:[#allocation2 + $0x1a8] sm:$0xf]  ;;  %v15594_v1 = vrot.slane %v5309_v63, 7  ;;  %v15613_v63 = vpop.f32.mrf.mxu1 }
 0x230   :  { %19098 = vst [vmem:[#allocation192_spill] sm:$0xff] %v15574_v22  ;;  %v19101_v22 = vcombine.low %v15315_v39, %v15326_v6  ;;  %v15596_v16 = vld [vmem:[#allocation2 + $0x174] sm:$0xf]  ;;  %v15598_v36 = vld [vmem:[#allocation2 + $0x178] sm:$0xf]  ;;  %v5353_v30 = vshrl.u32 %v15570_v14, 16 }
 0x231   :  { %19100 = vst [vmem:[#allocation193_spill] sm:$0xff] %v15583_v34  ;;  %19102 = vst [vmem:[#allocation194_spill] sm:$0xff] %v15594_v1  ;;  %v15602_v55 = vld [vmem:[#allocation2 + $0x184] sm:$0xf]  ;;  %v15604_v50 = vld [vmem:[#allocation2 + $0x188] sm:$0xf]  ;;  %v19106_v1 = vcombine.low %v15388_v15, %v15390_v61 }
 0x232   :  { %13300 = vmatprep.mubr.bf16.mxu0 %v19101_v22  ;;  %19103 = vst [vmem:[#allocation195_spill] sm:$0xff] %v15602_v55  ;;  %19104 = vst [vmem:[#allocation196_spill] sm:$0xff] %v15604_v50  ;;  %v15609_v6 = vld [vmem:[#allocation2 + $0x1b4] sm:$0xf]  ;;  %v15611_v22 = vpop.f32.mrf.mxu0  ;;  %v19107_v50 = vcombine.low %v15401_v32, %v15403_v33  ;;  %v15628_v55 = vrot.slane %v5331_v19, 7  ;;  %v5366_v61 = vshrl.u32 %v15578_v3, 16  ;;  %v15646_v19 = vadd.f32 %v14764_v51, %v15136_v5  ;;  %v15666_v5 = vpop.f32.mrf.mxu1 }
 0x233   :  { %19105 = vst [vmem:[#allocation197_spill] sm:$0xff] %v15611_v22  ;;  %13061 = vmatmul.mubr.bf16.gmra.mxu1 %v19106_v1  ;;  %v15626_v22 = vrot.slane %v5322_v24, 7  ;;  %v5375_v1 = vshrl.u32 %v15589_v27, 16  ;;  %v15632_v15 = vld [vmem:[#allocation2 + $0x1b8] sm:$0xf]  ;;  %v15634_v39 = vrot.slane %v5344_v29, 7 }
 0x234   :  { %13064 = vmatprep.mubr.bf16.mxu1 %v19107_v50  ;;  %19109 = vst [vmem:[#allocation199_spill] sm:$0xff] %v15628_v55  ;;  %v5388_v33 = vshrl.u32 %v15609_v6, 16  ;;  %v15640_v32 = vld [vmem:[#allocation2 + $0x1c4] sm:$0xf]  ;;  %v15642_v24 = vrot.slane %v5353_v30, 7  ;;  %19113 = vst [vmem:[#allocation203_spill] sm:$0xff] %v15646_v19  ;;  %v15664_v51 = vpop.f32.mrf.mxu0  ;;  %v15670_v19 = vadd.f32 %v14773_v43, %v15144_v48  ;;  %v19124_v43 = vcombine.low %v15334_v46, %v15346_v0 }
 0x235   :  { %19108 = vst [vmem:[#allocation198_spill] sm:$0xff] %v15626_v22  ;;  %19110 = vst [vmem:[#allocation200_spill] sm:$0xff] %v15634_v39  ;;  %v15648_v50 = vld [vmem:[#allocation2 + $0x194] sm:$0xf]  ;;  %v15650_v13 = vld [vmem:[#allocation2 + $0x198] sm:$0xf] }
 0x236   :  { %19111 = vst [vmem:[#allocation201_spill] sm:$0xff] %v15640_v32  ;;  %19112 = vst [vmem:[#allocation202_spill] sm:$0xff] %v15642_v24  ;;  %v15654_v45 = vld [vmem:[#allocation2 + $0x1a4] sm:$0xf]  ;;  %v15656_v34 = vld [vmem:[#allocation2 + $0x1a8] sm:$0xf]  ;;  %13301 = vmatmul.mubr.bf16.gmra.mxu0 %v19124_v43  ;;  %v15703_v55 = vpop.f32.mrf.mxu0 }
 0x237   :  { %19114 = vst [vmem:[#allocation204_spill] sm:$0xff] %v15650_v13  ;;  %19115 = vst [vmem:[#allocation205_spill] sm:$0xff] %v15654_v45  ;;  %v15660_v30 = vld [vmem:[#allocation2 + $0x1c8] sm:$0xf]  ;;  %v15662_v24 = vld [vmem:[#allocation2 + $0x1d4] sm:$0xf]  ;;  %v15699_v45 = vadd.f32 %v14782_v59, %v15154_v58 }
 0x238   :  { %19116 = vst [vmem:[#allocation206_spill] sm:$0xff] %v15656_v34  ;;  %19117 = vst [vmem:[#allocation207_spill] sm:$0xff] %v15660_v30  ;;  %v5397_v22 = vshrl.u32 %v15632_v15, 16  ;;  %v15675_v13 = vld [vmem:[#allocation2 + $0x1d8] sm:$0xf]  ;;  %v15677_v39 = vrot.slane %v5366_v61, 7 }
 0x239   :  { %19118 = vst [vmem:[#allocation208_spill] sm:$0xff] %v15662_v24  ;;  %19119 = vst [vmem:[#allocation209_spill] sm:$0xff] %v15664_v51  ;;  %v15679_v34 = vrot.slane %v5375_v1, 7  ;;  %v15687_v48 = vrot.slane %v5388_v33, 7  ;;  %v5410_v29 = vshrl.u32 %v15640_v32, 16  ;;  %v5419_v61 = vshrl.u32 %v15660_v30, 16 }
 0x23a   :  { %19120 = vst [vmem:[#allocation210_spill] sm:$0xff] %v15670_v19  ;;  %19121 = vst [vmem:[#allocation211_spill] sm:$0xff] %v15675_v13  ;;  %v19126_v1 = vcombine.low %v15359_v35, %v15371_v10  ;;  %v5432_v33 = vshrl.u32 %v15662_v24, 16  ;;  %v5441_v43 = vshrl.u32 %v15675_v13, 16  ;;  %v15705_v19 = vpop.f32.mrf.mxu1  ;;  %v15714_v51 = vadd.f32 %v14797_v28, %v15211_v44  ;;  %v15716_v59 = vld [vmem:[#allocation2 + $0x1b4] sm:$0xf] }
 0x23b   :  { %19122 = vst [vmem:[#allocation212_spill] sm:$0xff] %v15677_v39  ;;  %19123 = vst [vmem:[#allocation213_spill] sm:$0xff] %v15679_v34  ;;  %v15718_v58 = vld [vmem:[#allocation2 + $0x1b8] sm:$0xf]  ;;  %v15733_v28 = vadd.f32 %v14803_v42, %v15243_v60  ;;  %v15745_v34 = vrot.slane %v5419_v61, 7  ;;  %v15759_v44 = vadd.f32 %v14810_v8, %v15275_v23  ;;  %v15763_v61 = vpop.f32.mrf.mxu0  ;;  %v15769_v42 = vadd.f32 %v14826_v21, %v15363_v26  ;;  %v19191_v0 = vld [vmem:[#allocation94_spill] sm:$0xff] }
 0x23c   :  { %19125 = vst [vmem:[#allocation214_spill] sm:$0xff] %v15687_v48  ;;  %13304 = vmatprep.mubr.bf16.mxu0 %v19126_v1  ;;  %19127 = vst [vmem:[#allocation215_spill] sm:$0xff] %v15699_v45  ;;  %v19130_v48 = vcombine.low %v15437_v18, %v15439_v31  ;;  %v15710_v1 = vrot.slane %v5397_v22, 7  ;;  %v4758_v18 = vld [vmem:[#allocation2 + $0x10] sm:$0x8]  ;;  %v19133_v22 = vcombine.low %v15480_v2, %v15482_v7  ;;  %v15743_v31 = vrot.slane %v5410_v29, 7  ;;  %v15765_v7 = vpop.f32.mrf.mxu1 }
 0x23d   :  { %19128 = vst [vmem:[#allocation216_spill] sm:$0xff] %v15703_v55  ;;  %19129 = vst [vmem:[#allocation217_spill] sm:$0xff] %v15705_v19  ;;  %v15722_v55 = vld [vmem:[#allocation2 + $0x1c4] sm:$0xf]  ;;  %v15724_v19 = vld [vmem:[#allocation2 + $0x1c8] sm:$0xf]  ;;  %v19148_v26 = vcombine.low %v15378_v25, %v15394_v62 }
 0x23e   :  { %13065 = vmatmul.mubr.bf16.gmra.mxu1 %v19130_v48  ;;  %19131 = vst [vmem:[#allocation218_spill] sm:$0xff] %v15710_v1  ;;  %19132 = vst [vmem:[#allocation219_spill] sm:$0xff] %v15714_v51  ;;  %v15739_v51 = vld [vmem:[#allocation2 + $0x1e4] sm:$0xf]  ;;  %v15741_v1 = vld [vmem:[#allocation2 + $0x1e8] sm:$0xf]  ;;  %v15810_v39 = vpop.f32.mrf.mxu1 }
 0x23f   :  { %13068 = vmatprep.mubr.bf16.mxu1 %v19133_v22  ;;  %19134 = vst [vmem:[#allocation220_spill] sm:$0xff] %v15733_v28  ;;  %19135 = vst [vmem:[#allocation221_spill] sm:$0xff] %v15739_v51  ;;  %v15749_v60 = vld [vmem:[#allocation2 + $0x1f4] sm:$0xf]  ;;  %v15751_v2 = vrot.slane %v5432_v33, 7  ;;  %v15753_v22 = vrot.slane %v5441_v43, 7  ;;  %13305 = vmatmul.mubr.bf16.gmra.mxu0 %v19148_v26 }
 0x240   :  { %19136 = vst [vmem:[#allocation222_spill] sm:$0xff] %v15741_v1  ;;  %19137 = vst [vmem:[#allocation223_spill] sm:$0xff] %v15743_v31  ;;  %v15761_v29 = vld [vmem:[#allocation2 + $0x1f8] sm:$0xf]  ;;  %v5454_v33 = vshrl.u32 %v15739_v51, 16  ;;  %v5463_v43 = vshrl.u32 %v15741_v1, 16 }
 0x241   :  { %19138 = vst [vmem:[#allocation224_spill] sm:$0xff] %v15745_v34  ;;  %19139 = vst [vmem:[#allocation225_spill] sm:$0xff] %v15749_v60  ;;  %v4855_v45 = vshrl.u32 %v4758_v18, 16  ;;  %v5476_v48 = vshrl.u32 %v15749_v60, 16  ;;  %v19146_v8 = vshll.u32 %v15138_v37, 16  ;;  %v15806_v34 = vpop.f32.mrf.mxu0  ;;  %v19183_v25 = vld [vmem:[#allocation107_spill] sm:$0xff] }
 0x242   :  { %19140 = vst [vmem:[#allocation226_spill] sm:$0xff] %v15751_v2  ;;  %19141 = vst [vmem:[#allocation227_spill] sm:$0xff] %v15753_v22  ;;  %v15784_v21 = vld [vmem:[#allocation2 + $0x1d4] sm:$0xf]  ;;  %v15790_v22 = vld [vmem:[#allocation2 + $0x1e4] sm:$0xf] }
 0x243   :  { %19142 = vst [vmem:[#allocation228_spill] sm:$0xff] %v15759_v44  ;;  %19143 = vst [vmem:[#allocation229_spill] sm:$0xff] %v15761_v29  ;;  %v4865_v23 = vor.u32 %v19146_v8, %v15181_v9  ;;  %v4867_v44 = vrot.slane %v15181_v9, 4  ;;  %v15792_v37 = vld [vmem:[#allocation2 + $0x1e8] sm:$0xf]  ;;  %v19184_v10 = vld [vmem:[#allocation93_spill] sm:$0xff] }
 0x244   :  { %19144 = vst [vmem:[#allocation230_spill] sm:$0xff] %v15763_v61  ;;  %19145 = vst [vmem:[#allocation231_spill] sm:$0xff] %v15769_v42  ;;  %v19147_v61 = vshll.u32 %v15130_v12, 16  ;;  %v15786_v42 = vld [vmem:[#allocation2 + $0x1d8] sm:$0xf]  ;;  %v12007_v12 = vrot.slane %v4855_v45, 11 }
 0x245   :  { %v19150_v8 = vld [vmem:[#allocation27_spill] sm:$0xff]  ;;  %19152 = vst [vmem:[#allocation232_spill] sm:$0xff] %v15806_v34  ;;  %v4761_v18 = vld [vmem:[#allocation2 + $0x20] sm:$0x8]  ;;  %v19157_v34 = vld [vmem:[#allocation176_spill] sm:$0xff]  ;;  %v19185_v35 = vshll.u32 %v19184_v10, 16 }
 0x246   :  { %v4874_v28 = vor.u32 %v19147_v61, %v15184_v38  ;;  %v5485_v38 = vshrl.u32 %v15761_v29, 16  ;;  %v19149_v61 = vcombine.low %v15409_v49, %v15423_v56  ;;  %v15802_v26 = vadd.f32 %v19150_v8, %v15413_v53  ;;  %v19154_v45 = vld [vmem:[#allocation175_spill] sm:$0xff]  ;;  %v19166_v8 = vld [vmem:[#allocation12_spill] sm:$0xff]  ;;  %v15876_v49 = vld [vmem:[#allocation2 + $0x218] sm:$0xf] }
 0x247   :  { %v19155_v62 = vcombine.low %v15496_v17, %v19154_v45  ;;  %v4866_v2 = vsel %vm14444_vm3, %v12007_v12, %v4865_v23  ;;  %v15827_v56 = vrot.slane %v5476_v48, 7  ;;  %v19165_v12 = vld [vmem:[#allocation167_spill] sm:$0xff]  ;;  %v4764_v48 = vld [vmem:[#allocation2 + $0x30] sm:$0x8]  ;;  %v15860_v17 = vpop.f32.mrf.mxu0  ;;  %v4877_v23 = vshrl.u32 %v4761_v18, 16 }
 0x248   :  { %13308 = vmatprep.mubr.bf16.mxu0 %v19149_v61  ;;  %19151 = vst [vmem:[#allocation27_spill] sm:$0xff] %v15802_v26  ;;  %v4875_v9 = vsel %vm14444_vm3, %v4867_v44, %v4874_v28  ;;  %v15815_v61 = vrot.slane %v5454_v33, 7  ;;  %v19158_v26 = vld [vmem:[#allocation177_spill] sm:$0xff]  ;;  %v15825_v44 = vrot.slane %v5463_v43, 7  ;;  %v15834_v45 = vrot.slane %v5485_v38, 7  ;;  %19175 = vst [vmem:[#allocation239_spill] sm:$0xff] %v15860_v17 }
 0x249   :  { %13069 = vmatmul.mubr.bf16.gmra.mxu1 %v19155_v62  ;;  %v19159_v28 = vcombine.low %v19157_v34, %v19158_v26  ;;  %19161 = vst [vmem:[#allocation176_spill] sm:$0xff] %v15827_v56  ;;  %v15830_v62 = vld [vmem:[#allocation2 + $0x204] sm:$0xf]  ;;  %v15832_v33 = vcombine.low %v4866_v2, %v4875_v9  ;;  %v15840_v53 = vadd.f32 %v19166_v8, %v19165_v12  ;;  %v19168_v34 = vld [vmem:[#allocation29_spill] sm:$0xff]  ;;  %v15846_v26 = vld [vmem:[#allocation2 + $0x1f4] sm:$0xf] }
 0x24a   :  { %19156 = vst [vmem:[#allocation10_spill] sm:$0xff] %v15815_v61  ;;  %19160 = vst [vmem:[#allocation175_spill] sm:$0xff] %v15825_v44  ;;  %v15844_v43 = vadd.f32 %v19168_v34, %v15563_v20  ;;  %v15852_v9 = vld [vmem:[#allocation2 + $0x204] sm:$0xf]  ;;  %v15854_v38 = vld [vmem:[#allocation2 + $0x208] sm:$0xf]  ;;  %v15864_v34 = vpop.f32.mrf.mxu1  ;;  %v4896_v18 = vor.u32 %v19185_v35, %v19183_v25 }
 0x24b   :  { %13072 = vmatprep.mubr.bf16.mxu1 %v19159_v28  ;;  %19162 = vst [vmem:[#allocation177_spill] sm:$0xff] %v15830_v62  ;;  %19163 = vst [vmem:[#allocation233_spill] sm:$0xff] %v15832_v33  ;;  %v15848_v28 = vld [vmem:[#allocation2 + $0x1f8] sm:$0xf]  ;;  %v15858_v12 = vld [vmem:[#allocation2 + $0x208] sm:$0xf] }
 0x24c   :  { %19164 = vst [vmem:[#allocation234_spill] sm:$0xff] %v15834_v45  ;;  %19167 = vst [vmem:[#allocation167_spill] sm:$0xff] %v15840_v53  ;;  %v15862_v20 = vld [vmem:[#allocation2 + $0x24] sm:$0xf]  ;;  %v19177_v53 = vld [vmem:[#allocation95_spill] sm:$0xff]  ;;  %v5498_v61 = vshrl.u32 %v15830_v62, 16 }
 0x24d   :  { %19169 = vst [vmem:[#allocation12_spill] sm:$0xff] %v15844_v43  ;;  %19170 = vst [vmem:[#allocation29_spill] sm:$0xff] %v15846_v26  ;;  %v19176_v43 = vld [vmem:[#allocation106_spill] sm:$0xff]  ;;  %v19178_v45 = vshll.u32 %v19177_v53, 16  ;;  %v15874_v8 = vld [vmem:[#allocation2 + $0x214] sm:$0xf] }
 0x24e   :  { %19171 = vst [vmem:[#allocation235_spill] sm:$0xff] %v15848_v28  ;;  %19172 = vst [vmem:[#allocation236_spill] sm:$0xff] %v15852_v9  ;;  %v19179_v56 = vld [vmem:[#allocation30_spill] sm:$0xff]  ;;  %v4889_v17 = vrot.slane %v19176_v43, 4  ;;  %v15883_v53 = vld [vmem:[#allocation2 + $0x28] sm:$0xf] }
 0x24f   :  { %19173 = vst [vmem:[#allocation237_spill] sm:$0xff] %v15854_v38  ;;  %19174 = vst [vmem:[#allocation238_spill] sm:$0xff] %v15858_v12  ;;  %v4887_v2 = vor.u32 %v19178_v45, %v19176_v43  ;;  %v15871_v44 = vadd.f32 %v19179_v56, %v15613_v63  ;;  %v12008_v45 = vrot.slane %v4877_v23, 11  ;;  %v4899_v46 = vshrl.u32 %v4764_v48, 16  ;;  %v19186_v56 = vld [vmem:[#allocation108_spill] sm:$0xff]  ;;  %v19187_v63 = vld [vmem:[#allocation97_spill] sm:$0xff] }
 0x250   :  { %19181 = vst [vmem:[#allocation95_spill] sm:$0xff] %v15874_v8  ;;  %19182 = vst [vmem:[#allocation30_spill] sm:$0xff] %v15876_v49  ;;  %v19189_v38 = vcombine.low %v15444_v52, %v15446_v11  ;;  %v5507_v43 = vshrl.u32 %v15858_v12, 16  ;;  %v4897_v10 = vsel %vm14444_vm3, %v4889_v17, %v4896_v18  ;;  %v4911_v35 = vrot.slane %v19186_v56, 4  ;;  %v19190_v25 = vld [vmem:[#allocation109_spill] sm:$0xff]  ;;  %v15905_v11 = vpop.f32.mrf.mxu1  ;;  %v19199_v52 = vld [vmem:[#allocation187_spill] sm:$0xff] }
 0x251   :  { %19180 = vst [vmem:[#allocation106_spill] sm:$0xff] %v15871_v44  ;;  %v19188_v44 = vshll.u32 %v19187_v63, 16  ;;  %v19192_v9 = vshll.u32 %v19191_v0, 16  ;;  %v19193_v48 = vld [vmem:[#allocation165_spill] sm:$0xff]  ;;  %v5529_v63 = vshrl.u32 %v15876_v49, 16  ;;  %19197 = vst [vmem:[#allocation93_spill] sm:$0xff] %v15905_v11  ;;  %v4888_v17 = vsel %vm14444_vm3, %v12008_v45, %v4887_v2 }
 0x252   :  { %13309 = vmatmul.mubr.bf16.gmra.mxu0 %v19189_v38  ;;  %v19194_v28 = vld [vmem:[#allocation169_spill] sm:$0xff]  ;;  %v15903_v38 = vpop.f32.mrf.mxu0  ;;  %v12009_v18 = vrot.slane %v4899_v46, 11 }
 0x253   :  { %v4909_v33 = vor.u32 %v19188_v44, %v19186_v56  ;;  %v4918_v23 = vor.u32 %v19192_v9, %v19190_v25  ;;  %v19195_v26 = vcombine.low %v19193_v48, %v19194_v28  ;;  %v5520_v44 = vshrl.u32 %v15874_v8, 16  ;;  %19196 = vst [vmem:[#allocation107_spill] sm:$0xff] %v15903_v38  ;;  %v19198_v56 = vld [vmem:[#allocation186_spill] sm:$0xff]  ;;  %v19202_v48 = vld [vmem:[#allocation188_spill] sm:$0xff]  ;;  %v19203_v11 = vld [vmem:[#allocation189_spill] sm:$0xff] }
 0x254   :  { %v19200_v0 = vcombine.low %v19198_v56, %v19199_v52  ;;  %v8125_v9 = vld [vmem:[#allocation2 + $0x20] sm:$0x8]  ;;  %v8227_v25 = vshrl.u32 %v15862_v20, 16  ;;  %v15914_v28 = vcombine.low %v4888_v17, %v4897_v10  ;;  %v19204_v29 = vcombine.low %v19202_v48, %v19203_v11  ;;  %v19210_v17 = vld [vmem:[#allocation31_spill] sm:$0xff]  ;;  %v15954_v48 = vld [vmem:[#allocation2 + $0x214] sm:$0xf] }
 0x255   :  { %13312 = vmatprep.mubr.bf16.mxu0 %v19195_v26  ;;  %v8236_v26 = vshrl.u32 %v15883_v53, 16  ;;  %v4919_v38 = vsel %vm14444_vm3, %v4911_v35, %v4918_v23  ;;  %v4910_v45 = vsel %vm14444_vm3, %v12009_v18, %v4909_v33  ;;  %v15927_v56 = vrot.slane %v5498_v61, 7  ;;  %v15932_v23 = vld [vmem:[#allocation2 + $0x224] sm:$0xf]  ;;  %v15944_v33 = vld [vmem:[#allocation2 + $0x228] sm:$0xf]  ;;  %v12922_v18 = vpop.f32.mrf.mxu1 }
 0x256   :  { %13073 = vmatmul.mubr.bf16.gmra.mxu1 %v19200_v0  ;;  %19201 = vst [vmem:[#allocation108_spill] sm:$0xff] %v15914_v28  ;;  %v15929_v10 = vrot.slane %v5507_v43, 7  ;;  %19207 = vst [vmem:[#allocation94_spill] sm:$0xff] %v15932_v23  ;;  %v15934_v11 = vcombine.low %v4910_v45, %v4919_v38  ;;  %v15942_v0 = vadd.f32 %v19210_v17, %v15666_v5  ;;  %v8222_v61 = vshrl.u32 %v8125_v9, 16  ;;  %v15946_v43 = vpop.f32.mrf.mxu0  ;;  %v4767_v35 = vld [vmem:[#allocation2 + $0x40] sm:$0x8] }
 0x257   :  { %13076 = vmatprep.mubr.bf16.mxu1 %v19204_v29  ;;  %19205 = vst [vmem:[#allocation97_spill] sm:$0xff] %v15927_v56  ;;  %v15936_v29 = vrot.slane %v5520_v44, 7  ;;  %19212 = vst [vmem:[#allocation189_spill] sm:$0xff] %v15944_v33  ;;  %v15948_v2 = vrot.slane %v5529_v63, 7  ;;  %v19215_v38 = vld [vmem:[#allocation33_spill] sm:$0xff]  ;;  %v8229_v45 = vrot.slane %v8227_v25, 7 }
 0x258   :  { %19206 = vst [vmem:[#allocation109_spill] sm:$0xff] %v15929_v10  ;;  %19208 = vst [vmem:[#allocation186_spill] sm:$0xff] %v15934_v11  ;;  %v15952_v44 = vadd.f32 %v19215_v38, %v15765_v7  ;;  %v8238_v46 = vrot.slane %v8236_v26, 7  ;;  %v15956_v52 = vld [vmem:[#allocation2 + $0x218] sm:$0xf]  ;;  %v19219_v9 = vld [vmem:[#allocation34_spill] sm:$0xff] }
 0x259   :  { %19209 = vst [vmem:[#allocation187_spill] sm:$0xff] %v15936_v29  ;;  %19211 = vst [vmem:[#allocation188_spill] sm:$0xff] %v15942_v0  ;;  %v15962_v17 = vadd.f32 %v19219_v9, %v15810_v39  ;;  %v5542_v63 = vshrl.u32 %v15932_v23, 16  ;;  %v19221_v7 = vld [vmem:[#allocation173_spill] sm:$0xff]  ;;  %v5551_v25 = vshrl.u32 %v15944_v33, 16  ;;  %v8230_v26 = vshll.u32 %v15862_v20, 16 }
 0x25a   :  { %19213 = vst [vmem:[#allocation31_spill] sm:$0xff] %v15946_v43  ;;  %19214 = vst [vmem:[#allocation240_spill] sm:$0xff] %v15948_v2  ;;  %v19222_v38 = vcombine.low %v15487_v47, %v19221_v7  ;;  %v4921_v0 = vshrl.u32 %v4767_v35, 16  ;;  %v4770_v5 = vld [vmem:[#allocation2 + $0x50] sm:$0x8]  ;;  %v19223_v39 = vcombine.low %v15509_v54, %v15523_v40  ;;  %v15978_v2 = vpop.f32.mrf.mxu0  ;;  %v19226_v35 = vld [vmem:[#allocation98_spill] sm:$0xff] }
 0x25b   :  { %19216 = vst [vmem:[#allocation33_spill] sm:$0xff] %v15952_v44  ;;  %19217 = vst [vmem:[#allocation241_spill] sm:$0xff] %v15954_v48  ;;  %v8239_v44 = vshll.u32 %v15883_v53, 16  ;;  %v15980_v29 = vld [vmem:[#allocation2 + $0x34] sm:$0xf]  ;;  %v19227_v10 = vshll.u32 %v19226_v35, 16  ;;  %v8232_v9 = vor.u32 %v8230_v26, %v8229_v45 }
 0x25c   :  { %19218 = vst [vmem:[#allocation242_spill] sm:$0xff] %v15956_v52  ;;  %19220 = vst [vmem:[#allocation34_spill] sm:$0xff] %v15962_v17  ;;  %13313 = vmatmul.mubr.bf16.gmra.mxu0 %v19222_v38  ;;  %v12159_v17 = vrot.slane %v8222_v61, 11  ;;  %v2307_v38 = vpop.f32.mrf.mxu1  ;;  %v15982_v20 = vld [vmem:[#allocation2 + $0x38] sm:$0xf]  ;;  %v19225_v53 = vld [vmem:[#allocation112_spill] sm:$0xff]  ;;  %v16008_v48 = vpop.f32.mrf.mxu0 }
 0x25d   :  { %13316 = vmatprep.mubr.bf16.mxu0 %v19223_v39  ;;  %19224 = vst [vmem:[#allocation243_spill] sm:$0xff] %v15978_v2  ;;  %v4931_v56 = vor.u32 %v19227_v10, %v19225_v53  ;;  %v19228_v39 = vcombine.low %v15596_v16, %v15598_v36  ;;  %v8234_v40 = vrot.slane %v8229_v45, 4  ;;  %v8241_v54 = vor.u32 %v8239_v44, %v8238_v46  ;;  %v8132_v43 = vld [vmem:[#allocation2 + $0x44] sm:$0xf]  ;;  %v19229_v7 = vld [vmem:[#allocation195_spill] sm:$0xff]  ;;  %v19230_v2 = vld [vmem:[#allocation196_spill] sm:$0xff] }
 0x25e   :  { %v12010_v61 = vrot.slane %v4921_v0, 11  ;;  %v19231_v47 = vcombine.low %v19229_v7, %v19230_v2  ;;  %v15993_v11 = vld [vmem:[#allocation2 + $0x48] sm:$0xf]  ;;  %v4933_v28 = vrot.slane %v19225_v53, 4  ;;  %v4943_v52 = vshrl.u32 %v4770_v5, 16  ;;  %v19235_v16 = vld [vmem:[#allocation116_spill] sm:$0xff]  ;;  %v16010_v5 = vpop.f32.mrf.mxu1 }
 0x25f   :  { %13077 = vmatmul.mubr.bf16.gmra.mxu1 %v19228_v39  ;;  %v19232_v33 = vld [vmem:[#allocation115_spill] sm:$0xff]  ;;  %v19236_v36 = vld [vmem:[#allocation100_spill] sm:$0xff]  ;;  %v8249_v0 = vshrl.u32 %v15980_v29, 16  ;;  %v8258_v44 = vshrl.u32 %v15982_v20, 16  ;;  %v19238_v2 = vld [vmem:[#allocation118_spill] sm:$0xff]  ;;  %19241 = vst [vmem:[#allocation112_spill] sm:$0xff] %v16008_v48 }
 0x260   :  { %13080 = vmatprep.mubr.bf16.mxu1 %v19231_v47  ;;  %v19233_v35 = vld [vmem:[#allocation99_spill] sm:$0xff]  ;;  %v19237_v26 = vshll.u32 %v19236_v36, 16  ;;  %v8128_v46 = vld [vmem:[#allocation2 + $0x30] sm:$0x8]  ;;  %v4955_v47 = vrot.slane %v19235_v16, 4  ;;  %v19239_v7 = vld [vmem:[#allocation101_spill] sm:$0xff] }
 0x261   :  { %v19234_v10 = vshll.u32 %v19233_v35, 16  ;;  %v19240_v39 = vshll.u32 %v19239_v7, 16  ;;  %v8131_v35 = vld [vmem:[#allocation2 + $0x40] sm:$0x8]  ;;  %v16016_v49 = vrot.slane %v5542_v63, 7  ;;  %v16023_v7 = vrot.slane %v5551_v25, 7 }
 0x262   :  { %v4953_v45 = vor.u32 %v19237_v26, %v19235_v16  ;;  %v12011_v26 = vrot.slane %v4943_v52, 11  ;;  %v8280_v16 = vshrl.u32 %v15993_v11, 16  ;;  %v8244_v48 = vshrl.u32 %v8128_v46, 16  ;;  %v19245_v52 = vld [vmem:[#allocation35_spill] sm:$0xff]  ;;  %v19247_v63 = vld [vmem:[#allocation37_spill] sm:$0xff] }
 0x263   :  { %v4940_v23 = vor.u32 %v19234_v10, %v19232_v33  ;;  %v4962_v53 = vor.u32 %v19240_v39, %v19238_v2  ;;  %v8271_v33 = vshrl.u32 %v8132_v43, 16  ;;  %v4932_v10 = vsel %vm14444_vm3, %v12010_v61, %v4931_v56  ;;  %19242 = vst [vmem:[#allocation98_spill] sm:$0xff] %v16016_v49  ;;  %19243 = vst [vmem:[#allocation195_spill] sm:$0xff] %v16023_v7 }
 0x264   :  { %v8242_v39 = vsel %vm14444_vm3, %v8234_v40, %v8241_v54  ;;  %v4954_v56 = vsel %vm14444_vm3, %v12011_v26, %v4953_v45  ;;  %v16037_v61 = vadd.f32 %v19247_v63, %v12922_v18  ;;  %v8266_v25 = vshrl.u32 %v8131_v35, 16  ;;  %v16050_v18 = vld [vmem:[#allocation2 + $0x54] sm:$0xf] }
 0x265   :  { %v4941_v36 = vsel %vm14444_vm3, %v4933_v28, %v4940_v23  ;;  %v4963_v2 = vsel %vm14444_vm3, %v4955_v47, %v4962_v53  ;;  %v19244_v28 = vcombine.low %v15534_v57, %v15542_v41  ;;  %v16034_v23 = vadd.f32 %v19245_v52, %v15864_v34  ;;  %v4773_v53 = vld [vmem:[#allocation2 + $0x60] sm:$0x8]  ;;  %v16048_v34 = vpop.f32.mrf.mxu1  ;;  %v19252_v35 = vld [vmem:[#allocation204_spill] sm:$0xff] }
 0x266   :  { %v16019_v8 = vcombine.low %v4932_v10, %v4941_v36  ;;  %19248 = vst [vmem:[#allocation115_spill] sm:$0xff] %v16037_v61  ;;  %v16039_v47 = vcombine.low %v4954_v56, %v4963_v2  ;;  %v19249_v54 = vcombine.low %v15559_v4, %v15570_v14  ;;  %v8233_v40 = vsel %vm14444_vm3, %v12159_v17, %v8232_v9  ;;  %v16046_v36 = vpop.f32.mrf.mxu0  ;;  %v19254_v56 = vld [vmem:[#allocation38_spill] sm:$0xff]  ;;  %v19264_v61 = vld [vmem:[#allocation105_spill] sm:$0xff] }
 0x267   :  { %13317 = vmatmul.mubr.bf16.gmra.mxu0 %v19244_v28  ;;  %19246 = vst [vmem:[#allocation196_spill] sm:$0xff] %v16034_v23  ;;  %v8251_v45 = vrot.slane %v8249_v0, 7  ;;  %v8260_v46 = vrot.slane %v8258_v44, 7  ;;  %v8273_v10 = vrot.slane %v8271_v33, 7  ;;  %19250 = vst [vmem:[#allocation99_spill] sm:$0xff] %v16046_v36  ;;  %v19253_v26 = vcombine.low %v15648_v50, %v19252_v35  ;;  %v19256_v0 = vld [vmem:[#allocation205_spill] sm:$0xff] }
 0x268   :  { %13320 = vmatprep.mubr.bf16.mxu0 %v19249_v54  ;;  %19251 = vst [vmem:[#allocation116_spill] sm:$0xff] %v16048_v34  ;;  %v16055_v2 = vcombine.low %v8233_v40, %v8242_v39  ;;  %v16058_v28 = vadd.f32 %v19254_v56, %v2307_v38  ;;  %v8252_v17 = vshll.u32 %v15980_v29, 16  ;;  %v8282_v9 = vrot.slane %v8280_v16, 7  ;;  %v19257_v44 = vld [vmem:[#allocation206_spill] sm:$0xff]  ;;  %v16065_v34 = vld [vmem:[#allocation2 + $0x58] sm:$0xf] }
 0x269   :  { %13081 = vmatmul.mubr.bf16.gmra.mxu1 %v19253_v26  ;;  %v19258_v33 = vcombine.low %v19256_v0, %v19257_v44  ;;  %v12160_v52 = vrot.slane %v8244_v48, 11  ;;  %v8261_v63 = vshll.u32 %v15982_v20, 16  ;;  %v8274_v54 = vshll.u32 %v8132_v43, 16  ;;  %v19259_v40 = vld [vmem:[#allocation122_spill] sm:$0xff]  ;;  %v19260_v26 = vld [vmem:[#allocation104_spill] sm:$0xff]  ;;  %v12926_v43 = vpop.f32.mrf.mxu1 }
 0x26a   :  { %19255 = vst [vmem:[#allocation100_spill] sm:$0xff] %v16058_v28  ;;  %v4965_v50 = vshrl.u32 %v4773_v53, 16  ;;  %v12161_v35 = vrot.slane %v8266_v25, 11  ;;  %v8283_v39 = vshll.u32 %v15993_v11, 16  ;;  %v8293_v38 = vshrl.u32 %v16050_v18, 16  ;;  %v19263_v11 = vld [vmem:[#allocation123_spill] sm:$0xff] }
 0x26b   :  { %13084 = vmatprep.mubr.bf16.mxu1 %v19258_v33  ;;  %v19261_v29 = vshll.u32 %v19260_v26, 16  ;;  %v4776_v56 = vld [vmem:[#allocation2 + $0x70] sm:$0x8]  ;;  %v8254_v36 = vor.u32 %v8252_v17, %v8251_v45  ;;  %v8256_v0 = vrot.slane %v8251_v45, 4  ;;  %v8263_v44 = vor.u32 %v8261_v63, %v8260_v46  ;;  %v16072_v33 = vpop.f32.mrf.mxu0  ;;  %v19266_v17 = vld [vmem:[#allocation126_spill] sm:$0xff] }
 0x26c   :  { %v8276_v48 = vor.u32 %v8274_v54, %v8273_v10  ;;  %19262 = vst [vmem:[#allocation118_spill] sm:$0xff] %v16072_v33  ;;  %v8134_v20 = vld [vmem:[#allocation2 + $0x50] sm:$0x8]  ;;  %v8285_v28 = vor.u32 %v8283_v39, %v8282_v9  ;;  %v12012_v53 = vrot.slane %v4965_v50, 11  ;;  %v4977_v25 = vrot.slane %v19259_v40, 4  ;;  %v19267_v45 = vld [vmem:[#allocation110_spill] sm:$0xff] }
 0x26d   :  { %v4975_v16 = vor.u32 %v19261_v29, %v19259_v40  ;;  %v19265_v23 = vshll.u32 %v19264_v61, 16  ;;  %v8278_v49 = vrot.slane %v8273_v10, 4  ;;  %v8302_v26 = vshrl.u32 %v16065_v34, 16  ;;  %v16087_v39 = vld [vmem:[#allocation2 + $0x64] sm:$0xf]  ;;  %v16096_v40 = vpop.f32.mrf.mxu0 }
 0x26e   :  { %v4987_v29 = vshrl.u32 %v4776_v56, 16  ;;  %v19268_v46 = vshll.u32 %v19267_v45, 16  ;;  %v19269_v54 = vcombine.low %v15578_v3, %v15589_v27  ;;  %v8288_v9 = vshrl.u32 %v8134_v20, 16  ;;  %19271 = vst [vmem:[#allocation101_spill] sm:$0xff] %v16096_v40  ;;  %v16098_v56 = vpop.f32.mrf.mxu1  ;;  %v19272_v45 = vld [vmem:[#allocation127_spill] sm:$0xff] }
 0x26f   :  { %v4984_v7 = vor.u32 %v19265_v23, %v19263_v11  ;;  %v16085_v50 = vrot.slane %v8293_v38, 7  ;;  %v4976_v23 = vsel %vm14444_vm3, %v12012_v53, %v4975_v16  ;;  %v19270_v10 = vcombine.low %v15609_v6, %v15632_v15 }
 0x270   :  { %v4997_v63 = vor.u32 %v19268_v46, %v19266_v17  ;;  %13321 = vmatmul.mubr.bf16.gmra.mxu0 %v19269_v54  ;;  %v12013_v38 = vrot.slane %v4987_v29, 11  ;;  %v4999_v20 = vrot.slane %v19266_v17, 4  ;;  %v19273_v46 = vld [vmem:[#allocation113_spill] sm:$0xff]  ;;  %v8264_v53 = vsel %vm14444_vm3, %v8256_v0, %v8263_v44  ;;  %v8137_v17 = vld [vmem:[#allocation2 + $0x60] sm:$0x8] }
 0x271   :  { %v4985_v61 = vsel %vm14444_vm3, %v4977_v25, %v4984_v7  ;;  %13324 = vmatprep.mubr.bf16.mxu0 %v19270_v10  ;;  %v19274_v54 = vshll.u32 %v19273_v46, 16  ;;  %v19275_v7 = vcombine.low %v15716_v59, %v15718_v58  ;;  %v8286_v25 = vsel %vm14444_vm3, %v8278_v49, %v8285_v28  ;;  %v8139_v10 = vld [vmem:[#allocation2 + $0x68] sm:$0xf] }
 0x272   :  { %v16100_v11 = vcombine.low %v4976_v23, %v4985_v61  ;;  %v19276_v23 = vld [vmem:[#allocation39_spill] sm:$0xff]  ;;  %v8296_v29 = vshll.u32 %v16050_v18, 16  ;;  %v8304_v59 = vrot.slane %v8302_v26, 7  ;;  %v8315_v58 = vshrl.u32 %v16087_v39, 16 }
 0x273   :  { %v5006_v16 = vor.u32 %v19274_v54, %v19272_v45  ;;  %13085 = vmatmul.mubr.bf16.gmra.mxu1 %v19275_v7  ;;  %v16115_v61 = vadd.f32 %v19276_v23, %v16010_v5  ;;  %v19278_v45 = vcombine.low %v15722_v55, %v15724_v19  ;;  %v4998_v0 = vsel %vm14444_vm3, %v12013_v38, %v4997_v63  ;;  %v4779_v55 = vld [vmem:[#allocation2 + $0x80] sm:$0x8]  ;;  %v16134_v19 = vpop.f32.mrf.mxu0 }
 0x274   :  { %v8255_v5 = vsel %vm14444_vm3, %v12160_v52, %v8254_v36  ;;  %v8277_v18 = vsel %vm14444_vm3, %v12161_v35, %v8276_v48  ;;  %v16130_v28 = vrot.slane %v8288_v9, 11  ;;  %19279 = vst [vmem:[#allocation37_spill] sm:$0xff] %v16134_v19  ;;  %v8298_v26 = vor.u32 %v8296_v29, %v16085_v50  ;;  %v16143_v48 = vld [vmem:[#allocation2 + $0x74] sm:$0xf]  ;;  %v19280_v9 = vld [vmem:[#allocation41_spill] sm:$0xff] }
 0x275   :  { %19277 = vst [vmem:[#allocation35_spill] sm:$0xff] %v16115_v61  ;;  %13088 = vmatprep.mubr.bf16.mxu1 %v19278_v45  ;;  %v5007_v49 = vsel %vm14444_vm3, %v4999_v20, %v5006_v16  ;;  %v8305_v63 = vshll.u32 %v16065_v34, 16  ;;  %v8310_v38 = vshrl.u32 %v8137_v17, 16  ;;  %v8324_v46 = vshrl.u32 %v8139_v10, 16  ;;  %v12927_v20 = vpop.f32.mrf.mxu1  ;;  %v4782_v45 = vld [vmem:[#allocation2 + $0x90] sm:$0x8] }
 0x276   :  { %v16132_v44 = vcombine.low %v4998_v0, %v5007_v49  ;;  %v16138_v54 = vcombine.low %v8255_v5, %v8264_v53  ;;  %v16140_v36 = vcombine.low %v8277_v18, %v8286_v25  ;;  %v8318_v52 = vshll.u32 %v16087_v39, 16  ;;  %v16152_v25 = vld [vmem:[#allocation2 + $0x84] sm:$0xf]  ;;  %v19287_v5 = vld [vmem:[#allocation117_spill] sm:$0xff] }
 0x277   :  { %v8327_v35 = vshll.u32 %v8139_v10, 16  ;;  %v16146_v16 = vadd.f32 %v19280_v9, %v12926_v43  ;;  %v8307_v7 = vor.u32 %v8305_v63, %v8304_v59  ;;  %v8317_v23 = vrot.slane %v8315_v58, 7  ;;  %v19283_v17 = vld [vmem:[#allocation130_spill] sm:$0xff]  ;;  %v19286_v43 = vld [vmem:[#allocation132_spill] sm:$0xff]  ;;  %v16161_v18 = vld [vmem:[#allocation4 + $0x238] sm:$0xff]  }
 0x278   :  { %v5009_v29 = vshrl.u32 %v4779_v55, 16  ;;  %v19282_v34 = vcombine.low %v15640_v32, %v15660_v30  ;;  %v8300_v53 = vrot.slane %v16085_v50, 4  ;;  %v19284_v39 = vld [vmem:[#allocation114_spill] sm:$0xff]  ;;  %v5021_v49 = vrot.slane %v19283_v17, 4  ;;  %13580 = vmatprep.subr.bf16.mxu0 %v16161_v18 }
 0x279   :  { %19281 = vst [vmem:[#allocation204_spill] sm:$0xff] %v16146_v16  ;;  %v19285_v10 = vshll.u32 %v19284_v39, 16  ;;  %v19288_v59 = vshll.u32 %v19287_v5, 16  ;;  %v19289_v55 = vcombine.low %v15662_v24, %v15675_v13  ;;  %v8299_v50 = vsel %vm14444_vm3, %v16130_v28, %v8298_v26  ;;  %v16175_v39 = vld [vmem:[#allocation2 + $0x78] sm:$0xf]  ;;  %v19324_v13 = vld [vmem:[#allocation128_spill] sm:$0xff] }
 0x27a   :  { %13325 = vmatmul.mubr.bf16.gmra.mxu0 %v19282_v34  ;;  %v16169_v63 = vrot.slane %v8310_v38, 11  ;;  %v8326_v9 = vrot.slane %v8324_v46, 7  ;;  %v16171_v34 = vpop.f32.mrf.mxu0  ;;  %v16181_v5 = vld [vmem:[#allocation2 + $0x88] sm:$0xf]  ;;  %v5031_v26 = vshrl.u32 %v4782_v45, 16  ;;  %v19293_v38 = vld [vmem:[#allocation134_spill] sm:$0xff] }
 0x27b   :  { %v5019_v0 = vor.u32 %v19285_v10, %v19283_v17  ;;  %v5028_v58 = vor.u32 %v19288_v59, %v19286_v43  ;;  %13328 = vmatprep.mubr.bf16.mxu0 %v19289_v55  ;;  %19290 = vst [vmem:[#allocation38_spill] sm:$0xff] %v16171_v34  ;;  %v16173_v17 = vpop.f32.mrf.mxu1  ;;  %v8337_v10 = vshrl.u32 %v16143_v48, 16  ;;  %v19292_v43 = vcombine.low %v15784_v21, %v15786_v42  ;;  %v19294_v46 = vld [vmem:[#allocation119_spill] sm:$0xff]  ;;  %v19297_v45 = vld [vmem:[#allocation136_spill] sm:$0xff]  ;;  %v8149_v32 = vld [vmem:[#allocation2 + $0xa0] sm:$0x8] }
 0x27c   :  { %19291 = vst [vmem:[#allocation205_spill] sm:$0xff] %v16173_v17  ;;  %v12014_v59 = vrot.slane %v5009_v29, 11  ;;  %v19295_v55 = vshll.u32 %v19294_v46, 16  ;;  %v19296_v17 = vcombine.low %v15790_v22, %v15792_v37  ;;  %v8308_v42 = vsel %vm14444_vm3, %v8300_v53, %v8307_v7  ;;  %v8140_v29 = vld [vmem:[#allocation2 + $0x70] sm:$0x8]  ;;  %v16204_v7 = vpop.f32.mrf.mxu0  ;;  %v19327_v24 = vld [vmem:[#allocation131_spill] sm:$0xff] }
 0x27d   :  { %13089 = vmatmul.mubr.bf16.gmra.mxu1 %v19292_v43  ;;  %v5029_v28 = vsel %vm14444_vm3, %v5021_v49, %v5028_v58  ;;  %v16194_v21 = vor.u32 %v8318_v52, %v8317_v23  ;;  %v8143_v43 = vld [vmem:[#allocation2 + $0x80] sm:$0x8]  ;;  %v5043_v49 = vrot.slane %v19293_v38, 4  ;;  %v19298_v58 = vld [vmem:[#allocation121_spill] sm:$0xff]  ;;  %v8359_v19 = vshrl.u32 %v16152_v25, 16  ;;  %19300 = vst [vmem:[#allocation206_spill] sm:$0xff] %v16204_v7  ;;  %v16206_v52 = vpop.f32.mrf.mxu1 }
 0x27e   :  { %v5041_v40 = vor.u32 %v19295_v55, %v19293_v38  ;;  %13092 = vmatprep.mubr.bf16.mxu1 %v19296_v17  ;;  %v19299_v34 = vshll.u32 %v19298_v58, 16  ;;  %v8346_v55 = vshrl.u32 %v16175_v39, 16  ;;  %v5020_v22 = vsel %vm14444_vm3, %v12014_v59, %v5019_v0 }
 0x27f   :  { %v12015_v37 = vrot.slane %v5031_v26, 11  ;;  %v8329_v17 = vor.u32 %v8327_v35, %v8326_v9  ;;  %v8368_v53 = vshrl.u32 %v16181_v5, 16  ;;  %v16209_v38 = vcombine.low %v5020_v22, %v5029_v28  ;;  %v19301_v35 = vld [vmem:[#allocation42_spill] sm:$0xff]  ;;  %v16225_v28 = vld [vmem:[#allocation2 + $0x94] sm:$0xf] }
 0x280   :  { %v5050_v46 = vor.u32 %v19299_v34, %v19297_v45  ;;  %v8332_v45 = vshrl.u32 %v8140_v29, 16  ;;  %v16213_v58 = vrot.slane %v8337_v10, 7  ;;  %v8354_v33 = vshrl.u32 %v8143_v43, 16  ;;  %v16227_v22 = vld [vmem:[#allocation2 + $0x98] sm:$0xf]  ;;  %v19304_v29 = vld [vmem:[#allocation43_spill] sm:$0xff] }
 0x281   :  { %v5042_v0 = vsel %vm14444_vm3, %v12015_v37, %v5041_v40  ;;  %v16219_v9 = vadd.f32 %v19301_v35, %v16098_v56  ;;  %v16221_v59 = vcombine.low %v8299_v50, %v8308_v42  ;;  %v8322_v26 = vrot.slane %v8317_v23, 4  ;;  %v4785_v50 = vld [vmem:[#allocation2 + $0xa0] sm:$0x8]  ;;  %v19306_v23 = vld [vmem:[#allocation229_spill] sm:$0xff] }
 0x282   :  { %v5051_v34 = vsel %vm14444_vm3, %v5043_v49, %v5050_v46  ;;  %v19303_v10 = vcombine.low %v15739_v51, %v15741_v1  ;;  %v16233_v43 = vadd.f32 %v19304_v29, %v12927_v20  ;;  %v8340_v40 = vshll.u32 %v16143_v48, 16  ;;  %v16247_v20 = vpop.f32.mrf.mxu0 }
 0x283   :  { %19302 = vst [vmem:[#allocation122_spill] sm:$0xff] %v16219_v9  ;;  %v16223_v7 = vcombine.low %v5042_v0, %v5051_v34  ;;  %v8348_v56 = vrot.slane %v8346_v55, 7  ;;  %v8361_v49 = vrot.slane %v8359_v19, 7  ;;  %v19307_v42 = vcombine.low %v15749_v60, %v19306_v23  ;;  %19308 = vst [vmem:[#allocation123_spill] sm:$0xff] %v16247_v20  ;;  %v16249_v34 = vpop.f32.mrf.mxu1  ;;  %v19309_v55 = vld [vmem:[#allocation29_spill] sm:$0xff]  ;;  %v19310_v0 = vld [vmem:[#allocation235_spill] sm:$0xff] }
 0x284   :  { %13329 = vmatmul.mubr.bf16.gmra.mxu0 %v19303_v10  ;;  %19305 = vst [vmem:[#allocation104_spill] sm:$0xff] %v16233_v43  ;;  %v16245_v37 = vsel %vm14444_vm3, %v8322_v26, %v8329_v17  ;;  %v8349_v19 = vshll.u32 %v16175_v39, 16  ;;  %v8370_v48 = vrot.slane %v8368_v53, 7  ;;  %v19311_v35 = vcombine.low %v19309_v55, %v19310_v0  ;;  %v8146_v43 = vld [vmem:[#allocation2 + $0x90] sm:$0x8]  ;;  %v19313_v26 = vld [vmem:[#allocation237_spill] sm:$0xff]  ;;  %v16267_v23 = vpop.f32.mrf.mxu0 }
 0x285   :  { %13332 = vmatprep.mubr.bf16.mxu0 %v19307_v42  ;;  %v12164_v10 = vrot.slane %v8332_v45, 11  ;;  %v8342_v29 = vor.u32 %v8340_v40, %v16213_v58  ;;  %v12165_v42 = vrot.slane %v8354_v33, 11  ;;  %v8362_v46 = vshll.u32 %v16152_v25, 16  ;;  %v19312_v17 = vld [vmem:[#allocation236_spill] sm:$0xff]  ;;  %v19315_v33 = vld [vmem:[#allocation141_spill] sm:$0xff]  ;;  %19318 = vst [vmem:[#allocation105_spill] sm:$0xff] %v16267_v23 }
 0x286   :  { %13093 = vmatmul.mubr.bf16.gmra.mxu1 %v19311_v35  ;;  %v19314_v9 = vcombine.low %v19312_v17, %v19313_v26  ;;  %v8371_v20 = vshll.u32 %v16181_v5, 16  ;;  %v8381_v39 = vshrl.u32 %v16225_v28, 16  ;;  %v8390_v53 = vshrl.u32 %v16227_v22, 16  ;;  %v4788_v55 = vld [vmem:[#allocation2 + $0xb0] sm:$0x8]  ;;  %v16269_v26 = vpop.f32.mrf.mxu1 }
 0x287   :  { %v5053_v16 = vshrl.u32 %v4785_v50, 16  ;;  %v8344_v45 = vrot.slane %v16213_v58, 4  ;;  %v8351_v0 = vor.u32 %v8349_v19, %v8348_v56  ;;  %v8364_v40 = vor.u32 %v8362_v46, %v8361_v49  ;;  %v19316_v35 = vld [vmem:[#allocation124_spill] sm:$0xff]  ;;  %19319 = vst [vmem:[#allocation126_spill] sm:$0xff] %v16269_v26  ;;  %v16271_v60 = vld [vmem:[#allocation2 + $0xa4] sm:$0xf] }
 0x288   :  { %13096 = vmatprep.mubr.bf16.mxu1 %v19314_v9  ;;  %v19317_v25 = vshll.u32 %v19316_v35, 16  ;;  %v8366_v17 = vrot.slane %v8361_v49, 4  ;;  %v8373_v9 = vor.u32 %v8371_v20, %v8370_v48  ;;  %v8376_v5 = vshrl.u32 %v8146_v43, 16  ;;  %v16273_v50 = vld [vmem:[#allocation2 + $0xa8] sm:$0xf]  ;;  %v19320_v56 = vld [vmem:[#allocation142_spill] sm:$0xff] }
 0x289   :  { %v12016_v1 = vrot.slane %v5053_v16, 11  ;;  %v5065_v58 = vrot.slane %v19315_v33, 4  ;;  %v19321_v46 = vld [vmem:[#allocation125_spill] sm:$0xff]  ;;  %v5075_v35 = vshrl.u32 %v4788_v55, 16  ;;  %v19325_v23 = vshll.u32 %v19324_v13, 16  ;;  %v19326_v26 = vld [vmem:[#allocation146_spill] sm:$0xff] }
 0x28a   :  { %v5063_v61 = vor.u32 %v19317_v25, %v19315_v33  ;;  %v19322_v19 = vshll.u32 %v19321_v46, 16  ;;  %v19323_v25 = vld [vmem:[#allocation145_spill] sm:$0xff]  ;;  %v8383_v20 = vrot.slane %v8381_v39, 7  ;;  %v8392_v48 = vrot.slane %v8390_v53, 7  ;;  %v19330_v39 = vld [vmem:[#allocation95_spill] sm:$0xff]  ;;  %v19331_v53 = vld [vmem:[#allocation30_spill] sm:$0xff] }
 0x28b   :  { %v5085_v49 = vor.u32 %v19325_v23, %v19323_v25  ;;  %v5087_v43 = vrot.slane %v19323_v25, 4  ;;  %v19328_v16 = vshll.u32 %v19327_v24, 16  ;;  %v19329_v33 = vcombine.low %v15830_v62, %v15858_v12  ;;  %v16297_v24 = vpop.f32.mrf.mxu0 }
 0x28c   :  { %v5072_v51 = vor.u32 %v19322_v19, %v19320_v56  ;;  %v8403_v56 = vshrl.u32 %v16271_v60, 16  ;;  %v5064_v55 = vsel %vm14444_vm3, %v12016_v1, %v5063_v61  ;;  %v12017_v23 = vrot.slane %v5075_v35, 11  ;;  %19333 = vst [vmem:[#allocation110_spill] sm:$0xff] %v16297_v24  ;;  %v19335_v61 = vld [vmem:[#allocation241_spill] sm:$0xff]  ;;  %v19350_v24 = vld [vmem:[#allocation151_spill] sm:$0xff] }
 0x28d   :  { %v5094_v30 = vor.u32 %v19328_v16, %v19326_v26  ;;  %13333 = vmatmul.mubr.bf16.gmra.mxu0 %v19329_v33  ;;  %v19332_v46 = vcombine.low %v19330_v39, %v19331_v53  ;;  %v16299_v26 = vpop.f32.mrf.mxu1  ;;  %v8384_v19 = vshll.u32 %v16225_v28, 16  ;;  %v8412_v25 = vshrl.u32 %v16273_v50, 16  ;;  %v19359_v39 = vld [vmem:[#allocation155_spill] sm:$0xff] }
 0x28e   :  { %v5073_v13 = vsel %vm14444_vm3, %v5065_v58, %v5072_v51  ;;  %19334 = vst [vmem:[#allocation127_spill] sm:$0xff] %v16299_v26  ;;  %v19336_v51 = vld [vmem:[#allocation242_spill] sm:$0xff]  ;;  %v8352_v35 = vsel %vm14444_vm3, %v8344_v45, %v8351_v0  ;;  %v8374_v33 = vsel %vm14444_vm3, %v8366_v17, %v8373_v9  ;;  %v5086_v28 = vsel %vm14444_vm3, %v12017_v23, %v5085_v49  ;;  %v19351_v26 = vld [vmem:[#allocation135_spill] sm:$0xff] }
 0x28f   :  { %13336 = vmatprep.mubr.bf16.mxu0 %v19332_v46  ;;  %v16303_v16 = vcombine.low %v5064_v55, %v5073_v13  ;;  %v5095_v1 = vsel %vm14444_vm3, %v5087_v43, %v5094_v30  ;;  %v19337_v58 = vcombine.low %v19335_v61, %v19336_v51  ;;  %v8393_v46 = vshll.u32 %v16227_v22, 16  ;;  %v19338_v55 = vld [vmem:[#allocation233_spill] sm:$0xff]  ;;  %v4791_v45 = vld [vmem:[#allocation2 + $0xc0] sm:$0x8] }
 0x290   :  { %v16318_v13 = vrot.slane %v8376_v5, 11  ;;  %v16320_v30 = vor.u32 %v8384_v19, %v8383_v20  ;;  %v8398_v43 = vshrl.u32 %v8149_v32, 16  ;;  %v16322_v61 = vcombine.low %v5086_v28, %v5095_v1  ;;  %v16324_v51 = vld [vmem:[#allocation2 + $0xb8] sm:$0xf]  ;;  %v16344_v19 = vpop.f32.mrf.mxu0  ;;  %v19345_v28 = vld [vmem:[#allocation94_spill] sm:$0xff] }
 0x291   :  { %13097 = vmatmul.mubr.bf16.gmra.mxu1 %v19337_v58  ;;  %v8343_v0 = vsel %vm14444_vm3, %v12164_v10, %v8342_v29  ;;  %v8365_v22 = vsel %vm14444_vm3, %v12165_v42, %v8364_v40  ;;  %v8395_v17 = vor.u32 %v8393_v46, %v8392_v48  ;;  %v16330_v9 = vrot.slane %v8403_v56, 7  ;;  %19340 = vst [vmem:[#allocation113_spill] sm:$0xff] %v16344_v19  ;;  %v16346_v10 = vpop.f32.mrf.mxu1  ;;  %v16348_v42 = vld [vmem:[#allocation2 + $0xc4] sm:$0xf]  ;;  %v16351_v56 = vld [vmem:[#allocation2 + $0xb4] sm:$0xf] }
 0x292   :  { %13196 = vmatprep.mubr.bf16.mxu1 %v19338_v55  ;;  %v19339_v32 = vsel %vm14444_vm3, %v16169_v63, %v16194_v21  ;;  %v16340_v49 = vcombine.low %v8343_v0, %v8352_v35  ;;  %v16342_v23 = vcombine.low %v8365_v22, %v8374_v33  ;;  %19341 = vst [vmem:[#allocation39_spill] sm:$0xff] %v16346_v10  ;;  %v8414_v29 = vrot.slane %v8412_v25, 7  ;;  %v8152_v25 = vld [vmem:[#allocation2 + $0xb0] sm:$0x8]  ;;  %v19342_v35 = vld [vmem:[#allocation149_spill] sm:$0xff] }
 0x293   :  { %v16338_v5 = vcombine.low %v19339_v32, %v16245_v37  ;;  %v8388_v40 = vrot.slane %v8383_v20, 4  ;;  %v8406_v48 = vshll.u32 %v16271_v60, 16  ;;  %v8434_v63 = vshrl.u32 %v16324_v51, 16  ;;  %v19343_v33 = vld [vmem:[#allocation133_spill] sm:$0xff]  ;;  %v4794_v60 = vld [vmem:[#allocation2 + $0xd0] sm:$0x8]  ;;  %v16367_v22 = vpop.f32.mrf.mxu1 }
 0x294   :  { %v5097_v21 = vshrl.u32 %v4791_v45, 16  ;;  %v8387_v37 = vsel %vm14444_vm3, %v16318_v13, %v16320_v30  ;;  %v16358_v1 = vrot.slane %v8398_v43, 11  ;;  %v8415_v58 = vshll.u32 %v16273_v50, 16  ;;  %v19346_v55 = vld [vmem:[#allocation189_spill] sm:$0xff]  ;;  %v13819_v45 = vld [vmem:[#allocation4 + $0x170] sm:$0xff]   ;;  %19348 = vst [vmem:[#allocation41_spill] sm:$0xff] %v16367_v22 }
 0x295   :  { %v19344_v20 = vshll.u32 %v19343_v33, 16  ;;  %v19347_v0 = vcombine.low %v19345_v28, %v19346_v55  ;;  %v8396_v13 = vsel %vm14444_vm3, %v8388_v40, %v8395_v17  ;;  %v16372_v30 = vor.u32 %v8406_v48, %v16330_v9  ;;  %v16375_v43 = vld [vmem:[#allocation2 + $0xc8] sm:$0xf]  ;;  %v16378_v33 = vpop.f32.mrf.mxu0  ;;  %v19353_v48 = vld [vmem:[#allocation108_spill] sm:$0xff]  ;;  %v8155_v28 = vld [vmem:[#allocation2 + $0xc0] sm:$0x8] }
 0x296   :  { %v8410_v50 = vrot.slane %v16330_v9, 4  ;;  %v12018_v32 = vrot.slane %v5097_v21, 11  ;;  %19349 = vst [vmem:[#allocation130_spill] sm:$0xff] %v16378_v33  ;;  %v5109_v19 = vrot.slane %v19342_v35, 4  ;;  %v19352_v17 = vshll.u32 %v19351_v26, 16  ;;  %v19354_v33 = vld [vmem:[#allocation186_spill] sm:$0xff] }
 0x297   :  { %v5107_v46 = vor.u32 %v19344_v20, %v19342_v35  ;;  %13337 = vmatmul.mubr.bf16.gmra.mxu0 %v19347_v0  ;;  %v8417_v20 = vor.u32 %v8415_v58, %v8414_v29  ;;  %v8425_v0 = vshrl.u32 %v16351_v56, 16  ;;  %v8420_v55 = vshrl.u32 %v8152_v25, 16  ;;  %v19355_v26 = vld [vmem:[#allocation153_spill] sm:$0xff] }
 0x298   :  { %13436 = vmatprep.mubr.bf16.mxu0 %v16055_v2  ;;  %v5116_v40 = vor.u32 %v19352_v17, %v19350_v24  ;;  %v8436_v9 = vrot.slane %v8434_v63, 7  ;;  %v8447_v21 = vshrl.u32 %v16348_v42, 16  ;;  %v5119_v22 = vshrl.u32 %v4794_v60, 16  ;;  %v13941_v2 = vld [vmem:[#allocation4 + $0x178] sm:$0xff]   ;;  %v16398_v60 = vpop.f32.mrf.mxu1 }
 0x299   :  { %13197 = vmatmul.mubr.bf16.vlgmr.msra.gmra.mxu1 %v19353_v48  ;;  %v8456_v29 = vshrl.u32 %v16375_v43, 16  ;;  %v5108_v58 = vsel %vm14444_vm3, %v12018_v32, %v5107_v46  ;;  %v19356_v35 = vld [vmem:[#allocation137_spill] sm:$0xff]  ;;  %19358 = vst [vmem:[#allocation114_spill] sm:$0xff] %v16398_v60  ;;  %v13820_v48 = vld [vmem:[#allocation4 + $0x168] sm:$0xff]   ;;  %v5131_v53 = vrot.slane %v19355_v26, 4  ;;  %v19360_v46 = vld [vmem:[#allocation140_spill] sm:$0xff] }
 0x29a   :  { %13341 = vmatpush3.bf16.msra.mxu1 %v13941_v2  ;;  %13200 = vmatprep.mubr.bf16.mxu1 %v19354_v33  ;;  %v5117_v24 = vsel %vm14444_vm3, %v5109_v19, %v5116_v40  ;;  %v19357_v25 = vshll.u32 %v19356_v35, 16  ;;  %v16396_v17 = vld [vmem:[#allocation2 + $0xd8] sm:$0xf]  ;;  %v12019_v33 = vrot.slane %v5119_v22, 11  ;;  %v19361_v32 = vshll.u32 %v19360_v46, 16  ;;  %v16408_v40 = vpop.f32.mrf.mxu0 }
 0x29b   :  { %13342 = vmatprep.subr.bf16.mxu1 %v13819_v45  ;;  %v16400_v2 = vcombine.low %v5108_v58, %v5117_v24  ;;  %v16406_v19 = vld [vmem:[#allocation2 + $0xd4] sm:$0xf]  ;;  %19362 = vst [vmem:[#allocation132_spill] sm:$0xff] %v16408_v40  ;;  %v16410_v35 = vcombine.low %v8387_v37, %v8396_v13  ;;  %v8437_v62 = vshll.u32 %v16324_v51, 16  ;;  %v8442_v60 = vshrl.u32 %v8155_v28, 16 }
 0x29c   :  { %v5129_v63 = vor.u32 %v19357_v25, %v19355_v26  ;;  %v5138_v12 = vor.u32 %v19361_v32, %v19359_v39  ;;  %v8427_v25 = vrot.slane %v8425_v0, 7  ;;  %v16413_v10 = vrot.slane %v8447_v21, 7  ;;  %v13826_v24 = vld [vmem:[#allocation4 + $0x230] sm:$0xff]   ;;  %v4797_v21 = vld [vmem:[#allocation2 + $0xe0] sm:$0x8]  ;;  %v16429_v26 = vpop.f32.mrf.mxu1 }
 0x29d   :  { %v8478_v39 = vshrl.u32 %v16396_v17, 16  ;;  %v16422_v37 = vsel %vm14444_vm3, %v8410_v50, %v8417_v20  ;;  %v8428_v13 = vshll.u32 %v16351_v56, 16  ;;  %v8158_v28 = vld [vmem:[#allocation2 + $0xd0] sm:$0x8]  ;;  %v8469_v0 = vshrl.u32 %v16406_v19, 16  ;;  %19363 = vst [vmem:[#allocation117_spill] sm:$0xff] %v16429_v26  ;;  %v16435_v56 = vpop.f32.mrf.mxu0 }
 0x29e   :  { %v5130_v22 = vsel %vm14444_vm3, %v12019_v33, %v5129_v63  ;;  %v5139_v58 = vsel %vm14444_vm3, %v5131_v53, %v5138_v12  ;;  %13343 = vmatpush3.bf16.msra.mxu1 %v13819_v45  ;;  %v16431_v12 = vrot.slane %v8420_v55, 11  ;;  %v8439_v53 = vor.u32 %v8437_v62, %v8436_v9  ;;  %v13821_v20 = vld [vmem:[#allocation4 + $0x160] sm:$0xff]   ;;  %19364 = vst [vmem:[#allocation134_spill] sm:$0xff] %v16435_v56  ;;  %v16463_v56 = vld [vmem:[#allocation2 + $0xe8] sm:$0xf] }
 0x29f   :  { %v16425_v51 = vcombine.low %v5130_v22, %v5139_v58  ;;  %13437 = vmatmul.mubr.bf16.vlgmr.msra.gmra.mxu0 %v16138_v54  ;;  %13344 = vmatprep.subr.bf16.mxu1 %v13820_v48  ;;  %v8450_v45 = vshll.u32 %v16348_v42, 16  ;;  %v8458_v50 = vrot.slane %v8456_v29, 7  ;;  %v16437_v63 = vor.u32 %v8428_v13, %v8427_v25  ;;  %v13827_v29 = vld [vmem:[#allocation4 + $0x228] sm:$0xff]   ;;  %v16448_v32 = vld [vmem:[#allocation2 + $0xe4] sm:$0xf]  ;;  %v19368_v58 = vld [vmem:[#allocation160_spill] sm:$0xff] }
 0x2a0   :  { %13440 = vmatprep.mubr.bf16.mxu0 %v16140_v36  ;;  %v8432_v33 = vrot.slane %v8427_v25, 4  ;;  %v16439_v46 = vrot.slane %v8442_v60, 11  ;;  %v8459_v54 = vshll.u32 %v16375_v43, 16  ;;  %13581 = vmatpush3.bf16.msra.mxu0 %v16161_v18  ;;  %v8464_v42 = vshrl.u32 %v8158_v28, 16  ;;  %v4800_v36 = vld [vmem:[#allocation2 + $0xf0] sm:$0x8] }
 0x2a1   :  { %13201 = vmatmul.mubr.bf16.gmra.mxu1 %v16019_v8  ;;  %v16445_v62 = vor.u32 %v8450_v45, %v16413_v10  ;;  %v8480_v55 = vrot.slane %v8478_v39, 7  ;;  %v5141_v9 = vshrl.u32 %v4797_v21, 16  ;;  %13582 = vmatprep.subr.bf16.mxu0 %v13826_v24  ;;  %v8471_v60 = vrot.slane %v8469_v0, 7  ;;  %v19365_v43 = vld [vmem:[#allocation159_spill] sm:$0xff]  ;;  %v19369_v13 = vld [vmem:[#allocation144_spill] sm:$0xff]  ;;  %v16457_v21 = vpop.f32.mrf.mxu1 }
 0x2a2   :  { %13204 = vmatprep.mubr.bf16.mxu1 %v16039_v47  ;;  %13345 = vmatpush3.bf16.msra.mxu1 %v13820_v48  ;;  %v19366_v25 = vld [vmem:[#allocation143_spill] sm:$0xff]  ;;  %v5153_v8 = vrot.slane %v19365_v43, 4  ;;  %v19370_v28 = vshll.u32 %v19369_v13, 16  ;;  %19371 = vst [vmem:[#allocation119_spill] sm:$0xff] %v16457_v21  ;;  %v8440_v45 = vsel %vm14444_vm3, %v8432_v33, %v8439_v53  ;;  %v8454_v47 = vrot.slane %v16413_v10, 4  ;;  %v13828_v21 = vld [vmem:[#allocation4 + $0x220] sm:$0xff]  }
 0x2a3   :  { %v19367_v18 = vshll.u32 %v19366_v25, 16  ;;  %v8461_v48 = vor.u32 %v8459_v54, %v8458_v50  ;;  %v8481_v0 = vshll.u32 %v16396_v17, 16  ;;  %13346 = vmatprep.subr.bf16.mxu1 %v13821_v20  ;;  %v13822_v25 = vld [vmem:[#allocation4 + $0x158] sm:$0xff]   ;;  %v12020_v13 = vrot.slane %v5141_v9, 11  ;;  %v8161_v10 = vld [vmem:[#allocation2 + $0xe0] sm:$0x8] }
 0x2a4   :  { %v5160_v39 = vor.u32 %v19370_v28, %v19368_v58  ;;  %v5163_v28 = vshrl.u32 %v4800_v36, 16  ;;  %13583 = vmatpush3.bf16.msra.mxu0 %v13826_v24  ;;  %v12170_v53 = vrot.slane %v8464_v42, 11  ;;  %v8491_v50 = vshrl.u32 %v16448_v32, 16  ;;  %v19373_v17 = vld [vmem:[#allocation163_spill] sm:$0xff] }
 0x2a5   :  { %v5151_v22 = vor.u32 %v19367_v18, %v19365_v43  ;;  %v16465_v18 = vpop.f32.mrf.mxu0  ;;  %v8472_v43 = vshll.u32 %v16406_v19, 16  ;;  %v8483_v33 = vor.u32 %v8481_v0, %v8480_v55  ;;  %v19374_v54 = vld [vmem:[#allocation147_spill] sm:$0xff]  ;;  %13584 = vmatprep.subr.bf16.mxu0 %v13827_v29  ;;  %v8500_v9 = vshrl.u32 %v16463_v56, 16 }
 0x2a6   :  { %19372 = vst [vmem:[#allocation136_spill] sm:$0xff] %v16465_v18  ;;  %v5161_v58 = vsel %vm14444_vm3, %v5153_v8, %v5160_v39  ;;  %v19375_v40 = vshll.u32 %v19374_v54, 16  ;;  %v16474_v18 = vpop.f32.mrf.mxu1  ;;  %13347 = vmatpush3.bf16.msra.mxu1 %v13821_v20  ;;  %v12021_v24 = vrot.slane %v5163_v28, 11  ;;  %v8476_v42 = vrot.slane %v8471_v60, 4  ;;  %v19377_v39 = vld [vmem:[#allocation150_spill] sm:$0xff] }
 0x2a7   :  { %v8474_v19 = vor.u32 %v8472_v43, %v8471_v60  ;;  %v5152_v36 = vsel %vm14444_vm3, %v12020_v13, %v5151_v22  ;;  %13441 = vmatmul.mubr.bf16.gmra.mxu0 %v16221_v59  ;;  %v5175_v8 = vrot.slane %v19373_v17, 4  ;;  %v19378_v0 = vshll.u32 %v19377_v39, 16  ;;  %13348 = vmatprep.subr.bf16.mxu1 %v13822_v25  ;;  %v13823_v43 = vld [vmem:[#allocation4 + $0x150] sm:$0xff]   ;;  %v16491_v22 = vpop.f32.mrf.mxu0 }
 0x2a8   :  { %v5173_v26 = vor.u32 %v19375_v40, %v19373_v17  ;;  %v16480_v55 = vcombine.low %v5152_v36, %v5161_v58  ;;  %v19376_v40 = vld [vmem:[#allocation164_spill] sm:$0xff]  ;;  %13444 = vmatprep.mubr.bf16.mxu0 %v16338_v5  ;;  %v8409_v20 = vsel %vm14444_vm3, %v16358_v1, %v16372_v30  ;;  %19379 = vst [vmem:[#allocation121_spill] sm:$0xff] %v16491_v22  ;;  %v8486_v13 = vshrl.u32 %v8161_v10, 16 }
 0x2a9   :  { %v5182_v54 = vor.u32 %v19378_v0, %v19376_v40  ;;  %v8431_v59 = vsel %vm14444_vm3, %v16431_v12, %v16437_v63  ;;  %v8462_v60 = vsel %vm14444_vm3, %v8454_v47, %v8461_v48  ;;  %v16499_v58 = vld [vmem:[#allocation2 + $0xf4] sm:$0xf]  ;;  %13585 = vmatpush3.bf16.msra.mxu0 %v13827_v29  ;;  %13205 = vmatmul.mubr.bf16.gmra.mxu1 %v16100_v11  ;;  %v16504_v1 = vrot.slane %v8491_v50, 7  ;;  %v13830_v63 = vld [vmem:[#allocation4 + $0x218] sm:$0xff]   ;;  %v16516_v11 = vpop.f32.mrf.mxu1  ;;  %v8164_v10 = vld [vmem:[#allocation2 + $0xf0] sm:$0x8]  ;;  %v16528_v17 = vpop.f32.mrf.mxu0 }
 0x2aa   :  { %v8484_v5 = vsel %vm14444_vm3, %v8476_v42, %v8483_v33  ;;  %v5174_v30 = vsel %vm14444_vm3, %v12021_v24, %v5173_v26  ;;  %13586 = vmatprep.subr.bf16.mxu0 %v13828_v21  ;;  %13208 = vmatprep.mubr.bf16.mxu1 %v16132_v44  ;;  %v16512_v47 = vcombine.low %v8409_v20, %v16422_v37  ;;  %v8502_v48 = vrot.slane %v8500_v9, 7  ;;  %v4803_v33 = vld [vmem:[#allocation2 + $0x100] sm:$0x8]  ;;  %v13824_v50 = vld [vmem:[#allocation4 + $0x148] sm:$0xff]   ;;  %v19381_v42 = vld [vmem:[#allocation168_spill] sm:$0xff] }
 0x2ab   :  { %v5183_v12 = vsel %vm14444_vm3, %v5175_v8, %v5182_v54  ;;  %v16514_v29 = vcombine.low %v8431_v59, %v8440_v45  ;;  %13349 = vmatpush3.bf16.msra.mxu1 %v13822_v25  ;;  %v8453_v26 = vsel %vm14444_vm3, %v16439_v46, %v16445_v62  ;;  %v8475_v44 = vsel %vm14444_vm3, %v12170_v53, %v8474_v19  ;;  %v16537_v62 = vld [vmem:[#allocation2 + $0xf8] sm:$0xf]  ;;  %v16539_v53 = vld [vmem:[#allocation2 + $0x104] sm:$0xf]  ;;  %v19382_v8 = vld [vmem:[#allocation152_spill] sm:$0xff]  ;;  %v16548_v20 = vpop.f32.mrf.mxu1 }
 0x2ac   :  { %v16518_v28 = vcombine.low %v5174_v30, %v5183_v12  ;;  %v8494_v37 = vshll.u32 %v16448_v32, 16  ;;  %v8513_v45 = vshrl.u32 %v16499_v58, 16  ;;  %13350 = vmatprep.subr.bf16.mxu1 %v13823_v43  ;;  %19380 = vst [vmem:[#allocation42_spill] sm:$0xff] %v16528_v17  ;;  %v16530_v9 = vcombine.low %v8453_v26, %v8462_v60  ;;  %v4806_v0 = vld [vmem:[#allocation2 + $0x130] sm:$0x8]  ;;  %19384 = vst [vmem:[#allocation43_spill] sm:$0xff] %v16548_v20 }
 0x2ad   :  { %v16532_v25 = vcombine.low %v8475_v44, %v8484_v5  ;;  %v16534_v36 = vrot.slane %v8486_v13, 11  ;;  %v8503_v46 = vshll.u32 %v16463_v56, 16  ;;  %13587 = vmatpush3.bf16.msra.mxu0 %v13828_v21  ;;  %v8498_v19 = vrot.slane %v16504_v1, 4  ;;  %v13831_v54 = vld [vmem:[#allocation4 + $0x210] sm:$0xff]   ;;  %v16550_v60 = vld [vmem:[#allocation2 + $0x108] sm:$0xf] }
 0x2ae   :  { %v16542_v32 = vor.u32 %v8494_v37, %v16504_v1  ;;  %v5185_v24 = vshrl.u32 %v4803_v33, 16  ;;  %v19383_v40 = vshll.u32 %v19382_v8, 16  ;;  %13588 = vmatprep.subr.bf16.mxu0 %v13830_v63  ;;  %v8508_v59 = vshrl.u32 %v8164_v10, 16  ;;  %v19385_v13 = vld [vmem:[#allocation170_spill] sm:$0xff]  ;;  %v16562_v37 = vpop.f32.mrf.mxu0  ;;  %v19407_v17 = vld [vmem:[#allocation184_spill] sm:$0xff]  ;;  %v19408_v20 = vld [vmem:[#allocation165_spill] sm:$0xff] }
 0x2af   :  { %v8505_v56 = vor.u32 %v8503_v46, %v8502_v48  ;;  %v5197_v21 = vrot.slane %v19381_v42, 4  ;;  %v19386_v5 = vld [vmem:[#allocation154_spill] sm:$0xff]  ;;  %13351 = vmatpush3.bf16.msra.mxu1 %v13823_v43  ;;  %13445 = vmatmul.mubr.bf16.gmra.mxu0 %v16340_v49  ;;  %v16557_v12 = vrot.slane %v8513_v45, 7  ;;  %v8516_v33 = vshll.u32 %v16499_v58, 16  ;;  %19388 = vst [vmem:[#allocation29_spill] sm:$0xff] %v16562_v37  ;;  %v19389_v45 = vld [vmem:[#allocation171_spill] sm:$0xff] }
 0x2b0   :  { %v5195_v39 = vor.u32 %v19383_v40, %v19381_v42  ;;  %v19387_v30 = vshll.u32 %v19386_v5, 16  ;;  %v8522_v26 = vshrl.u32 %v16537_v62, 16  ;;  %v12022_v44 = vrot.slane %v5185_v24, 11  ;;  %13352 = vmatprep.subr.bf16.mxu1 %v13824_v50  ;;  %v13829_v48 = vld [vmem:[#allocation4 + $0x140] sm:$0xff]   ;;  %13448 = vmatprep.mubr.bf16.mxu0 %v16342_v23  ;;  %v19390_v42 = vld [vmem:[#allocation156_spill] sm:$0xff] }
 0x2b1   :  { %v8167_v10 = vld [vmem:[#allocation2 + $0x100] sm:$0x8]  ;;  %v8535_v46 = vshrl.u32 %v16539_v53, 16  ;;  %v5207_v49 = vshrl.u32 %v4806_v0, 16  ;;  %v19391_v8 = vshll.u32 %v19390_v42, 16  ;;  %13589 = vmatpush3.bf16.msra.mxu0 %v13830_v63  ;;  %13209 = vmatmul.mubr.bf16.gmra.mxu1 %v16209_v38  ;;  %v8544_v24 = vshrl.u32 %v16550_v60, 16  ;;  %v16581_v63 = vpop.f32.mrf.mxu1 }
 0x2b2   :  { %v5204_v1 = vor.u32 %v19387_v30, %v19385_v13  ;;  %v5196_v23 = vsel %vm14444_vm3, %v12022_v44, %v5195_v39  ;;  %v5219_v40 = vrot.slane %v19389_v45, 4  ;;  %v19392_v13 = vld [vmem:[#allocation174_spill] sm:$0xff]  ;;  %13590 = vmatprep.subr.bf16.mxu0 %v13831_v54  ;;  %v13832_v0 = vld [vmem:[#allocation4 + $0x208] sm:$0xff]   ;;  %13212 = vmatprep.mubr.bf16.mxu1 %v16223_v7  ;;  %19395 = vst [vmem:[#allocation235_spill] sm:$0xff] %v16581_v63 }
 0x2b3   :  { %v5217_v58 = vor.u32 %v19391_v8, %v19389_v45  ;;  %v19393_v5 = vld [vmem:[#allocation158_spill] sm:$0xff]  ;;  %v8506_v38 = vsel %vm14444_vm3, %v8498_v19, %v8505_v56  ;;  %v12023_v44 = vrot.slane %v5207_v49, 11  ;;  %v8170_v45 = vld [vmem:[#allocation2 + $0x110] sm:$0x8]  ;;  %13353 = vmatpush3.bf16.msra.mxu1 %v13824_v50  ;;  %v16590_v42 = vor.u32 %v8516_v33, %v16557_v12  ;;  %v16596_v19 = vpop.f32.mrf.mxu0 }
 0x2b4   :  { %v5205_v43 = vsel %vm14444_vm3, %v5197_v21, %v5204_v1  ;;  %v19394_v30 = vshll.u32 %v19393_v5, 16  ;;  %v16578_v21 = vld [vmem:[#allocation2 + $0x114] sm:$0xf]  ;;  %v16585_v1 = vrot.slane %v8508_v59, 11  ;;  %v8524_v8 = vrot.slane %v8522_v26, 7  ;;  %13354 = vmatprep.subr.bf16.mxu1 %v13829_v48  ;;  %19396 = vst [vmem:[#allocation236_spill] sm:$0xff] %v16596_v19 }
 0x2b5   :  { %v16587_v39 = vcombine.low %v5196_v23, %v5205_v43  ;;  %v16594_v5 = vld [vmem:[#allocation2 + $0x118] sm:$0xf]  ;;  %v8497_v56 = vsel %vm14444_vm3, %v16534_v36, %v16542_v32  ;;  %v16602_v50 = vrot.slane %v8535_v46, 7  ;;  %v5218_v59 = vsel %vm14444_vm3, %v12023_v44, %v5217_v58  ;;  %13591 = vmatpush3.bf16.msra.mxu0 %v13831_v54  ;;  %v16610_v49 = vld [vmem:[#allocation2 + $0x144] sm:$0xf] }
 0x2b6   :  { %v5226_v37 = vor.u32 %v19394_v30, %v19392_v13  ;;  %v8530_v13 = vshrl.u32 %v8167_v10, 16  ;;  %v13834_v30 = vld [vmem:[#allocation4 + $0x1f8] sm:$0xff]   ;;  %v8557_v33 = vshrl.u32 %v16578_v21, 16  ;;  %v8525_v26 = vshll.u32 %v16537_v62, 16  ;;  %13592 = vmatprep.subr.bf16.mxu0 %v13832_v0  ;;  %v13833_v23 = vld [vmem:[#allocation4 + $0x200] sm:$0xff]  }
 0x2b7   :  { %v8552_v43 = vshrl.u32 %v8170_v45, 16  ;;  %v16614_v36 = vcombine.low %v8497_v56, %v8506_v38  ;;  %v8538_v46 = vshll.u32 %v16539_v53, 16  ;;  %v8566_v54 = vshrl.u32 %v16594_v5, 16  ;;  %v4809_v58 = vld [vmem:[#allocation2 + $0x140] sm:$0x8]  ;;  %13355 = vmatpush3.bf16.msra.mxu1 %v13829_v48  ;;  %13449 = vmatmul.mubr.bf16.gmra.mxu0 %v16410_v35  ;;  %v16630_v53 = vpop.f32.mrf.mxu0 }
 0x2b8   :  { %v5227_v7 = vsel %vm14444_vm3, %v5219_v40, %v5226_v37  ;;  %v8546_v37 = vrot.slane %v8544_v24, 7  ;;  %v16612_v40 = vpop.f32.mrf.mxu1  ;;  %v8527_v24 = vor.u32 %v8525_v26, %v8524_v8  ;;  %v16624_v44 = vrot.slane %v8530_v13, 11  ;;  %v16627_v45 = vld [vmem:[#allocation2 + $0x148] sm:$0xf]  ;;  %13500 = vmatprep.subr.bf16.mxu1 %v13834_v30  ;;  %13452 = vmatprep.mubr.bf16.mxu0 %v16512_v47  ;;  %19398 = vst [vmem:[#allocation141_spill] sm:$0xff] %v16630_v53 }
 0x2b9   :  { %v16608_v10 = vcombine.low %v5218_v59, %v5227_v7  ;;  %19397 = vst [vmem:[#allocation237_spill] sm:$0xff] %v16612_v40  ;;  %v8547_v38 = vshll.u32 %v16550_v60, 16  ;;  %v16633_v48 = vor.u32 %v8538_v46, %v16602_v50  ;;  %v8542_v35 = vrot.slane %v16602_v50, 4  ;;  %v8173_v13 = vld [vmem:[#allocation2 + $0x140] sm:$0x8]  ;;  %13593 = vmatpush3.bf16.msra.mxu0 %v13832_v0  ;;  %13213 = vmatmul.mubr.bf16.gmra.mxu1 %v16303_v16  ;;  %v19401_v46 = vld [vmem:[#allocation161_spill] sm:$0xff]  ;;  %v16653_v32 = vpop.f32.mrf.mxu0 }
 0x2ba   :  { %v16636_v7 = vrot.slane %v8557_v33, 7  ;;  %v8560_v8 = vshll.u32 %v16578_v21, 16  ;;  %v16640_v56 = vrot.slane %v8552_v43, 11  ;;  %v8579_v47 = vshrl.u32 %v16610_v49, 16  ;;  %v4812_v59 = vld [vmem:[#allocation2 + $0x150] sm:$0x8]  ;;  %13594 = vmatprep.subr.bf16.mxu0 %v13833_v23  ;;  %13216 = vmatprep.mubr.bf16.mxu1 %v16322_v61  ;;  %v16644_v26 = vpop.f32.mrf.mxu1 }
 0x2bb   :  { %v8549_v60 = vor.u32 %v8547_v38, %v8546_v37  ;;  %v5229_v30 = vshrl.u32 %v4809_v58, 16  ;;  %19399 = vst [vmem:[#allocation124_spill] sm:$0xff] %v16644_v26  ;;  %v8568_v50 = vrot.slane %v8566_v54, 7  ;;  %v8569_v33 = vshll.u32 %v16594_v5, 16  ;;  %v19400_v0 = vld [vmem:[#allocation182_spill] sm:$0xff]  ;;  %19403 = vst [vmem:[#allocation142_spill] sm:$0xff] %v16653_v32  ;;  %v16670_v63 = vpop.f32.mrf.mxu0 }
 0x2bc   :  { %v8588_v21 = vshrl.u32 %v16627_v45, 16  ;;  %v19402_v16 = vshll.u32 %v19401_v46, 16  ;;  %v8574_v43 = vshrl.u32 %v8173_v13, 16  ;;  %v8582_v38 = vshll.u32 %v16610_v49, 16  ;;  %v19404_v54 = vld [vmem:[#allocation183_spill] sm:$0xff]  ;;  %v19405_v26 = vld [vmem:[#allocation162_spill] sm:$0xff] }
 0x2bd   :  { %v12024_v62 = vrot.slane %v5229_v30, 11  ;;  %v5241_v58 = vrot.slane %v19400_v0, 4  ;;  %v16656_v61 = vor.u32 %v8560_v8, %v16636_v7  ;;  %v19406_v5 = vshll.u32 %v19405_v26, 16  ;;  %13595 = vmatpush3.bf16.msra.mxu0 %v13833_v23  ;;  %v19411_v32 = vld [vmem:[#allocation169_spill] sm:$0xff]  ;;  %v8177_v40 = vld [vmem:[#allocation2 + $0x154] sm:$0xf]  ;;  %v16672_v26 = vpop.f32.mrf.mxu1 }
 0x2be   :  { %v5239_v37 = vor.u32 %v19402_v16, %v19400_v0  ;;  %v5251_v19 = vshrl.u32 %v4812_v59, 16  ;;  %v19409_v46 = vshll.u32 %v19408_v20, 16  ;;  %v8581_v13 = vrot.slane %v8579_v47, 7  ;;  %v19410_v0 = vld [vmem:[#allocation185_spill] sm:$0xff]  ;;  %19413 = vst [vmem:[#allocation125_spill] sm:$0xff] %v16670_v63  ;;  %19414 = vst [vmem:[#allocation145_spill] sm:$0xff] %v16672_v26 }
 0x2bf   :  { %v5248_v53 = vor.u32 %v19406_v5, %v19404_v54  ;;  %v5263_v30 = vrot.slane %v19407_v17, 4  ;;  %v19412_v8 = vshll.u32 %v19411_v32, 16  ;;  %v8590_v59 = vrot.slane %v8588_v21, 7  ;;  %v8178_v54 = vld [vmem:[#allocation2 + $0x158] sm:$0xf]  ;;  %13453 = vmatmul.mubr.bf16.gmra.mxu0 %v16514_v29 }
 0x2c0   :  { %v5261_v16 = vor.u32 %v19409_v46, %v19407_v17  ;;  %v5240_v49 = vsel %vm14444_vm3, %v12024_v62, %v5239_v37  ;;  %v8591_v20 = vshll.u32 %v16627_v45, 16  ;;  %v12025_v47 = vrot.slane %v5251_v19, 11  ;;  %v8176_v5 = vld [vmem:[#allocation2 + $0x150] sm:$0x8]  ;;  %13456 = vmatprep.mubr.bf16.mxu0 %v16530_v9  ;;  %v16704_v46 = vld [vmem:[#allocation2 + $0x164] sm:$0xf] }
 0x2c1   :  { %v5270_v22 = vor.u32 %v19412_v8, %v19410_v0  ;;  %v5249_v23 = vsel %vm14444_vm3, %v5241_v58, %v5248_v53  ;;  %v8564_v17 = vrot.slane %v16636_v7, 4  ;;  %v8571_v62 = vor.u32 %v8569_v33, %v8568_v50  ;;  %13217 = vmatmul.mubr.bf16.gmra.mxu1 %v16400_v2  ;;  %v4815_v33 = vld [vmem:[#allocation2 + $0x160] sm:$0x8]  ;;  %v16721_v0 = vld [vmem:[#allocation2 + $0x168] sm:$0xf] }
 0x2c2   :  { %v16679_v32 = vcombine.low %v5240_v49, %v5249_v23  ;;  %v19415_v45 = vrot.slane %v16557_v12, 4  ;;  %v8550_v19 = vsel %vm14444_vm3, %v8542_v35, %v8549_v60  ;;  %v5262_v29 = vsel %vm14444_vm3, %v12025_v47, %v5261_v16  ;;  %13220 = vmatprep.mubr.bf16.mxu1 %v16425_v51  ;;  %v16702_v35 = vpop.f32.mrf.mxu1  ;;  %v8179_v16 = vld [vmem:[#allocation2 + $0x160] sm:$0x8]  ;;  %v19420_v23 = vld [vmem:[#allocation172_spill] sm:$0xff] }
 0x2c3   :  { %v5271_v37 = vsel %vm14444_vm3, %v5263_v30, %v5270_v22  ;;  %v8601_v7 = vshrl.u32 %v8177_v40, 16  ;;  %v8541_v22 = vsel %vm14444_vm3, %v16624_v44, %v16633_v48  ;;  %v12175_v9 = vrot.slane %v8574_v43, 11 }
 0x2c4   :  { %v8528_v53 = vsel %vm14444_vm3, %v19415_v45, %v8527_v24  ;;  %v16697_v50 = vcombine.low %v5262_v29, %v5271_v37  ;;  %v8610_v12 = vshrl.u32 %v8178_v54, 16  ;;  %v16700_v24 = vpop.f32.mrf.mxu0  ;;  %v8584_v60 = vor.u32 %v8582_v38, %v8581_v13  ;;  %v19423_v29 = vld [vmem:[#allocation192_spill] sm:$0xff] }
 0x2c5   :  { %19416 = vst [vmem:[#allocation128_spill] sm:$0xff] %v16700_v24  ;;  %v8586_v21 = vrot.slane %v8581_v13, 4  ;;  %v8593_v58 = vor.u32 %v8591_v20, %v8590_v59  ;;  %v8596_v2 = vshrl.u32 %v8176_v5, 16  ;;  %v19417_v44 = vsel %vm14444_vm3, %v16585_v1, %v16590_v42  ;;  %v16723_v1 = vpop.f32.mrf.mxu1  ;;  %v19419_v20 = vld [vmem:[#allocation191_spill] sm:$0xff] }
 0x2c6   :  { %v16711_v48 = vcombine.low %v19417_v44, %v8528_v53  ;;  %v16713_v43 = vcombine.low %v8541_v22, %v8550_v19  ;;  %v8563_v51 = vsel %vm14444_vm3, %v16640_v56, %v16656_v61  ;;  %v8572_v38 = vsel %vm14444_vm3, %v8564_v17, %v8571_v62  ;;  %19418 = vst [vmem:[#allocation146_spill] sm:$0xff] %v16723_v1  ;;  %v4818_v61 = vld [vmem:[#allocation2 + $0x170] sm:$0x8]  ;;  %v16730_v17 = vpop.f32.mrf.mxu0 }
 0x2c7   :  { %v8603_v13 = vrot.slane %v8601_v7, 7  ;;  %v8604_v49 = vshll.u32 %v8177_v40, 16  ;;  %v8613_v30 = vshll.u32 %v8178_v54, 16  ;;  %v5273_v8 = vshrl.u32 %v4815_v33, 16  ;;  %19422 = vst [vmem:[#allocation131_spill] sm:$0xff] %v16730_v17  ;;  %13457 = vmatmul.mubr.bf16.gmra.mxu0 %v16532_v25  ;;  %v19424_v7 = vld [vmem:[#allocation173_spill] sm:$0xff]  ;;  %v16751_v25 = vpop.f32.mrf.mxu1 }
 0x2c8   :  { %v8612_v42 = vrot.slane %v8610_v12, 7  ;;  %v8623_v59 = vshrl.u32 %v16704_v46, 16  ;;  %v19421_v47 = vshll.u32 %v19420_v23, 16  ;;  %v5285_v56 = vrot.slane %v19419_v20, 4  ;;  %13460 = vmatprep.mubr.bf16.mxu0 %v16614_v36  ;;  %19429 = vst [vmem:[#allocation241_spill] sm:$0xff] %v16751_v25 }
 0x2c9   :  { %v8585_v40 = vsel %vm14444_vm3, %v12175_v9, %v8584_v60  ;;  %v8594_v54 = vsel %vm14444_vm3, %v8586_v21, %v8593_v58  ;;  %v16736_v62 = vrot.slane %v8596_v2, 11  ;;  %v8618_v5 = vshrl.u32 %v8179_v16, 16  ;;  %v19426_v21 = vld [vmem:[#allocation193_spill] sm:$0xff]  ;;  %v19427_v58 = vld [vmem:[#allocation178_spill] sm:$0xff]  ;;  %13221 = vmatmul.mubr.bf16.gmra.mxu1 %v16480_v55 }
 0x2ca   :  { %v5283_v37 = vor.u32 %v19421_v47, %v19419_v20  ;;  %v8626_v45 = vshll.u32 %v16704_v46, 16  ;;  %v8632_v53 = vshrl.u32 %v16721_v0, 16  ;;  %v12026_v19 = vrot.slane %v5273_v8, 11  ;;  %13224 = vmatprep.mubr.bf16.mxu1 %v16518_v28  ;;  %v16760_v20 = vpop.f32.mrf.mxu0  ;;  %v8186_v28 = vld [vmem:[#allocation2 + $0x184] sm:$0xf] }
 0x2cb   :  { %v19425_v22 = vshll.u32 %v19424_v7, 16  ;;  %v16745_v9 = vor.u32 %v8604_v49, %v8603_v13  ;;  %v8608_v33 = vrot.slane %v8603_v13, 4  ;;  %v5295_v60 = vshrl.u32 %v4818_v61, 16  ;;  %v8182_v49 = vld [vmem:[#allocation2 + $0x170] sm:$0x8]  ;;  %19430 = vst [vmem:[#allocation242_spill] sm:$0xff] %v16760_v20 }
 0x2cc   :  { %v19428_v2 = vshll.u32 %v19427_v58, 16  ;;  %v8615_v46 = vor.u32 %v8613_v30, %v8612_v42  ;;  %v16753_v16 = vrot.slane %v8623_v59, 7  ;;  %v5284_v8 = vsel %vm14444_vm3, %v12026_v19, %v5283_v37  ;;  %v8183_v13 = vld [vmem:[#allocation2 + $0x174] sm:$0xf]  ;;  %v19431_v30 = vld [vmem:[#allocation194_spill] sm:$0xff]  ;;  %v19432_v42 = vld [vmem:[#allocation181_spill] sm:$0xff] }
 0x2cd   :  { %v5292_v12 = vor.u32 %v19425_v22, %v19423_v29  ;;  %v12027_v55 = vrot.slane %v5295_v60, 11  ;;  %v5307_v47 = vrot.slane %v19426_v21, 4  ;;  %v19433_v59 = vshll.u32 %v19432_v42, 16  ;;  %v8184_v29 = vld [vmem:[#allocation2 + $0x178] sm:$0xf] }
 0x2ce   :  { %v5305_v44 = vor.u32 %v19428_v2, %v19426_v21  ;;  %v16768_v37 = vcombine.low %v8563_v51, %v8572_v38  ;;  %v16770_v19 = vcombine.low %v8585_v40, %v8594_v54  ;;  %v8635_v7 = vshll.u32 %v16721_v0, 16  ;;  %v8187_v22 = vld [vmem:[#allocation2 + $0x188] sm:$0xf]  ;;  %v16779_v51 = vpop.f32.mrf.mxu1  ;;  %v19438_v38 = vld [vmem:[#allocation198_spill] sm:$0xff] }
 0x2cf   :  { %v5293_v36 = vsel %vm14444_vm3, %v5285_v56, %v5292_v12  ;;  %v5314_v61 = vor.u32 %v19433_v59, %v19431_v30  ;;  %v8634_v56 = vrot.slane %v8632_v53, 7  ;;  %v16773_v12 = vpop.f32.mrf.mxu0  ;;  %v8640_v58 = vshrl.u32 %v8182_v49, 16  ;;  %19435 = vst [vmem:[#allocation149_spill] sm:$0xff] %v16779_v51  ;;  %v4821_v53 = vld [vmem:[#allocation2 + $0x180] sm:$0x8]  ;;  %13461 = vmatmul.mubr.bf16.gmra.mxu0 %v16711_v48 }
 0x2d0   :  { %v16762_v23 = vcombine.low %v5284_v8, %v5293_v36  ;;  %19434 = vst [vmem:[#allocation233_spill] sm:$0xff] %v16773_v12  ;;  %v5306_v60 = vsel %vm14444_vm3, %v12027_v55, %v5305_v44  ;;  %v8645_v2 = vshrl.u32 %v8183_v13, 16  ;;  %v8185_v8 = vld [vmem:[#allocation2 + $0x180] sm:$0x8]  ;;  %v16785_v0 = vrot.slane %v8618_v5, 11  ;;  %13464 = vmatprep.mubr.bf16.mxu0 %v16713_v43 }
 0x2d1   :  { %v5315_v21 = vsel %vm14444_vm3, %v5307_v47, %v5314_v61  ;;  %v8654_v54 = vshrl.u32 %v8184_v29, 16  ;;  %v16791_v44 = vsel %vm14444_vm3, %v8608_v33, %v8615_v46  ;;  %v16794_v36 = vor.u32 %v8626_v45, %v16753_v16  ;;  %v16797_v47 = vpop.f32.mrf.mxu0  ;;  %v4824_v45 = vld [vmem:[#allocation2 + $0x190] sm:$0x8]  ;;  %13225 = vmatmul.mubr.bf16.gmra.mxu1 %v16587_v39 }
 0x2d2   :  { %v16787_v40 = vcombine.low %v5306_v60, %v5315_v21  ;;  %v8667_v49 = vshrl.u32 %v8186_v28, 16  ;;  %v8676_v55 = vshrl.u32 %v8187_v22, 16  ;;  %19436 = vst [vmem:[#allocation133_spill] sm:$0xff] %v16797_v47  ;;  %v8630_v5 = vrot.slane %v16753_v16, 4  ;;  %v16803_v21 = vpop.f32.mrf.mxu1  ;;  %13228 = vmatprep.mubr.bf16.mxu1 %v16608_v10 }
 0x2d3   :  { %v8637_v30 = vor.u32 %v8635_v7, %v8634_v56  ;;  %v8648_v42 = vshll.u32 %v8183_v13, 16  ;;  %v8662_v59 = vshrl.u32 %v8185_v8, 16  ;;  %v16801_v61 = vrot.slane %v8640_v58, 11  ;;  %19437 = vst [vmem:[#allocation151_spill] sm:$0xff] %v16803_v21  ;;  %v19440_v56 = vld [vmem:[#allocation199_spill] sm:$0xff] }
 0x2d4   :  { %v8647_v33 = vrot.slane %v8645_v2, 7  ;;  %v8657_v46 = vshll.u32 %v8184_v29, 16  ;;  %v5317_v60 = vshrl.u32 %v4821_v53, 16  ;;  %v8656_v48 = vrot.slane %v8654_v54, 7  ;;  %v16814_v53 = vpop.f32.mrf.mxu0  ;;  %v16816_v39 = vpop.f32.mrf.mxu1 }
 0x2d5   :  { %v19439_v47 = vshll.u32 %v15534_v57, 16  ;;  %v5329_v13 = vrot.slane %v19438_v38, 4  ;;  %v19441_v43 = vshll.u32 %v15542_v41, 16  ;;  %v8669_v29 = vrot.slane %v8667_v49, 7  ;;  %19442 = vst [vmem:[#allocation135_spill] sm:$0xff] %v16814_v53  ;;  %19443 = vst [vmem:[#allocation108_spill] sm:$0xff] %v16816_v39 }
 0x2d6   :  { %v8670_v58 = vshll.u32 %v8186_v28, 16  ;;  %v8678_v2 = vrot.slane %v8676_v55, 7  ;;  %v8679_v8 = vshll.u32 %v8187_v22, 16  ;;  %v12179_v54 = vrot.slane %v8662_v59, 11  ;;  %v19444_v41 = vld [vmem:[#allocation200_spill] sm:$0xff]  ;;  %v16824_v22 = vpop.f32.mrf.mxu1 }
 0x2d7   :  { %v5327_v16 = vor.u32 %v19439_v47, %v19438_v38  ;;  %v5336_v7 = vor.u32 %v19441_v43, %v19440_v56  ;;  %v12028_v21 = vrot.slane %v5317_v60, 11  ;;  %v5339_v38 = vshrl.u32 %v4824_v45, 16  ;;  %v8189_v49 = vld [vmem:[#allocation2 + $0x194] sm:$0xf]  ;;  %19446 = vst [vmem:[#allocation186_spill] sm:$0xff] %v16824_v22  ;;  %v19447_v43 = vld [vmem:[#allocation202_spill] sm:$0xff]  ;;  %13465 = vmatmul.mubr.bf16.gmra.mxu0 %v16768_v37 }
 0x2d8   :  { %v8650_v47 = vor.u32 %v8648_v42, %v8647_v33  ;;  %v8652_v12 = vrot.slane %v8647_v33, 4  ;;  %v19445_v56 = vshll.u32 %v15559_v4, 16  ;;  %v5351_v28 = vrot.slane %v19444_v41, 4  ;;  %v8190_v42 = vld [vmem:[#allocation2 + $0x198] sm:$0xf]  ;;  %13468 = vmatprep.mubr.bf16.mxu0 %v16770_v19 }
 0x2d9   :  { %v5337_v57 = vsel %vm14444_vm3, %v5329_v13, %v5336_v7  ;;  %v8659_v55 = vor.u32 %v8657_v46, %v8656_v48  ;;  %v5328_v59 = vsel %vm14444_vm3, %v12028_v21, %v5327_v16  ;;  %v12029_v60 = vrot.slane %v5339_v38, 11  ;;  %v16836_v46 = vpop.f32.mrf.mxu1  ;;  %13229 = vmatmul.mubr.bf16.gmra.mxu1 %v16679_v32  ;;  %v19533_v22 = vld [vmem:[#allocation177_spill] sm:$0xff] }
 0x2da   :  { %v5349_v10 = vor.u32 %v19445_v56, %v19444_v41  ;;  %v19448_v13 = vshll.u32 %v15570_v14, 16  ;;  %v8672_v33 = vor.u32 %v8670_v58, %v8669_v29  ;;  %v8674_v7 = vrot.slane %v8669_v29, 4  ;;  %v8188_v56 = vld [vmem:[#allocation2 + $0x190] sm:$0x8]  ;;  %v16833_v41 = vpop.f32.mrf.mxu0  ;;  %19450 = vst [vmem:[#allocation137_spill] sm:$0xff] %v16836_v46  ;;  %13232 = vmatprep.mubr.bf16.mxu1 %v16697_v50 }
 0x2db   :  { %v8681_v39 = vor.u32 %v8679_v8, %v8678_v2  ;;  %v16831_v4 = vcombine.low %v5328_v59, %v5337_v57  ;;  %19449 = vst [vmem:[#allocation153_spill] sm:$0xff] %v16833_v41  ;;  %v8629_v21 = vsel %vm14444_vm3, %v16785_v0, %v16794_v36  ;;  %v8689_v16 = vshrl.u32 %v8189_v49, 16  ;;  %v16846_v29 = vld [vmem:[#allocation2 + $0x1a4] sm:$0xf]  ;;  %v8191_v36 = vld [vmem:[#allocation2 + $0x1a0] sm:$0x8]  ;;  %v16858_v57 = vpop.f32.mrf.mxu1 }
 0x2dc   :  { %v5358_v45 = vor.u32 %v19448_v13, %v19447_v43  ;;  %v5350_v14 = vsel %vm14444_vm3, %v12029_v60, %v5349_v10  ;;  %v8638_v37 = vsel %vm14444_vm3, %v8630_v5, %v8637_v30  ;;  %v8651_v58 = vsel %vm14444_vm3, %v16801_v61, %v8650_v47  ;;  %v16856_v8 = vpop.f32.mrf.mxu0  ;;  %19452 = vst [vmem:[#allocation140_spill] sm:$0xff] %v16858_v57  ;;  %v16865_v30 = vld [vmem:[#allocation2 + $0x1a8] sm:$0xf]  ;;  %v19453_v61 = vld [vmem:[#allocation45_spill] sm:$0xff]  ;;  %v19454_v59 = vld [vmem:[#allocation46_spill] sm:$0xff] }
 0x2dd   :  { %v8698_v0 = vshrl.u32 %v8190_v42, 16  ;;  %19451 = vst [vmem:[#allocation155_spill] sm:$0xff] %v16856_v8  ;;  %v8660_v19 = vsel %vm14444_vm3, %v8652_v12, %v8659_v55  ;;  %v8684_v38 = vshrl.u32 %v8188_v56, 16  ;;  %v16863_v10 = vrot.slane %v8689_v16, 7  ;;  %v4827_v55 = vld [vmem:[#allocation2 + $0x1a0] sm:$0x8]  ;;  %v16883_v43 = vpop.f32.mrf.mxu1 }
 0x2de   :  { %v5359_v48 = vsel %vm14444_vm3, %v5351_v28, %v5358_v45  ;;  %v8692_v5 = vshll.u32 %v8189_v49, 16  ;;  %v16869_v47 = vadd.f32 %v19453_v61, %v16206_v52  ;;  %v8673_v28 = vsel %vm14444_vm3, %v12179_v54, %v8672_v33  ;;  %v16881_v60 = vpop.f32.mrf.mxu0  ;;  %19456 = vst [vmem:[#allocation143_spill] sm:$0xff] %v16883_v43  ;;  %v4845_v43 = vld [vmem:[#allocation2 + $0x200] sm:$0x8] }
 0x2df   :  { %v16854_v2 = vcombine.low %v5350_v14, %v5359_v48  ;;  %v8682_v32 = vsel %vm14444_vm3, %v8674_v7, %v8681_v39  ;;  %v8711_v12 = vshrl.u32 %v16846_v29, 16  ;;  %v16879_v49 = vadd.f32 %v19454_v59, %v16249_v34  ;;  %19455 = vst [vmem:[#allocation159_spill] sm:$0xff] %v16881_v60  ;;  %v16896_v56 = vpop.f32.mrf.mxu1  ;;  %v8209_v60 = vld [vmem:[#allocation2 + $0x200] sm:$0x8] }
 0x2e0   :  { %v8700_v52 = vrot.slane %v8698_v0, 7  ;;  %v8701_v13 = vshll.u32 %v8190_v42, 16  ;;  %v8706_v50 = vshrl.u32 %v8191_v36, 16  ;;  %v19457_v39 = vsel %vm14444_vm3, %v16736_v62, %v16745_v9  ;;  %v16894_v7 = vpop.f32.mrf.mxu0  ;;  %19459 = vst [vmem:[#allocation144_spill] sm:$0xff] %v16896_v56  ;;  %v4830_v0 = vld [vmem:[#allocation2 + $0x1b0] sm:$0x8] }
 0x2e1   :  { %v12208_v54 = vcombine.low %v19457_v39, %v16791_v44  ;;  %v12209_v45 = vcombine.low %v8629_v21, %v8638_v37  ;;  %v16891_v33 = vcombine.low %v8651_v58, %v8660_v19  ;;  %v8720_v34 = vshrl.u32 %v16865_v30, 16  ;;  %19458 = vst [vmem:[#allocation160_spill] sm:$0xff] %v16894_v7  ;;  %v19460_v21 = vld [vmem:[#allocation212_spill] sm:$0xff]  ;;  %v16914_v19 = vpop.f32.mrf.mxu1  ;;  %13233 = vmatmul.mubr.bf16.gmra.mxu1 %v16762_v23  ;;  %v4833_v7 = vld [vmem:[#allocation2 + $0x1c0] sm:$0x8] }
 0x2e2   :  { %v16898_v14 = vcombine.low %v8673_v28, %v8682_v32  ;;  %v16900_v42 = vrot.slane %v8684_v38, 11  ;;  %v16903_v48 = vor.u32 %v8692_v5, %v16863_v10  ;;  %v5361_v16 = vshrl.u32 %v4827_v55, 16  ;;  %v16912_v36 = vpop.f32.mrf.mxu0  ;;  %19463 = vst [vmem:[#allocation147_spill] sm:$0xff] %v16914_v19  ;;  %v8195_v32 = vld [vmem:[#allocation2 + $0x1b4] sm:$0xf]  ;;  %v19464_v55 = vld [vmem:[#allocation213_spill] sm:$0xff]  ;;  %13236 = vmatprep.mubr.bf16.mxu1 %v16787_v40 }
 0x2e3   :  { %v16906_v9 = vrot.slane %v8711_v12, 7  ;;  %v8714_v44 = vshll.u32 %v16846_v29, 16  ;;  %v19461_v37 = vshll.u32 %v15578_v3, 16  ;;  %19462 = vst [vmem:[#allocation163_spill] sm:$0xff] %v16912_v36  ;;  %13469 = vmatmul.mubr.bf16.gmra.mxu0 %v12208_v54  ;;  %v8703_v38 = vor.u32 %v8701_v13, %v8700_v52  ;;  %v16925_v62 = vpop.f32.mrf.mxu1  ;;  %v19468_v13 = vld [vmem:[#allocation214_spill] sm:$0xff] }
 0x2e4   :  { %v16916_v5 = vrot.slane %v8706_v50, 11  ;;  %v12030_v61 = vrot.slane %v5361_v16, 11  ;;  %v5373_v28 = vrot.slane %v19460_v21, 4  ;;  %13472 = vmatprep.mubr.bf16.mxu0 %v12209_v45  ;;  %v8722_v12 = vrot.slane %v8720_v34, 7  ;;  %v16923_v54 = vpop.f32.mrf.mxu0  ;;  %19467 = vst [vmem:[#allocation150_spill] sm:$0xff] %v16925_v62 }
 0x2e5   :  { %v5371_v58 = vor.u32 %v19461_v37, %v19460_v21  ;;  %v8723_v29 = vshll.u32 %v16865_v30, 16  ;;  %v19465_v3 = vshll.u32 %v15589_v27, 16  ;;  %v5383_v39 = vshrl.u32 %v4830_v0, 16  ;;  %v8194_v37 = vld [vmem:[#allocation2 + $0x1b0] sm:$0x8]  ;;  %19466 = vst [vmem:[#allocation164_spill] sm:$0xff] %v16923_v54 }
 0x2e6   :  { %v19469_v27 = vshll.u32 %v15609_v6, 16  ;;  %v5395_v45 = vrot.slane %v19468_v13, 4  ;;  %v8196_v34 = vld [vmem:[#allocation2 + $0x1b8] sm:$0xf]  ;;  %v16940_v16 = vor.u32 %v8714_v44, %v16906_v9  ;;  %v19470_v21 = vld [vmem:[#allocation218_spill] sm:$0xff]  ;;  %v16949_v6 = vpop.f32.mrf.mxu1  ;;  %v8733_v40 = vshrl.u32 %v8195_v32, 16 }
 0x2e7   :  { %v5380_v59 = vor.u32 %v19465_v3, %v19464_v55  ;;  %v5372_v30 = vsel %vm14444_vm3, %v12030_v61, %v5371_v58  ;;  %v12031_v0 = vrot.slane %v5383_v39, 11  ;;  %v19471_v55 = vshll.u32 %v15632_v15, 16  ;;  %v8197_v61 = vld [vmem:[#allocation2 + $0x1c0] sm:$0x8]  ;;  %v16947_v3 = vpop.f32.mrf.mxu0  ;;  %19473 = vst [vmem:[#allocation152_spill] sm:$0xff] %v16949_v6 }
 0x2e8   :  { %v5393_v50 = vor.u32 %v19469_v27, %v19468_v13  ;;  %19472 = vst [vmem:[#allocation168_spill] sm:$0xff] %v16947_v3  ;;  %v8728_v27 = vshrl.u32 %v8194_v37, 16  ;;  %v8736_v52 = vshll.u32 %v8195_v32, 16  ;;  %v8198_v44 = vld [vmem:[#allocation2 + $0x1c4] sm:$0xf]  ;;  %v8718_v54 = vrot.slane %v16906_v9, 4 }
 0x2e9   :  { %v5381_v23 = vsel %vm14444_vm3, %v5373_v28, %v5380_v59  ;;  %v5402_v58 = vor.u32 %v19471_v55, %v19470_v21  ;;  %v8742_v59 = vshrl.u32 %v8196_v34, 16  ;;  %v8199_v39 = vld [vmem:[#allocation2 + $0x1c8] sm:$0xf]  ;;  %v16958_v21 = vpop.f32.mrf.mxu0  ;;  %v16960_v55 = vpop.f32.mrf.mxu1  ;;  %v8735_v37 = vrot.slane %v8733_v40, 7  ;;  %13237 = vmatmul.mubr.bf16.gmra.mxu1 %v16831_v4  ;;  %v8210_v19 = vld [vmem:[#allocation2 + $0x204] sm:$0xf] }
 0x2ea   :  { %v16951_v13 = vcombine.low %v5372_v30, %v5381_v23  ;;  %v5394_v28 = vsel %vm14444_vm3, %v12031_v0, %v5393_v50  ;;  %19474 = vst [vmem:[#allocation170_spill] sm:$0xff] %v16958_v21  ;;  %v8725_v30 = vor.u32 %v8723_v29, %v8722_v12  ;;  %v8745_v32 = vshll.u32 %v8196_v34, 16  ;;  %13240 = vmatprep.mubr.bf16.mxu1 %v16854_v2  ;;  %v19481_v2 = vld [vmem:[#allocation201_spill] sm:$0xff] }
 0x2eb   :  { %v5403_v15 = vsel %vm14444_vm3, %v5395_v45, %v5402_v58  ;;  %v12182_v3 = vrot.slane %v8728_v27, 11  ;;  %v8744_v36 = vrot.slane %v8742_v59, 7  ;;  %v8750_v9 = vshrl.u32 %v8197_v61, 16  ;;  %v16964_v50 = vpop.f32.mrf.mxu0  ;;  %13473 = vmatmul.mubr.bf16.gmra.mxu0 %v16891_v33  ;;  %v16967_v45 = vpop.f32.mrf.mxu1 }
 0x2ec   :  { %v16962_v23 = vcombine.low %v5394_v28, %v5403_v15  ;;  %v8755_v6 = vshrl.u32 %v8198_v44, 16  ;;  %19475 = vst [vmem:[#allocation154_spill] sm:$0xff] %v16964_v50  ;;  %19476 = vst [vmem:[#allocation171_spill] sm:$0xff] %v16967_v45  ;;  %v8738_v0 = vor.u32 %v8736_v52, %v8735_v37  ;;  %v8740_v58 = vrot.slane %v8735_v37, 4  ;;  %13476 = vmatprep.mubr.bf16.mxu0 %v16898_v14  ;;  %v4836_v15 = vld [vmem:[#allocation2 + $0x1d0] sm:$0x8] }
 0x2ed   :  { %v8758_v21 = vshll.u32 %v8198_v44, 16  ;;  %v8764_v62 = vshrl.u32 %v8199_v39, 16  ;;  %v19477_v12 = vrot.slane %v16863_v10, 4  ;;  %v8747_v34 = vor.u32 %v8745_v32, %v8744_v36  ;;  %v16974_v40 = vpop.f32.mrf.mxu0  ;;  %v16976_v28 = vpop.f32.mrf.mxu1  ;;  %v19484_v32 = vld [vmem:[#allocation224_spill] sm:$0xff]  ;;  %v19499_v50 = vld [vmem:[#allocation210_spill] sm:$0xff] }
 0x2ee   :  { %v12183_v61 = vrot.slane %v8750_v9, 11  ;;  %v8757_v27 = vrot.slane %v8755_v6, 7  ;;  %19478 = vst [vmem:[#allocation156_spill] sm:$0xff] %v16974_v40  ;;  %v8717_v33 = vsel %vm14444_vm3, %v16916_v5, %v16940_v16  ;;  %v8767_v52 = vshll.u32 %v8199_v39, 16  ;;  %v19480_v16 = vld [vmem:[#allocation223_spill] sm:$0xff] }
 0x2ef   :  { %v8704_v29 = vsel %vm14444_vm3, %v19477_v12, %v8703_v38  ;;  %v8766_v14 = vrot.slane %v8764_v62, 7  ;;  %v5405_v10 = vshrl.u32 %v4833_v7, 16  ;;  %v8726_v36 = vsel %vm14444_vm3, %v8718_v54, %v8725_v30  ;;  %v16988_v4 = vpop.f32.mrf.mxu0  ;;  %v16990_v59 = vpop.f32.mrf.mxu1  ;;  %v19485_v9 = vld [vmem:[#allocation207_spill] sm:$0xff]  ;;  %v8200_v12 = vld [vmem:[#allocation2 + $0x1d0] sm:$0x8] }
 0x2f0   :  { %v8739_v38 = vsel %vm14444_vm3, %v12182_v3, %v8738_v0  ;;  %v8760_v6 = vor.u32 %v8758_v21, %v8757_v27  ;;  %v8762_v44 = vrot.slane %v8757_v27, 4  ;;  %19479 = vst [vmem:[#allocation174_spill] sm:$0xff] %v16988_v4  ;;  %v8748_v62 = vsel %vm14444_vm3, %v8740_v58, %v8747_v34 }
 0x2f1   :  { %v8769_v5 = vor.u32 %v8767_v52, %v8766_v14  ;;  %v12032_v7 = vrot.slane %v5405_v10, 11  ;;  %v19482_v39 = vshll.u32 %v19481_v2, 16  ;;  %v19483_v54 = vsel %vm14444_vm3, %v16900_v42, %v16903_v48  ;;  %v17008_v34 = vpop.f32.mrf.mxu0  ;;  %v17010_v27 = vpop.f32.mrf.mxu1  ;;  %13241 = vmatmul.mubr.bf16.gmra.mxu1 %v16951_v13 }
 0x2f2   :  { %v12212_v3 = vcombine.low %v19483_v54, %v8704_v29  ;;  %v8761_v21 = vsel %vm14444_vm3, %v12183_v61, %v8760_v6  ;;  %v5417_v30 = vrot.slane %v19480_v16, 4  ;;  %v19486_v0 = vshll.u32 %v19485_v9, 16  ;;  %19487 = vst [vmem:[#allocation158_spill] sm:$0xff] %v17008_v34  ;;  %v19488_v29 = vld [vmem:[#allocation226_spill] sm:$0xff]  ;;  %v19489_v61 = vld [vmem:[#allocation208_spill] sm:$0xff]  ;;  %13244 = vmatprep.mubr.bf16.mxu1 %v16962_v23 }
 0x2f3   :  { %v5415_v37 = vor.u32 %v19482_v39, %v19480_v16  ;;  %v8770_v14 = vsel %vm14444_vm3, %v8762_v44, %v8769_v5  ;;  %v5427_v48 = vshrl.u32 %v4836_v15, 16  ;;  %v19490_v52 = vshll.u32 %v19489_v61, 16  ;;  %v8201_v6 = vld [vmem:[#allocation2 + $0x1d4] sm:$0xf]  ;;  %v8202_v16 = vld [vmem:[#allocation2 + $0x1d8] sm:$0xf]  ;;  %v17022_v9 = vpop.f32.mrf.mxu0  ;;  %v17024_v44 = vpop.f32.mrf.mxu1 }
 0x2f4   :  { %v5424_v58 = vor.u32 %v19486_v0, %v19484_v32  ;;  %v12213_v2 = vcombine.low %v8717_v33, %v8726_v36  ;;  %v12214_v39 = vcombine.low %v8739_v38, %v8748_v62  ;;  %v5439_v32 = vrot.slane %v19488_v29, 4  ;;  %19491 = vst [vmem:[#allocation182_spill] sm:$0xff] %v17022_v9  ;;  %13477 = vmatmul.mubr.bf16.gmra.mxu0 %v12212_v3  ;;  %v8203_v34 = vld [vmem:[#allocation2 + $0x1e0] sm:$0x8]  ;;  %v8204_v33 = vld [vmem:[#allocation2 + $0x1e4] sm:$0xf] }
 0x2f5   :  { %v5416_v42 = vsel %vm14444_vm3, %v12032_v7, %v5415_v37  ;;  %v5437_v10 = vor.u32 %v19490_v52, %v19488_v29  ;;  %19492 = vst [vmem:[#allocation161_spill] sm:$0xff] %v17024_v44  ;;  %v12033_v15 = vrot.slane %v5427_v48, 11  ;;  %v19493_v7 = vld [vmem:[#allocation227_spill] sm:$0xff]  ;;  %v8772_v52 = vshrl.u32 %v8200_v12, 16  ;;  %v17029_v29 = vpop.f32.mrf.mxu0  ;;  %v13050_v3 = vpop.f32.mrf.mxu1 }
 0x2f6   :  { %v5425_v54 = vsel %vm14444_vm3, %v5417_v30, %v5424_v58  ;;  %v19494_v37 = vld [vmem:[#allocation211_spill] sm:$0xff]  ;;  %13480 = vmatprep.mubr.bf16.mxu0 %v12213_v2  ;;  %v12215_v36 = vcombine.low %v8761_v21, %v8770_v14  ;;  %v8777_v38 = vshrl.u32 %v8201_v6, 16  ;;  %v8780_v62 = vshll.u32 %v8201_v6, 16  ;;  %19496 = vst [vmem:[#allocation183_spill] sm:$0xff] %v17029_v29 }
 0x2f7   :  { %v12064_v5 = vcombine.low %v5416_v42, %v5425_v54  ;;  %v19495_v0 = vshll.u32 %v19494_v37, 16  ;;  %v8786_v30 = vshrl.u32 %v8202_v16, 16  ;;  %v8205_v58 = vld [vmem:[#allocation2 + $0x1e8] sm:$0xf]  ;;  %v5438_v42 = vsel %vm14444_vm3, %v12033_v15, %v5437_v10  ;;  %v17040_v37 = vpop.f32.mrf.mxu0  ;;  %v4839_v15 = vld [vmem:[#allocation2 + $0x1e0] sm:$0x8] }
 0x2f8   :  { %v12184_v12 = vrot.slane %v8772_v52, 11  ;;  %v8789_v54 = vshll.u32 %v8202_v16, 16  ;;  %v8779_v14 = vrot.slane %v8777_v38, 7  ;;  %19498 = vst [vmem:[#allocation162_spill] sm:$0xff] %v17040_v37  ;;  %v8794_v13 = vshrl.u32 %v8203_v34, 16  ;;  %v19592_v37 = vld [vmem:[#allocation100_spill] sm:$0xff] }
 0x2f9   :  { %v5446_v61 = vor.u32 %v19495_v0, %v19493_v7  ;;  %v19497_v7 = vld [vmem:[#allocation203_spill] sm:$0xff]  ;;  %v8788_v6 = vrot.slane %v8786_v30, 7  ;;  %v3074_v0 = vpop.f32.mrf.mxu1  ;;  %v8799_v44 = vshrl.u32 %v8204_v33, 16  ;;  %v8802_v40 = vshll.u32 %v8204_v33, 16  ;;  %13245 = vmatmul.mubr.bf16.gmra.mxu1 %v12064_v5 }
 0x2fa   :  { %v17037_v2 = vadd.f32 %v13050_v3, %v19497_v7  ;;  %v8808_v10 = vshrl.u32 %v8205_v58, 16  ;;  %v8782_v16 = vor.u32 %v8780_v62, %v8779_v14  ;;  %v17045_v3 = vpop.f32.mrf.mxu0  ;;  %v19501_v7 = vld [vmem:[#allocation215_spill] sm:$0xff]  ;;  %v5449_v33 = vshrl.u32 %v4839_v15, 16  ;;  %v4842_v62 = vld [vmem:[#allocation2 + $0x1f0] sm:$0x8] }
 0x2fb   :  { %v5447_v48 = vsel %vm14444_vm3, %v5439_v32, %v5446_v61  ;;  %v17043_v32 = vadd.f32 %v3074_v0, %v19499_v50  ;;  %v8784_v61 = vrot.slane %v8779_v14, 4  ;;  %v8791_v52 = vor.u32 %v8789_v54, %v8788_v6  ;;  %19500 = vst [vmem:[#allocation184_spill] sm:$0xff] %v17045_v3  ;;  %v13051_v23 = vpop.f32.mrf.mxu1  ;;  %v19502_v14 = vld [vmem:[#allocation126_spill] sm:$0xff]  ;;  %v19503_v54 = vld [vmem:[#allocation47_spill] sm:$0xff] }
 0x2fc   :  { %v12065_v21 = vcombine.low %v5438_v42, %v5447_v48  ;;  %v12185_v42 = vrot.slane %v8794_v13, 11  ;;  %v8801_v38 = vrot.slane %v8799_v44, 7  ;;  %v8810_v30 = vrot.slane %v8808_v10, 7  ;;  %v17058_v0 = vpop.f32.mrf.mxu0  ;;  %13481 = vmatmul.mubr.bf16.gmra.mxu0 %v12214_v39  ;;  %v6724_v9 = vld [vmem:[#allocation2 + $0x48] sm:$0xf] }
 0x2fd   :  { %v8811_v48 = vshll.u32 %v8205_v58, 16  ;;  %v17048_v45 = vadd.f32 %v13051_v23, %v19501_v7  ;;  %v8783_v34 = vsel %vm14444_vm3, %v12184_v12, %v8782_v16  ;;  %v8792_v50 = vsel %vm14444_vm3, %v8784_v61, %v8791_v52  ;;  %19504 = vst [vmem:[#allocation165_spill] sm:$0xff] %v17058_v0  ;;  %v17060_v44 = vpop.f32.mrf.mxu1  ;;  %13484 = vmatprep.mubr.bf16.mxu0 %v12215_v36  ;;  %v19506_v16 = vld [vmem:[#allocation10_spill] sm:$0xff]  ;;  %v19507_v7 = vld [vmem:[#allocation221_spill] sm:$0xff] }
 0x2fe   :  { %v17056_v6 = vadd.f32 %v19503_v54, %v19502_v14  ;;  %19505 = vst [vmem:[#allocation185_spill] sm:$0xff] %v17060_v44  ;;  %v8804_v58 = vor.u32 %v8802_v40, %v8801_v38  ;;  %v8806_v13 = vrot.slane %v8801_v38, 4  ;;  %v12216_v23 = vcombine.low %v8783_v34, %v8792_v50  ;;  %v17066_v3 = vpop.f32.mrf.mxu0  ;;  %v19510_v38 = vld [vmem:[#allocation175_spill] sm:$0xff]  ;;  %v19511_v36 = vld [vmem:[#allocation222_spill] sm:$0xff]  ;;  %v8206_v50 = vld [vmem:[#allocation2 + $0x1f0] sm:$0x8]  ;;  %13248 = vmatprep.mubr.bf16.mxu1 %v12065_v21 }
 0x2ff   :  { %v8813_v10 = vor.u32 %v8811_v48, %v8810_v30  ;;  %v12034_v12 = vrot.slane %v5449_v33, 11  ;;  %v19508_v61 = vshll.u32 %v19507_v7, 16  ;;  %v5461_v52 = vrot.slane %v19506_v16, 4  ;;  %19509 = vst [vmem:[#allocation169_spill] sm:$0xff] %v17066_v3  ;;  %v13054_v14 = vpop.f32.mrf.mxu1  ;;  %v8207_v33 = vld [vmem:[#allocation2 + $0x1f4] sm:$0xf] }
 0x300   :  { %v8805_v39 = vsel %vm14444_vm3, %v12185_v42, %v8804_v58  ;;  %v19512_v30 = vshll.u32 %v19511_v36, 16  ;;  %v5471_v34 = vshrl.u32 %v4842_v62, 16  ;;  %v19513_v54 = vld [vmem:[#allocation219_spill] sm:$0xff]  ;;  %v19515_v42 = vld [vmem:[#allocation225_spill] sm:$0xff] }
 0x301   :  { %v5459_v15 = vor.u32 %v19508_v61, %v19506_v16  ;;  %v8814_v40 = vsel %vm14444_vm3, %v8806_v13, %v8813_v10  ;;  %v17076_v7 = vadd.f32 %v13054_v14, %v19513_v54  ;;  %v19514_v61 = vld [vmem:[#allocation176_spill] sm:$0xff]  ;;  %v19516_v58 = vshll.u32 %v19515_v42, 16  ;;  %v8208_v13 = vld [vmem:[#allocation2 + $0x1f8] sm:$0xf]  ;;  %v17083_v10 = vpop.f32.mrf.mxu0  ;;  %v3090_v36 = vpop.f32.mrf.mxu1 }
 0x302   :  { %v5468_v48 = vor.u32 %v19512_v30, %v19510_v38  ;;  %v12217_v16 = vcombine.low %v8805_v39, %v8814_v40  ;;  %19517 = vst [vmem:[#allocation191_spill] sm:$0xff] %v17083_v10  ;;  %v12035_v38 = vrot.slane %v5471_v34, 11  ;;  %v5483_v14 = vrot.slane %v19514_v61, 4  ;;  %v19518_v30 = vld [vmem:[#allocation234_spill] sm:$0xff]  ;;  %v19519_v21 = vld [vmem:[#allocation229_spill] sm:$0xff]  ;;  %v19521_v54 = vld [vmem:[#allocation220_spill] sm:$0xff] }
 0x303   :  { %v5460_v5 = vsel %vm14444_vm3, %v12034_v12, %v5459_v15  ;;  %v5481_v44 = vor.u32 %v19516_v58, %v19514_v61  ;;  %v19520_v39 = vshll.u32 %v19519_v21, 16  ;;  %v17092_v12 = vadd.f32 %v3090_v36, %v19521_v54  ;;  %v17094_v8 = vpop.f32.mrf.mxu0  ;;  %v13055_v56 = vpop.f32.mrf.mxu1  ;;  %v10085_v0 = vld [vmem:[#allocation2 + $0x38] sm:$0xf] }
 0x304   :  { %v5469_v62 = vsel %vm14444_vm3, %v5461_v52, %v5468_v48  ;;  %v8816_v42 = vshrl.u32 %v8206_v50, 16  ;;  %v8821_v58 = vshrl.u32 %v8207_v33, 16  ;;  %19522 = vst [vmem:[#allocation172_spill] sm:$0xff] %v17094_v8  ;;  %v8824_v34 = vshll.u32 %v8207_v33, 16  ;;  %13485 = vmatmul.mubr.bf16.gmra.mxu0 %v12216_v23  ;;  %v19526_v33 = vld [vmem:[#allocation49_spill] sm:$0xff] }
 0x305   :  { %v5490_v40 = vor.u32 %v19520_v39, %v19518_v30  ;;  %v12066_v15 = vcombine.low %v5460_v5, %v5469_v62  ;;  %v5482_v52 = vsel %vm14444_vm3, %v12035_v38, %v5481_v44  ;;  %v8830_v61 = vshrl.u32 %v8208_v13, 16  ;;  %v19523_v30 = vld [vmem:[#allocation228_spill] sm:$0xff]  ;;  %v8211_v62 = vld [vmem:[#allocation2 + $0x208] sm:$0xf]  ;;  %v17103_v39 = vpop.f32.mrf.mxu0  ;;  %v17105_v54 = vpop.f32.mrf.mxu1  ;;  %13488 = vmatprep.mubr.bf16.mxu0 %v12217_v16 }
 0x306   :  { %v17101_v21 = vadd.f32 %v13055_v56, %v19523_v30  ;;  %v12186_v5 = vrot.slane %v8816_v42, 11  ;;  %v8823_v50 = vrot.slane %v8821_v58, 7  ;;  %19524 = vst [vmem:[#allocation192_spill] sm:$0xff] %v17103_v39  ;;  %v8833_v41 = vshll.u32 %v8208_v13, 16  ;;  %v19528_v13 = vld [vmem:[#allocation231_spill] sm:$0xff] }
 0x307   :  { %v5491_v48 = vsel %vm14444_vm3, %v5483_v14, %v5490_v40  ;;  %v8832_v8 = vrot.slane %v8830_v61, 7  ;;  %v8838_v44 = vshrl.u32 %v8209_v60, 16  ;;  %v8843_v38 = vshrl.u32 %v8210_v19, 16  ;;  %v19525_v14 = vld [vmem:[#allocation39_spill] sm:$0xff]  ;;  %v17111_v58 = vpop.f32.mrf.mxu0  ;;  %13249 = vmatmul.mubr.bf16.gmra.mxu1 %v12066_v15 }
 0x308   :  { %v12067_v36 = vcombine.low %v5482_v52, %v5491_v48  ;;  %v17109_v40 = vadd.f32 %v19526_v33, %v19525_v14  ;;  %v8826_v56 = vor.u32 %v8824_v34, %v8823_v50  ;;  %v8828_v52 = vrot.slane %v8823_v50, 4  ;;  %19527 = vst [vmem:[#allocation173_spill] sm:$0xff] %v17111_v58  ;;  %v13058_v48 = vpop.f32.mrf.mxu1  ;;  %v19569_v58 = vld [vmem:[#allocation189_spill] sm:$0xff] }
 0x309   :  { %v8846_v42 = vshll.u32 %v8210_v19, 16  ;;  %v8835_v23 = vor.u32 %v8833_v41, %v8832_v8  ;;  %v12187_v30 = vrot.slane %v8838_v44, 11  ;;  %v8845_v46 = vrot.slane %v8843_v38, 7  ;;  %v17118_v34 = vpop.f32.mrf.mxu0  ;;  %v4848_v44 = vld [vmem:[#allocation2 + $0x210] sm:$0x8]  ;;  %v19530_v38 = vld [vmem:[#allocation27_spill] sm:$0xff] }
 0x30a   :  { %v8852_v61 = vshrl.u32 %v8211_v62, 16  ;;  %v17114_v60 = vadd.f32 %v13058_v48, %v19528_v13  ;;  %13252 = vmatprep.mubr.bf16.mxu1 %v12067_v36  ;;  %v8827_v14 = vsel %vm14444_vm3, %v12186_v5, %v8826_v56  ;;  %v8855_v33 = vshll.u32 %v8211_v62, 16  ;;  %19529 = vst [vmem:[#allocation193_spill] sm:$0xff] %v17118_v34  ;;  %v3106_v19 = vpop.f32.mrf.mxu1  ;;  %v19532_v13 = vld [vmem:[#allocation97_spill] sm:$0xff] }
 0x30b   :  { %v5493_v16 = vshrl.u32 %v4845_v43, 16  ;;  %v8836_v50 = vsel %vm14444_vm3, %v8828_v52, %v8835_v23  ;;  %v8848_v15 = vor.u32 %v8846_v42, %v8845_v46  ;;  %v8850_v41 = vrot.slane %v8845_v46, 4  ;;  %v17128_v43 = vpop.f32.mrf.mxu0  ;;  %v19536_v42 = vld [vmem:[#allocation109_spill] sm:$0xff]  ;;  %v19537_v23 = vld [vmem:[#allocation238_spill] sm:$0xff] }
 0x30c   :  { %v8854_v8 = vrot.slane %v8852_v61, 7  ;;  %v17123_v57 = vadd.f32 %v3106_v19, %v19530_v38  ;;  %v12218_v48 = vcombine.low %v8827_v14, %v8836_v50  ;;  %v19534_v5 = vshll.u32 %v19533_v22, 16  ;;  %19535 = vst [vmem:[#allocation194_spill] sm:$0xff] %v17128_v43  ;;  %v13059_v52 = vpop.f32.mrf.mxu1  ;;  %v19539_v38 = vld [vmem:[#allocation167_spill] sm:$0xff]  ;;  %v19566_v34 = vld [vmem:[#allocation33_spill] sm:$0xff] }
 0x30d   :  { %v12036_v36 = vrot.slane %v5493_v16, 11  ;;  %v8849_v56 = vsel %vm14444_vm3, %v12187_v30, %v8848_v15  ;;  %v5505_v46 = vrot.slane %v19532_v13, 4  ;;  %v19538_v61 = vshll.u32 %v19537_v23, 16  ;;  %v19541_v50 = vld [vmem:[#allocation187_spill] sm:$0xff]  ;;  %v8212_v30 = vld [vmem:[#allocation2 + $0x210] sm:$0x8]  ;;  %v17144_v15 = vpop.f32.mrf.mxu0 }
 0x30e   :  { %19531 = vst [vmem:[#allocation178_spill] sm:$0xff] %v17123_v57  ;;  %v5503_v62 = vor.u32 %v19534_v5, %v19532_v13  ;;  %v8857_v53 = vor.u32 %v8855_v33, %v8854_v8  ;;  %v17137_v14 = vadd.f32 %v13059_v52, %v19539_v38  ;;  %v5515_v16 = vshrl.u32 %v4848_v44, 16  ;;  %v19542_v5 = vld [vmem:[#allocation95_spill] sm:$0xff]  ;;  %v8213_v33 = vld [vmem:[#allocation2 + $0x214] sm:$0xf]  ;;  %19544 = vst [vmem:[#allocation198_spill] sm:$0xff] %v17144_v15  ;;  %v17148_v13 = vpop.f32.mrf.mxu1 }
 0x30f   :  { %v5512_v19 = vor.u32 %v19538_v61, %v19536_v42  ;;  %v19543_v20 = vshll.u32 %v19542_v5, 16  ;;  %13489 = vmatmul.mubr.bf16.gmra.mxu0 %v12218_v48  ;;  %v19545_v44 = vld [vmem:[#allocation240_spill] sm:$0xff]  ;;  %v19548_v61 = vld [vmem:[#allocation41_spill] sm:$0xff]  ;;  %v19549_v38 = vld [vmem:[#allocation50_spill] sm:$0xff]  ;;  %v8868_v24 = vshll.u32 %v8213_v33, 16 }
 0x310   :  { %19540 = vst [vmem:[#allocation181_spill] sm:$0xff] %v17137_v14  ;;  %v5504_v22 = vsel %vm14444_vm3, %v12036_v36, %v5503_v62  ;;  %v8858_v8 = vsel %vm14444_vm3, %v8850_v41, %v8857_v53  ;;  %v5527_v36 = vrot.slane %v19541_v50, 4  ;;  %v19546_v62 = vld [vmem:[#allocation30_spill] sm:$0xff]  ;;  %v17158_v5 = vadd.f32 %v19549_v38, %v19548_v61  ;;  %v17160_v41 = vpop.f32.mrf.mxu0  ;;  %v13062_v17 = vpop.f32.mrf.mxu1  ;;  %v6714_v15 = vld [vmem:[#allocation2 + $0x14] sm:$0xf] }
 0x311   :  { %v5525_v51 = vor.u32 %v19543_v20, %v19541_v50  ;;  %v5513_v52 = vsel %vm14444_vm3, %v5505_v46, %v5512_v19  ;;  %v19547_v42 = vshll.u32 %v19546_v62, 16  ;;  %v8214_v20 = vld [vmem:[#allocation2 + $0x218] sm:$0xf]  ;;  %v12219_v48 = vcombine.low %v8849_v56, %v8858_v8  ;;  %v8215_v53 = vld [vmem:[#allocation2 + $0x220] sm:$0x8]  ;;  %19550 = vst [vmem:[#allocation199_spill] sm:$0xff] %v17160_v41 }
 0x312   :  { %v12068_v25 = vcombine.low %v5504_v22, %v5513_v52  ;;  %v12037_v1 = vrot.slane %v5515_v16, 11  ;;  %v8860_v19 = vshrl.u32 %v8212_v30, 16  ;;  %v8865_v50 = vshrl.u32 %v8213_v33, 16  ;;  %v8216_v62 = vld [vmem:[#allocation2 + $0x224] sm:$0xf]  ;;  %v17169_v52 = vpop.f32.mrf.mxu0  ;;  %v3122_v38 = vpop.f32.mrf.mxu1 }
 0x313   :  { %v5534_v23 = vor.u32 %v19547_v42, %v19545_v44  ;;  %13492 = vmatprep.mubr.bf16.mxu0 %v12219_v48  ;;  %v19551_v44 = vld [vmem:[#allocation12_spill] sm:$0xff]  ;;  %v8874_v22 = vshrl.u32 %v8214_v20, 16  ;;  %v8877_v16 = vshll.u32 %v8214_v20, 16  ;;  %v8217_v8 = vld [vmem:[#allocation2 + $0x228] sm:$0xf]  ;;  %19553 = vst [vmem:[#allocation202_spill] sm:$0xff] %v17169_v52 }
 0x314   :  { %v17165_v42 = vadd.f32 %v13062_v17, %v19551_v44  ;;  %13253 = vmatmul.mubr.bf16.gmra.mxu1 %v12068_v25  ;;  %v5526_v56 = vsel %vm14444_vm3, %v12037_v1, %v5525_v51  ;;  %v8867_v30 = vrot.slane %v8865_v50, 7  ;;  %v19554_v33 = vld [vmem:[#allocation106_spill] sm:$0xff]  ;;  %v8887_v17 = vshrl.u32 %v8216_v62, 16  ;;  %v17174_v26 = vpop.f32.mrf.mxu0  ;;  %v13063_v52 = vpop.f32.mrf.mxu1  ;;  %v19557_v50 = vld [vmem:[#allocation188_spill] sm:$0xff] }
 0x315   :  { %v5535_v46 = vsel %vm14444_vm3, %v5527_v36, %v5534_v23  ;;  %v12188_v36 = vrot.slane %v8860_v19, 11  ;;  %v8882_v23 = vshrl.u32 %v8215_v53, 16  ;;  %v17172_v63 = vadd.f32 %v3122_v38, %v19554_v33  ;;  %v4851_v25 = vld [vmem:[#allocation2 + $0x220] sm:$0x8]  ;;  %19556 = vst [vmem:[#allocation46_spill] sm:$0xff] %v17174_v26 }
 0x316   :  { %19552 = vst [vmem:[#allocation200_spill] sm:$0xff] %v17165_v42  ;;  %v12069_v61 = vcombine.low %v5526_v56, %v5535_v46  ;;  %v8876_v48 = vrot.slane %v8874_v22, 7  ;;  %v8890_v44 = vshll.u32 %v8216_v62, 16  ;;  %v8870_v1 = vor.u32 %v8868_v24, %v8867_v30  ;;  %v17179_v38 = vpop.f32.mrf.mxu0  ;;  %v17183_v33 = vpop.f32.mrf.mxu1  ;;  %v19560_v24 = vld [vmem:[#allocation98_spill] sm:$0xff] }
 0x317   :  { %19555 = vst [vmem:[#allocation45_spill] sm:$0xff] %v17172_v63  ;;  %v8872_v51 = vrot.slane %v8867_v30, 4  ;;  %v12189_v20 = vrot.slane %v8882_v23, 11  ;;  %v8896_v41 = vshrl.u32 %v8217_v8, 16  ;;  %v8889_v56 = vrot.slane %v8887_v17, 7  ;;  %19559 = vst [vmem:[#allocation213_spill] sm:$0xff] %v17179_v38 }
 0x318   :  { %13256 = vmatprep.mubr.bf16.mxu1 %v12069_v61  ;;  %v8879_v46 = vor.u32 %v8877_v16, %v8876_v48  ;;  %v8899_v19 = vshll.u32 %v8217_v8, 16  ;;  %v17177_v53 = vadd.f32 %v13063_v52, %v19557_v50  ;;  %v8871_v62 = vsel %vm14444_vm3, %v12188_v36, %v8870_v1  ;;  %v19561_v30 = vld [vmem:[#allocation94_spill] sm:$0xff]  ;;  %v19564_v48 = vld [vmem:[#allocation51_spill] sm:$0xff]  ;;  %v6715_v38 = vld [vmem:[#allocation2 + $0x18] sm:$0xf]  ;;  %v17194_v1 = vpop.f32.mrf.mxu0 }
 0x319   :  { %v8898_v22 = vrot.slane %v8896_v41, 7  ;;  %v5537_v61 = vshrl.u32 %v4851_v25, 16  ;;  %v19562_v23 = vshll.u32 %v19561_v30, 16  ;;  %v19563_v16 = vld [vmem:[#allocation114_spill] sm:$0xff]  ;;  %v8892_v17 = vor.u32 %v8890_v44, %v8889_v56  ;;  %19565 = vst [vmem:[#allocation214_spill] sm:$0xff] %v17194_v1  ;;  %v13066_v25 = vpop.f32.mrf.mxu1 }
 0x31a   :  { %19558 = vst [vmem:[#allocation212_spill] sm:$0xff] %v17177_v53  ;;  %v17190_v8 = vadd.f32 %v19564_v48, %v19563_v16  ;;  %v8880_v52 = vsel %vm14444_vm3, %v8872_v51, %v8879_v46  ;;  %v8894_v50 = vrot.slane %v8889_v56, 4  ;;  %v5549_v30 = vrot.slane %v19560_v24, 4  ;;  %v19568_v48 = vld [vmem:[#allocation195_spill] sm:$0xff]  ;;  %v6716_v46 = vld [vmem:[#allocation2 + $0x1c] sm:$0x1] }
 0x31b   :  { %v5547_v26 = vor.u32 %v19562_v23, %v19560_v24  ;;  %v12220_v36 = vcombine.low %v8871_v62, %v8880_v52  ;;  %v8901_v41 = vor.u32 %v8899_v19, %v8898_v22  ;;  %v12038_v43 = vrot.slane %v5537_v61, 11  ;;  %v17207_v62 = vpop.f32.mrf.mxu0  ;;  %v3138_v24 = vpop.f32.mrf.mxu1  ;;  %v8219_v52 = vld [vmem:[#allocation2 + $0x234] sm:$0xf]  ;;  %v13965_v53 = vld [vmem:[#allocation2 + $0xd8] sm:$0xf] }
 0x31c   :  { %v8893_v23 = vsel %vm14444_vm3, %v12189_v20, %v8892_v17  ;;  %v17200_v16 = vadd.f32 %v13066_v25, %v19566_v34  ;;  %v19570_v51 = vshll.u32 %v19569_v58, 16  ;;  %v6811_v56 = vshrl.u32 %v6714_v15, 16  ;;  %19571 = vst [vmem:[#allocation223_spill] sm:$0xff] %v17207_v62  ;;  %v8218_v34 = vld [vmem:[#allocation2 + $0x230] sm:$0x8] }
 0x31d   :  { %13493 = vmatmul.mubr.bf16.gmra.mxu0 %v12220_v36  ;;  %v8902_v19 = vsel %vm14444_vm3, %v8894_v50, %v8901_v41  ;;  %v5548_v22 = vsel %vm14444_vm3, %v12038_v43, %v5547_v26  ;;  %v6814_v61 = vshll.u32 %v6714_v15, 16  ;;  %v6820_v20 = vshll.u32 %v6715_v38, 16  ;;  %v8220_v36 = vld [vmem:[#allocation2 + $0x238] sm:$0xf]  ;;  %v17213_v1 = vpop.f32.mrf.mxu0  ;;  %v19573_v43 = vld [vmem:[#allocation34_spill] sm:$0xff] }
 0x31e   :  { %19567 = vst [vmem:[#allocation218_spill] sm:$0xff] %v17200_v16  ;;  %v5556_v44 = vor.u32 %v19570_v51, %v19568_v48  ;;  %v12221_v17 = vcombine.low %v8893_v23, %v8902_v19  ;;  %v6813_v25 = vrot.slane %v6811_v56, 4  ;;  %v6824_v48 = vshrl.u32 %v6715_v38, 16  ;;  %19572 = vst [vmem:[#allocation201_spill] sm:$0xff] %v17213_v1  ;;  %v13067_v16 = vpop.f32.mrf.mxu1  ;;  %v10081_v19 = vld [vmem:[#allocation2 + $0x24] sm:$0xf] }
 0x31f   :  { %v6816_v50 = vrot.slane %v6814_v61, 5  ;;  %v6822_v41 = vrot.slane %v6820_v20, 5  ;;  %v6830_v62 = vshll.u32 %v6716_v46, 16  ;;  %v17216_v15 = vadd.f32 %v3138_v24, %v19573_v43  ;;  %v17218_v38 = vpop.f32.mrf.mxu0 }
 0x320   :  { %v5557_v58 = vsel %vm14444_vm3, %v5549_v30, %v5556_v44  ;;  %13496 = vmatprep.mubr.bf16.mxu0 %v12221_v17  ;;  %v6826_v26 = vrot.slane %v6824_v48, 4  ;;  %v8904_v39 = vshrl.u32 %v8218_v34, 16  ;;  %v8909_v23 = vshrl.u32 %v8219_v52, 16  ;;  %19575 = vst [vmem:[#allocation207_spill] sm:$0xff] %v17218_v38  ;;  %v17220_v61 = vpop.f32.mrf.mxu1  ;;  %v10083_v38 = vld [vmem:[#allocation2 + $0x2c] sm:$0x1] }
 0x321   :  { %v12070_v51 = vcombine.low %v5548_v22, %v5557_v58  ;;  %19574 = vst [vmem:[#allocation224_spill] sm:$0xff] %v17216_v15  ;;  %v6817_v30 = vor.u32 %v6816_v50, %v6813_v25  ;;  %v6832_v44 = vrot.slane %v6830_v62, 5  ;;  %v8912_v56 = vshll.u32 %v8219_v52, 16  ;;  %v10082_v58 = vld [vmem:[#allocation2 + $0x28] sm:$0xf]  ;;  %19576 = vst [vmem:[#allocation226_spill] sm:$0xff] %v17220_v61  ;;  %v17222_v15 = vpop.f32.mrf.mxu0 }
 0x322   :  { %v8918_v22 = vshrl.u32 %v8220_v36, 16  ;;  %v6827_v46 = vor.u32 %v6826_v26, %v6822_v41  ;;  %v12190_v20 = vrot.slane %v8904_v39, 11  ;;  %v8911_v17 = vrot.slane %v8909_v23, 7  ;;  %19577 = vst [vmem:[#allocation208_spill] sm:$0xff] %v17222_v15  ;;  %v19582_v15 = vld [vmem:[#allocation53_spill] sm:$0xff] }
 0x323   :  { %13257 = vmatmul.mubr.bf16.gmra.mxu1 %v12070_v51  ;;  %v8921_v48 = vshll.u32 %v8220_v36, 16  ;;  %v6818_v1 = vrot.slane %v6817_v30, 4  ;;  %v10178_v43 = vshrl.u32 %v10081_v19, 16  ;;  %v10181_v34 = vshll.u32 %v10081_v19, 16  ;;  %v13070_v51 = vpop.f32.mrf.mxu1  ;;  %v17226_v23 = vpop.f32.mrf.mxu0 }
 0x324   :  { %v8920_v24 = vrot.slane %v8918_v22, 7  ;;  %v6828_v25 = vrot.slane %v6827_v46, 4  ;;  %v8914_v62 = vor.u32 %v8912_v56, %v8911_v17  ;;  %v8916_v50 = vrot.slane %v8911_v17, 4  ;;  %19579 = vst [vmem:[#allocation227_spill] sm:$0xff] %v17226_v23  ;;  %v6717_v46 = vld [vmem:[#allocation2 + $0x24] sm:$0xf] }
 0x325   :  { %v10187_v52 = vshll.u32 %v10082_v58, 16  ;;  %v6823_v10 = vsel %vm14499_vm6, %v6818_v1, %v6822_v41  ;;  %v10180_v26 = vrot.slane %v10178_v43, 4  ;;  %v10183_v39 = vrot.slane %v10181_v34, 5  ;;  %v17228_v36 = vpop.f32.mrf.mxu1  ;;  %v6718_v43 = vld [vmem:[#allocation2 + $0x28] sm:$0xf] }
 0x326   :  { %v8923_v61 = vor.u32 %v8921_v48, %v8920_v24  ;;  %v6833_v19 = vsel %vm14499_vm6, %v6828_v25, %v6832_v44  ;;  %v8915_v30 = vsel %vm14444_vm3, %v12190_v20, %v8914_v62  ;;  %v10191_v22 = vshrl.u32 %v10082_v58, 16  ;;  %v17236_v24 = vpop.f32.mrf.mxu0  ;;  %v19581_v23 = vld [vmem:[#allocation119_spill] sm:$0xff]  ;;  %v19583_v62 = vld [vmem:[#allocation196_spill] sm:$0xff] }
 0x327   :  { %v10189_v56 = vrot.slane %v10187_v52, 5  ;;  %v12119_v17 = vcombine.low %v6823_v10, %v6833_v19  ;;  %v10184_v41 = vor.u32 %v10183_v39, %v10180_v26  ;;  %v10197_v48 = vshll.u32 %v10083_v38, 16  ;;  %19580 = vst [vmem:[#allocation211_spill] sm:$0xff] %v17236_v24  ;;  %v17238_v34 = vpop.f32.mrf.mxu1  ;;  %v6719_v10 = vld [vmem:[#allocation2 + $0x2c] sm:$0x1] }
 0x328   :  { %v8924_v1 = vsel %vm14444_vm3, %v8916_v50, %v8923_v61  ;;  %v17242_v44 = vadd.f32 %v19582_v15, %v19581_v23  ;;  %v10193_v20 = vrot.slane %v10191_v22, 4  ;;  %v17245_v58 = vadd.f32 %v13067_v16, %v19583_v62  ;;  %v6720_v52 = vld [vmem:[#allocation2 + $0x34] sm:$0xf]  ;;  %v19585_v38 = vld [vmem:[#allocation115_spill] sm:$0xff]  ;;  %v17250_v39 = vpop.f32.mrf.mxu0  ;;  %v6721_v16 = vld [vmem:[#allocation2 + $0x38] sm:$0xf] }
 0x329   :  { %v12222_v25 = vcombine.low %v8915_v30, %v8924_v1  ;;  %13356 = vmatprep.mubr.bf16.mxu1 %v12119_v17  ;;  %v10185_v31 = vrot.slane %v10184_v41, 4  ;;  %v10199_v61 = vrot.slane %v10197_v48, 5  ;;  %v17248_v50 = vadd.f32 %v13070_v51, %v19585_v38  ;;  %19587 = vst [vmem:[#allocation215_spill] sm:$0xff] %v17250_v39  ;;  %v17252_v19 = vpop.f32.mrf.mxu1 }
 0x32a   :  { %19584 = vst [vmem:[#allocation203_spill] sm:$0xff] %v17245_v58  ;;  %v6835_v26 = vshrl.u32 %v6717_v46, 16  ;;  %19588 = vst [vmem:[#allocation126_spill] sm:$0xff] %v17252_v19  ;;  %v10194_v15 = vor.u32 %v10193_v20, %v10189_v56  ;;  %v6838_v23 = vshll.u32 %v6717_v46, 16  ;;  %v6844_v30 = vshll.u32 %v6718_v43, 16  ;;  %v17256_v62 = vpop.f32.mrf.mxu0 }
 0x32b   :  { %19586 = vst [vmem:[#allocation210_spill] sm:$0xff] %v17248_v50  ;;  %13497 = vmatmul.mubr.bf16.gmra.mxu0 %v12222_v25  ;;  %v6848_v22 = vshrl.u32 %v6718_v43, 16  ;;  %v10190_v1 = vsel %vm14499_vm6, %v10185_v31, %v10189_v56  ;;  %v6854_v41 = vshll.u32 %v6719_v10, 16  ;;  %v6859_v48 = vshrl.u32 %v6720_v52, 16  ;;  %19589 = vst [vmem:[#allocation47_spill] sm:$0xff] %v17256_v62  ;;  %v17258_v51 = vpop.f32.mrf.mxu1 }
 0x32c   :  { %v6837_v17 = vrot.slane %v6835_v26, 4  ;;  %v10195_v38 = vrot.slane %v10194_v15, 4  ;;  %v6840_v24 = vrot.slane %v6838_v23, 5  ;;  %v6846_v39 = vrot.slane %v6844_v30, 5  ;;  %v6722_v25 = vld [vmem:[#allocation2 + $0x3c] sm:$0x1]  ;;  %v17260_v58 = vpop.f32.mrf.mxu0 }
 0x32d   :  { %v6850_v19 = vrot.slane %v6848_v22, 4  ;;  %v6856_v20 = vrot.slane %v6854_v41, 5  ;;  %v6861_v46 = vrot.slane %v6859_v48, 4  ;;  %v6862_v50 = vshll.u32 %v6720_v52, 16  ;;  %19590 = vst [vmem:[#allocation10_spill] sm:$0xff] %v17260_v58  ;;  %v17262_v3 = vpop.f32.mrf.mxu1 }
 0x32e   :  { %v6868_v43 = vshll.u32 %v6721_v16, 16  ;;  %v10200_v56 = vsel %vm14499_vm6, %v10195_v38, %v10199_v61  ;;  %v6841_v10 = vor.u32 %v6840_v24, %v6837_v17  ;;  %v6872_v26 = vshrl.u32 %v6721_v16, 16  ;;  %v10084_v62 = vld [vmem:[#allocation2 + $0x34] sm:$0xf]  ;;  %v17266_v41 = vpop.f32.mrf.mxu0 }
 0x32f   :  { %v6851_v31 = vor.u32 %v6850_v19, %v6846_v39  ;;  %v12271_v15 = vcombine.low %v10190_v1, %v10200_v56  ;;  %v6864_v23 = vrot.slane %v6862_v50, 5  ;;  %v6878_v22 = vshll.u32 %v6722_v25, 16  ;;  %19591 = vst [vmem:[#allocation221_spill] sm:$0xff] %v17266_v41  ;;  %v17268_v52 = vpop.f32.mrf.mxu1  ;;  %v10086_v19 = vld [vmem:[#allocation2 + $0x3c] sm:$0x1] }
 0x330   :  { %v6870_v30 = vrot.slane %v6868_v43, 5  ;;  %v6842_v48 = vrot.slane %v6841_v10, 4  ;;  %v6874_v63 = vrot.slane %v6872_v26, 4  ;;  %v17272_v29 = vadd.f32 %v17228_v36, %v19592_v37  ;;  %v17274_v1 = vpop.f32.mrf.mxu0  ;;  %v10087_v37 = vld [vmem:[#allocation2 + $0x44] sm:$0xf] }
 0x331   :  { %v6852_v58 = vrot.slane %v6851_v31, 4  ;;  %13596 = vmatprep.mubr.bf16.mxu0 %v12271_v15  ;;  %v6865_v24 = vor.u32 %v6864_v23, %v6861_v46  ;;  %v6880_v61 = vrot.slane %v6878_v22, 5  ;;  %v10202_v16 = vshrl.u32 %v10084_v62, 16  ;;  %19594 = vst [vmem:[#allocation222_spill] sm:$0xff] %v17274_v1  ;;  %v17276_v17 = vpop.f32.mrf.mxu1  ;;  %v10088_v26 = vld [vmem:[#allocation2 + $0x48] sm:$0xf] }
 0x332   :  { %19593 = vst [vmem:[#allocation175_spill] sm:$0xff] %v17272_v29  ;;  %v10205_v50 = vshll.u32 %v10084_v62, 16  ;;  %19595 = vst [vmem:[#allocation219_spill] sm:$0xff] %v17276_v17  ;;  %v6847_v38 = vsel %vm14499_vm6, %v6842_v48, %v6846_v39  ;;  %v6875_v43 = vor.u32 %v6874_v63, %v6870_v30  ;;  %v10211_v56 = vshll.u32 %v10085_v0, 16  ;;  %v17282_v15 = vpop.f32.mrf.mxu0  ;;  %v13835_v62 = vld [vmem:[#allocation4 + $0x1f0] sm:$0xff]  }
 0x333   :  { %v6857_v25 = vsel %vm14499_vm6, %v6852_v58, %v6856_v20  ;;  %v6866_v10 = vrot.slane %v6865_v24, 4  ;;  %v10204_v46 = vrot.slane %v10202_v16, 4  ;;  %19596 = vst [vmem:[#allocation176_spill] sm:$0xff] %v17282_v15  ;;  %v17284_v23 = vpop.f32.mrf.mxu1  ;;  %v10215_v17 = vshrl.u32 %v10085_v0, 16  ;;  %v10089_v20 = vld [vmem:[#allocation2 + $0x4c] sm:$0x1] }
 0x334   :  { %v12120_v36 = vcombine.low %v6847_v38, %v6857_v25  ;;  %v10207_v31 = vrot.slane %v10205_v50, 5  ;;  %v6876_v22 = vrot.slane %v6875_v43, 4  ;;  %v10213_v41 = vrot.slane %v10211_v56, 5  ;;  %v17288_v16 = vpop.f32.mrf.mxu0  ;;  %v13942_v38 = vld [vmem:[#allocation4 + $0x1f8] sm:$0xff]  }
 0x335   :  { %v10221_v39 = vshll.u32 %v10086_v19, 16  ;;  %v6871_v63 = vsel %vm14499_vm6, %v6866_v10, %v6870_v30  ;;  %v10226_v48 = vshrl.u32 %v10087_v37, 16  ;;  %v10229_v24 = vshll.u32 %v10087_v37, 16  ;;  %19597 = vst [vmem:[#allocation225_spill] sm:$0xff] %v17288_v16  ;;  %v17290_v50 = vpop.f32.mrf.mxu1  ;;  %v6723_v10 = vld [vmem:[#allocation2 + $0x44] sm:$0xf] }
 0x336   :  { %13357 = vmatmul.mubr.bf16.vlgmr.msra.gmra.mxu1 %v12120_v36  ;;  %v10208_v58 = vor.u32 %v10207_v31, %v10204_v46  ;;  %v6881_v25 = vsel %vm14499_vm6, %v6876_v22, %v6880_v61  ;;  %v10217_v43 = vrot.slane %v10215_v17, 4  ;;  %v10235_v19 = vshll.u32 %v10088_v26, 16  ;;  %v17294_v46 = vpop.f32.mrf.mxu0  ;;  %v13836_v31 = vld [vmem:[#allocation4 + $0x1e8] sm:$0xff]   ;;  %v19599_v61 = vld [vmem:[#allocation54_spill] sm:$0xff] }
 0x337   :  { %13501 = vmatpush3.bf16.msra.mxu1 %v13942_v38  ;;  %v10223_v0 = vrot.slane %v10221_v39, 5  ;;  %v12121_v56 = vcombine.low %v6871_v63, %v6881_v25  ;;  %v10228_v15 = vrot.slane %v10226_v48, 4  ;;  %v10231_v30 = vrot.slane %v10229_v24, 5  ;;  %19598 = vst [vmem:[#allocation234_spill] sm:$0xff] %v17294_v46  ;;  %v17296_v37 = vpop.f32.mrf.mxu1  ;;  %v19600_v63 = vld [vmem:[#allocation35_spill] sm:$0xff] }
 0x338   :  { %v10209_v36 = vrot.slane %v10208_v58, 4  ;;  %13502 = vmatprep.subr.bf16.mxu1 %v13835_v62  ;;  %v10218_v16 = vor.u32 %v10217_v43, %v10213_v41  ;;  %v10237_v1 = vrot.slane %v10235_v19, 5  ;;  %v10239_v38 = vshrl.u32 %v10088_v26, 16  ;;  %v6725_v48 = vld [vmem:[#allocation2 + $0x4c] sm:$0x1]  ;;  %v17308_v24 = vpop.f32.mrf.mxu0  ;;  %v19604_v19 = vld [vmem:[#allocation204_spill] sm:$0xff] }
 0x339   :  { %v10245_v29 = vshll.u32 %v10089_v20, 16  ;;  %v17300_v17 = vadd.f32 %v19599_v61, %v16474_v18  ;;  %13360 = vmatprep.mubr.bf16.mxu1 %v12121_v56  ;;  %v10232_v39 = vor.u32 %v10231_v30, %v10228_v15  ;;  %v17306_v58 = vadd.f32 %v17238_v34, %v19600_v63  ;;  %19602 = vst [vmem:[#allocation220_spill] sm:$0xff] %v17308_v24  ;;  %v17310_v25 = vpop.f32.mrf.mxu1  ;;  %v13837_v34 = vld [vmem:[#allocation4 + $0x1e0] sm:$0xff]   ;;  %v6727_v46 = vld [vmem:[#allocation2 + $0x58] sm:$0xf] }
 0x33a   :  { %v10214_v22 = vsel %vm14499_vm6, %v10209_v36, %v10213_v41  ;;  %19603 = vst [vmem:[#allocation228_spill] sm:$0xff] %v17310_v25  ;;  %v10219_v26 = vrot.slane %v10218_v16, 4  ;;  %v10241_v20 = vrot.slane %v10239_v38, 4  ;;  %v17314_v18 = vadd.f32 %v17258_v51, %v19604_v19  ;;  %v17322_v19 = vpop.f32.mrf.mxu0 }
 0x33b   :  { %19601 = vst [vmem:[#allocation229_spill] sm:$0xff] %v17306_v58  ;;  %v10247_v43 = vrot.slane %v10245_v29, 5  ;;  %13503 = vmatpush3.bf16.msra.mxu1 %v13835_v62  ;;  %v10233_v56 = vrot.slane %v10232_v39, 4  ;;  %v6883_v41 = vshrl.u32 %v6723_v10, 16  ;;  %v6886_v15 = vshll.u32 %v6723_v10, 16  ;;  %v17316_v30 = vpop.f32.mrf.mxu1  ;;  %19606 = vst [vmem:[#allocation49_spill] sm:$0xff] %v17322_v19 }
 0x33c   :  { %19605 = vst [vmem:[#allocation39_spill] sm:$0xff] %v17314_v18  ;;  %v6892_v36 = vshll.u32 %v6724_v9, 16  ;;  %13504 = vmatprep.subr.bf16.mxu1 %v13836_v31  ;;  %v10224_v61 = vsel %vm14499_vm6, %v10219_v26, %v10223_v0  ;;  %v10242_v63 = vor.u32 %v10241_v20, %v10237_v1  ;;  %v6896_v16 = vshrl.u32 %v6724_v9, 16  ;;  %v6726_v29 = vld [vmem:[#allocation2 + $0x54] sm:$0xf] }
 0x33d   :  { %v6902_v38 = vshll.u32 %v6725_v48, 16  ;;  %v12272_v24 = vcombine.low %v10214_v22, %v10224_v61  ;;  %v10238_v51 = vsel %vm14499_vm6, %v10233_v56, %v10237_v1  ;;  %v6885_v62 = vrot.slane %v6883_v41, 4  ;;  %v6728_v10 = vld [vmem:[#allocation2 + $0x5c] sm:$0x1]  ;;  %v17324_v25 = vpop.f32.mrf.mxu1  ;;  %v10090_v61 = vld [vmem:[#allocation2 + $0x54] sm:$0xf] }
 0x33e   :  { %v6888_v39 = vrot.slane %v6886_v15, 5  ;;  %v10243_v18 = vrot.slane %v10242_v63, 4  ;;  %v6894_v58 = vrot.slane %v6892_v36, 5  ;;  %v6898_v42 = vrot.slane %v6896_v16, 4 }
 0x33f   :  { %v6904_v0 = vrot.slane %v6902_v38, 5  ;;  %13505 = vmatpush3.bf16.msra.mxu1 %v13836_v31  ;;  %13597 = vmatmul.mubr.bf16.vlgmr.msra.gmra.mxu0 %v12272_v24  ;;  %v6907_v48 = vshrl.u32 %v6726_v29, 16  ;;  %v6910_v26 = vshll.u32 %v6726_v29, 16  ;;  %v6916_v22 = vshll.u32 %v6727_v46, 16  ;;  %v17326_v20 = vpop.f32.mrf.mxu1  ;;  %v10091_v31 = vld [vmem:[#allocation2 + $0x58] sm:$0xf]  ;;  %v17330_v24 = vpop.f32.mrf.mxu0 }
 0x340   :  { %v6889_v9 = vor.u32 %v6888_v39, %v6885_v62  ;;  %13506 = vmatprep.subr.bf16.mxu1 %v13837_v34  ;;  %v10248_v1 = vsel %vm14499_vm6, %v10243_v18, %v10247_v43  ;;  %v6899_v56 = vor.u32 %v6898_v42, %v6894_v58  ;;  %v6920_v41 = vshrl.u32 %v6727_v46, 16  ;;  %19607 = vst [vmem:[#allocation231_spill] sm:$0xff] %v17330_v24  ;;  %v13838_v29 = vld [vmem:[#allocation4 + $0x1d8] sm:$0xff]   ;;  %v19609_v43 = vld [vmem:[#allocation122_spill] sm:$0xff] }
 0x341   :  { %v6926_v15 = vshll.u32 %v6728_v10, 16  ;;  %v12273_v63 = vcombine.low %v10238_v51, %v10248_v1  ;;  %v6909_v16 = vrot.slane %v6907_v48, 4  ;;  %v6912_v38 = vrot.slane %v6910_v26, 5  ;;  %v17332_v62 = vpop.f32.mrf.mxu1  ;;  %v10092_v51 = vld [vmem:[#allocation2 + $0x5c] sm:$0x1] }
 0x342   :  { %v6890_v36 = vrot.slane %v6889_v9, 4  ;;  %19608 = vst [vmem:[#allocation27_spill] sm:$0xff] %v17332_v62  ;;  %v6900_v39 = vrot.slane %v6899_v56, 4  ;;  %v6918_v19 = vrot.slane %v6916_v22, 5  ;;  %v6922_v4 = vrot.slane %v6920_v41, 4 }
 0x343   :  { %v6928_v14 = vrot.slane %v6926_v15, 5  ;;  %13507 = vmatpush3.bf16.msra.mxu1 %v13837_v34  ;;  %13600 = vmatprep.mubr.bf16.mxu0 %v12273_v63  ;;  %v6913_v46 = vor.u32 %v6912_v38, %v6909_v16  ;;  %v17338_v18 = vadd.f32 %v17262_v3, %v19609_v43  ;;  %v10250_v10 = vshrl.u32 %v10090_v61, 16  ;;  %v17340_v9 = vpop.f32.mrf.mxu1  ;;  %v10093_v1 = vld [vmem:[#allocation2 + $0x64] sm:$0xf]  ;;  %v10094_v63 = vld [vmem:[#allocation2 + $0x68] sm:$0xf] }
 0x344   :  { %v6895_v42 = vsel %vm14499_vm6, %v6890_v36, %v6894_v58  ;;  %13508 = vmatprep.subr.bf16.mxu1 %v13838_v29  ;;  %v6905_v48 = vsel %vm14499_vm6, %v6900_v39, %v6904_v0  ;;  %v6923_v26 = vor.u32 %v6922_v4, %v6918_v19  ;;  %v10253_v22 = vshll.u32 %v10090_v61, 16  ;;  %v17344_v36 = vpop.f32.mrf.mxu0  ;;  %v10095_v61 = vld [vmem:[#allocation2 + $0x6c] sm:$0x1]  ;;  %v6729_v24 = vld [vmem:[#allocation2 + $0x64] sm:$0xf] }
 0x345   :  { %19610 = vst [vmem:[#allocation97_spill] sm:$0xff] %v17338_v18  ;;  %v10259_v34 = vshll.u32 %v10091_v31, 16  ;;  %v12122_v56 = vcombine.low %v6895_v42, %v6905_v48  ;;  %v6914_v41 = vrot.slane %v6913_v46, 4  ;;  %v10252_v58 = vrot.slane %v10250_v10, 4  ;;  %19611 = vst [vmem:[#allocation177_spill] sm:$0xff] %v17344_v36  ;;  %v17346_v3 = vpop.f32.mrf.mxu1  ;;  %v19614_v18 = vld [vmem:[#allocation55_spill] sm:$0xff] }
 0x346   :  { %v10263_v15 = vshrl.u32 %v10091_v31, 16  ;;  %v6924_v16 = vrot.slane %v6923_v26, 4  ;;  %v10255_v38 = vrot.slane %v10253_v22, 5  ;;  %v10269_v62 = vshll.u32 %v10092_v51, 16 }
 0x347   :  { %v10261_v43 = vrot.slane %v10259_v34, 5  ;;  %13509 = vmatpush3.bf16.msra.mxu1 %v13838_v29  ;;  %v6919_v4 = vsel %vm14499_vm6, %v6914_v41, %v6918_v19  ;;  %v10274_v39 = vshrl.u32 %v10093_v1, 16  ;;  %v10277_v42 = vshll.u32 %v10093_v1, 16  ;;  %v17350_v46 = vpop.f32.mrf.mxu1 }
 0x348   :  { %13361 = vmatmul.mubr.bf16.gmra.mxu1 %v12122_v56  ;;  %v10265_v0 = vrot.slane %v10263_v15, 4  ;;  %v6929_v31 = vsel %vm14499_vm6, %v6924_v16, %v6928_v14  ;;  %v10256_v10 = vor.u32 %v10255_v38, %v10252_v58  ;;  %v10271_v48 = vrot.slane %v10269_v62, 5  ;;  %v17354_v56 = vpop.f32.mrf.mxu0  ;;  %v19615_v58 = vld [vmem:[#allocation104_spill] sm:$0xff]  ;;  %v6730_v38 = vld [vmem:[#allocation2 + $0x68] sm:$0xf] }
 0x349   :  { %v10283_v26 = vshll.u32 %v10094_v63, 16  ;;  %v12123_v22 = vcombine.low %v6919_v4, %v6929_v31  ;;  %v10276_v51 = vrot.slane %v10274_v39, 4  ;;  %v10279_v29 = vrot.slane %v10277_v42, 5  ;;  %19612 = vst [vmem:[#allocation109_spill] sm:$0xff] %v17354_v56  ;;  %v17356_v36 = vpop.f32.mrf.mxu1 }
 0x34a   :  { %v10266_v34 = vor.u32 %v10265_v0, %v10261_v43  ;;  %19613 = vst [vmem:[#allocation238_spill] sm:$0xff] %v17356_v36  ;;  %v10257_v19 = vrot.slane %v10256_v10, 4  ;;  %v10287_v15 = vshrl.u32 %v10094_v63, 16  ;;  %v10293_v1 = vshll.u32 %v10095_v61, 16  ;;  %v6732_v10 = vld [vmem:[#allocation2 + $0x74] sm:$0xf] }
 0x34b   :  { %v10285_v41 = vrot.slane %v10283_v26, 5  ;;  %v17360_v57 = vadd.f32 %v19614_v18, %v16516_v11  ;;  %13364 = vmatprep.mubr.bf16.mxu1 %v12123_v22  ;;  %v10280_v62 = vor.u32 %v10279_v29, %v10276_v51  ;;  %v17364_v16 = vadd.f32 %v17268_v52, %v19615_v58  ;;  %v17366_v4 = vpop.f32.mrf.mxu1  ;;  %v6731_v11 = vld [vmem:[#allocation2 + $0x6c] sm:$0x1]  ;;  %v17376_v26 = vpop.f32.mrf.mxu0 }
 0x34c   :  { %v10267_v14 = vrot.slane %v10266_v34, 4  ;;  %v10262_v0 = vsel %vm14499_vm6, %v10257_v19, %v10261_v43  ;;  %v10289_v63 = vrot.slane %v10287_v15, 4  ;;  %v10295_v61 = vrot.slane %v10293_v1, 5  ;;  %19618 = vst [vmem:[#allocation95_spill] sm:$0xff] %v17376_v26  ;;  %v6733_v19 = vld [vmem:[#allocation2 + $0x78] sm:$0xf] }
 0x34d   :  { %19616 = vst [vmem:[#allocation167_spill] sm:$0xff] %v17364_v16  ;;  %v17372_v39 = vadd.f32 %v17284_v23, %v16869_v47  ;;  %v10281_v42 = vrot.slane %v10280_v62, 4  ;;  %v6931_v31 = vshrl.u32 %v6729_v24, 16  ;;  %v6934_v52 = vshll.u32 %v6729_v24, 16  ;;  %v17378_v22 = vpop.f32.mrf.mxu1 }
 0x34e   :  { %v10272_v18 = vsel %vm14499_vm6, %v10267_v14, %v10271_v48  ;;  %v10290_v43 = vor.u32 %v10289_v63, %v10285_v41  ;;  %v6940_v51 = vshll.u32 %v6730_v38, 16  ;;  %v6944_v29 = vshrl.u32 %v6730_v38, 16  ;;  %v17384_v38 = vpop.f32.mrf.mxu0 }
 0x34f   :  { %19617 = vst [vmem:[#allocation187_spill] sm:$0xff] %v17372_v39  ;;  %v12274_v34 = vcombine.low %v10262_v0, %v10272_v18  ;;  %v10286_v47 = vsel %vm14499_vm6, %v10281_v42, %v10285_v41  ;;  %v6933_v23 = vrot.slane %v6931_v31, 4  ;;  %v6936_v15 = vrot.slane %v6934_v52, 5  ;;  %v17382_v48 = vpop.f32.mrf.mxu1  ;;  %v6734_v0 = vld [vmem:[#allocation2 + $0x7c] sm:$0x1]  ;;  %19620 = vst [vmem:[#allocation30_spill] sm:$0xff] %v17384_v38 }
 0x350   :  { %v6950_v1 = vshll.u32 %v6731_v11, 16  ;;  %19619 = vst [vmem:[#allocation240_spill] sm:$0xff] %v17382_v48  ;;  %v10291_v24 = vrot.slane %v10290_v43, 4  ;;  %v6942_v14 = vrot.slane %v6940_v51, 5  ;;  %v6946_v62 = vrot.slane %v6944_v29, 4 }
 0x351   :  { %13601 = vmatmul.mubr.bf16.gmra.mxu0 %v12274_v34  ;;  %v6955_v58 = vshrl.u32 %v6732_v10, 16  ;;  %v6937_v36 = vor.u32 %v6936_v15, %v6933_v23  ;;  %v6958_v63 = vshll.u32 %v6732_v10, 16  ;;  %v6964_v18 = vshll.u32 %v6733_v19, 16  ;;  %v17386_v56 = vpop.f32.mrf.mxu1  ;;  %v10096_v52 = vld [vmem:[#allocation2 + $0x74] sm:$0xf] }
 0x352   :  { %v6952_v26 = vrot.slane %v6950_v1, 5  ;;  %19621 = vst [vmem:[#allocation41_spill] sm:$0xff] %v17386_v56  ;;  %v10296_v41 = vsel %vm14499_vm6, %v10291_v24, %v10295_v61  ;;  %v6947_v11 = vor.u32 %v6946_v62, %v6942_v14  ;;  %v6968_v31 = vshrl.u32 %v6733_v19, 16  ;;  %v10097_v23 = vld [vmem:[#allocation2 + $0x78] sm:$0xf]  ;;  %v17398_v62 = vpop.f32.mrf.mxu0 }
 0x353   :  { %v6957_v42 = vrot.slane %v6955_v58, 4  ;;  %v12275_v34 = vcombine.low %v10286_v47, %v10296_v41  ;;  %v6938_v43 = vrot.slane %v6937_v36, 4  ;;  %v6960_v51 = vrot.slane %v6958_v63, 5  ;;  %v17390_v15 = vpop.f32.mrf.mxu1  ;;  %v10098_v24 = vld [vmem:[#allocation2 + $0x7c] sm:$0x1]  ;;  %19623 = vst [vmem:[#allocation12_spill] sm:$0xff] %v17398_v62 }
 0x354   :  { %v6966_v29 = vrot.slane %v6964_v18, 5  ;;  %v6948_v10 = vrot.slane %v6947_v11, 4  ;;  %v6970_v1 = vrot.slane %v6968_v31, 4  ;;  %v6974_v48 = vshll.u32 %v6734_v0, 16  ;;  %v17408_v38 = vpop.f32.mrf.mxu0 }
 0x355   :  { %v17394_v56 = vadd.f32 %v17290_v50, %v16879_v49  ;;  %13604 = vmatprep.mubr.bf16.mxu0 %v12275_v34  ;;  %v6943_v61 = vsel %vm14499_vm6, %v6938_v43, %v6942_v14  ;;  %v6961_v19 = vor.u32 %v6960_v51, %v6957_v42  ;;  %v10298_v47 = vshrl.u32 %v10096_v52, 16  ;;  %v17400_v58 = vpop.f32.mrf.mxu1  ;;  %v10099_v49 = vld [vmem:[#allocation2 + $0x84] sm:$0xf]  ;;  %v10100_v14 = vld [vmem:[#allocation2 + $0x88] sm:$0xf]  ;;  %19626 = vst [vmem:[#allocation98_spill] sm:$0xff] %v17408_v38 }
 0x356   :  { %v10301_v36 = vshll.u32 %v10096_v52, 16  ;;  %19624 = vst [vmem:[#allocation106_spill] sm:$0xff] %v17400_v58  ;;  %v6953_v63 = vsel %vm14499_vm6, %v6948_v10, %v6952_v26  ;;  %v6971_v0 = vor.u32 %v6970_v1, %v6966_v29  ;;  %v6976_v18 = vrot.slane %v6974_v48, 5  ;;  %v10101_v10 = vld [vmem:[#allocation2 + $0x8c] sm:$0x1] }
 0x357   :  { %19622 = vst [vmem:[#allocation50_spill] sm:$0xff] %v17394_v56  ;;  %v10307_v41 = vshll.u32 %v10097_v23, 16  ;;  %v12124_v50 = vcombine.low %v6943_v61, %v6953_v63  ;;  %v6962_v11 = vrot.slane %v6961_v19, 4  ;;  %v10300_v31 = vrot.slane %v10298_v47, 4  ;;  %v17404_v42 = vpop.f32.mrf.mxu1  ;;  %v19629_v38 = vld [vmem:[#allocation235_spill] sm:$0xff] }
 0x358   :  { %v10303_v34 = vrot.slane %v10301_v36, 5  ;;  %19625 = vst [vmem:[#allocation188_spill] sm:$0xff] %v17404_v42  ;;  %v6972_v43 = vrot.slane %v6971_v0, 4  ;;  %v10311_v51 = vshrl.u32 %v10097_v23, 16  ;;  %v10317_v62 = vshll.u32 %v10098_v24, 16 }
 0x359   :  { %v10309_v52 = vrot.slane %v10307_v41, 5  ;;  %13365 = vmatmul.mubr.bf16.gmra.mxu1 %v12124_v50  ;;  %v6967_v58 = vsel %vm14499_vm6, %v6962_v11, %v6966_v29  ;;  %v10322_v48 = vshrl.u32 %v10099_v49, 16  ;;  %v10325_v1 = vshll.u32 %v10099_v49, 16  ;;  %v17410_v61 = vpop.f32.mrf.mxu1  ;;  %v6735_v50 = vld [vmem:[#allocation2 + $0x84] sm:$0xf] }
 0x35a   :  { %v10304_v26 = vor.u32 %v10303_v34, %v10300_v31  ;;  %19627 = vst [vmem:[#allocation94_spill] sm:$0xff] %v17410_v61  ;;  %v6977_v19 = vsel %vm14499_vm6, %v6972_v43, %v6976_v18  ;;  %v10313_v47 = vrot.slane %v10311_v51, 4  ;;  %v10319_v36 = vrot.slane %v10317_v62, 5  ;;  %v6736_v42 = vld [vmem:[#allocation2 + $0x88] sm:$0xf]  ;;  %v19630_v61 = vld [vmem:[#allocation57_spill] sm:$0xff]  ;;  %v17426_v51 = vpop.f32.mrf.mxu0 }
 0x35b   :  { %v10331_v63 = vshll.u32 %v10100_v14, 16  ;;  %v12125_v23 = vcombine.low %v6967_v58, %v6977_v19  ;;  %v10324_v0 = vrot.slane %v10322_v48, 4  ;;  %v10327_v41 = vrot.slane %v10325_v1, 5  ;;  %v17414_v29 = vpop.f32.mrf.mxu1  ;;  %v6737_v43 = vld [vmem:[#allocation2 + $0x8c] sm:$0x1]  ;;  %19632 = vst [vmem:[#allocation33_spill] sm:$0xff] %v17426_v51 }
 0x35c   :  { %v10305_v24 = vrot.slane %v10304_v26, 4  ;;  %19628 = vst [vmem:[#allocation114_spill] sm:$0xff] %v17414_v29  ;;  %v10314_v11 = vor.u32 %v10313_v47, %v10309_v52  ;;  %v10335_v49 = vshrl.u32 %v10100_v14, 16  ;;  %v10341_v34 = vshll.u32 %v10101_v10, 16 }
 0x35d   :  { %v10333_v31 = vrot.slane %v10331_v63, 5  ;;  %v17418_v56 = vadd.f32 %v19630_v61, %v19629_v38  ;;  %13368 = vmatprep.mubr.bf16.mxu1 %v12125_v23  ;;  %v10328_v58 = vor.u32 %v10327_v41, %v10324_v0  ;;  %v17424_v18 = vadd.f32 %v17296_v37, %v17056_v6  ;;  %v17428_v26 = vpop.f32.mrf.mxu1  ;;  %v6739_v0 = vld [vmem:[#allocation2 + $0x98] sm:$0xf] }
 0x35e   :  { %v10310_v62 = vsel %vm14499_vm6, %v10305_v24, %v10309_v52  ;;  %19633 = vst [vmem:[#allocation195_spill] sm:$0xff] %v17428_v26  ;;  %v10315_v14 = vrot.slane %v10314_v11, 4  ;;  %v10337_v10 = vrot.slane %v10335_v49, 4  ;;  %v10343_v48 = vrot.slane %v10341_v34, 5  ;;  %v6738_v24 = vld [vmem:[#allocation2 + $0x94] sm:$0xf]  ;;  %v17440_v34 = vpop.f32.mrf.mxu0 }
 0x35f   :  { %19631 = vst [vmem:[#allocation51_spill] sm:$0xff] %v17424_v18  ;;  %v17432_v38 = vadd.f32 %v17316_v30, %v17109_v40  ;;  %v10329_v1 = vrot.slane %v10328_v58, 4  ;;  %v6979_v61 = vshrl.u32 %v6735_v50, 16  ;;  %v6982_v52 = vshll.u32 %v6735_v50, 16  ;;  %v17434_v47 = vpop.f32.mrf.mxu1  ;;  %v6740_v49 = vld [vmem:[#allocation2 + $0x9c] sm:$0x1] }
 0x360   :  { %v6988_v19 = vshll.u32 %v6736_v42, 16  ;;  %19635 = vst [vmem:[#allocation34_spill] sm:$0xff] %v17434_v47  ;;  %v10320_v6 = vsel %vm14499_vm6, %v10315_v14, %v10319_v36  ;;  %v10338_v37 = vor.u32 %v10337_v10, %v10333_v31  ;;  %v6992_v63 = vshrl.u32 %v6736_v42, 16  ;;  %19636 = vst [vmem:[#allocation11_spill] sm:$0xff] %v17440_v34  ;;  %v13839_v34 = vld [vmem:[#allocation4 + $0x1d0] sm:$0xff]  }
 0x361   :  { %19634 = vst [vmem:[#allocation189_spill] sm:$0xff] %v17432_v38  ;;  %v6998_v23 = vshll.u32 %v6737_v43, 16  ;;  %v12276_v41 = vcombine.low %v10310_v62, %v10320_v6  ;;  %v10334_v11 = vsel %vm14499_vm6, %v10329_v1, %v10333_v31  ;;  %v6981_v40 = vrot.slane %v6979_v61, 4  ;;  %v17442_v50 = vpop.f32.mrf.mxu1  ;;  %v10102_v6 = vld [vmem:[#allocation2 + $0x94] sm:$0xf]  ;;  %13510 = vmatprep.subr.bf16.mxu1 %v13839_v34 }
 0x362   :  { %v6984_v30 = vrot.slane %v6982_v52, 5  ;;  %19637 = vst [vmem:[#allocation119_spill] sm:$0xff] %v17442_v50  ;;  %v10339_v58 = vrot.slane %v10338_v37, 4  ;;  %v6990_v47 = vrot.slane %v6988_v19, 5  ;;  %v6994_v26 = vrot.slane %v6992_v63, 4  ;;  %13511 = vmatpush3.bf16.msra.mxu1 %v13839_v34 }
 0x363   :  { %v7000_v36 = vrot.slane %v6998_v23, 5  ;;  %13605 = vmatmul.mubr.bf16.gmra.mxu0 %v12276_v41  ;;  %v7003_v43 = vshrl.u32 %v6738_v24, 16  ;;  %v7006_v14 = vshll.u32 %v6738_v24, 16  ;;  %v7012_v10 = vshll.u32 %v6739_v0, 16  ;;  %v17444_v62 = vpop.f32.mrf.mxu1  ;;  %v10103_v63 = vld [vmem:[#allocation2 + $0x98] sm:$0xf]  ;;  %v17448_v23 = vpop.f32.mrf.mxu0 }
 0x364   :  { %v6985_v42 = vor.u32 %v6984_v30, %v6981_v40  ;;  %19638 = vst [vmem:[#allocation53_spill] sm:$0xff] %v17444_v62  ;;  %v10344_v31 = vsel %vm14499_vm6, %v10339_v58, %v10343_v48  ;;  %v6995_v1 = vor.u32 %v6994_v26, %v6990_v47  ;;  %v7016_v61 = vshrl.u32 %v6739_v0, 16  ;;  %19639 = vst [vmem:[#allocation196_spill] sm:$0xff] %v17448_v23  ;;  %v6771_v38 = vld [vmem:[#allocation2 + $0x164] sm:$0xf] }
 0x365   :  { %v7022_v52 = vshll.u32 %v6740_v49, 16  ;;  %v12277_v29 = vcombine.low %v10334_v11, %v10344_v31  ;;  %v7005_v37 = vrot.slane %v7003_v43, 4  ;;  %v7008_v19 = vrot.slane %v7006_v14, 5  ;;  %v17450_v41 = vpop.f32.mrf.mxu1  ;;  %v10104_v11 = vld [vmem:[#allocation2 + $0x9c] sm:$0x1] }
 0x366   :  { %v6986_v50 = vrot.slane %v6985_v42, 4  ;;  %19640 = vst [vmem:[#allocation115_spill] sm:$0xff] %v17450_v41  ;;  %v6996_v24 = vrot.slane %v6995_v1, 4  ;;  %v7014_v40 = vrot.slane %v7012_v10, 5  ;;  %v7018_v30 = vrot.slane %v7016_v61, 4 }
 0x367   :  { %v7024_v62 = vrot.slane %v7022_v52, 5  ;;  %13608 = vmatprep.mubr.bf16.mxu0 %v12277_v29  ;;  %v7009_v48 = vor.u32 %v7008_v19, %v7005_v37  ;;  %v17456_v0 = vadd.f32 %v17324_v25, %v17158_v5  ;;  %v10346_v49 = vshrl.u32 %v10102_v6, 16  ;;  %v17458_v58 = vpop.f32.mrf.mxu1  ;;  %v10105_v31 = vld [vmem:[#allocation2 + $0xa4] sm:$0xf]  ;;  %v10106_v61 = vld [vmem:[#allocation2 + $0xa8] sm:$0xf]  ;;  %v17462_v52 = vpop.f32.mrf.mxu0 }
 0x368   :  { %v6991_v26 = vsel %vm14499_vm6, %v6986_v50, %v6990_v47  ;;  %19642 = vst [vmem:[#allocation54_spill] sm:$0xff] %v17458_v58  ;;  %v7001_v42 = vsel %vm14499_vm6, %v6996_v24, %v7000_v36  ;;  %v7019_v43 = vor.u32 %v7018_v30, %v7014_v40  ;;  %v10349_v14 = vshll.u32 %v10102_v6, 16  ;;  %19643 = vst [vmem:[#allocation35_spill] sm:$0xff] %v17462_v52  ;;  %v10107_v24 = vld [vmem:[#allocation2 + $0xac] sm:$0x1]  ;;  %v19648_v52 = vld [vmem:[#allocation58_spill] sm:$0xff] }
 0x369   :  { %19641 = vst [vmem:[#allocation100_spill] sm:$0xff] %v17456_v0  ;;  %v10355_v10 = vshll.u32 %v10103_v63, 16  ;;  %v12126_v29 = vcombine.low %v6991_v26, %v7001_v42  ;;  %v7010_v1 = vrot.slane %v7009_v48, 4  ;;  %v10348_v47 = vrot.slane %v10346_v49, 4  ;;  %v17464_v5 = vpop.f32.mrf.mxu1  ;;  %v6741_v41 = vld [vmem:[#allocation2 + $0xa4] sm:$0xf] }
 0x36a   :  { %v10359_v50 = vshrl.u32 %v10103_v63, 16  ;;  %19644 = vst [vmem:[#allocation204_spill] sm:$0xff] %v17464_v5  ;;  %v7020_v25 = vrot.slane %v7019_v43, 4  ;;  %v10351_v37 = vrot.slane %v10349_v14, 5  ;;  %v10365_v58 = vshll.u32 %v10104_v11, 16 }
 0x36b   :  { %v10357_v19 = vrot.slane %v10355_v10, 5  ;;  %13369 = vmatmul.mubr.bf16.gmra.mxu1 %v12126_v29  ;;  %v7015_v36 = vsel %vm14499_vm6, %v7010_v1, %v7014_v40  ;;  %v10370_v30 = vshrl.u32 %v10105_v31, 16  ;;  %v10373_v26 = vshll.u32 %v10105_v31, 16  ;;  %v17470_v10 = vpop.f32.mrf.mxu0  ;;  %v17472_v11 = vpop.f32.mrf.mxu1  ;;  %v19647_v31 = vld [vmem:[#allocation237_spill] sm:$0xff] }
 0x36c   :  { %v10361_v6 = vrot.slane %v10359_v50, 4  ;;  %v7025_v63 = vsel %vm14499_vm6, %v7020_v25, %v7024_v62  ;;  %v10352_v48 = vor.u32 %v10351_v37, %v10348_v47  ;;  %v10367_v49 = vrot.slane %v10365_v58, 5  ;;  %19645 = vst [vmem:[#allocation122_spill] sm:$0xff] %v17470_v10  ;;  %19646 = vst [vmem:[#allocation55_spill] sm:$0xff] %v17472_v11  ;;  %v6742_v25 = vld [vmem:[#allocation2 + $0xa8] sm:$0xf] }
 0x36d   :  { %v10379_v42 = vshll.u32 %v10106_v61, 16  ;;  %v12127_v5 = vcombine.low %v7015_v36, %v7025_v63  ;;  %v10372_v43 = vrot.slane %v10370_v30, 4  ;;  %v10375_v14 = vrot.slane %v10373_v26, 5  ;;  %v6744_v63 = vld [vmem:[#allocation2 + $0xb4] sm:$0xf] }
 0x36e   :  { %v10362_v34 = vor.u32 %v10361_v6, %v10357_v19  ;;  %v10353_v29 = vrot.slane %v10352_v48, 4  ;;  %v10383_v1 = vshrl.u32 %v10106_v61, 16  ;;  %v10389_v50 = vshll.u32 %v10107_v24, 16  ;;  %v6743_v24 = vld [vmem:[#allocation2 + $0xac] sm:$0x1] }
 0x36f   :  { %v10381_v40 = vrot.slane %v10379_v42, 5  ;;  %v17476_v23 = vadd.f32 %v19648_v52, %v19647_v31  ;;  %13372 = vmatprep.mubr.bf16.mxu1 %v12127_v5  ;;  %v10376_v58 = vor.u32 %v10375_v14, %v10372_v43  ;;  %v17480_v47 = vadd.f32 %v17326_v20, %v17190_v8  ;;  %v17490_v8 = vpop.f32.mrf.mxu0  ;;  %v17492_v20 = vpop.f32.mrf.mxu1  ;;  %v6745_v43 = vld [vmem:[#allocation2 + $0xb8] sm:$0xf] }
 0x370   :  { %v10363_v62 = vrot.slane %v10362_v34, 4  ;;  %v10358_v37 = vsel %vm14499_vm6, %v10353_v29, %v10357_v19  ;;  %v10385_v36 = vrot.slane %v10383_v1, 4  ;;  %v10391_v6 = vrot.slane %v10389_v50, 5  ;;  %19651 = vst [vmem:[#allocation57_spill] sm:$0xff] %v17490_v8  ;;  %19652 = vst [vmem:[#allocation237_spill] sm:$0xff] %v17492_v20 }
 0x371   :  { %19649 = vst [vmem:[#allocation104_spill] sm:$0xff] %v17480_v47  ;;  %v17486_v61 = vadd.f32 %v17340_v9, %v17242_v44  ;;  %v10377_v5 = vrot.slane %v10376_v58, 4  ;;  %v7027_v30 = vshrl.u32 %v6741_v41, 16  ;;  %v7030_v26 = vshll.u32 %v6741_v41, 16  ;;  %v6746_v58 = vld [vmem:[#allocation2 + $0xbc] sm:$0x1] }
 0x372   :  { %v10368_v52 = vsel %vm14499_vm6, %v10363_v62, %v10367_v49  ;;  %v10386_v19 = vor.u32 %v10385_v36, %v10381_v40  ;;  %v7036_v42 = vshll.u32 %v6742_v25, 16  ;;  %v7040_v34 = vshrl.u32 %v6742_v25, 16  ;;  %v17496_v36 = vpop.f32.mrf.mxu0  ;;  %v17498_v25 = vpop.f32.mrf.mxu1 }
 0x373   :  { %19650 = vst [vmem:[#allocation235_spill] sm:$0xff] %v17486_v61  ;;  %v12278_v48 = vcombine.low %v10358_v37, %v10368_v52  ;;  %v10382_v44 = vsel %vm14499_vm6, %v10377_v5, %v10381_v40  ;;  %v7029_v9 = vrot.slane %v7027_v30, 4  ;;  %v7032_v14 = vrot.slane %v7030_v26, 5  ;;  %19653 = vst [vmem:[#allocation58_spill] sm:$0xff] %v17496_v36  ;;  %v10108_v30 = vld [vmem:[#allocation2 + $0xb4] sm:$0xf] }
 0x374   :  { %v7046_v29 = vshll.u32 %v6743_v24, 16  ;;  %v10387_v49 = vrot.slane %v10386_v19, 4  ;;  %v7038_v1 = vrot.slane %v7036_v42, 5  ;;  %v7042_v41 = vrot.slane %v7040_v34, 4  ;;  %v10109_v34 = vld [vmem:[#allocation2 + $0xb8] sm:$0xf] }
 0x375   :  { %13609 = vmatmul.mubr.bf16.gmra.mxu0 %v12278_v48  ;;  %v7051_v50 = vshrl.u32 %v6744_v63, 16  ;;  %v7033_v31 = vor.u32 %v7032_v14, %v7029_v9  ;;  %v7054_v20 = vshll.u32 %v6744_v63, 16  ;;  %v7060_v37 = vshll.u32 %v6745_v43, 16 }
 0x376   :  { %v7048_v62 = vrot.slane %v7046_v29, 5  ;;  %v10392_v40 = vsel %vm14499_vm6, %v10387_v49, %v10391_v6  ;;  %v7043_v52 = vor.u32 %v7042_v41, %v7038_v1  ;;  %v7064_v24 = vshrl.u32 %v6745_v43, 16  ;;  %v10110_v41 = vld [vmem:[#allocation2 + $0xbc] sm:$0x1] }
 0x377   :  { %v7053_v5 = vrot.slane %v7051_v50, 4  ;;  %v12279_v26 = vcombine.low %v10382_v44, %v10392_v40  ;;  %v7034_v48 = vrot.slane %v7033_v31, 4  ;;  %v7056_v19 = vrot.slane %v7054_v20, 5  ;;  %v17508_v44 = vpop.f32.mrf.mxu0  ;;  %v17510_v20 = vpop.f32.mrf.mxu1 }
 0x378   :  { %v7062_v42 = vrot.slane %v7060_v37, 5  ;;  %v7044_v9 = vrot.slane %v7043_v52, 4  ;;  %v7066_v14 = vrot.slane %v7064_v24, 4  ;;  %v7070_v63 = vshll.u32 %v6746_v58, 16  ;;  %19655 = vst [vmem:[#allocation245_spill] sm:$0xff] %v17508_v44  ;;  %19656 = vst [vmem:[#allocation246_spill] sm:$0xff] %v17510_v20 }
 0x379   :  { %v17504_v29 = vadd.f32 %v17346_v3, %v17300_v17  ;;  %13612 = vmatprep.mubr.bf16.mxu0 %v12279_v26  ;;  %v7039_v6 = vsel %vm14499_vm6, %v7034_v48, %v7038_v1  ;;  %v7057_v49 = vor.u32 %v7056_v19, %v7053_v5  ;;  %v10394_v43 = vshrl.u32 %v10108_v30, 16  ;;  %v10111_v17 = vld [vmem:[#allocation2 + $0xc4] sm:$0xf]  ;;  %v10112_v1 = vld [vmem:[#allocation2 + $0xc8] sm:$0xf] }
 0x37a   :  { %v10397_v50 = vshll.u32 %v10108_v30, 16  ;;  %v7049_v31 = vsel %vm14499_vm6, %v7044_v9, %v7048_v62  ;;  %v7067_v58 = vor.u32 %v7066_v14, %v7062_v42  ;;  %v7072_v37 = vrot.slane %v7070_v63, 5  ;;  %v10113_v44 = vld [vmem:[#allocation2 + $0xcc] sm:$0x1]  ;;  %v17516_v14 = vpop.f32.mrf.mxu0  ;;  %v17518_v63 = vpop.f32.mrf.mxu1 }
 0x37b   :  { %19654 = vst [vmem:[#allocation244_spill] sm:$0xff] %v17504_v29  ;;  %v10403_v40 = vshll.u32 %v10109_v34, 16  ;;  %v12128_v3 = vcombine.low %v7039_v6, %v7049_v31  ;;  %v7058_v52 = vrot.slane %v7057_v49, 4  ;;  %v10396_v24 = vrot.slane %v10394_v43, 4  ;;  %19657 = vst [vmem:[#allocation247_spill] sm:$0xff] %v17516_v14 }
 0x37c   :  { %v10399_v26 = vrot.slane %v10397_v50, 5  ;;  %v7068_v5 = vrot.slane %v7067_v58, 4  ;;  %v10407_v19 = vshrl.u32 %v10109_v34, 16  ;;  %v10413_v30 = vshll.u32 %v10110_v41, 16  ;;  %v6770_v29 = vld [vmem:[#allocation2 + $0x15c] sm:$0x1] }
 0x37d   :  { %v10405_v48 = vrot.slane %v10403_v40, 5  ;;  %13373 = vmatmul.mubr.bf16.gmra.mxu1 %v12128_v3  ;;  %v7063_v20 = vsel %vm14499_vm6, %v7058_v52, %v7062_v42  ;;  %v10418_v62 = vshrl.u32 %v10111_v17, 16  ;;  %v10421_v9 = vshll.u32 %v10111_v17, 16  ;;  %v6747_v40 = vld [vmem:[#allocation2 + $0xc4] sm:$0xf] }
 0x37e   :  { %v10400_v11 = vor.u32 %v10399_v26, %v10396_v24  ;;  %v7073_v6 = vsel %vm14499_vm6, %v7068_v5, %v7072_v37  ;;  %v10409_v49 = vrot.slane %v10407_v19, 4  ;;  %v10415_v43 = vrot.slane %v10413_v30, 5  ;;  %v6748_v17 = vld [vmem:[#allocation2 + $0xc8] sm:$0xf]  ;;  %v19658_v26 = vld [vmem:[#allocation61_spill] sm:$0xff]  ;;  %v17532_v19 = vpop.f32.mrf.mxu0  ;;  %v17534_v30 = vpop.f32.mrf.mxu1 }
 0x37f   :  { %v10427_v50 = vshll.u32 %v10112_v1, 16  ;;  %v12129_v34 = vcombine.low %v7063_v20, %v7073_v6  ;;  %v10420_v31 = vrot.slane %v10418_v62, 4  ;;  %v10423_v58 = vrot.slane %v10421_v9, 5  ;;  %v6749_v20 = vld [vmem:[#allocation2 + $0xcc] sm:$0x1]  ;;  %19660 = vst [vmem:[#allocation248_spill] sm:$0xff] %v17532_v19 }
 0x380   :  { %v10401_v41 = vrot.slane %v10400_v11, 4  ;;  %v10410_v42 = vor.u32 %v10409_v49, %v10405_v48  ;;  %v10431_v52 = vshrl.u32 %v10112_v1, 16  ;;  %v10437_v24 = vshll.u32 %v10113_v44, 16 }
 0x381   :  { %v10429_v3 = vrot.slane %v10427_v50, 5  ;;  %v17524_v14 = vadd.f32 %v19658_v26, %v16702_v35  ;;  %13376 = vmatprep.mubr.bf16.mxu1 %v12129_v34  ;;  %v10424_v5 = vor.u32 %v10423_v58, %v10420_v31  ;;  %v17530_v11 = vadd.f32 %v17350_v46, %v17360_v57  ;;  %v6751_v31 = vld [vmem:[#allocation2 + $0xd8] sm:$0xf]  ;;  %v17546_v26 = vpop.f32.mrf.mxu1 }
 0x382   :  { %v10406_v37 = vsel %vm14499_vm6, %v10401_v41, %v10405_v48  ;;  %v10411_v44 = vrot.slane %v10410_v42, 4  ;;  %v10433_v1 = vrot.slane %v10431_v52, 4  ;;  %v10439_v62 = vrot.slane %v10437_v24, 5  ;;  %v6750_v41 = vld [vmem:[#allocation2 + $0xd4] sm:$0xf] }
 0x383   :  { %19659 = vst [vmem:[#allocation61_spill] sm:$0xff] %v17530_v11  ;;  %v17538_v35 = vadd.f32 %v17366_v4, %v17418_v56  ;;  %v10425_v9 = vrot.slane %v10424_v5, 4  ;;  %v7075_v6 = vshrl.u32 %v6747_v40, 16  ;;  %v7078_v48 = vshll.u32 %v6747_v40, 16  ;;  %v6752_v56 = vld [vmem:[#allocation2 + $0xdc] sm:$0x1]  ;;  %v17544_v4 = vpop.f32.mrf.mxu0 }
 0x384   :  { %v7084_v49 = vshll.u32 %v6748_v17, 16  ;;  %v10416_v57 = vsel %vm14499_vm6, %v10411_v44, %v10415_v43  ;;  %v10434_v46 = vor.u32 %v10433_v1, %v10429_v3  ;;  %v7088_v50 = vshrl.u32 %v6748_v17, 16  ;;  %19662 = vst [vmem:[#allocation250_spill] sm:$0xff] %v17544_v4  ;;  %v6765_v11 = vld [vmem:[#allocation2 + $0x144] sm:$0xf] }
 0x385   :  { %19661 = vst [vmem:[#allocation249_spill] sm:$0xff] %v17538_v35  ;;  %v7094_v34 = vshll.u32 %v6749_v20, 16  ;;  %v12280_v58 = vcombine.low %v10406_v37, %v10416_v57  ;;  %v10430_v42 = vsel %vm14499_vm6, %v10425_v9, %v10429_v3  ;;  %v7077_v52 = vrot.slane %v7075_v6, 4 }
 0x386   :  { %v7080_v24 = vrot.slane %v7078_v48, 5  ;;  %v10435_v40 = vrot.slane %v10434_v46, 4  ;;  %v7086_v5 = vrot.slane %v7084_v49, 5  ;;  %v7090_v19 = vrot.slane %v7088_v50, 4  ;;  %v10114_v48 = vld [vmem:[#allocation2 + $0xd4] sm:$0xf]  ;;  %v17550_v49 = vpop.f32.mrf.mxu0  ;;  %v17552_v50 = vpop.f32.mrf.mxu1 }
 0x387   :  { %v7096_v43 = vrot.slane %v7094_v34, 5  ;;  %13613 = vmatmul.mubr.bf16.gmra.mxu0 %v12280_v58  ;;  %v7099_v20 = vshrl.u32 %v6750_v41, 16  ;;  %v7102_v44 = vshll.u32 %v6750_v41, 16  ;;  %v7108_v1 = vshll.u32 %v6751_v31, 16  ;;  %v10115_v46 = vld [vmem:[#allocation2 + $0xd8] sm:$0xf] }
 0x388   :  { %v7081_v17 = vor.u32 %v7080_v24, %v7077_v52  ;;  %v10440_v37 = vsel %vm14499_vm6, %v10435_v40, %v10439_v62  ;;  %v7091_v3 = vor.u32 %v7090_v19, %v7086_v5  ;;  %v7112_v9 = vshrl.u32 %v6751_v31, 16  ;;  %19663 = vst [vmem:[#allocation251_spill] sm:$0xff] %v17550_v49  ;;  %19664 = vst [vmem:[#allocation252_spill] sm:$0xff] %v17552_v50 }
 0x389   :  { %v7118_v6 = vshll.u32 %v6752_v56, 16  ;;  %v12281_v57 = vcombine.low %v10430_v42, %v10440_v37  ;;  %v7101_v36 = vrot.slane %v7099_v20, 4  ;;  %v7104_v8 = vrot.slane %v7102_v44, 5  ;;  %v10116_v42 = vld [vmem:[#allocation2 + $0xdc] sm:$0x1] }
 0x38a   :  { %v7082_v4 = vrot.slane %v7081_v17, 4  ;;  %v7092_v34 = vrot.slane %v7091_v3, 4  ;;  %v7110_v58 = vrot.slane %v7108_v1, 5  ;;  %v7114_v41 = vrot.slane %v7112_v9, 4  ;;  %v10117_v44 = vld [vmem:[#allocation2 + $0xe4] sm:$0xf] }
 0x38b   :  { %v7120_v52 = vrot.slane %v7118_v6, 5  ;;  %13616 = vmatprep.mubr.bf16.mxu0 %v12281_v57  ;;  %v7105_v62 = vor.u32 %v7104_v8, %v7101_v36  ;;  %v17558_v31 = vadd.f32 %v17378_v22, %v17476_v23  ;;  %v10442_v24 = vshrl.u32 %v10114_v48, 16  ;;  %v13840_v1 = vld [vmem:[#allocation4 + $0x1c8] sm:$0xff]   ;;  %v17562_v8 = vpop.f32.mrf.mxu0  ;;  %v17564_v36 = vpop.f32.mrf.mxu1 }
 0x38c   :  { %v7087_v19 = vsel %vm14499_vm6, %v7082_v4, %v7086_v5  ;;  %v7097_v56 = vsel %vm14499_vm6, %v7092_v34, %v7096_v43  ;;  %v7115_v40 = vor.u32 %v7114_v41, %v7110_v58  ;;  %v10445_v17 = vshll.u32 %v10114_v48, 16  ;;  %v10118_v4 = vld [vmem:[#allocation2 + $0xe8] sm:$0xf]  ;;  %19666 = vst [vmem:[#allocation254_spill] sm:$0xff] %v17562_v8  ;;  %13512 = vmatprep.subr.bf16.mxu1 %v13840_v1  ;;  %v10119_v34 = vld [vmem:[#allocation2 + $0xec] sm:$0x1] }
 0x38d   :  { %19665 = vst [vmem:[#allocation253_spill] sm:$0xff] %v17558_v31  ;;  %v10451_v20 = vshll.u32 %v10115_v46, 16  ;;  %v12130_v37 = vcombine.low %v7087_v19, %v7097_v56  ;;  %v7106_v3 = vrot.slane %v7105_v62, 4  ;;  %v10444_v9 = vrot.slane %v10442_v24, 4  ;;  %13513 = vmatpush3.bf16.msra.mxu1 %v13840_v1  ;;  %v17570_v50 = vpop.f32.mrf.mxu0 }
 0x38e   :  { %v10455_v6 = vshrl.u32 %v10115_v46, 16  ;;  %v7116_v22 = vrot.slane %v7115_v40, 4  ;;  %v10447_v23 = vrot.slane %v10445_v17, 5  ;;  %v10461_v57 = vshll.u32 %v10116_v42, 16  ;;  %19667 = vst [vmem:[#allocation255_spill] sm:$0xff] %v17570_v50 }
 0x38f   :  { %v10453_v5 = vrot.slane %v10451_v20, 5  ;;  %13377 = vmatmul.mubr.bf16.gmra.mxu1 %v12130_v37  ;;  %v7111_v43 = vsel %vm14499_vm6, %v7106_v3, %v7110_v58  ;;  %v10466_v41 = vshrl.u32 %v10117_v44, 16  ;;  %v10469_v19 = vshll.u32 %v10117_v44, 16  ;;  %v17572_v37 = vpop.f32.mrf.mxu1  ;;  %v6753_v44 = vld [vmem:[#allocation2 + $0xe4] sm:$0xf] }
 0x390   :  { %v10457_v48 = vrot.slane %v10455_v6, 4  ;;  %v7121_v46 = vsel %vm14499_vm6, %v7116_v22, %v7120_v52  ;;  %v10448_v62 = vor.u32 %v10447_v23, %v10444_v9  ;;  %v10463_v24 = vrot.slane %v10461_v57, 5  ;;  %v6754_v9 = vld [vmem:[#allocation2 + $0xe8] sm:$0xf] }
 0x391   :  { %v10475_v56 = vshll.u32 %v10118_v4, 16  ;;  %v12131_v40 = vcombine.low %v7111_v43, %v7121_v46  ;;  %v10468_v20 = vrot.slane %v10466_v41, 4  ;;  %v10471_v42 = vrot.slane %v10469_v19, 5  ;;  %v6755_v43 = vld [vmem:[#allocation2 + $0xec] sm:$0x1]  ;;  %v17582_v46 = vpop.f32.mrf.mxu0 }
 0x392   :  { %v10458_v17 = vor.u32 %v10457_v48, %v10453_v5  ;;  %v10449_v58 = vrot.slane %v10448_v62, 4  ;;  %v10479_v6 = vshrl.u32 %v10118_v4, 16  ;;  %v10485_v8 = vshll.u32 %v10119_v34, 16  ;;  %v6756_v19 = vld [vmem:[#allocation2 + $0xf4] sm:$0xf]  ;;  %19669 = vst [vmem:[#allocation257_spill] sm:$0xff] %v17582_v46  ;;  %v17584_v62 = vpop.f32.mrf.mxu1 }
 0x393   :  { %v10477_v3 = vrot.slane %v10475_v56, 5  ;;  %13380 = vmatprep.mubr.bf16.mxu1 %v12131_v40  ;;  %v10472_v52 = vor.u32 %v10471_v42, %v10468_v20  ;;  %v17578_v57 = vadd.f32 %v17390_v15, %v17524_v14  ;;  %v7123_v34 = vshrl.u32 %v6753_v44, 16  ;;  %v6758_v46 = vld [vmem:[#allocation2 + $0xfc] sm:$0x1] }
 0x394   :  { %v10459_v49 = vrot.slane %v10458_v17, 4  ;;  %v10454_v1 = vsel %vm14499_vm6, %v10449_v58, %v10453_v5  ;;  %v10481_v22 = vrot.slane %v10479_v6, 4  ;;  %v10487_v23 = vrot.slane %v10485_v8, 5  ;;  %v6757_v17 = vld [vmem:[#allocation2 + $0xf8] sm:$0xf] }
 0x395   :  { %19668 = vst [vmem:[#allocation256_spill] sm:$0xff] %v17578_v57  ;;  %v10473_v4 = vrot.slane %v10472_v52, 4  ;;  %v7126_v41 = vshll.u32 %v6753_v44, 16  ;;  %v7132_v40 = vshll.u32 %v6754_v9, 16  ;;  %v7136_v8 = vshrl.u32 %v6754_v9, 16  ;;  %v17590_v9 = vpop.f32.mrf.mxu1 }
 0x396   :  { %v10464_v48 = vsel %vm14499_vm6, %v10459_v49, %v10463_v24  ;;  %v10482_v5 = vor.u32 %v10481_v22, %v10477_v3  ;;  %v7125_v14 = vrot.slane %v7123_v34, 4  ;;  %v7142_v42 = vshll.u32 %v6755_v43, 16  ;;  %v17588_v22 = vpop.f32.mrf.mxu0  ;;  %19671 = vst [vmem:[#allocation259_spill] sm:$0xff] %v17590_v9  ;;  %v10120_v34 = vld [vmem:[#allocation2 + $0xf4] sm:$0xf] }
 0x397   :  { %v12282_v56 = vcombine.low %v10454_v1, %v10464_v48  ;;  %v10478_v15 = vsel %vm14499_vm6, %v10473_v4, %v10477_v3  ;;  %v7128_v20 = vrot.slane %v7126_v41, 5  ;;  %v7134_v24 = vrot.slane %v7132_v40, 5  ;;  %19670 = vst [vmem:[#allocation258_spill] sm:$0xff] %v17588_v22  ;;  %v10122_v22 = vld [vmem:[#allocation2 + $0xfc] sm:$0x1] }
 0x398   :  { %v10483_v49 = vrot.slane %v10482_v5, 4  ;;  %v7138_v58 = vrot.slane %v7136_v8, 4  ;;  %v7147_v6 = vshrl.u32 %v6756_v19, 16  ;;  %v7144_v52 = vrot.slane %v7142_v42, 5  ;;  %v10121_v8 = vld [vmem:[#allocation2 + $0xf8] sm:$0xf] }
 0x399   :  { %13617 = vmatmul.mubr.bf16.gmra.mxu0 %v12282_v56  ;;  %v7129_v44 = vor.u32 %v7128_v20, %v7125_v14  ;;  %v7150_v50 = vshll.u32 %v6756_v19, 16  ;;  %v7156_v1 = vshll.u32 %v6757_v17, 16  ;;  %v7160_v43 = vshrl.u32 %v6757_v17, 16  ;;  %v17598_v17 = vpop.f32.mrf.mxu1 }
 0x39a   :  { %v10488_v3 = vsel %vm14499_vm6, %v10483_v49, %v10487_v23  ;;  %v7139_v48 = vor.u32 %v7138_v58, %v7134_v24  ;;  %v7149_v4 = vrot.slane %v7147_v6, 4  ;;  %v7166_v19 = vshll.u32 %v6758_v46, 16  ;;  %v17596_v49 = vpop.f32.mrf.mxu0 }
 0x39b   :  { %v12283_v41 = vcombine.low %v10478_v15, %v10488_v3  ;;  %v7130_v56 = vrot.slane %v7129_v44, 4  ;;  %v7152_v5 = vrot.slane %v7150_v50, 5  ;;  %v7158_v40 = vrot.slane %v7156_v1, 5  ;;  %19672 = vst [vmem:[#allocation260_spill] sm:$0xff] %v17596_v49  ;;  %v10123_v44 = vld [vmem:[#allocation2 + $0x104] sm:$0xf] }
 0x39c   :  { %v7140_v14 = vrot.slane %v7139_v48, 4  ;;  %v7162_v20 = vrot.slane %v7160_v43, 4  ;;  %v10490_v57 = vshrl.u32 %v10120_v34, 16  ;;  %v10493_v23 = vshll.u32 %v10120_v34, 16  ;;  %v10125_v49 = vld [vmem:[#allocation2 + $0x10c] sm:$0x1] }
 0x39d   :  { %13620 = vmatprep.mubr.bf16.mxu0 %v12283_v41  ;;  %v7135_v42 = vsel %vm14499_vm6, %v7130_v56, %v7134_v24  ;;  %v7153_v9 = vor.u32 %v7152_v5, %v7149_v4  ;;  %v7168_v58 = vrot.slane %v7166_v19, 5  ;;  %v10499_v6 = vshll.u32 %v10121_v8, 16  ;;  %v10124_v24 = vld [vmem:[#allocation2 + $0x108] sm:$0xf]  ;;  %v17606_v19 = vpop.f32.mrf.mxu1 }
 0x39e   :  { %v7145_v50 = vsel %vm14499_vm6, %v7140_v14, %v7144_v52  ;;  %v7163_v15 = vor.u32 %v7162_v20, %v7158_v40  ;;  %v10492_v3 = vrot.slane %v10490_v57, 4  ;;  %v10495_v48 = vrot.slane %v10493_v23, 5  ;;  %v17604_v20 = vpop.f32.mrf.mxu0 }
 0x39f   :  { %v12132_v46 = vcombine.low %v7135_v42, %v7145_v50  ;;  %v7154_v1 = vrot.slane %v7153_v9, 4  ;;  %v10501_v43 = vrot.slane %v10499_v6, 5  ;;  %v10503_v41 = vshrl.u32 %v10121_v8, 16  ;;  %19673 = vst [vmem:[#allocation261_spill] sm:$0xff] %v17604_v20  ;;  %v6759_v6 = vld [vmem:[#allocation2 + $0x104] sm:$0xf]  ;;  %v17612_v31 = vpop.f32.mrf.mxu1 }
 0x3a0   :  { %v7164_v4 = vrot.slane %v7163_v15, 4  ;;  %v10509_v34 = vshll.u32 %v10122_v22, 16  ;;  %v10496_v5 = vor.u32 %v10495_v48, %v10492_v3  ;;  %v10514_v52 = vshrl.u32 %v10123_v44, 16  ;;  %v6761_v20 = vld [vmem:[#allocation2 + $0x10c] sm:$0x1]  ;;  %v17610_v10 = vpop.f32.mrf.mxu0 }
 0x3a1   :  { %13381 = vmatmul.mubr.bf16.gmra.mxu1 %v12132_v46  ;;  %v7159_v56 = vsel %vm14499_vm6, %v7154_v1, %v7158_v40  ;;  %v10517_v14 = vshll.u32 %v10123_v44, 16  ;;  %v10505_v9 = vrot.slane %v10503_v41, 4  ;;  %v10523_v23 = vshll.u32 %v10124_v24, 16  ;;  %v6760_v44 = vld [vmem:[#allocation2 + $0x108] sm:$0xf]  ;;  %19674 = vst [vmem:[#allocation262_spill] sm:$0xff] %v17610_v10 }
 0x3a2   :  { %v7169_v57 = vsel %vm14499_vm6, %v7164_v4, %v7168_v58  ;;  %v10511_v42 = vrot.slane %v10509_v34, 5  ;;  %v10497_v22 = vrot.slane %v10496_v5, 4  ;;  %v10516_v50 = vrot.slane %v10514_v52, 4 }
 0x3a3   :  { %v12133_v8 = vcombine.low %v7159_v56, %v7169_v57  ;;  %v10519_v15 = vrot.slane %v10517_v14, 5  ;;  %v10506_v40 = vor.u32 %v10505_v9, %v10501_v43  ;;  %v10525_v46 = vrot.slane %v10523_v23, 5  ;;  %v6762_v23 = vld [vmem:[#allocation2 + $0x134] sm:$0xf] }
 0x3a4   :  { %v10527_v1 = vshrl.u32 %v10124_v24, 16  ;;  %v10533_v3 = vshll.u32 %v10125_v49, 16  ;;  %v10502_v58 = vsel %vm14499_vm6, %v10497_v22, %v10501_v43  ;;  %v7171_v5 = vshrl.u32 %v6759_v6, 16 }
 0x3a5   :  { %13384 = vmatprep.mubr.bf16.mxu1 %v12133_v8  ;;  %v10520_v48 = vor.u32 %v10519_v15, %v10516_v50  ;;  %v10507_v4 = vrot.slane %v10506_v40, 4  ;;  %v7174_v52 = vshll.u32 %v6759_v6, 16  ;;  %v7180_v14 = vshll.u32 %v6760_v44, 16  ;;  %v6763_v8 = vld [vmem:[#allocation2 + $0x138] sm:$0xf] }
 0x3a6   :  { %v10529_v41 = vrot.slane %v10527_v1, 4  ;;  %v10535_v34 = vrot.slane %v10533_v3, 5  ;;  %v7184_v57 = vshrl.u32 %v6760_v44, 16  ;;  %v7190_v9 = vshll.u32 %v6761_v20, 16  ;;  %v6764_v40 = vld [vmem:[#allocation2 + $0x13c] sm:$0x1]  ;;  %v17620_v1 = vpop.f32.mrf.mxu0  ;;  %v17622_v3 = vpop.f32.mrf.mxu1 }
 0x3a7   :  { %v10521_v56 = vrot.slane %v10520_v48, 4  ;;  %v10512_v49 = vsel %vm14499_vm6, %v10507_v4, %v10511_v42  ;;  %v7173_v43 = vrot.slane %v7171_v5, 4  ;;  %v7176_v22 = vrot.slane %v7174_v52, 5  ;;  %19675 = vst [vmem:[#allocation263_spill] sm:$0xff] %v17620_v1  ;;  %v10126_v52 = vld [vmem:[#allocation2 + $0x114] sm:$0xf] }
 0x3a8   :  { %v10530_v24 = vor.u32 %v10529_v41, %v10525_v46  ;;  %v12284_v50 = vcombine.low %v10502_v58, %v10512_v49  ;;  %v7182_v48 = vrot.slane %v7180_v14, 5  ;;  %v7186_v10 = vrot.slane %v7184_v57, 4  ;;  %v17626_v14 = vpop.f32.mrf.mxu0  ;;  %v17628_v57 = vpop.f32.mrf.mxu1 }
 0x3a9   :  { %v10526_v15 = vsel %vm14499_vm6, %v10521_v56, %v10525_v46  ;;  %v7192_v42 = vrot.slane %v7190_v9, 5  ;;  %v7177_v44 = vor.u32 %v7176_v22, %v7173_v43  ;;  %v7195_v20 = vshrl.u32 %v6762_v23, 16  ;;  %19676 = vst [vmem:[#allocation264_spill] sm:$0xff] %v17626_v14  ;;  %v10128_v43 = vld [vmem:[#allocation2 + $0x11c] sm:$0x1] }
 0x3aa   :  { %v10531_v6 = vrot.slane %v10530_v24, 4  ;;  %13621 = vmatmul.mubr.bf16.gmra.mxu0 %v12284_v50  ;;  %v7198_v4 = vshll.u32 %v6762_v23, 16  ;;  %v7204_v41 = vshll.u32 %v6763_v8, 16  ;;  %v7187_v46 = vor.u32 %v7186_v10, %v7182_v48  ;;  %v10127_v24 = vld [vmem:[#allocation2 + $0x118] sm:$0xf]  ;;  %v17636_v14 = vpop.f32.mrf.mxu1 }
 0x3ab   :  { %v7208_v56 = vshrl.u32 %v6763_v8, 16  ;;  %v7214_v5 = vshll.u32 %v6764_v40, 16  ;;  %v7178_v1 = vrot.slane %v7177_v44, 4  ;;  %v7197_v35 = vrot.slane %v7195_v20, 4  ;;  %v10129_v20 = vld [vmem:[#allocation2 + $0x144] sm:$0xf] }
 0x3ac   :  { %v10536_v58 = vsel %vm14499_vm6, %v10531_v6, %v10535_v34  ;;  %v7200_v51 = vrot.slane %v7198_v4, 5  ;;  %v7188_v9 = vrot.slane %v7187_v46, 4  ;;  %v7206_v50 = vrot.slane %v7204_v41, 5 }
 0x3ad   :  { %v12285_v49 = vcombine.low %v10526_v15, %v10536_v58  ;;  %v7210_v23 = vrot.slane %v7208_v56, 4  ;;  %v7183_v34 = vsel %vm14499_vm6, %v7178_v1, %v7182_v48  ;;  %v7216_v8 = vrot.slane %v7214_v5, 5  ;;  %v10130_v56 = vld [vmem:[#allocation2 + $0x148] sm:$0xf]  ;;  %v13841_v5 = vld [vmem:[#allocation4 + $0x1c0] sm:$0xff]  }
 0x3ae   :  { %v7201_v10 = vor.u32 %v7200_v51, %v7197_v35  ;;  %v10538_v22 = vshrl.u32 %v10126_v52, 16  ;;  %v7193_v15 = vsel %vm14499_vm6, %v7188_v9, %v7192_v42  ;;  %v10541_v6 = vshll.u32 %v10126_v52, 16  ;;  %v10131_v9 = vld [vmem:[#allocation2 + $0x14c] sm:$0x1]  ;;  %13514 = vmatprep.subr.bf16.mxu1 %v13841_v5 }
 0x3af   :  { %13624 = vmatprep.mubr.bf16.mxu0 %v12285_v49  ;;  %v7211_v40 = vor.u32 %v7210_v23, %v7206_v50  ;;  %v10547_v44 = vshll.u32 %v10127_v24, 16  ;;  %v12134_v4 = vcombine.low %v7183_v34, %v7193_v15  ;;  %v10551_v41 = vshrl.u32 %v10127_v24, 16  ;;  %v17634_v49 = vpop.f32.mrf.mxu0  ;;  %13515 = vmatpush3.bf16.msra.mxu1 %v13841_v5 }
 0x3b0   :  { %v7202_v58 = vrot.slane %v7201_v10, 4  ;;  %v10540_v46 = vrot.slane %v10538_v22, 4  ;;  %19677 = vst [vmem:[#allocation265_spill] sm:$0xff] %v17634_v49  ;;  %v10543_v35 = vrot.slane %v10541_v6, 5  ;;  %v10557_v48 = vshll.u32 %v10128_v43, 16 }
 0x3b1   :  { %v7212_v51 = vrot.slane %v7211_v40, 4  ;;  %v10549_v1 = vrot.slane %v10547_v44, 5  ;;  %13385 = vmatmul.mubr.bf16.gmra.mxu1 %v12134_v4  ;;  %v10553_v52 = vrot.slane %v10551_v41, 4  ;;  %v10562_v23 = vshrl.u32 %v10129_v20, 16  ;;  %v17642_v49 = vpop.f32.mrf.mxu0  ;;  %v17644_v4 = vpop.f32.mrf.mxu1 }
 0x3b2   :  { %v7207_v42 = vsel %vm14499_vm6, %v7202_v58, %v7206_v50  ;;  %v10565_v34 = vshll.u32 %v10129_v20, 16  ;;  %v10544_v10 = vor.u32 %v10543_v35, %v10540_v46  ;;  %v10559_v22 = vrot.slane %v10557_v48, 5  ;;  %19678 = vst [vmem:[#allocation266_spill] sm:$0xff] %v17642_v49 }
 0x3b3   :  { %v7217_v24 = vsel %vm14499_vm6, %v7212_v51, %v7216_v8  ;;  %v10571_v15 = vshll.u32 %v10130_v56, 16  ;;  %v10554_v6 = vor.u32 %v10553_v52, %v10549_v1  ;;  %v10564_v44 = vrot.slane %v10562_v23, 4  ;;  %v6766_v51 = vld [vmem:[#allocation2 + $0x148] sm:$0xf] }
 0x3b4   :  { %v12135_v40 = vcombine.low %v7207_v42, %v7217_v24  ;;  %v10567_v43 = vrot.slane %v10565_v34, 5  ;;  %v10545_v50 = vrot.slane %v10544_v10, 4  ;;  %v10575_v41 = vshrl.u32 %v10130_v56, 16  ;;  %v6767_v42 = vld [vmem:[#allocation2 + $0x14c] sm:$0x1]  ;;  %v17650_v10 = vpop.f32.mrf.mxu0  ;;  %v17652_v56 = vpop.f32.mrf.mxu1 }
 0x3b5   :  { %v10573_v58 = vrot.slane %v10571_v15, 5  ;;  %v10581_v20 = vshll.u32 %v10131_v9, 16  ;;  %v10555_v8 = vrot.slane %v10554_v6, 4  ;;  %v7219_v34 = vshrl.u32 %v6765_v11, 16  ;;  %v6768_v24 = vld [vmem:[#allocation2 + $0x154] sm:$0xf] }
 0x3b6   :  { %13388 = vmatprep.mubr.bf16.mxu1 %v12135_v40  ;;  %v10568_v46 = vor.u32 %v10567_v43, %v10564_v44  ;;  %v10550_v35 = vsel %vm14499_vm6, %v10545_v50, %v10549_v1  ;;  %v10577_v48 = vrot.slane %v10575_v41, 4  ;;  %v7222_v5 = vshll.u32 %v6765_v11, 16  ;;  %19679 = vst [vmem:[#allocation267_spill] sm:$0xff] %v17650_v10  ;;  %v6769_v44 = vld [vmem:[#allocation2 + $0x158] sm:$0xf] }
 0x3b7   :  { %v10560_v52 = vsel %vm14499_vm6, %v10555_v8, %v10559_v22  ;;  %v10583_v40 = vrot.slane %v10581_v20, 5  ;;  %v7228_v6 = vshll.u32 %v6766_v51, 16  ;;  %v7221_v43 = vrot.slane %v7219_v34, 4  ;;  %v17658_v20 = vpop.f32.mrf.mxu1  ;;  %v10132_v34 = vld [vmem:[#allocation2 + $0x154] sm:$0xf] }
 0x3b8   :  { %v10569_v23 = vrot.slane %v10568_v46, 4  ;;  %v12286_v9 = vcombine.low %v10550_v35, %v10560_v52  ;;  %v10578_v15 = vor.u32 %v10577_v48, %v10573_v58  ;;  %v7224_v50 = vrot.slane %v7222_v5, 5  ;;  %v17656_v48 = vpop.f32.mrf.mxu0 }
 0x3b9   :  { %v7232_v41 = vshrl.u32 %v6766_v51, 16  ;;  %v7230_v8 = vrot.slane %v7228_v6, 5  ;;  %v7238_v11 = vshll.u32 %v6767_v42, 16  ;;  %v7243_v46 = vshrl.u32 %v6768_v24, 16  ;;  %19680 = vst [vmem:[#allocation268_spill] sm:$0xff] %v17656_v48 }
 0x3ba   :  { %v10574_v1 = vsel %vm14499_vm6, %v10569_v23, %v10573_v58  ;;  %13625 = vmatmul.mubr.bf16.gmra.mxu0 %v12286_v9  ;;  %v10579_v22 = vrot.slane %v10578_v15, 4  ;;  %v7225_v49 = vor.u32 %v7224_v50, %v7221_v43  ;;  %v7246_v61 = vshll.u32 %v6768_v24, 16  ;;  %v10133_v24 = vld [vmem:[#allocation2 + $0x158] sm:$0xf] }
 0x3bb   :  { %v7234_v10 = vrot.slane %v7232_v41, 4  ;;  %v7252_v35 = vshll.u32 %v6769_v44, 16  ;;  %v7240_v52 = vrot.slane %v7238_v11, 5  ;;  %v7245_v23 = vrot.slane %v7243_v46, 4 }
 0x3bc   :  { %v10584_v58 = vsel %vm14499_vm6, %v10579_v22, %v10583_v40  ;;  %v7256_v51 = vshrl.u32 %v6769_v44, 16  ;;  %v7226_v9 = vrot.slane %v7225_v49, 4  ;;  %v7248_v15 = vrot.slane %v7246_v61, 5  ;;  %v17664_v40 = vpop.f32.mrf.mxu0  ;;  %v17666_v22 = vpop.f32.mrf.mxu1  ;;  %v10134_v49 = vld [vmem:[#allocation2 + $0x15c] sm:$0x1] }
 0x3bd   :  { %v12287_v5 = vcombine.low %v10574_v1, %v10584_v58  ;;  %v7235_v42 = vor.u32 %v7234_v10, %v7230_v8  ;;  %v7254_v6 = vrot.slane %v7252_v35, 5  ;;  %v7262_v50 = vshll.u32 %v6770_v29, 16  ;;  %19681 = vst [vmem:[#allocation269_spill] sm:$0xff] %v17664_v40  ;;  %19682 = vst [vmem:[#allocation270_spill] sm:$0xff] %v17666_v22  ;;  %v10135_v61 = vld [vmem:[#allocation2 + $0x164] sm:$0xf] }
 0x3be   :  { %v7258_v43 = vrot.slane %v7256_v51, 4  ;;  %v7231_v41 = vsel %vm14499_vm6, %v7226_v9, %v7230_v8  ;;  %v7249_v47 = vor.u32 %v7248_v15, %v7245_v23  ;;  %v10586_v0 = vshrl.u32 %v10132_v34, 16 }
 0x3bf   :  { %13628 = vmatprep.mubr.bf16.mxu0 %v12287_v5  ;;  %v7236_v48 = vrot.slane %v7235_v42, 4  ;;  %v7264_v1 = vrot.slane %v7262_v50, 5  ;;  %v10589_v10 = vshll.u32 %v10132_v34, 16  ;;  %v10595_v35 = vshll.u32 %v10133_v24, 16  ;;  %v10136_v5 = vld [vmem:[#allocation2 + $0x168] sm:$0xf]  ;;  %v17672_v50 = vpop.f32.mrf.mxu0  ;;  %v17674_v34 = vpop.f32.mrf.mxu1 }
 0x3c0   :  { %v7259_v44 = vor.u32 %v7258_v43, %v7254_v6  ;;  %v7250_v11 = vrot.slane %v7249_v47, 4  ;;  %v10588_v46 = vrot.slane %v10586_v0, 4  ;;  %v10599_v23 = vshrl.u32 %v10133_v24, 16  ;;  %19683 = vst [vmem:[#allocation271_spill] sm:$0xff] %v17672_v50  ;;  %19684 = vst [vmem:[#allocation272_spill] sm:$0xff] %v17674_v34 }
 0x3c1   :  { %v7241_v29 = vsel %vm14499_vm6, %v7236_v48, %v7240_v52  ;;  %v10591_v51 = vrot.slane %v10589_v10, 5  ;;  %v10597_v42 = vrot.slane %v10595_v35, 5  ;;  %v10605_v15 = vshll.u32 %v10134_v49, 16  ;;  %v10137_v52 = vld [vmem:[#allocation2 + $0x16c] sm:$0x1]  ;;  %v17680_v18 = vpop.f32.mrf.mxu0 }
 0x3c2   :  { %v12136_v58 = vcombine.low %v7231_v41, %v7241_v29  ;;  %v7260_v8 = vrot.slane %v7259_v44, 4  ;;  %v7255_v9 = vsel %vm14499_vm6, %v7250_v11, %v7254_v6  ;;  %v10610_v43 = vshrl.u32 %v10135_v61, 16  ;;  %v17678_v6 = vpop.f32.mrf.mxu1  ;;  %19686 = vst [vmem:[#allocation274_spill] sm:$0xff] %v17680_v18  ;;  %v6775_v18 = vld [vmem:[#allocation2 + $0x178] sm:$0xf] }
 0x3c3   :  { %v10592_v47 = vor.u32 %v10591_v51, %v10588_v46  ;;  %v10601_v48 = vrot.slane %v10599_v23, 4  ;;  %v10613_v41 = vshll.u32 %v10135_v61, 16  ;;  %v10607_v44 = vrot.slane %v10605_v15, 5  ;;  %19685 = vst [vmem:[#allocation273_spill] sm:$0xff] %v17678_v6  ;;  %v6772_v23 = vld [vmem:[#allocation2 + $0x168] sm:$0xf] }
 0x3c4   :  { %13389 = vmatmul.mubr.bf16.gmra.mxu1 %v12136_v58  ;;  %v7265_v0 = vsel %vm14499_vm6, %v7260_v8, %v7264_v1  ;;  %v10612_v10 = vrot.slane %v10610_v43, 4  ;;  %v10619_v29 = vshll.u32 %v10136_v5, 16  ;;  %v10623_v50 = vshrl.u32 %v10136_v5, 16  ;;  %v17682_v1 = vpop.f32.mrf.mxu1 }
 0x3c5   :  { %v12137_v24 = vcombine.low %v7255_v9, %v7265_v0  ;;  %v10593_v49 = vrot.slane %v10592_v47, 4  ;;  %v10602_v11 = vor.u32 %v10601_v48, %v10597_v42  ;;  %v10615_v35 = vrot.slane %v10613_v41, 5  ;;  %19687 = vst [vmem:[#allocation275_spill] sm:$0xff] %v17682_v1  ;;  %v6773_v0 = vld [vmem:[#allocation2 + $0x16c] sm:$0x1] }
 0x3c6   :  { %v10621_v40 = vrot.slane %v10619_v29, 5  ;;  %v10629_v58 = vshll.u32 %v10137_v52, 16  ;;  %v10625_v51 = vrot.slane %v10623_v50, 4  ;;  %v7267_v47 = vshrl.u32 %v6771_v38, 16  ;;  %v6774_v48 = vld [vmem:[#allocation2 + $0x174] sm:$0xf]  ;;  %v17688_v52 = vpop.f32.mrf.mxu1 }
 0x3c7   :  { %13392 = vmatprep.mubr.bf16.mxu1 %v12137_v24  ;;  %v10598_v61 = vsel %vm14499_vm6, %v10593_v49, %v10597_v42  ;;  %v10603_v46 = vrot.slane %v10602_v11, 4  ;;  %v10616_v8 = vor.u32 %v10615_v35, %v10612_v10  ;;  %19688 = vst [vmem:[#allocation276_spill] sm:$0xff] %v17688_v52  ;;  %v7270_v24 = vshll.u32 %v6771_v38, 16  ;;  %v17690_v42 = vpop.f32.mrf.mxu0 }
 0x3c8   :  { %v10631_v9 = vrot.slane %v10629_v58, 5  ;;  %v10626_v43 = vor.u32 %v10625_v51, %v10621_v40  ;;  %v7276_v29 = vshll.u32 %v6772_v23, 16  ;;  %19689 = vst [vmem:[#allocation277_spill] sm:$0xff] %v17690_v42  ;;  %v7269_v49 = vrot.slane %v7267_v47, 4  ;;  %v10138_v51 = vld [vmem:[#allocation2 + $0x174] sm:$0xf] }
 0x3c9   :  { %v10608_v15 = vsel %vm14499_vm6, %v10603_v46, %v10607_v44  ;;  %v10617_v5 = vrot.slane %v10616_v8, 4  ;;  %v7280_v11 = vshrl.u32 %v6772_v23, 16  ;;  %v17694_v44 = vpop.f32.mrf.mxu1  ;;  %v7272_v35 = vrot.slane %v7270_v24, 5  ;;  %v17700_v47 = vpop.f32.mrf.mxu0 }
 0x3ca   :  { %v12288_v41 = vcombine.low %v10598_v61, %v10608_v15  ;;  %v10627_v10 = vrot.slane %v10626_v43, 4  ;;  %19690 = vst [vmem:[#allocation278_spill] sm:$0xff] %v17694_v44  ;;  %v7278_v58 = vrot.slane %v7276_v29, 5  ;;  %v7286_v46 = vshll.u32 %v6773_v0, 16  ;;  %v6776_v15 = vld [vmem:[#allocation2 + $0x17c] sm:$0x1] }
 0x3cb   :  { %v10622_v50 = vsel %vm14499_vm6, %v10617_v5, %v10621_v40  ;;  %v7291_v8 = vshrl.u32 %v6774_v48, 16  ;;  %v7282_v61 = vrot.slane %v7280_v11, 4  ;;  %v7294_v42 = vshll.u32 %v6774_v48, 16  ;;  %v17698_v16 = vpop.f32.mrf.mxu1  ;;  %19692 = vst [vmem:[#allocation280_spill] sm:$0xff] %v17700_v47  ;;  %v10139_v11 = vld [vmem:[#allocation2 + $0x178] sm:$0xf] }
 0x3cc   :  { %13629 = vmatmul.mubr.bf16.gmra.mxu0 %v12288_v41  ;;  %v10632_v38 = vsel %vm14499_vm6, %v10627_v10, %v10631_v9  ;;  %v7300_v39 = vshll.u32 %v6775_v18, 16  ;;  %19691 = vst [vmem:[#allocation279_spill] sm:$0xff] %v17698_v16  ;;  %v7273_v5 = vor.u32 %v7272_v35, %v7269_v49  ;;  %v7288_v23 = vrot.slane %v7286_v46, 5 }
 0x3cd   :  { %v12289_v40 = vcombine.low %v10622_v50, %v10632_v38  ;;  %v7293_v43 = vrot.slane %v7291_v8, 4  ;;  %v7283_v41 = vor.u32 %v7282_v61, %v7278_v58  ;;  %v7296_v24 = vrot.slane %v7294_v42, 5  ;;  %v17702_v44 = vpop.f32.mrf.mxu1  ;;  %v10140_v50 = vld [vmem:[#allocation2 + $0x17c] sm:$0x1]  ;;  %v17708_v8 = vpop.f32.mrf.mxu0 }
 0x3ce   :  { %v7302_v0 = vrot.slane %v7300_v39, 5  ;;  %v7304_v29 = vshrl.u32 %v6775_v18, 16  ;;  %19693 = vst [vmem:[#allocation281_spill] sm:$0xff] %v17702_v44  ;;  %v7274_v9 = vrot.slane %v7273_v5, 4  ;;  %v7310_v10 = vshll.u32 %v6776_v15, 16  ;;  %19695 = vst [vmem:[#allocation283_spill] sm:$0xff] %v17708_v8 }
 0x3cf   :  { %13632 = vmatprep.mubr.bf16.mxu0 %v12289_v40  ;;  %v10634_v48 = vshrl.u32 %v10138_v51, 16  ;;  %v7284_v52 = vrot.slane %v7283_v41, 4  ;;  %v7297_v1 = vor.u32 %v7296_v24, %v7293_v43  ;;  %v10637_v49 = vshll.u32 %v10138_v51, 16  ;;  %v17704_v35 = vpop.f32.mrf.mxu1  ;;  %v10141_v18 = vld [vmem:[#allocation2 + $0x184] sm:$0xf]  ;;  %v17718_v47 = vpop.f32.mrf.mxu0 }
 0x3d0   :  { %v7306_v16 = vrot.slane %v7304_v29, 4  ;;  %19694 = vst [vmem:[#allocation282_spill] sm:$0xff] %v17704_v35  ;;  %v7279_v46 = vsel %vm14499_vm6, %v7274_v9, %v7278_v58  ;;  %v7312_v42 = vrot.slane %v7310_v10, 5  ;;  %v10643_v51 = vshll.u32 %v10139_v11, 16  ;;  %v10142_v29 = vld [vmem:[#allocation2 + $0x188] sm:$0xf] }
 0x3d1   :  { %v10636_v39 = vrot.slane %v10634_v48, 4  ;;  %v7289_v38 = vsel %vm14499_vm6, %v7284_v52, %v7288_v23  ;;  %v7298_v61 = vrot.slane %v7297_v1, 4  ;;  %v10639_v40 = vrot.slane %v10637_v49, 5  ;;  %v17712_v5 = vpop.f32.mrf.mxu1  ;;  %v10143_v23 = vld [vmem:[#allocation2 + $0x18c] sm:$0x1]  ;;  %19698 = vst [vmem:[#allocation286_spill] sm:$0xff] %v17718_v47 }
 0x3d2   :  { %v7307_v15 = vor.u32 %v7306_v16, %v7302_v0  ;;  %19696 = vst [vmem:[#allocation284_spill] sm:$0xff] %v17712_v5  ;;  %v12138_v43 = vcombine.low %v7279_v46, %v7289_v38  ;;  %v10647_v41 = vshrl.u32 %v10139_v11, 16  ;;  %v10653_v24 = vshll.u32 %v10140_v50, 16 }
 0x3d3   :  { %v7303_v58 = vsel %vm14499_vm6, %v7298_v61, %v7302_v0  ;;  %v10640_v10 = vor.u32 %v10639_v40, %v10636_v39  ;;  %v10658_v48 = vshrl.u32 %v10141_v18, 16  ;;  %v17716_v8 = vpop.f32.mrf.mxu1  ;;  %v10645_v52 = vrot.slane %v10643_v51, 5 }
 0x3d4   :  { %v7308_v9 = vrot.slane %v7307_v15, 4  ;;  %19697 = vst [vmem:[#allocation285_spill] sm:$0xff] %v17716_v8  ;;  %13393 = vmatmul.mubr.bf16.gmra.mxu1 %v12138_v43  ;;  %v10649_v1 = vrot.slane %v10647_v41, 4  ;;  %v10655_v16 = vrot.slane %v10653_v24, 5  ;;  %v10661_v49 = vshll.u32 %v10141_v18, 16 }
 0x3d5   :  { %v10641_v50 = vrot.slane %v10640_v10, 4  ;;  %v10660_v46 = vrot.slane %v10658_v48, 4  ;;  %v10667_v38 = vshll.u32 %v10142_v29, 16  ;;  %v17722_v0 = vpop.f32.mrf.mxu1  ;;  %v10671_v40 = vshrl.u32 %v10142_v29, 16  ;;  %v6777_v43 = vld [vmem:[#allocation2 + $0x184] sm:$0xf]  ;;  %v17728_v10 = vpop.f32.mrf.mxu0 }
 0x3d6   :  { %v7313_v11 = vsel %vm14499_vm6, %v7308_v9, %v7312_v42  ;;  %19699 = vst [vmem:[#allocation287_spill] sm:$0xff] %v17722_v0  ;;  %v10650_v61 = vor.u32 %v10649_v1, %v10645_v52  ;;  %v10663_v15 = vrot.slane %v10661_v49, 5  ;;  %v10677_v41 = vshll.u32 %v10143_v23, 16  ;;  %19701 = vst [vmem:[#allocation289_spill] sm:$0xff] %v17728_v10  ;;  %v6778_v48 = vld [vmem:[#allocation2 + $0x188] sm:$0xf] }
 0x3d7   :  { %v12139_v39 = vcombine.low %v7303_v58, %v7313_v11  ;;  %v10669_v51 = vrot.slane %v10667_v38, 5  ;;  %v17724_v24 = vpop.f32.mrf.mxu1  ;;  %v10646_v18 = vsel %vm14499_vm6, %v10641_v50, %v10645_v52  ;;  %v10673_v9 = vrot.slane %v10671_v40, 4  ;;  %v6779_v11 = vld [vmem:[#allocation2 + $0x18c] sm:$0x1]  ;;  %v6780_v38 = vld [vmem:[#allocation2 + $0x194] sm:$0xf] }
 0x3d8   :  { %19700 = vst [vmem:[#allocation288_spill] sm:$0xff] %v17724_v24  ;;  %v10651_v8 = vrot.slane %v10650_v61, 4  ;;  %v10664_v42 = vor.u32 %v10663_v15, %v10660_v46  ;;  %v7315_v47 = vshrl.u32 %v6777_v43, 16  ;;  %v10679_v49 = vrot.slane %v10677_v41, 5  ;;  %v6781_v50 = vld [vmem:[#allocation2 + $0x198] sm:$0xf] }
 0x3d9   :  { %13396 = vmatprep.mubr.bf16.mxu1 %v12139_v39  ;;  %v17730_v58 = vpop.f32.mrf.mxu1  ;;  %v10674_v23 = vor.u32 %v10673_v9, %v10669_v51  ;;  %v7318_v52 = vshll.u32 %v6777_v43, 16  ;;  %v7324_v40 = vshll.u32 %v6778_v48, 16  ;;  %v7328_v10 = vshrl.u32 %v6778_v48, 16  ;;  %v10144_v9 = vld [vmem:[#allocation2 + $0x194] sm:$0xf] }
 0x3da   :  { %19702 = vst [vmem:[#allocation290_spill] sm:$0xff] %v17730_v58  ;;  %v10656_v29 = vsel %vm14499_vm6, %v10651_v8, %v10655_v16  ;;  %v10665_v1 = vrot.slane %v10664_v42, 4  ;;  %v7317_v24 = vrot.slane %v7315_v47, 4  ;;  %v17738_v58 = vpop.f32.mrf.mxu0  ;;  %v7334_v16 = vshll.u32 %v6779_v11, 16 }
 0x3db   :  { %v12290_v39 = vcombine.low %v10646_v18, %v10656_v29  ;;  %v17734_v46 = vpop.f32.mrf.mxu1  ;;  %v10675_v15 = vrot.slane %v10674_v23, 4  ;;  %19704 = vst [vmem:[#allocation292_spill] sm:$0xff] %v17738_v58  ;;  %v7320_v8 = vrot.slane %v7318_v52, 5  ;;  %v7339_v41 = vshrl.u32 %v6780_v38, 16 }
 0x3dc   :  { %19703 = vst [vmem:[#allocation291_spill] sm:$0xff] %v17734_v46  ;;  %v10670_v61 = vsel %vm14499_vm6, %v10665_v1, %v10669_v51  ;;  %v7342_v42 = vshll.u32 %v6780_v38, 16  ;;  %v7326_v43 = vrot.slane %v7324_v40, 5  ;;  %v7330_v29 = vrot.slane %v7328_v10, 4  ;;  %v6782_v46 = vld [vmem:[#allocation2 + $0x19c] sm:$0x1]  ;;  %v17746_v5 = vpop.f32.mrf.mxu0 }
 0x3dd   :  { %13633 = vmatmul.mubr.bf16.gmra.mxu0 %v12290_v39  ;;  %v17740_v18 = vpop.f32.mrf.mxu1  ;;  %v10680_v47 = vsel %vm14499_vm6, %v10675_v15, %v10679_v49  ;;  %v7348_v51 = vshll.u32 %v6781_v50, 16  ;;  %v7321_v23 = vor.u32 %v7320_v8, %v7317_v24  ;;  %v7336_v48 = vrot.slane %v7334_v16, 5  ;;  %19707 = vst [vmem:[#allocation295_spill] sm:$0xff] %v17746_v5  ;;  %v10145_v49 = vld [vmem:[#allocation2 + $0x198] sm:$0xf] }
 0x3de   :  { %19705 = vst [vmem:[#allocation293_spill] sm:$0xff] %v17740_v18  ;;  %v12291_v1 = vcombine.low %v10670_v61, %v10680_v47  ;;  %v7341_v0 = vrot.slane %v7339_v41, 4  ;;  %v7331_v39 = vor.u32 %v7330_v29, %v7326_v43  ;;  %v7344_v11 = vrot.slane %v7342_v42, 5  ;;  %v10146_v8 = vld [vmem:[#allocation2 + $0x19c] sm:$0x1]  ;;  %v17756_v5 = vpop.f32.mrf.mxu0 }
 0x3df   :  { %v17744_v58 = vpop.f32.mrf.mxu1  ;;  %v7350_v52 = vrot.slane %v7348_v51, 5  ;;  %v7352_v38 = vshrl.u32 %v6781_v50, 16  ;;  %v7322_v18 = vrot.slane %v7321_v23, 4  ;;  %v7358_v35 = vshll.u32 %v6782_v46, 16  ;;  %v10147_v50 = vld [vmem:[#allocation2 + $0x1a4] sm:$0xf] }
 0x3e0   :  { %19706 = vst [vmem:[#allocation294_spill] sm:$0xff] %v17744_v58  ;;  %13636 = vmatprep.mubr.bf16.mxu0 %v12291_v1  ;;  %v10682_v15 = vshrl.u32 %v10144_v9, 16  ;;  %v7332_v40 = vrot.slane %v7331_v39, 4  ;;  %v7345_v61 = vor.u32 %v7344_v11, %v7341_v0  ;;  %v10685_v16 = vshll.u32 %v10144_v9, 16  ;;  %19710 = vst [vmem:[#allocation298_spill] sm:$0xff] %v17756_v5 }
 0x3e1   :  { %v17748_v10 = vpop.f32.mrf.mxu1  ;;  %v7354_v24 = vrot.slane %v7352_v38, 4  ;;  %v7327_v41 = vsel %vm14499_vm6, %v7322_v18, %v7326_v43  ;;  %v7360_v42 = vrot.slane %v7358_v35, 5  ;;  %v10691_v39 = vshll.u32 %v10145_v49, 16  ;;  %v10148_v38 = vld [vmem:[#allocation2 + $0x1a8] sm:$0xf] }
 0x3e2   :  { %19708 = vst [vmem:[#allocation296_spill] sm:$0xff] %v17748_v10  ;;  %v10684_v47 = vrot.slane %v10682_v15, 4  ;;  %v7337_v46 = vsel %vm14499_vm6, %v7332_v40, %v7336_v48  ;;  %v7346_v51 = vrot.slane %v7345_v61, 4  ;;  %v10687_v23 = vrot.slane %v10685_v16, 5 }
 0x3e3   :  { %v17752_v29 = vpop.f32.mrf.mxu1  ;;  %v7355_v1 = vor.u32 %v7354_v24, %v7350_v52  ;;  %v12140_v0 = vcombine.low %v7327_v41, %v7337_v46  ;;  %v10695_v11 = vshrl.u32 %v10145_v49, 16  ;;  %v10701_v9 = vshll.u32 %v10146_v8, 16  ;;  %v10149_v24 = vld [vmem:[#allocation2 + $0x1ac] sm:$0x1] }
 0x3e4   :  { %19709 = vst [vmem:[#allocation297_spill] sm:$0xff] %v17752_v29  ;;  %v7351_v35 = vsel %vm14499_vm6, %v7346_v51, %v7350_v52  ;;  %v10688_v43 = vor.u32 %v10687_v23, %v10684_v47  ;;  %v10706_v15 = vshrl.u32 %v10147_v50, 16  ;;  %v10693_v48 = vrot.slane %v10691_v39, 5  ;;  %v6783_v23 = vld [vmem:[#allocation2 + $0x1a4] sm:$0xf] }
 0x3e5   :  { %v17758_v10 = vpop.f32.mrf.mxu1  ;;  %v7356_v18 = vrot.slane %v7355_v1, 4  ;;  %13397 = vmatmul.mubr.bf16.gmra.mxu1 %v12140_v0  ;;  %v10697_v40 = vrot.slane %v10695_v11, 4  ;;  %v10703_v61 = vrot.slane %v10701_v9, 5  ;;  %v10709_v16 = vshll.u32 %v10147_v50, 16 }
 0x3e6   :  { %19711 = vst [vmem:[#allocation299_spill] sm:$0xff] %v17758_v10  ;;  %v10689_v8 = vrot.slane %v10688_v43, 4  ;;  %v10708_v41 = vrot.slane %v10706_v15, 4  ;;  %v10715_v46 = vshll.u32 %v10148_v38, 16  ;;  %v17766_v10 = vpop.f32.mrf.mxu0  ;;  %v10719_v1 = vshrl.u32 %v10148_v38, 16 }
 0x3e7   :  { %v17762_v5 = vpop.f32.mrf.mxu1  ;;  %v7361_v49 = vsel %vm14499_vm6, %v7356_v18, %v7360_v42  ;;  %19713 = vst [vmem:[#allocation301_spill] sm:$0xff] %v17766_v10  ;;  %v10698_v51 = vor.u32 %v10697_v40, %v10693_v48  ;;  %v10711_v47 = vrot.slane %v10709_v16, 5  ;;  %v10725_v11 = vshll.u32 %v10149_v24, 16  ;;  %v6784_v15 = vld [vmem:[#allocation2 + $0x1a8] sm:$0xf] }
 0x3e8   :  { %19712 = vst [vmem:[#allocation300_spill] sm:$0xff] %v17762_v5  ;;  %v12141_v52 = vcombine.low %v7351_v35, %v7361_v49  ;;  %v10717_v39 = vrot.slane %v10715_v46, 5  ;;  %v10694_v50 = vsel %vm14499_vm6, %v10689_v8, %v10693_v48  ;;  %v10721_v18 = vrot.slane %v10719_v1, 4  ;;  %v17774_v35 = vpop.f32.mrf.mxu0  ;;  %v6785_v24 = vld [vmem:[#allocation2 + $0x1ac] sm:$0x1] }
 0x3e9   :  { %v17768_v0 = vpop.f32.mrf.mxu1  ;;  %v10699_v9 = vrot.slane %v10698_v51, 4  ;;  %v10712_v42 = vor.u32 %v10711_v47, %v10708_v41  ;;  %v7363_v10 = vshrl.u32 %v6783_v23, 16  ;;  %19716 = vst [vmem:[#allocation304_spill] sm:$0xff] %v17774_v35  ;;  %v10727_v49 = vrot.slane %v10725_v11, 5  ;;  %v6786_v46 = vld [vmem:[#allocation2 + $0x1b4] sm:$0xf] }
 0x3ea   :  { %19714 = vst [vmem:[#allocation302_spill] sm:$0xff] %v17768_v0  ;;  %13400 = vmatprep.mubr.bf16.mxu1 %v12141_v52  ;;  %v10722_v16 = vor.u32 %v10721_v18, %v10717_v39  ;;  %v7366_v41 = vshll.u32 %v6783_v23, 16  ;;  %v6787_v51 = vld [vmem:[#allocation2 + $0x1b8] sm:$0xf]  ;;  %v7376_v35 = vshrl.u32 %v6784_v15, 16  ;;  %v7387_v11 = vshrl.u32 %v6786_v46, 16  ;;  %v17784_v5 = vpop.f32.mrf.mxu0 }
 0x3eb   :  { %v17772_v43 = vpop.f32.mrf.mxu1  ;;  %v10704_v38 = vsel %vm14499_vm6, %v10699_v9, %v10703_v61  ;;  %v10713_v40 = vrot.slane %v10712_v42, 4  ;;  %v7365_v8 = vrot.slane %v7363_v10, 4  ;;  %v7382_v9 = vshll.u32 %v6785_v24, 16  ;;  %v10150_v18 = vld [vmem:[#allocation2 + $0x1b4] sm:$0xf]  ;;  %19719 = vst [vmem:[#allocation307_spill] sm:$0xff] %v17784_v5 }
 0x3ec   :  { %19715 = vst [vmem:[#allocation303_spill] sm:$0xff] %v17772_v43  ;;  %v12292_v48 = vcombine.low %v10694_v50, %v10704_v38  ;;  %v10723_v1 = vrot.slane %v10722_v16, 4  ;;  %v7372_v43 = vshll.u32 %v6784_v15, 16  ;;  %v7368_v61 = vrot.slane %v7366_v41, 5  ;;  %v6788_v38 = vld [vmem:[#allocation2 + $0x1bc] sm:$0x1] }
 0x3ed   :  { %v17778_v52 = vpop.f32.mrf.mxu1  ;;  %v10718_v47 = vsel %vm14499_vm6, %v10713_v40, %v10717_v39  ;;  %v7390_v42 = vshll.u32 %v6786_v46, 16  ;;  %v7378_v50 = vrot.slane %v7376_v35, 4  ;;  %v7396_v39 = vshll.u32 %v6787_v51, 16  ;;  %v17792_v35 = vpop.f32.mrf.mxu0 }
 0x3ee   :  { %19717 = vst [vmem:[#allocation305_spill] sm:$0xff] %v17778_v52  ;;  %13637 = vmatmul.mubr.bf16.gmra.mxu0 %v12292_v48  ;;  %v10728_v10 = vsel %vm14499_vm6, %v10723_v1, %v10727_v49  ;;  %v7374_v23 = vrot.slane %v7372_v43, 5  ;;  %v7369_v16 = vor.u32 %v7368_v61, %v7365_v8  ;;  %v7389_v48 = vrot.slane %v7387_v11, 4  ;;  %v10151_v49 = vld [vmem:[#allocation2 + $0x1b8] sm:$0xf]  ;;  %19722 = vst [vmem:[#allocation310_spill] sm:$0xff] %v17792_v35 }
 0x3ef   :  { %v17782_v0 = vpop.f32.mrf.mxu1  ;;  %v12293_v15 = vcombine.low %v10718_v47, %v10728_v10  ;;  %v7392_v24 = vrot.slane %v7390_v42, 5  ;;  %v7398_v52 = vrot.slane %v7396_v39, 5  ;;  %v7400_v46 = vshrl.u32 %v6787_v51, 16  ;;  %v10152_v47 = vld [vmem:[#allocation2 + $0x1bc] sm:$0x1] }
 0x3f0   :  { %19718 = vst [vmem:[#allocation306_spill] sm:$0xff] %v17782_v0  ;;  %v7384_v0 = vrot.slane %v7382_v9, 5  ;;  %v7379_v41 = vor.u32 %v7378_v50, %v7374_v23  ;;  %v7370_v5 = vrot.slane %v7369_v16, 4  ;;  %v7406_v58 = vshll.u32 %v6788_v38, 16  ;;  %v10153_v42 = vld [vmem:[#allocation2 + $0x1c4] sm:$0xf] }
 0x3f1   :  { %v17788_v40 = vpop.f32.mrf.mxu1  ;;  %13640 = vmatprep.mubr.bf16.mxu0 %v12293_v15  ;;  %v10730_v43 = vshrl.u32 %v10150_v18, 16  ;;  %v7393_v44 = vor.u32 %v7392_v24, %v7389_v48  ;;  %v10733_v8 = vshll.u32 %v10150_v18, 16  ;;  %v10739_v48 = vshll.u32 %v10151_v49, 16  ;;  %v10154_v24 = vld [vmem:[#allocation2 + $0x1c8] sm:$0xf] }
 0x3f2   :  { %19720 = vst [vmem:[#allocation308_spill] sm:$0xff] %v17788_v40  ;;  %v7380_v1 = vrot.slane %v7379_v41, 4  ;;  %v7402_v40 = vrot.slane %v7400_v46, 4  ;;  %v7375_v9 = vsel %vm14499_vm6, %v7370_v5, %v7374_v23  ;;  %v7408_v51 = vrot.slane %v7406_v58, 5  ;;  %v17802_v46 = vpop.f32.mrf.mxu0 }
 0x3f3   :  { %v17790_v29 = vpop.f32.mrf.mxu1  ;;  %v10732_v11 = vrot.slane %v10730_v43, 4  ;;  %v7394_v50 = vrot.slane %v7393_v44, 4  ;;  %v10735_v39 = vrot.slane %v10733_v8, 5  ;;  %v10743_v41 = vshrl.u32 %v10151_v49, 16  ;;  %19725 = vst [vmem:[#allocation313_spill] sm:$0xff] %v17802_v46 }
 0x3f4   :  { %19721 = vst [vmem:[#allocation309_spill] sm:$0xff] %v17790_v29  ;;  %v7385_v10 = vsel %vm14499_vm6, %v7380_v1, %v7384_v0  ;;  %v7403_v38 = vor.u32 %v7402_v40, %v7398_v52  ;;  %v10749_v18 = vshll.u32 %v10152_v47, 16  ;;  %v10754_v43 = vshrl.u32 %v10153_v42, 16  ;;  %v10155_v1 = vld [vmem:[#allocation2 + $0x1cc] sm:$0x1] }
 0x3f5   :  { %v17794_v61 = vpop.f32.mrf.mxu1  ;;  %v12142_v16 = vcombine.low %v7375_v9, %v7385_v10  ;;  %v7399_v5 = vsel %vm14499_vm6, %v7394_v50, %v7398_v52  ;;  %v10736_v23 = vor.u32 %v10735_v39, %v10732_v11  ;;  %v10741_v44 = vrot.slane %v10739_v48, 5  ;;  %v6789_v39 = vld [vmem:[#allocation2 + $0x1c4] sm:$0xf] }
 0x3f6   :  { %19723 = vst [vmem:[#allocation311_spill] sm:$0xff] %v17794_v61  ;;  %v7404_v58 = vrot.slane %v7403_v38, 4  ;;  %v10745_v0 = vrot.slane %v10743_v41, 4  ;;  %v10751_v40 = vrot.slane %v10749_v18, 5  ;;  %v10757_v8 = vshll.u32 %v10153_v42, 16 }
 0x3f7   :  { %v17800_v15 = vpop.f32.mrf.mxu1  ;;  %13401 = vmatmul.mubr.bf16.gmra.mxu1 %v12142_v16  ;;  %v10737_v47 = vrot.slane %v10736_v23, 4  ;;  %v10756_v9 = vrot.slane %v10754_v43, 4  ;;  %v10763_v10 = vshll.u32 %v10154_v24, 16  ;;  %v10767_v38 = vshrl.u32 %v10154_v24, 16  ;;  %v6790_v23 = vld [vmem:[#allocation2 + $0x1c8] sm:$0xf] }
 0x3f8   :  { %19724 = vst [vmem:[#allocation312_spill] sm:$0xff] %v17800_v15  ;;  %v7409_v49 = vsel %vm14499_vm6, %v7404_v58, %v7408_v51  ;;  %v10746_v50 = vor.u32 %v10745_v0, %v10741_v44  ;;  %v10759_v11 = vrot.slane %v10757_v8, 5  ;;  %v10773_v48 = vshll.u32 %v10155_v1, 16  ;;  %v6791_v1 = vld [vmem:[#allocation2 + $0x1cc] sm:$0x1] }
 0x3f9   :  { %v17806_v35 = vpop.f32.mrf.mxu1  ;;  %v12143_v52 = vcombine.low %v7399_v5, %v7409_v49  ;;  %v10765_v16 = vrot.slane %v10763_v10, 5  ;;  %v10742_v51 = vsel %vm14499_vm6, %v10737_v47, %v10741_v44  ;;  %v10769_v58 = vrot.slane %v10767_v38, 4  ;;  %v6792_v10 = vld [vmem:[#allocation2 + $0x1d4] sm:$0xf]  ;;  %v6793_v47 = vld [vmem:[#allocation2 + $0x1d8] sm:$0xf] }
 0x3fa   :  { %19726 = vst [vmem:[#allocation314_spill] sm:$0xff] %v17806_v35  ;;  %v17812_v35 = vpop.f32.mrf.mxu0  ;;  %v10747_v42 = vrot.slane %v10746_v50, 4  ;;  %v10760_v18 = vor.u32 %v10759_v11, %v10756_v9  ;;  %v7411_v43 = vshrl.u32 %v6789_v39, 16  ;;  %v10775_v49 = vrot.slane %v10773_v48, 5 }
 0x3fb   :  { %v17810_v46 = vpop.f32.mrf.mxu1  ;;  %19728 = vst [vmem:[#allocation316_spill] sm:$0xff] %v17812_v35  ;;  %13404 = vmatprep.mubr.bf16.mxu1 %v12143_v52  ;;  %v10770_v8 = vor.u32 %v10769_v58, %v10765_v16  ;;  %v7414_v44 = vshll.u32 %v6789_v39, 16  ;;  %v7420_v38 = vshll.u32 %v6790_v23, 16  ;;  %v7435_v48 = vshrl.u32 %v6792_v10, 16  ;;  %v10156_v58 = vld [vmem:[#allocation2 + $0x1d4] sm:$0xf] }
 0x3fc   :  { %19727 = vst [vmem:[#allocation315_spill] sm:$0xff] %v17810_v46  ;;  %v10752_v24 = vsel %vm14499_vm6, %v10747_v42, %v10751_v40  ;;  %v10761_v0 = vrot.slane %v10760_v18, 4  ;;  %v17822_v35 = vpop.f32.mrf.mxu0  ;;  %v7430_v42 = vshll.u32 %v6791_v1, 16  ;;  %v7438_v18 = vshll.u32 %v6792_v10, 16 }
 0x3fd   :  { %v17814_v41 = vpop.f32.mrf.mxu1  ;;  %19731 = vst [vmem:[#allocation319_spill] sm:$0xff] %v17822_v35  ;;  %v12294_v52 = vcombine.low %v10742_v51, %v10752_v24  ;;  %v10771_v11 = vrot.slane %v10770_v8, 4  ;;  %v7416_v40 = vrot.slane %v7414_v44, 5  ;;  %v7422_v51 = vrot.slane %v7420_v38, 5  ;;  %v6794_v24 = vld [vmem:[#allocation2 + $0x1dc] sm:$0x1] }
 0x3fe   :  { %19729 = vst [vmem:[#allocation317_spill] sm:$0xff] %v17814_v41  ;;  %v7413_v41 = vrot.slane %v7411_v43, 4  ;;  %v10766_v50 = vsel %vm14499_vm6, %v10761_v0, %v10765_v16  ;;  %v7444_v35 = vshll.u32 %v6793_v47, 16  ;;  %v7437_v8 = vrot.slane %v7435_v48, 4 }
 0x3ff   :  { %v17818_v5 = vpop.f32.mrf.mxu1  ;;  %13641 = vmatmul.mubr.bf16.gmra.mxu0 %v12294_v52  ;;  %v10776_v39 = vsel %vm14499_vm6, %v10771_v11, %v10775_v49  ;;  %v7440_v10 = vrot.slane %v7438_v18, 5  ;;  %v7448_v15 = vshrl.u32 %v6793_v47, 16  ;;  %v7454_v61 = vshll.u32 %v6794_v24, 16  ;;  %v10157_v49 = vld [vmem:[#allocation2 + $0x1d8] sm:$0xf] }
 0x400   :  { %19730 = vst [vmem:[#allocation318_spill] sm:$0xff] %v17818_v5  ;;  %v7424_v5 = vshrl.u32 %v6790_v23, 16  ;;  %v12295_v16 = vcombine.low %v10766_v50, %v10776_v39  ;;  %v7417_v0 = vor.u32 %v7416_v40, %v7413_v41  ;;  %v7432_v23 = vrot.slane %v7430_v42, 5  ;;  %v10158_v50 = vld [vmem:[#allocation2 + $0x1dc] sm:$0x1] }
 0x401   :  { %v17824_v9 = vpop.f32.mrf.mxu1  ;;  %v7446_v44 = vrot.slane %v7444_v35, 5  ;;  %v10778_v11 = vshrl.u32 %v10156_v58, 16  ;;  %v7441_v29 = vor.u32 %v7440_v10, %v7437_v8  ;;  %v10781_v41 = vshll.u32 %v10156_v58, 16  ;;  %v10159_v47 = vld [vmem:[#allocation2 + $0x1e4] sm:$0xf] }
 0x402   :  { %19732 = vst [vmem:[#allocation320_spill] sm:$0xff] %v17824_v9  ;;  %v7426_v43 = vrot.slane %v7424_v5, 4  ;;  %v17832_v9 = vpop.f32.mrf.mxu0  ;;  %13644 = vmatprep.mubr.bf16.mxu0 %v12295_v16  ;;  %v7456_v48 = vrot.slane %v7454_v61, 5  ;;  %v10791_v8 = vshrl.u32 %v10157_v49, 16  ;;  %v10797_v58 = vshll.u32 %v10158_v50, 16 }
 0x403   :  { %v17828_v46 = vpop.f32.mrf.mxu1  ;;  %19734 = vst [vmem:[#allocation322_spill] sm:$0xff] %v17832_v9  ;;  %v7450_v9 = vrot.slane %v7448_v15, 4  ;;  %v10780_v35 = vrot.slane %v10778_v11, 4  ;;  %v10783_v16 = vrot.slane %v10781_v41, 5  ;;  %v10787_v15 = vshll.u32 %v10157_v49, 16 }
 0x404   :  { %19733 = vst [vmem:[#allocation321_spill] sm:$0xff] %v17828_v46  ;;  %v7427_v1 = vor.u32 %v7426_v43, %v7422_v51  ;;  %v7418_v46 = vrot.slane %v7417_v0, 4  ;;  %v17838_v40 = vpop.f32.mrf.mxu0  ;;  %v7442_v43 = vrot.slane %v7441_v29, 4  ;;  %v10802_v11 = vshrl.u32 %v10159_v47, 16 }
 0x405   :  { %v17834_v52 = vpop.f32.mrf.mxu1  ;;  %19737 = vst [vmem:[#allocation325_spill] sm:$0xff] %v17838_v40  ;;  %v7451_v24 = vor.u32 %v7450_v9, %v7446_v44  ;;  %v10793_v29 = vrot.slane %v10791_v8, 4  ;;  %v10799_v9 = vrot.slane %v10797_v58, 5  ;;  %v10805_v41 = vshll.u32 %v10159_v47, 16 }
 0x406   :  { %19735 = vst [vmem:[#allocation323_spill] sm:$0xff] %v17834_v52  ;;  %v7428_v38 = vrot.slane %v7427_v1, 4  ;;  %v7423_v42 = vsel %vm14499_vm6, %v7418_v46, %v7422_v51  ;;  %v10160_v1 = vld [vmem:[#allocation2 + $0x1e8] sm:$0xf]  ;;  %v7447_v61 = vsel %vm14499_vm6, %v7442_v43, %v7446_v44  ;;  %v10784_v51 = vor.u32 %v10783_v16, %v10780_v35  ;;  %v17850_v40 = vpop.f32.mrf.mxu0  ;;  %v6795_v16 = vld [vmem:[#allocation2 + $0x1e4] sm:$0xf] }
 0x407   :  { %v17836_v5 = vpop.f32.mrf.mxu1  ;;  %v7452_v46 = vrot.slane %v7451_v24, 4  ;;  %19740 = vst [vmem:[#allocation328_spill] sm:$0xff] %v17850_v40  ;;  %v10807_v35 = vrot.slane %v10805_v41, 5  ;;  %v10815_v24 = vshrl.u32 %v10160_v1, 16 }
 0x408   :  { %19736 = vst [vmem:[#allocation324_spill] sm:$0xff] %v17836_v5  ;;  %v7433_v39 = vsel %vm14499_vm6, %v7428_v38, %v7432_v23  ;;  %v10789_v23 = vrot.slane %v10787_v15, 5  ;;  %v10161_v38 = vld [vmem:[#allocation2 + $0x1ec] sm:$0x1]  ;;  %v10785_v50 = vrot.slane %v10784_v51, 4  ;;  %v17858_v8 = vpop.f32.mrf.mxu0 }
 0x409   :  { %v17842_v18 = vpop.f32.mrf.mxu1  ;;  %v12144_v0 = vcombine.low %v7423_v42, %v7433_v39  ;;  %v7457_v49 = vsel %vm14499_vm6, %v7452_v46, %v7456_v48  ;;  %v10804_v39 = vrot.slane %v10802_v11, 4  ;;  %v10821_v15 = vshll.u32 %v10161_v38, 16  ;;  %19743 = vst [vmem:[#allocation331_spill] sm:$0xff] %v17858_v8  ;;  %v6797_v38 = vld [vmem:[#allocation2 + $0x1ec] sm:$0x1] }
 0x40a   :  { %19738 = vst [vmem:[#allocation326_spill] sm:$0xff] %v17842_v18  ;;  %v12145_v44 = vcombine.low %v7447_v61, %v7457_v49  ;;  %v10794_v43 = vor.u32 %v10793_v29, %v10789_v23  ;;  %v10790_v47 = vsel %vm14499_vm6, %v10785_v50, %v10789_v23  ;;  %v10817_v46 = vrot.slane %v10815_v24, 4  ;;  %v6796_v61 = vld [vmem:[#allocation2 + $0x1e8] sm:$0xf]  ;;  %v6798_v49 = vld [vmem:[#allocation2 + $0x1f4] sm:$0xf] }
 0x40b   :  { %v17846_v10 = vpop.f32.mrf.mxu1  ;;  %13405 = vmatmul.mubr.bf16.gmra.mxu1 %v12144_v0  ;;  %v10808_v48 = vor.u32 %v10807_v35, %v10804_v39  ;;  %v7459_v11 = vshrl.u32 %v6795_v16, 16  ;;  %v7462_v23 = vshll.u32 %v6795_v16, 16  ;;  %v6799_v50 = vld [vmem:[#allocation2 + $0x1f8] sm:$0xf]  ;;  %v17868_v39 = vpop.f32.mrf.mxu0  ;;  %v7468_v24 = vshll.u32 %v6796_v61, 16 }
 0x40c   :  { %19739 = vst [vmem:[#allocation327_spill] sm:$0xff] %v17846_v10  ;;  %v10811_v10 = vshll.u32 %v10160_v1, 16  ;;  %13408 = vmatprep.mubr.bf16.mxu1 %v12145_v44  ;;  %v10795_v58 = vrot.slane %v10794_v43, 4  ;;  %19746 = vst [vmem:[#allocation334_spill] sm:$0xff] %v17868_v39  ;;  %v7492_v39 = vshll.u32 %v6799_v50, 16 }
 0x40d   :  { %v17852_v42 = vpop.f32.mrf.mxu1  ;;  %v10809_v29 = vrot.slane %v10808_v48, 4  ;;  %v7483_v48 = vshrl.u32 %v6798_v49, 16 }
 0x40e   :  { %19741 = vst [vmem:[#allocation329_spill] sm:$0xff] %v17852_v42  ;;  %v10813_v0 = vrot.slane %v10811_v10, 5  ;;  %v10800_v1 = vsel %vm14499_vm6, %v10795_v58, %v10799_v9  ;;  %v10823_v10 = vrot.slane %v10821_v15, 5  ;;  %v7464_v15 = vrot.slane %v7462_v23, 5 }
 0x40f   :  { %v17856_v40 = vpop.f32.mrf.mxu1  ;;  %v12296_v44 = vcombine.low %v10790_v47, %v10800_v1  ;;  %v7478_v58 = vshll.u32 %v6797_v38, 16  ;;  %v7470_v47 = vrot.slane %v7468_v24, 5  ;;  %v6800_v1 = vld [vmem:[#allocation2 + $0x1fc] sm:$0x1]  ;;  %v7494_v23 = vrot.slane %v7492_v39, 5 }
 0x410   :  { %19742 = vst [vmem:[#allocation330_spill] sm:$0xff] %v17856_v40  ;;  %v10818_v41 = vor.u32 %v10817_v46, %v10813_v0  ;;  %v7461_v40 = vrot.slane %v7459_v11, 4  ;;  %v10814_v43 = vsel %vm14499_vm6, %v10809_v29, %v10813_v0  ;;  %v7486_v46 = vshll.u32 %v6798_v49, 16 }
 0x411   :  { %v17862_v51 = vpop.f32.mrf.mxu1  ;;  %13645 = vmatmul.mubr.bf16.gmra.mxu0 %v12296_v44  ;;  %v7496_v49 = vshrl.u32 %v6799_v50, 16  ;;  %v10165_v50 = vld [vmem:[#allocation2 + $0x204] sm:$0xf] }
 0x412   :  { %19744 = vst [vmem:[#allocation332_spill] sm:$0xff] %v17862_v51  ;;  %v10819_v35 = vrot.slane %v10818_v41, 4  ;;  %v7472_v51 = vshrl.u32 %v6796_v61, 16  ;;  %v7465_v29 = vor.u32 %v7464_v15, %v7461_v40  ;;  %v7480_v61 = vrot.slane %v7478_v58, 5 }
 0x413   :  { %v17866_v8 = vpop.f32.mrf.mxu1  ;;  %v7485_v41 = vrot.slane %v7483_v48, 4  ;;  %v7488_v38 = vrot.slane %v7486_v46, 5 }
 0x414   :  { %19745 = vst [vmem:[#allocation333_spill] sm:$0xff] %v17866_v8  ;;  %v10162_v8 = vld [vmem:[#allocation2 + $0x1f4] sm:$0xf]  ;;  %v10824_v16 = vsel %vm14499_vm6, %v10819_v35, %v10823_v10  ;;  %v7474_v11 = vrot.slane %v7472_v51, 4  ;;  %v7466_v10 = vrot.slane %v7465_v29, 4  ;;  %v7502_v35 = vshll.u32 %v6800_v1, 16 }
 0x415   :  { %v17872_v9 = vpop.f32.mrf.mxu1  ;;  %v12297_v0 = vcombine.low %v10814_v43, %v10824_v16  ;;  %v10163_v51 = vld [vmem:[#allocation2 + $0x1f8] sm:$0xf]  ;;  %v10826_v24 = vshrl.u32 %v10162_v8, 16  ;;  %v7489_v52 = vor.u32 %v7488_v38, %v7485_v41  ;;  %v10164_v43 = vld [vmem:[#allocation2 + $0x1fc] sm:$0x1]  ;;  %v10829_v40 = vshll.u32 %v10162_v8, 16 }
 0x416   :  { %19747 = vst [vmem:[#allocation335_spill] sm:$0xff] %v17872_v9  ;;  %v17878_v9 = vpop.f32.mrf.mxu0  ;;  %v7475_v44 = vor.u32 %v7474_v11, %v7470_v47  ;;  %v7471_v58 = vsel %vm14499_vm6, %v7466_v10, %v7470_v47  ;;  %v7504_v48 = vrot.slane %v7502_v35, 5  ;;  %v10835_v8 = vshll.u32 %v10163_v51, 16 }
 0x417   :  { %v17876_v42 = vpop.f32.mrf.mxu1  ;;  %19749 = vst [vmem:[#allocation337_spill] sm:$0xff] %v17878_v9  ;;  %13648 = vmatprep.mubr.bf16.mxu0 %v12297_v0  ;;  %v10828_v39 = vrot.slane %v10826_v24, 4  ;;  %v7490_v11 = vrot.slane %v7489_v52, 4  ;;  %v10831_v0 = vrot.slane %v10829_v40, 5  ;;  %v10845_v38 = vshll.u32 %v10164_v43, 16 }
 0x418   :  { %19748 = vst [vmem:[#allocation336_spill] sm:$0xff] %v17876_v42  ;;  %v7476_v5 = vrot.slane %v7475_v44, 4  ;;  %v7498_v42 = vrot.slane %v7496_v49, 4  ;;  %v17886_v46 = vpop.f32.mrf.mxu0  ;;  %v10839_v44 = vshrl.u32 %v10163_v51, 16  ;;  %v10166_v49 = vld [vmem:[#allocation2 + $0x208] sm:$0xf] }
 0x419   :  { %v17880_v18 = vpop.f32.mrf.mxu1  ;;  %19751 = vst [vmem:[#allocation339_spill] sm:$0xff] %v17886_v46  ;;  %v7495_v47 = vsel %vm14499_vm6, %v7490_v11, %v7494_v23  ;;  %v10832_v35 = vor.u32 %v10831_v0, %v10828_v39  ;;  %v10850_v24 = vshrl.u32 %v10165_v50, 16  ;;  %v10837_v46 = vrot.slane %v10835_v8, 5  ;;  %v10167_v52 = vld [vmem:[#allocation2 + $0x20c] sm:$0x1] }
 0x41a   :  { %v7481_v16 = vsel %vm14499_vm6, %v7476_v5, %v7480_v61  ;;  %v7499_v1 = vor.u32 %v7498_v42, %v7494_v23  ;;  %v10841_v9 = vrot.slane %v10839_v44, 4  ;;  %v10847_v5 = vrot.slane %v10845_v38, 5  ;;  %v17894_v61 = vpop.f32.mrf.mxu0  ;;  %v6801_v0 = vld [vmem:[#allocation2 + $0x204] sm:$0xf] }
 0x41b   :  { %v17882_v15 = vpop.f32.mrf.mxu1  ;;  %v12146_v41 = vcombine.low %v7471_v58, %v7481_v16  ;;  %v10853_v42 = vshll.u32 %v10165_v50, 16  ;;  %19752 = vst [vmem:[#allocation340_spill] sm:$0xff] %v17894_v61  ;;  %v10833_v43 = vrot.slane %v10832_v35, 4  ;;  %v10852_v58 = vrot.slane %v10850_v24, 4 }
 0x41c   :  { %19750 = vst [vmem:[#allocation338_spill] sm:$0xff] %v17882_v15  ;;  %v7500_v10 = vrot.slane %v7499_v1, 4  ;;  %v10859_v16 = vshll.u32 %v10166_v49, 16  ;;  %v10842_v11 = vor.u32 %v10841_v9, %v10837_v46  ;;  %v10863_v1 = vshrl.u32 %v10166_v49, 16  ;;  %v17902_v15 = vpop.f32.mrf.mxu0 }
 0x41d   :  { %v17890_v29 = vpop.f32.mrf.mxu1  ;;  %13409 = vmatmul.mubr.bf16.gmra.mxu1 %v12146_v41  ;;  %v10855_v39 = vrot.slane %v10853_v42, 5  ;;  %v10869_v8 = vshll.u32 %v10167_v52, 16  ;;  %v10838_v50 = vsel %vm14499_vm6, %v10833_v43, %v10837_v46  ;;  %19753 = vst [vmem:[#allocation341_spill] sm:$0xff] %v17902_v15  ;;  %v7507_v35 = vshrl.u32 %v6801_v0, 16  ;;  %v6803_v52 = vld [vmem:[#allocation2 + $0x20c] sm:$0x1] }
 0x41e   :  { %v7505_v51 = vsel %vm14499_vm6, %v7500_v10, %v7504_v48  ;;  %v10861_v41 = vrot.slane %v10859_v16, 5  ;;  %v10843_v44 = vrot.slane %v10842_v11, 4  ;;  %v10865_v61 = vrot.slane %v10863_v1, 4  ;;  %v6802_v10 = vld [vmem:[#allocation2 + $0x208] sm:$0xf]  ;;  %v17910_v1 = vpop.f32.mrf.mxu0 }
 0x41f   :  { %v17896_v40 = vpop.f32.mrf.mxu1  ;;  %v12147_v23 = vcombine.low %v7495_v47, %v7505_v51  ;;  %v10856_v38 = vor.u32 %v10855_v39, %v10852_v58  ;;  %v10871_v24 = vrot.slane %v10869_v8, 5  ;;  %v6804_v42 = vld [vmem:[#allocation2 + $0x214] sm:$0xf]  ;;  %v7509_v16 = vrot.slane %v7507_v35, 4  ;;  %v6805_v43 = vld [vmem:[#allocation2 + $0x218] sm:$0xf] }
 0x420   :  { %v10848_v9 = vsel %vm14499_vm6, %v10843_v44, %v10847_v5  ;;  %v10866_v47 = vor.u32 %v10865_v61, %v10861_v41  ;;  %v7510_v46 = vshll.u32 %v6801_v0, 16  ;;  %v7516_v11 = vshll.u32 %v6802_v10, 16  ;;  %19755 = vst [vmem:[#allocation343_spill] sm:$0xff] %v17910_v1 }
 0x421   :  { %13412 = vmatprep.mubr.bf16.mxu1 %v12147_v23  ;;  %v17904_v48 = vpop.f32.mrf.mxu1  ;;  %v10857_v49 = vrot.slane %v10856_v38, 4  ;;  %v12298_v51 = vcombine.low %v10838_v50, %v10848_v9  ;;  %v7520_v39 = vshrl.u32 %v6802_v10, 16  ;;  %v7526_v61 = vshll.u32 %v6803_v52, 16  ;;  %v10168_v38 = vld [vmem:[#allocation2 + $0x214] sm:$0xf] }
 0x422   :  { %19754 = vst [vmem:[#allocation342_spill] sm:$0xff] %v17904_v48  ;;  %v10867_v23 = vrot.slane %v10866_v47, 4  ;;  %v7512_v5 = vrot.slane %v7510_v46, 5  ;;  %v7531_v8 = vshrl.u32 %v6804_v42, 16  ;;  %v7534_v44 = vshll.u32 %v6804_v42, 16  ;;  %v17916_v46 = vpop.f32.mrf.mxu0 }
 0x423   :  { %v10862_v58 = vsel %vm14499_vm6, %v10857_v49, %v10861_v41  ;;  %v17912_v15 = vpop.f32.mrf.mxu1  ;;  %13649 = vmatmul.mubr.bf16.gmra.mxu0 %v12298_v51  ;;  %v7518_v50 = vrot.slane %v7516_v11, 5  ;;  %v7522_v35 = vrot.slane %v7520_v39, 4  ;;  %v6806_v9 = vld [vmem:[#allocation2 + $0x21c] sm:$0x1]  ;;  %v7540_v41 = vshll.u32 %v6805_v43, 16  ;;  %19757 = vst [vmem:[#allocation345_spill] sm:$0xff] %v17916_v46 }
 0x424   :  { %19756 = vst [vmem:[#allocation344_spill] sm:$0xff] %v17912_v15  ;;  %v10872_v0 = vsel %vm14499_vm6, %v10867_v23, %v10871_v24  ;;  %v7513_v47 = vor.u32 %v7512_v5, %v7509_v16  ;;  %v7528_v10 = vrot.slane %v7526_v61, 5  ;;  %v7533_v6 = vrot.slane %v7531_v8, 4  ;;  %v10169_v24 = vld [vmem:[#allocation2 + $0x218] sm:$0xf] }
 0x425   :  { %v12299_v49 = vcombine.low %v10862_v58, %v10872_v0  ;;  %v7523_v1 = vor.u32 %v7522_v35, %v7518_v50  ;;  %v7536_v34 = vrot.slane %v7534_v44, 5  ;;  %v7542_v15 = vrot.slane %v7540_v41, 5  ;;  %v10170_v58 = vld [vmem:[#allocation2 + $0x21c] sm:$0x1] }
 0x426   :  { %v7544_v51 = vshrl.u32 %v6805_v43, 16  ;;  %v7514_v42 = vrot.slane %v7513_v47, 4  ;;  %v7550_v22 = vshll.u32 %v6806_v9, 16  ;;  %v10874_v23 = vshrl.u32 %v10168_v38, 16  ;;  %v10171_v43 = vld [vmem:[#allocation2 + $0x224] sm:$0xf]  ;;  %v17924_v9 = vpop.f32.mrf.mxu0 }
 0x427   :  { %13652 = vmatprep.mubr.bf16.mxu0 %v12299_v49  ;;  %v7524_v11 = vrot.slane %v7523_v1, 4  ;;  %v7537_v39 = vor.u32 %v7536_v34, %v7533_v6  ;;  %v10877_v16 = vshll.u32 %v10168_v38, 16  ;;  %19758 = vst [vmem:[#allocation346_spill] sm:$0xff] %v17924_v9  ;;  %v10883_v6 = vshll.u32 %v10169_v24, 16  ;;  %v10172_v47 = vld [vmem:[#allocation2 + $0x228] sm:$0xf] }
 0x428   :  { %v7546_v48 = vrot.slane %v7544_v51, 4  ;;  %v7519_v5 = vsel %vm14499_vm6, %v7514_v42, %v7518_v50  ;;  %v7552_v61 = vrot.slane %v7550_v22, 5  ;;  %v10876_v8 = vrot.slane %v10874_v23, 4 }
 0x429   :  { %v7529_v44 = vsel %vm14499_vm6, %v7524_v11, %v7528_v10  ;;  %v7538_v0 = vrot.slane %v7537_v39, 4  ;;  %v10879_v41 = vrot.slane %v10877_v16, 5  ;;  %v10887_v1 = vshrl.u32 %v10169_v24, 16  ;;  %v10173_v11 = vld [vmem:[#allocation2 + $0x22c] sm:$0x1] }
 0x42a   :  { %v7547_v35 = vor.u32 %v7546_v48, %v7542_v15  ;;  %v12148_v34 = vcombine.low %v7519_v5, %v7529_v44  ;;  %v10893_v38 = vshll.u32 %v10170_v58, 16  ;;  %v10898_v42 = vshrl.u32 %v10171_v43, 16  ;;  %v17932_v58 = vpop.f32.mrf.mxu0 }
 0x42b   :  { %v17918_v52 = vpop.f32.mrf.mxu1  ;;  %v7543_v22 = vsel %vm14499_vm6, %v7538_v0, %v7542_v15  ;;  %v10880_v51 = vor.u32 %v10879_v41, %v10876_v8  ;;  %v10885_v10 = vrot.slane %v10883_v6, 5  ;;  %v10889_v23 = vrot.slane %v10887_v1, 4  ;;  %19759 = vst [vmem:[#allocation347_spill] sm:$0xff] %v17932_v58  ;;  %v6807_v41 = vld [vmem:[#allocation2 + $0x224] sm:$0xf] }
 0x42c   :  { %v7548_v50 = vrot.slane %v7547_v35, 4  ;;  %13413 = vmatmul.mubr.bf16.gmra.mxu1 %v12148_v34  ;;  %v10895_v48 = vrot.slane %v10893_v38, 5  ;;  %v10901_v39 = vshll.u32 %v10171_v43, 16  ;;  %v10900_v44 = vrot.slane %v10898_v42, 4  ;;  %v17938_v42 = vpop.f32.mrf.mxu0 }
 0x42d   :  { %v17926_v49 = vpop.f32.mrf.mxu1  ;;  %v10881_v5 = vrot.slane %v10880_v51, 4  ;;  %v10907_v24 = vshll.u32 %v10172_v47, 16  ;;  %v10890_v0 = vor.u32 %v10889_v23, %v10885_v10  ;;  %v10911_v35 = vshrl.u32 %v10172_v47, 16  ;;  %19760 = vst [vmem:[#allocation348_spill] sm:$0xff] %v17938_v42 }
 0x42e   :  { %v7553_v16 = vsel %vm14499_vm6, %v7548_v50, %v7552_v61  ;;  %v10903_v8 = vrot.slane %v10901_v39, 5  ;;  %v10917_v6 = vshll.u32 %v10173_v11, 16  ;;  %v6808_v50 = vld [vmem:[#allocation2 + $0x228] sm:$0xf]  ;;  %v7555_v51 = vshrl.u32 %v6807_v41, 16  ;;  %v17946_v42 = vpop.f32.mrf.mxu0 }
 0x42f   :  { %v17934_v9 = vpop.f32.mrf.mxu1  ;;  %v12149_v15 = vcombine.low %v7543_v22, %v7553_v16  ;;  %v10909_v34 = vrot.slane %v10907_v24, 5  ;;  %v10886_v43 = vsel %vm14499_vm6, %v10881_v5, %v10885_v10  ;;  %v10891_v1 = vrot.slane %v10890_v0, 4  ;;  %v6809_v11 = vld [vmem:[#allocation2 + $0x22c] sm:$0x1]  ;;  %19761 = vst [vmem:[#allocation349_spill] sm:$0xff] %v17946_v42  ;;  %v19929_v42 = vld [vmem:[#allocation104_spill] sm:$0xff] }
 0x430   :  { %v10904_v61 = vor.u32 %v10903_v8, %v10900_v44  ;;  %v10913_v38 = vrot.slane %v10911_v35, 4  ;;  %v10919_v39 = vrot.slane %v10917_v6, 5  ;;  %v7557_v24 = vrot.slane %v7555_v51, 4  ;;  %v17952_v51 = vpop.f32.mrf.mxu0 }
 0x431   :  { %13416 = vmatprep.mubr.bf16.mxu1 %v12149_v15  ;;  %v17940_v58 = vpop.f32.mrf.mxu1  ;;  %v10896_v22 = vsel %vm14499_vm6, %v10891_v1, %v10895_v48  ;;  %v7558_v15 = vshll.u32 %v6807_v41, 16  ;;  %v7564_v44 = vshll.u32 %v6808_v50, 16  ;;  %v7568_v0 = vshrl.u32 %v6808_v50, 16  ;;  %19762 = vst [vmem:[#allocation350_spill] sm:$0xff] %v17952_v51 }
 0x432   :  { %v10905_v47 = vrot.slane %v10904_v61, 4  ;;  %v10914_v23 = vor.u32 %v10913_v38, %v10909_v34  ;;  %v12300_v16 = vcombine.low %v10886_v43, %v10896_v22  ;;  %v7574_v35 = vshll.u32 %v6809_v11, 16  ;;  %v17960_v11 = vpop.f32.mrf.mxu0 }
 0x433   :  { %v7560_v8 = vrot.slane %v7558_v15, 5  ;;  %v7566_v6 = vrot.slane %v7564_v44, 5  ;;  %v7570_v43 = vrot.slane %v7568_v0, 4  ;;  %19763 = vst [vmem:[#allocation351_spill] sm:$0xff] %v17960_v11  ;;  %v13944_v15 = vld [vmem:[#allocation2 + $0x28] sm:$0xf] }
 0x434   :  { %v10910_v10 = vsel %vm14499_vm6, %v10905_v47, %v10909_v34  ;;  %v10915_v5 = vrot.slane %v10914_v23, 4  ;;  %13653 = vmatmul.mubr.bf16.gmra.mxu0 %v12300_v16  ;;  %v7576_v38 = vrot.slane %v7574_v35, 5  ;;  %v19765_v0 = vld [vmem:[#allocation80_spill] sm:$0xff] }
 0x435   :  { %v7561_v41 = vor.u32 %v7560_v8, %v7557_v24  ;;  %v7571_v61 = vor.u32 %v7570_v43, %v7566_v6  ;;  %v13943_v24 = vld [vmem:[#allocation2 + $0x24] sm:$0xf]  ;;  %v19766_v8 = vld [vmem:[#allocation19_spill] sm:$0xff] }
 0x436   :  { %v10920_v48 = vsel %vm14499_vm6, %v10915_v5, %v10919_v39  ;;  %v17964_v5 = vpop.f32.mrf.mxu0  ;;  %v2508_v35 = vadd.f32 %v19766_v8, %v19765_v0 }
 0x437   :  { %v12301_v1 = vcombine.low %v10910_v10, %v10920_v48  ;;  %v7562_v34 = vrot.slane %v7561_v41, 4  ;;  %v7572_v22 = vrot.slane %v7571_v61, 4  ;;  %v12231_v10 = vcombine.low %v13943_v24, %v13944_v15  ;;  %19764 = vst [vmem:[#allocation352_spill] sm:$0xff] %v17964_v5  ;;  %v19767_v48 = vld [vmem:[#allocation84_spill] sm:$0xff]  ;;  %v19770_v41 = vld [vmem:[#allocation22_spill] sm:$0xff] }
 0x438   :  { %v17977_v15 = vpop.f32.mrf.mxu0  ;;  %v19779_v5 = vld [vmem:[#allocation32_spill] sm:$0xff] }
 0x439   :  { %13656 = vmatprep.mubr.bf16.mxu0 %v12301_v1  ;;  %v7567_v47 = vsel %vm14499_vm6, %v7562_v34, %v7566_v6  ;;  %v7577_v23 = vsel %vm14499_vm6, %v7572_v22, %v7576_v38  ;;  %v19768_v6 = vld [vmem:[#allocation21_spill] sm:$0xff]  ;;  %v19769_v1 = vld [vmem:[#allocation86_spill] sm:$0xff]  ;;  %v19771_v38 = vld [vmem:[#allocation88_spill] sm:$0xff]  ;;  %19773 = vst [vmem:[#allocation80_spill] sm:$0xff] %v17977_v15 }
 0x43a   :  { %v12150_v39 = vcombine.low %v7567_v47, %v7577_v23  ;;  %v2521_v43 = vadd.f32 %v19768_v6, %v19767_v48  ;;  %v2513_v61 = vadd.f32 %v19770_v41, %v19769_v1  ;;  %v19772_v34 = vld [vmem:[#allocation23_spill] sm:$0xff]  ;;  %v3288_v47 = vadd.f32 %v16960_v55, %v2508_v35  ;;  %v13945_v23 = vld [vmem:[#allocation2 + $0x34] sm:$0xf]  ;;  %v13947_v6 = vld [vmem:[#allocation2 + $0x44] sm:$0xf]  ;;  %v17990_v51 = vpop.f32.mrf.mxu0 }
 0x43b   :  { %v2524_v22 = vadd.f32 %v19772_v34, %v19771_v38  ;;  %v13948_v1 = vld [vmem:[#allocation2 + $0x48] sm:$0xf]  ;;  %v19775_v55 = vld [vmem:[#allocation26_spill] sm:$0xff]  ;;  %v19776_v34 = vld [vmem:[#allocation180_spill] sm:$0xff]  ;;  %19780 = vst [vmem:[#allocation19_spill] sm:$0xff] %v17990_v51 }
 0x43c   :  { %13417 = vmatmul.mubr.bf16.gmra.mxu1 %v12150_v39  ;;  %v13946_v39 = vld [vmem:[#allocation2 + $0x38] sm:$0xf]  ;;  %v3291_v0 = vadd.f32 %v16976_v28, %v2521_v43  ;;  %v3289_v8 = vadd.f32 %v16990_v59, %v2513_v61  ;;  %v12233_v41 = vcombine.low %v13947_v6, %v13948_v1  ;;  %v19774_v38 = vld [vmem:[#allocation139_spill] sm:$0xff] }
 0x43d   :  { %v17948_v46 = vpop.f32.mrf.mxu1  ;;  %13516 = vmatprep.mubr.bf16.mxu1 %v12231_v10  ;;  %v12232_v24 = vcombine.low %v13945_v23, %v13946_v39  ;;  %v3292_v48 = vadd.f32 %v17010_v27, %v2524_v22  ;;  %v2548_v35 = vadd.f32 %v19775_v55, %v19774_v38  ;;  %v19777_v23 = vld [vmem:[#allocation28_spill] sm:$0xff]  ;;  %v19778_v15 = vld [vmem:[#allocation217_spill] sm:$0xff]  ;;  %v19781_v59 = vld [vmem:[#allocation83_spill] sm:$0xff] }
 0x43e   :  { %v2564_v39 = vadd.f32 %v19777_v23, %v19776_v34  ;;  %v2580_v11 = vadd.f32 %v19779_v5, %v19778_v15  ;;  %v4701_v27 = vadd.f32 %v19781_v59, %v3288_v47  ;;  %v19782_v43 = vld [vmem:[#allocation87_spill] sm:$0xff]  ;;  %v19783_v22 = vld [vmem:[#allocation89_spill] sm:$0xff] }
 0x43f   :  { %v17954_v50 = vpop.f32.mrf.mxu1  ;;  %v4704_v61 = vadd.f32 %v19782_v43, %v3291_v0  ;;  %v19784_v6 = vld [vmem:[#allocation91_spill] sm:$0xff]  ;;  %v19785_v0 = vld [vmem:[#allocation96_spill] sm:$0xff] }
 0x440   :  { %v4705_v1 = vadd.f32 %v19784_v6, %v3292_v48  ;;  %v3302_v38 = vadd.f32 %v17148_v13, %v2564_v39  ;;  %v18001_v55 = vadd.f32 %v17183_v33, %v2580_v11  ;;  %v6047_v5 = vadd.f32 %v17498_v25, %v4701_v27  ;;  %v19786_v48 = vld [vmem:[#allocation102_spill] sm:$0xff]  ;;  %v13950_v33 = vld [vmem:[#allocation2 + $0x58] sm:$0xf]  ;;  %v18013_v39 = vpop.f32.mrf.mxu0  ;;  %v13952_v43 = vld [vmem:[#allocation2 + $0x68] sm:$0xf] }
 0x441   :  { %v17962_v16 = vpop.f32.mrf.mxu1  ;;  %v6050_v15 = vadd.f32 %v17518_v63, %v4704_v61  ;;  %v4706_v23 = vadd.f32 %v19786_v48, %v17043_v32  ;;  %19788 = vst [vmem:[#allocation84_spill] sm:$0xff] %v18013_v39  ;;  %v19789_v63 = vld [vmem:[#allocation129_spill] sm:$0xff]  ;;  %v13951_v32 = vld [vmem:[#allocation2 + $0x64] sm:$0xf]  ;;  %v14000_v51 = vld [vmem:[#allocation2 + $0x208] sm:$0xf] }
 0x442   :  { %v6051_v47 = vadd.f32 %v17546_v26, %v4705_v1  ;;  %v19790_v26 = vld [vmem:[#allocation138_spill] sm:$0xff]  ;;  %v12235_v61 = vcombine.low %v13951_v32, %v13952_v43  ;;  %v19792_v6 = vld [vmem:[#allocation157_spill] sm:$0xff]  ;;  %v19804_v32 = vld [vmem:[#allocation183_spill] sm:$0xff] }
 0x443   :  { %v17966_v44 = vpop.f32.mrf.mxu1  ;;  %v4710_v59 = vadd.f32 %v19790_v26, %v17092_v12  ;;  %v13999_v39 = vld [vmem:[#allocation2 + $0x204] sm:$0xf] }
 0x444   :  { %13517 = vmatmul.mubr.bf16.vlgmr.msra.gmra.mxu1 %v12232_v24  ;;  %v4702_v24 = vadd.f32 %v19783_v22, %v3289_v8  ;;  %v4708_v8 = vadd.f32 %v19785_v0, %v17037_v2  ;;  %v19791_v2 = vld [vmem:[#allocation148_spill] sm:$0xff]  ;;  %v6052_v22 = vadd.f32 %v17572_v37, %v4706_v23  ;;  %v19796_v23 = vld [vmem:[#allocation181_spill] sm:$0xff] }
 0x445   :  { %13520 = vmatprep.mubr.bf16.mxu1 %v12233_v41  ;;  %v3298_v41 = vadd.f32 %v17105_v54, %v2548_v35  ;;  %v19787_v54 = vld [vmem:[#allocation111_spill] sm:$0xff]  ;;  %v13949_v35 = vld [vmem:[#allocation2 + $0x54] sm:$0xf]  ;;  %v4713_v27 = vadd.f32 %v19791_v2, %v17101_v21  ;;  %v6056_v0 = vadd.f32 %v17606_v19, %v4710_v59  ;;  %v19793_v21 = vld [vmem:[#allocation166_spill] sm:$0xff] }
 0x446   :  { %v6048_v34 = vadd.f32 %v17534_v30, %v4702_v24  ;;  %v4709_v13 = vadd.f32 %v19787_v54, %v17048_v45  ;;  %v12234_v11 = vcombine.low %v13949_v35, %v13950_v33  ;;  %v4712_v30 = vadd.f32 %v19789_v63, %v17076_v7  ;;  %v19799_v35 = vld [vmem:[#allocation174_spill] sm:$0xff]  ;;  %v19800_v19 = vld [vmem:[#allocation197_spill] sm:$0xff] }
 0x447   :  { %v6054_v45 = vadd.f32 %v17564_v36, %v4708_v8  ;;  %v4711_v1 = vadd.f32 %v19792_v6, %v3298_v41  ;;  %v6059_v12 = vadd.f32 %v17612_v31, %v4713_v27  ;;  %v4716_v48 = vadd.f32 %v19793_v21, %v17114_v60  ;;  %v19794_v36 = vld [vmem:[#allocation178_spill] sm:$0xff]  ;;  %v19795_v8 = vld [vmem:[#allocation179_spill] sm:$0xff]  ;;  %v18037_v41 = vpop.f32.mrf.mxu0  ;;  %v19801_v60 = vld [vmem:[#allocation200_spill] sm:$0xff] }
 0x448   :  { %v6055_v24 = vadd.f32 %v17584_v62, %v4709_v13  ;;  %v6058_v7 = vadd.f32 %v17598_v17, %v4712_v30  ;;  %v4714_v37 = vadd.f32 %v19795_v8, %v19794_v36  ;;  %v19797_v62 = vld [vmem:[#allocation190_spill] sm:$0xff]  ;;  %19798 = vst [vmem:[#allocation21_spill] sm:$0xff] %v18037_v41  ;;  %v6657_v17 = vadd.f32 %v19799_v35, %v6047_v5  ;;  %v19802_v63 = vld [vmem:[#allocation209_spill] sm:$0xff]  ;;  %v19812_v35 = vld [vmem:[#allocation191_spill] sm:$0xff] }
 0x449   :  { %v6057_v54 = vadd.f32 %v17622_v3, %v4711_v1  ;;  %v4717_v13 = vadd.f32 %v19797_v62, %v19796_v23  ;;  %v6062_v31 = vadd.f32 %v17628_v57, %v4716_v48  ;;  %v4720_v30 = vadd.f32 %v19802_v63, %v19801_v60  ;;  %v19803_v3 = vld [vmem:[#allocation182_spill] sm:$0xff]  ;;  %v19806_v1 = vld [vmem:[#allocation45_spill] sm:$0xff]  ;;  %v18061_v36 = vpop.f32.mrf.mxu0  ;;  %v19814_v60 = vld [vmem:[#allocation212_spill] sm:$0xff] }
 0x44a   :  { %v6660_v26 = vadd.f32 %v19803_v3, %v6050_v15  ;;  %v6060_v59 = vadd.f32 %v17636_v14, %v4714_v37  ;;  %v18050_v27 = vadd.f32 %v17880_v18, %v6657_v17  ;;  %v6658_v5 = vadd.f32 %v19804_v32, %v6048_v34  ;;  %v19807_v15 = vld [vmem:[#allocation216_spill] sm:$0xff]  ;;  %v13954_v48 = vld [vmem:[#allocation2 + $0x78] sm:$0xf]  ;;  %19808 = vst [vmem:[#allocation86_spill] sm:$0xff] %v18061_v36  ;;  %v13956_v37 = vld [vmem:[#allocation2 + $0x88] sm:$0xf] }
 0x44b   :  { %v6063_v2 = vadd.f32 %v17644_v4, %v4717_v13  ;;  %v6066_v57 = vadd.f32 %v17658_v20, %v4720_v30  ;;  %v4718_v21 = vadd.f32 %v19807_v15, %v19806_v1  ;;  %v13953_v14 = vld [vmem:[#allocation2 + $0x74] sm:$0xf]  ;;  %v19809_v34 = vld [vmem:[#allocation165_spill] sm:$0xff]  ;;  %v13955_v20 = vld [vmem:[#allocation2 + $0x84] sm:$0xf]  ;;  %v6665_v17 = vadd.f32 %v19812_v35, %v6055_v24 }
 0x44c   :  { %13521 = vmatmul.mubr.bf16.gmra.mxu1 %v12234_v11  ;;  %v4715_v11 = vadd.f32 %v19800_v19, %v3302_v38  ;;  %v18056_v38 = vadd.f32 %v17890_v29, %v6660_v26  ;;  %v12236_v4 = vcombine.low %v13953_v14, %v13954_v48  ;;  %v18064_v18 = vadd.f32 %v17896_v40, %v6658_v5  ;;  %v19810_v23 = vld [vmem:[#allocation342_spill] sm:$0xff]  ;;  %v19817_v32 = vld [vmem:[#allocation232_spill] sm:$0xff] }
 0x44d   :  { %13524 = vmatprep.mubr.bf16.mxu1 %v12235_v61  ;;  %v19805_v61 = vld [vmem:[#allocation162_spill] sm:$0xff]  ;;  %v12237_v29 = vcombine.low %v13955_v20, %v13956_v37  ;;  %v4719_v5 = vadd.f32 %v19817_v32, %v18001_v55  ;;  %v18085_v24 = vadd.f32 %v17934_v9, %v6665_v17  ;;  %v19819_v1 = vld [vmem:[#allocation272_spill] sm:$0xff] }
 0x44e   :  { %v6061_v43 = vadd.f32 %v17652_v56, %v4715_v11  ;;  %v6661_v6 = vadd.f32 %v19805_v61, %v6051_v47  ;;  %v6664_v56 = vadd.f32 %v19809_v34, %v6054_v45  ;;  %v19811_v47 = vld [vmem:[#allocation169_spill] sm:$0xff]  ;;  %v19813_v19 = vld [vmem:[#allocation270_spill] sm:$0xff]  ;;  %v19816_v45 = vld [vmem:[#allocation192_spill] sm:$0xff] }
 0x44f   :  { %v17979_v10 = vpop.f32.mrf.mxu1  ;;  %v6662_v13 = vadd.f32 %v19811_v47, %v6052_v22  ;;  %v6064_v11 = vadd.f32 %v19813_v19, %v4718_v21  ;;  %v19815_v63 = vld [vmem:[#allocation230_spill] sm:$0xff]  ;;  %v6668_v3 = vadd.f32 %v19816_v45, %v6058_v7  ;;  %v19818_v61 = vld [vmem:[#allocation173_spill] sm:$0xff]  ;;  %v18089_v21 = vpop.f32.mrf.mxu0  ;;  %v10174_v35 = vld [vmem:[#allocation2 + $0x234] sm:$0xf] }
 0x450   :  { %v18068_v62 = vadd.f32 %v19810_v23, %v6661_v6  ;;  %v4721_v30 = vadd.f32 %v19815_v63, %v19814_v60  ;;  %v18076_v40 = vadd.f32 %v17918_v52, %v6664_v56  ;;  %v6666_v6 = vadd.f32 %v19818_v61, %v6056_v0  ;;  %19820 = vst [vmem:[#allocation22_spill] sm:$0xff] %v18089_v21  ;;  %v19821_v7 = vld [vmem:[#allocation193_spill] sm:$0xff]  ;;  %v19822_v48 = vld [vmem:[#allocation194_spill] sm:$0xff]  ;;  %v19825_v56 = vld [vmem:[#allocation239_spill] sm:$0xff] }
 0x451   :  { %v17992_v28 = vpop.f32.mrf.mxu1  ;;  %v18082_v22 = vadd.f32 %v17926_v49, %v6662_v13  ;;  %v18092_v52 = vadd.f32 %v17948_v46, %v6668_v3  ;;  %v6669_v14 = vadd.f32 %v19821_v7, %v6059_v12  ;;  %v6667_v55 = vadd.f32 %v19822_v48, %v6057_v54  ;;  %v19824_v49 = vld [vmem:[#allocation218_spill] sm:$0xff]  ;;  %v19827_v23 = vld [vmem:[#allocation199_spill] sm:$0xff]  ;;  %v13957_v17 = vld [vmem:[#allocation2 + $0x94] sm:$0xf] }
 0x452   :  { %v6067_v15 = vadd.f32 %v19819_v1, %v4721_v30  ;;  %v4724_v20 = vadd.f32 %v19825_v56, %v19824_v49  ;;  %v18100_v9 = vadd.f32 %v17954_v50, %v6666_v6  ;;  %v19826_v0 = vld [vmem:[#allocation198_spill] sm:$0xff]  ;;  %v6670_v12 = vadd.f32 %v19827_v23, %v6060_v59  ;;  %v13958_v19 = vld [vmem:[#allocation2 + $0x98] sm:$0xf]  ;;  %v19923_v41 = vld [vmem:[#allocation132_spill] sm:$0xff] }
 0x453   :  { %v18015_v25 = vpop.f32.mrf.mxu1  ;;  %v6672_v37 = vadd.f32 %v19826_v0, %v6062_v31  ;;  %v18107_v46 = vadd.f32 %v17966_v44, %v6667_v55  ;;  %v19828_v47 = vld [vmem:[#allocation202_spill] sm:$0xff]  ;;  %v12238_v60 = vcombine.low %v13957_v17, %v13958_v19  ;;  %v19830_v30 = vld [vmem:[#allocation213_spill] sm:$0xff]  ;;  %v13960_v44 = vld [vmem:[#allocation2 + $0xa8] sm:$0xf]  ;;  %v10925_v55 = vshll.u32 %v10174_v35, 16 }
 0x454   :  { %13525 = vmatmul.mubr.bf16.gmra.mxu1 %v12236_v4  ;;  %v19823_v4 = vld [vmem:[#allocation273_spill] sm:$0xff]  ;;  %v6673_v54 = vadd.f32 %v19828_v47, %v6063_v2  ;;  %v19829_v63 = vld [vmem:[#allocation46_spill] sm:$0xff]  ;;  %v18119_v59 = vadd.f32 %v17992_v28, %v6670_v12  ;;  %v19841_v12 = vld [vmem:[#allocation275_spill] sm:$0xff] }
 0x455   :  { %v18040_v33 = vpop.f32.mrf.mxu1  ;;  %13528 = vmatprep.mubr.bf16.mxu1 %v12237_v29  ;;  %v6065_v34 = vadd.f32 %v19823_v4, %v4719_v5  ;;  %v18104_v29 = vadd.f32 %v17962_v16, %v6669_v14  ;;  %v18112_v50 = vadd.f32 %v17979_v10, %v6672_v37  ;;  %v6671_v31 = vadd.f32 %v19829_v63, %v6061_v43  ;;  %v10175_v45 = vld [vmem:[#allocation2 + $0x238] sm:$0xf]  ;;  %v13959_v3 = vld [vmem:[#allocation2 + $0xa4] sm:$0xf]  ;;  %v18116_v5 = vpop.f32.mrf.mxu0  ;;  %v10176_v10 = vld [vmem:[#allocation2 + $0x23c] sm:$0x1] }
 0x456   :  { %v6676_v16 = vadd.f32 %v19830_v30, %v6066_v57  ;;  %v12239_v32 = vcombine.low %v13959_v3, %v13960_v44  ;;  %19831 = vst [vmem:[#allocation88_spill] sm:$0xff] %v18116_v5  ;;  %v18122_v2 = vadd.f32 %v18015_v25, %v6673_v54  ;;  %v19833_v61 = vld [vmem:[#allocation214_spill] sm:$0xff]  ;;  %v19836_v57 = vld [vmem:[#allocation223_spill] sm:$0xff]  ;;  %v10922_v14 = vshrl.u32 %v10174_v35, 16  ;;  %v19839_v0 = vld [vmem:[#allocation201_spill] sm:$0xff] }
 0x457   :  { %v6674_v6 = vadd.f32 %v19833_v61, %v6064_v11  ;;  %v18126_v1 = vadd.f32 %v18040_v33, %v6671_v31  ;;  %v6677_v7 = vadd.f32 %v19836_v57, %v6067_v15  ;;  %v10931_v28 = vshll.u32 %v10175_v45, 16  ;;  %v18136_v37 = vpop.f32.mrf.mxu0  ;;  %v19843_v54 = vld [vmem:[#allocation107_spill] sm:$0xff]  ;;  %v19845_v63 = vld [vmem:[#allocation276_spill] sm:$0xff]  ;;  %v13963_v57 = vld [vmem:[#allocation2 + $0xc4] sm:$0xf] }
 0x458   :  { %19832 = vst [vmem:[#allocation23_spill] sm:$0xff] %v18122_v2  ;;  %v10935_v4 = vshrl.u32 %v10175_v45, 16  ;;  %v10924_v11 = vrot.slane %v10922_v14, 4  ;;  %v10941_v56 = vshll.u32 %v10176_v10, 16  ;;  %v6675_v33 = vadd.f32 %v19839_v0, %v6065_v34  ;;  %19840 = vst [vmem:[#allocation217_spill] sm:$0xff] %v18136_v37  ;;  %v19846_v30 = vld [vmem:[#allocation203_spill] sm:$0xff] }
 0x459   :  { %19834 = vst [vmem:[#allocation139_spill] sm:$0xff] %v18126_v1  ;;  %v10933_v23 = vrot.slane %v10931_v28, 5  ;;  %v6070_v47 = vadd.f32 %v19841_v12, %v4724_v20  ;;  %v13961_v45 = vld [vmem:[#allocation2 + $0xb8] sm:$0xf]  ;;  %v13962_v3 = vld [vmem:[#allocation2 + $0xb4] sm:$0xf] }
 0x45a   :  { %v10937_v15 = vrot.slane %v10935_v4, 4  ;;  %v12240_v44 = vcombine.low %v13962_v3, %v13961_v45  ;;  %v19860_v45 = vld [vmem:[#allocation112_spill] sm:$0xff]  ;;  %v19914_v21 = vld [vmem:[#allocation49_spill] sm:$0xff] }
 0x45b   :  { %v20067_v2 = vld [vmem:[#allocation77_spill] sm:$0xff] }
 0x45c   :  { %13529 = vmatmul.mubr.bf16.gmra.mxu1 %v12238_v60  ;;  %v10938_v60 = vor.u32 %v10937_v15, %v10933_v23 }
 0x45d   :  { %13532 = vmatprep.mubr.bf16.mxu1 %v12239_v32  ;;  %v18146_v32 = vpop.f32.mrf.mxu0 }
 0x45e   :  { %19848 = vst [vmem:[#allocation83_spill] sm:$0xff] %v18146_v32  ;;  %v10939_v20 = vrot.slane %v10938_v60, 4  ;;  %v13992_v32 = vld [vmem:[#allocation2 + $0x1c8] sm:$0xf] }
 0x45f   :  { %v18157_v15 = vpop.f32.mrf.mxu0 }
 0x460   :  { %19853 = vst [vmem:[#allocation89_spill] sm:$0xff] %v18157_v15  ;;  %v13991_v15 = vld [vmem:[#allocation2 + $0x1c4] sm:$0xf] }
 0x461   :  { %v13382_v8 = vpop.f32.mrf.mxu1 }
 0x462   :  { %v18128_v43 = vadd.f32 %v13382_v8, %v6676_v16  ;;  %v10927_v8 = vrot.slane %v10925_v55, 5  ;;  %v19847_v16 = vld [vmem:[#allocation31_spill] sm:$0xff] }
 0x463   :  { %v7901_v26 = vpop.f32.mrf.mxu1  ;;  %v4725_v34 = vadd.f32 %v19847_v16, %v19846_v30  ;;  %v19850_v55 = vld [vmem:[#allocation207_spill] sm:$0xff] }
 0x464   :  { %19835 = vst [vmem:[#allocation26_spill] sm:$0xff] %v18128_v43  ;;  %v18131_v48 = vadd.f32 %v7901_v26, %v6674_v6  ;;  %v19842_v26 = vld [vmem:[#allocation224_spill] sm:$0xff]  ;;  %v10928_v19 = vor.u32 %v10927_v8, %v10924_v11  ;;  %v19849_v6 = vld [vmem:[#allocation278_spill] sm:$0xff]  ;;  %v6680_v28 = vadd.f32 %v19850_v55, %v6070_v47  ;;  %13533 = vmatmul.mubr.bf16.gmra.mxu1 %v12240_v44  ;;  %v19855_v47 = vld [vmem:[#allocation227_spill] sm:$0xff] }
 0x465   :  { %v13383_v13 = vpop.f32.mrf.mxu1  ;;  %v4722_v35 = vadd.f32 %v19843_v54, %v19842_v26  ;;  %v6071_v10 = vadd.f32 %v19849_v6, %v4725_v34  ;;  %v13968_v30 = vld [vmem:[#allocation2 + $0xe8] sm:$0xf]  ;;  %v19859_v34 = vld [vmem:[#allocation210_spill] sm:$0xff]  ;;  %v19861_v44 = vld [vmem:[#allocation281_spill] sm:$0xff] }
 0x466   :  { %19837 = vst [vmem:[#allocation180_spill] sm:$0xff] %v18131_v48  ;;  %v18133_v25 = vadd.f32 %v13383_v13, %v6677_v7  ;;  %v10943_v13 = vrot.slane %v10941_v56, 5  ;;  %v10929_v61 = vrot.slane %v10928_v19, 4  ;;  %v13964_v7 = vld [vmem:[#allocation2 + $0xc8] sm:$0xf]  ;;  %v4728_v3 = vadd.f32 %v19860_v45, %v19859_v34 }
 0x467   :  { %v7904_v49 = vpop.f32.mrf.mxu1  ;;  %v6068_v31 = vadd.f32 %v19845_v63, %v4722_v35  ;;  %v12241_v14 = vcombine.low %v13963_v57, %v13964_v7  ;;  %v6681_v54 = vadd.f32 %v19855_v47, %v6071_v10  ;;  %v13966_v19 = vld [vmem:[#allocation2 + $0xd4] sm:$0xf]  ;;  %v13967_v63 = vld [vmem:[#allocation2 + $0xe4] sm:$0xf]  ;;  %v19863_v6 = vld [vmem:[#allocation99_spill] sm:$0xff] }
 0x468   :  { %19838 = vst [vmem:[#allocation28_spill] sm:$0xff] %v18133_v25  ;;  %v18141_v17 = vadd.f32 %v7904_v49, %v6675_v33  ;;  %v10934_v4 = vsel %vm14499_vm6, %v10929_v61, %v10933_v23  ;;  %v10944_v49 = vsel %vm14499_vm6, %v10939_v20, %v10943_v13  ;;  %v19852_v33 = vld [vmem:[#allocation208_spill] sm:$0xff]  ;;  %v12242_v60 = vcombine.low %v13966_v19, %v13965_v53  ;;  %v18164_v13 = vpop.f32.mrf.mxu0  ;;  %v19862_v20 = vld [vmem:[#allocation175_spill] sm:$0xff]  ;;  %v13970_v7 = vld [vmem:[#allocation2 + $0xf8] sm:$0xf] }
 0x469   :  { %13536 = vmatprep.mubr.bf16.mxu1 %v12241_v14  ;;  %v12302_v56 = vcombine.low %v10934_v4, %v10944_v49  ;;  %v6678_v8 = vadd.f32 %v19852_v33, %v6068_v31  ;;  %19857 = vst [vmem:[#allocation102_spill] sm:$0xff] %v18164_v13  ;;  %v12243_v16 = vcombine.low %v13967_v63, %v13968_v30  ;;  %v13969_v57 = vld [vmem:[#allocation2 + $0xf4] sm:$0xf]  ;;  %v13972_v4 = vld [vmem:[#allocation2 + $0x108] sm:$0xf]  ;;  %v20010_v25 = vld [vmem:[#allocation321_spill] sm:$0xff] }
 0x46a   :  { %19844 = vst [vmem:[#allocation32_spill] sm:$0xff] %v18141_v17  ;;  %v18166_v31 = vpop.f32.mrf.mxu0  ;;  %v6074_v61 = vadd.f32 %v19861_v44, %v4728_v3  ;;  %v4726_v10 = vadd.f32 %v19863_v6, %v19862_v20  ;;  %v12244_v14 = vcombine.low %v13969_v57, %v13970_v7  ;;  %v19871_v19 = vld [vmem:[#allocation215_spill] sm:$0xff]  ;;  %v13973_v30 = vld [vmem:[#allocation2 + $0x114] sm:$0xf]  ;;  %v19876_v57 = vld [vmem:[#allocation10_spill] sm:$0xff] }
 0x46b   :  { %13657 = vmatmul.mubr.bf16.gmra.mxu0 %v12302_v56  ;;  %19858 = vst [vmem:[#allocation111_spill] sm:$0xff] %v18166_v31  ;;  %v19866_v56 = vld [vmem:[#allocation282_spill] sm:$0xff]  ;;  %v19873_v3 = vld [vmem:[#allocation47_spill] sm:$0xff]  ;;  %v20009_v17 = vld [vmem:[#allocation245_spill] sm:$0xff] }
 0x46c   :  { %13537 = vmatmul.mubr.bf16.gmra.mxu1 %v12242_v60  ;;  %v18173_v55 = vpop.f32.mrf.mxu0  ;;  %v6072_v33 = vadd.f32 %v19866_v56, %v4726_v10  ;;  %v6684_v60 = vadd.f32 %v19871_v19, %v6074_v61  ;;  %v19881_v19 = vld [vmem:[#allocation37_spill] sm:$0xff]  ;;  %v19904_v31 = vld [vmem:[#allocation110_spill] sm:$0xff] }
 0x46d   :  { %13540 = vmatprep.mubr.bf16.mxu1 %v12243_v16  ;;  %19864 = vst [vmem:[#allocation129_spill] sm:$0xff] %v18173_v55  ;;  %v13974_v16 = vld [vmem:[#allocation2 + $0x118] sm:$0xf]  ;;  %v19903_v55 = vld [vmem:[#allocation50_spill] sm:$0xff] }
 0x46e   :  { %v18181_v53 = vpop.f32.mrf.mxu0  ;;  %v12246_v34 = vcombine.low %v13973_v30, %v13974_v16  ;;  %v6682_v44 = vadd.f32 %v19873_v3, %v6072_v33  ;;  %v13977_v33 = vld [vmem:[#allocation2 + $0x154] sm:$0xf]  ;;  %v19882_v16 = vld [vmem:[#allocation287_spill] sm:$0xff] }
 0x46f   :  { %19870 = vst [vmem:[#allocation148_spill] sm:$0xff] %v18181_v53 }
 0x470   :  { %v18187_v6 = vpop.f32.mrf.mxu0 }
 0x471   :  { %v13386_v11 = vpop.f32.mrf.mxu1  ;;  %19874 = vst [vmem:[#allocation166_spill] sm:$0xff] %v18187_v6  ;;  %v19902_v6 = vld [vmem:[#allocation293_spill] sm:$0xff] }
 0x472   :  { %v18154_v0 = vadd.f32 %v13386_v11, %v6680_v28  ;;  %v13971_v28 = vld [vmem:[#allocation2 + $0x104] sm:$0xf]  ;;  %v18194_v56 = vpop.f32.mrf.mxu0 }
 0x473   :  { %v7917_v12 = vpop.f32.mrf.mxu1  ;;  %v12245_v49 = vcombine.low %v13971_v28, %v13972_v4  ;;  %v13976_v28 = vld [vmem:[#allocation2 + $0x148] sm:$0xf]  ;;  %19878 = vst [vmem:[#allocation181_spill] sm:$0xff] %v18194_v56  ;;  %v19893_v56 = vld [vmem:[#allocation176_spill] sm:$0xff] }
 0x474   :  { %19851 = vst [vmem:[#allocation87_spill] sm:$0xff] %v18154_v0  ;;  %v18159_v26 = vadd.f32 %v7917_v12, %v6678_v8  ;;  %v19867_v8 = vld [vmem:[#allocation229_spill] sm:$0xff]  ;;  %v19868_v12 = vld [vmem:[#allocation118_spill] sm:$0xff]  ;;  %13541 = vmatmul.mubr.bf16.gmra.mxu1 %v12244_v14 }
 0x475   :  { %v13387_v35 = vpop.f32.mrf.mxu1  ;;  %v4729_v47 = vadd.f32 %v19868_v12, %v19867_v8  ;;  %13544 = vmatprep.mubr.bf16.mxu1 %v12245_v49  ;;  %v13975_v14 = vld [vmem:[#allocation2 + $0x144] sm:$0xf]  ;;  %v18196_v8 = vpop.f32.mrf.mxu0  ;;  %v13978_v12 = vld [vmem:[#allocation2 + $0x158] sm:$0xf] }
 0x476   :  { %19854 = vst [vmem:[#allocation91_spill] sm:$0xff] %v18159_v26  ;;  %v18162_v23 = vadd.f32 %v13387_v35, %v6681_v54  ;;  %v19869_v54 = vld [vmem:[#allocation284_spill] sm:$0xff]  ;;  %v12247_v4 = vcombine.low %v13975_v14, %v13976_v28  ;;  %19879 = vst [vmem:[#allocation190_spill] sm:$0xff] %v18196_v8  ;;  %v20004_v0 = vld [vmem:[#allocation318_spill] sm:$0xff] }
 0x477   :  { %v18175_v11 = vpop.f32.mrf.mxu1  ;;  %v6075_v35 = vadd.f32 %v19869_v54, %v4729_v47  ;;  %v12248_v47 = vcombine.low %v13977_v33, %v13978_v12  ;;  %v19880_v54 = vld [vmem:[#allocation39_spill] sm:$0xff]  ;;  %v19887_v14 = vld [vmem:[#allocation288_spill] sm:$0xff]  ;;  %v19890_v12 = vld [vmem:[#allocation290_spill] sm:$0xff] }
 0x478   :  { %19856 = vst [vmem:[#allocation96_spill] sm:$0xff] %v18162_v23  ;;  %19865 = vst [vmem:[#allocation138_spill] sm:$0xff] %v18175_v11 }
 0x479   :  { %v6685_v7 = vadd.f32 %v19876_v57, %v6075_v35  ;;  %v13980_v35 = vld [vmem:[#allocation2 + $0x168] sm:$0xf]  ;;  %v18203_v57 = vpop.f32.mrf.mxu0 }
 0x47a   :  { %19885 = vst [vmem:[#allocation174_spill] sm:$0xff] %v18203_v57 }
 0x47c   :  { %13545 = vmatmul.mubr.bf16.gmra.mxu1 %v12246_v34  ;;  %v19883_v34 = vld [vmem:[#allocation97_spill] sm:$0xff] }
 0x47d   :  { %13548 = vmatprep.mubr.bf16.mxu1 %v12247_v4  ;;  %v19888_v4 = vld [vmem:[#allocation167_spill] sm:$0xff] }
 0x484   :  { %v13390_v63 = vpop.f32.mrf.mxu1  ;;  %13549 = vmatmul.mubr.bf16.gmra.mxu1 %v12248_v47  ;;  %v18212_v47 = vpop.f32.mrf.mxu0 }
 0x485   :  { %v18184_v45 = vadd.f32 %v13390_v63, %v6684_v60  ;;  %v4732_v60 = vadd.f32 %v19881_v19, %v19880_v54  ;;  %v13979_v63 = vld [vmem:[#allocation2 + $0x164] sm:$0xf] }
 0x486   :  { %v7933_v20 = vpop.f32.mrf.mxu1  ;;  %v12249_v30 = vcombine.low %v13979_v63, %v13980_v35  ;;  %v19891_v19 = vld [vmem:[#allocation222_spill] sm:$0xff]  ;;  %v13982_v35 = vld [vmem:[#allocation2 + $0x178] sm:$0xf] }
 0x487   :  { %19872 = vst [vmem:[#allocation157_spill] sm:$0xff] %v18184_v45  ;;  %v18189_v10 = vadd.f32 %v7933_v20, %v6682_v44  ;;  %v6078_v3 = vadd.f32 %v19882_v16, %v4732_v60  ;;  %v19884_v44 = vld [vmem:[#allocation38_spill] sm:$0xff]  ;;  %v13981_v60 = vld [vmem:[#allocation2 + $0x174] sm:$0xf] }
 0x488   :  { %v13391_v49 = vpop.f32.mrf.mxu1  ;;  %v4730_v20 = vadd.f32 %v19884_v44, %v19883_v34  ;;  %13552 = vmatprep.mubr.bf16.mxu1 %v12249_v30  ;;  %v12250_v16 = vcombine.low %v13981_v60, %v13982_v35  ;;  %v13983_v30 = vld [vmem:[#allocation2 + $0x184] sm:$0xf]  ;;  %v13984_v44 = vld [vmem:[#allocation2 + $0x188] sm:$0xf]  ;;  %v13985_v35 = vld [vmem:[#allocation2 + $0x194] sm:$0xf] }
 0x489   :  { %19875 = vst [vmem:[#allocation178_spill] sm:$0xff] %v18189_v10  ;;  %v18192_v61 = vadd.f32 %v13391_v49, %v6685_v7  ;;  %v19889_v49 = vld [vmem:[#allocation206_spill] sm:$0xff]  ;;  %v6688_v63 = vadd.f32 %v19891_v19, %v6078_v3  ;;  %v12251_v57 = vcombine.low %v13983_v30, %v13984_v44  ;;  %v13986_v30 = vld [vmem:[#allocation2 + $0x198] sm:$0xf]  ;;  %v13988_v44 = vld [vmem:[#allocation2 + $0x1a8] sm:$0xf] }
 0x48a   :  { %v18205_v7 = vpop.f32.mrf.mxu1  ;;  %v6076_v28 = vadd.f32 %v19887_v14, %v4730_v20  ;;  %v4733_v33 = vadd.f32 %v19889_v49, %v19888_v4  ;;  %v19895_v49 = vld [vmem:[#allocation225_spill] sm:$0xff]  ;;  %v19976_v10 = vld [vmem:[#allocation128_spill] sm:$0xff]  ;;  %v19977_v45 = vld [vmem:[#allocation314_spill] sm:$0xff] }
 0x48b   :  { %19877 = vst [vmem:[#allocation179_spill] sm:$0xff] %v18192_v61  ;;  %19886 = vst [vmem:[#allocation197_spill] sm:$0xff] %v18205_v7  ;;  %v19973_v61 = vld [vmem:[#allocation253_spill] sm:$0xff] }
 0x48c   :  { %v6079_v54 = vadd.f32 %v19890_v12, %v4733_v33  ;;  %v6686_v20 = vadd.f32 %v19893_v56, %v6076_v28  ;;  %13553 = vmatmul.mubr.bf16.gmra.mxu1 %v12250_v16  ;;  %v18220_v33 = vpop.f32.mrf.mxu0  ;;  %v19898_v28 = vld [vmem:[#allocation48_spill] sm:$0xff] }
 0x48d   :  { %13556 = vmatprep.mubr.bf16.mxu1 %v12251_v57  ;;  %v19897_v57 = vld [vmem:[#allocation127_spill] sm:$0xff] }
 0x48e   :  { %v6689_v3 = vadd.f32 %v19895_v49, %v6079_v54  ;;  %v18224_v60 = vpop.f32.mrf.mxu0  ;;  %v2644_v16 = vadd.f32 %v19898_v28, %v19897_v57  ;;  %v19900_v54 = vld [vmem:[#allocation105_spill] sm:$0xff]  ;;  %v13989_v28 = vld [vmem:[#allocation2 + $0x1b4] sm:$0xf] }
 0x490   :  { %v18230_v49 = vpop.f32.mrf.mxu0 }
 0x492   :  { %v18241_v57 = vpop.f32.mrf.mxu0 }
 0x494   :  { %v13394_v34 = vpop.f32.mrf.mxu1 }
 0x495   :  { %v18214_v8 = vadd.f32 %v13394_v34, %v6688_v63  ;;  %v12252_v63 = vcombine.low %v13985_v35, %v13986_v30  ;;  %v13987_v34 = vld [vmem:[#allocation2 + $0x1a4] sm:$0xf]  ;;  %v4734_v35 = vadd.f32 %v19904_v31, %v19903_v55  ;;  %v19911_v31 = vld [vmem:[#allocation220_spill] sm:$0xff] }
 0x496   :  { %v7949_v14 = vpop.f32.mrf.mxu1  ;;  %v12253_v56 = vcombine.low %v13987_v34, %v13988_v44  ;;  %v19906_v34 = vld [vmem:[#allocation294_spill] sm:$0xff]  ;;  %v19907_v44 = vld [vmem:[#allocation51_spill] sm:$0xff] }
 0x497   :  { %19892 = vst [vmem:[#allocation200_spill] sm:$0xff] %v18214_v8  ;;  %v18217_v4 = vadd.f32 %v7949_v14, %v6686_v20  ;;  %13557 = vmatmul.mubr.bf16.gmra.mxu1 %v12252_v63  ;;  %v19899_v20 = vld [vmem:[#allocation187_spill] sm:$0xff]  ;;  %v6080_v63 = vadd.f32 %v19906_v34, %v4734_v35  ;;  %v19912_v34 = vld [vmem:[#allocation297_spill] sm:$0xff] }
 0x498   :  { %v13395_v12 = vpop.f32.mrf.mxu1  ;;  %13560 = vmatprep.mubr.bf16.mxu1 %v12253_v56  ;;  %v4736_v14 = vadd.f32 %v19900_v54, %v19899_v20  ;;  %v19908_v56 = vld [vmem:[#allocation113_spill] sm:$0xff] }
 0x499   :  { %19894 = vst [vmem:[#allocation209_spill] sm:$0xff] %v18217_v4  ;;  %v18222_v19 = vadd.f32 %v13395_v12, %v6689_v3  ;;  %v19901_v3 = vld [vmem:[#allocation228_spill] sm:$0xff]  ;;  %v4737_v13 = vadd.f32 %v19908_v56, %v19907_v44  ;;  %v13990_v20 = vld [vmem:[#allocation2 + $0x1b8] sm:$0xf]  ;;  %v18247_v44 = vpop.f32.mrf.mxu0 }
 0x49a   :  { %v3322_v12 = vadd.f32 %v19901_v3, %v2644_v16  ;;  %v6082_v53 = vadd.f32 %v19902_v6, %v4736_v14  ;;  %v18236_v30 = vpop.f32.mrf.mxu1  ;;  %v12254_v54 = vcombine.low %v13989_v28, %v13990_v20  ;;  %v12255_v16 = vcombine.low %v13991_v15, %v13992_v32  ;;  %v19909_v3 = vld [vmem:[#allocation296_spill] sm:$0xff]  ;;  %v19910_v14 = vld [vmem:[#allocation130_spill] sm:$0xff]  ;;  %v19916_v32 = vld [vmem:[#allocation231_spill] sm:$0xff] }
 0x49b   :  { %19896 = vst [vmem:[#allocation182_spill] sm:$0xff] %v18222_v19  ;;  %19905 = vst [vmem:[#allocation183_spill] sm:$0xff] %v18236_v30  ;;  %v6083_v6 = vadd.f32 %v19909_v3, %v4737_v13  ;;  %v6690_v28 = vadd.f32 %v19914_v21, %v6080_v63  ;;  %v14004_v19 = vld [vmem:[#allocation2 + $0x228] sm:$0xf]  ;;  %v19953_v4 = vld [vmem:[#allocation308_spill] sm:$0xff] }
 0x49c   :  { %v4735_v37 = vadd.f32 %v19910_v14, %v3322_v12  ;;  %v6692_v55 = vadd.f32 %v19911_v31, %v6082_v53  ;;  %v18255_v12 = vpop.f32.mrf.mxu0  ;;  %v13994_v53 = vld [vmem:[#allocation2 + $0x1d8] sm:$0xf]  ;;  %v13995_v31 = vld [vmem:[#allocation2 + $0x1e4] sm:$0xf] }
 0x49d   :  { %v6693_v15 = vadd.f32 %v19916_v32, %v6083_v6  ;;  %v19920_v6 = vld [vmem:[#allocation117_spill] sm:$0xff] }
 0x49e   :  { %v6081_v5 = vadd.f32 %v19912_v34, %v4735_v37  ;;  %v19918_v37 = vld [vmem:[#allocation177_spill] sm:$0xff]  ;;  %v18262_v63 = vpop.f32.mrf.mxu0 }
 0x49f   :  { %13561 = vmatmul.mubr.bf16.gmra.mxu1 %v12254_v54  ;;  %v13993_v54 = vld [vmem:[#allocation2 + $0x1d4] sm:$0xf]  ;;  %v19922_v32 = vld [vmem:[#allocation189_spill] sm:$0xff] }
 0x4a0   :  { %13564 = vmatprep.mubr.bf16.mxu1 %v12255_v16  ;;  %v12256_v16 = vcombine.low %v13993_v54, %v13994_v53  ;;  %v6691_v14 = vadd.f32 %v19918_v37, %v6081_v5  ;;  %v4740_v54 = vadd.f32 %v19923_v41, %v19922_v32  ;;  %v13998_v5 = vld [vmem:[#allocation2 + $0x1f8] sm:$0xf]  ;;  %v19924_v37 = vld [vmem:[#allocation27_spill] sm:$0xff]  ;;  %v19930_v41 = vld [vmem:[#allocation136_spill] sm:$0xff] }
 0x4a1   :  { %v4741_v32 = vadd.f32 %v19930_v41, %v19929_v42  ;;  %v14002_v42 = vld [vmem:[#allocation2 + $0x218] sm:$0xf]  ;;  %v14003_v41 = vld [vmem:[#allocation2 + $0x224] sm:$0xf] }
 0x4a5   :  { %v13398_v35 = vpop.f32.mrf.mxu1 }
 0x4a6   :  { %v18249_v56 = vadd.f32 %v13398_v35, %v6692_v55  ;;  %v13996_v55 = vld [vmem:[#allocation2 + $0x1e8] sm:$0xf] }
 0x4a7   :  { %v7965_v20 = vpop.f32.mrf.mxu1  ;;  %v12257_v35 = vcombine.low %v13995_v31, %v13996_v55  ;;  %13565 = vmatmul.mubr.bf16.gmra.mxu1 %v12256_v16  ;;  %v19925_v55 = vld [vmem:[#allocation299_spill] sm:$0xff] }
 0x4a8   :  { %19913 = vst [vmem:[#allocation162_spill] sm:$0xff] %v18249_v56  ;;  %v18252_v36 = vadd.f32 %v7965_v20, %v6690_v28  ;;  %v19921_v28 = vld [vmem:[#allocation52_spill] sm:$0xff]  ;;  %v6086_v16 = vadd.f32 %v19925_v55, %v4740_v54  ;;  %v19933_v54 = vld [vmem:[#allocation109_spill] sm:$0xff] }
 0x4a9   :  { %v13399_v13 = vpop.f32.mrf.mxu1  ;;  %13568 = vmatprep.mubr.bf16.mxu1 %v12257_v35  ;;  %v2660_v20 = vadd.f32 %v19921_v28, %v19920_v6  ;;  %v19928_v6 = vld [vmem:[#allocation300_spill] sm:$0xff] }
 0x4aa   :  { %19915 = vst [vmem:[#allocation45_spill] sm:$0xff] %v18252_v36  ;;  %v18257_v3 = vadd.f32 %v13399_v13, %v6693_v15  ;;  %v18268_v15 = vpop.f32.mrf.mxu0  ;;  %v13997_v13 = vld [vmem:[#allocation2 + $0x1f4] sm:$0xf]  ;;  %v6696_v55 = vadd.f32 %v19933_v54, %v6086_v16 }
 0x4ab   :  { %v7968_v34 = vpop.f32.mrf.mxu1  ;;  %v12258_v53 = vcombine.low %v13997_v13, %v13998_v5  ;;  %v3326_v31 = vadd.f32 %v19924_v37, %v2660_v20  ;;  %v19931_v13 = vld [vmem:[#allocation302_spill] sm:$0xff]  ;;  %v19932_v20 = vld [vmem:[#allocation121_spill] sm:$0xff] }
 0x4ac   :  { %19917 = vst [vmem:[#allocation216_spill] sm:$0xff] %v18257_v3  ;;  %v18260_v21 = vadd.f32 %v7968_v34, %v6691_v14  ;;  %v19926_v14 = vld [vmem:[#allocation100_spill] sm:$0xff]  ;;  %v19927_v34 = vld [vmem:[#allocation134_spill] sm:$0xff]  ;;  %v18277_v3 = vpop.f32.mrf.mxu0  ;;  %v6087_v5 = vadd.f32 %v19931_v13, %v4741_v32  ;;  %v12261_v32 = vcombine.low %v14003_v41, %v14004_v19 }
 0x4ad   :  { %v4738_v35 = vadd.f32 %v19927_v34, %v19926_v14  ;;  %v4739_v37 = vadd.f32 %v19932_v20, %v3326_v31  ;;  %v19934_v14 = vld [vmem:[#allocation303_spill] sm:$0xff]  ;;  %v19938_v31 = vld [vmem:[#allocation30_spill] sm:$0xff] }
 0x4ae   :  { %19919 = vst [vmem:[#allocation165_spill] sm:$0xff] %v18260_v21  ;;  %v12259_v21 = vcombine.low %v13999_v39, %v14000_v51  ;;  %v19936_v51 = vld [vmem:[#allocation95_spill] sm:$0xff]  ;;  %v6697_v16 = vadd.f32 %v19938_v31, %v6087_v5  ;;  %v19945_v41 = vld [vmem:[#allocation42_spill] sm:$0xff] }
 0x4af   :  { %13569 = vmatmul.mubr.bf16.gmra.mxu1 %v12258_v53  ;;  %v6084_v28 = vadd.f32 %v19928_v6, %v4738_v35  ;;  %v6085_v34 = vadd.f32 %v19934_v14, %v4739_v37  ;;  %v18286_v53 = vpop.f32.mrf.mxu0  ;;  %v14001_v35 = vld [vmem:[#allocation2 + $0x214] sm:$0xf]  ;;  %v19946_v31 = vld [vmem:[#allocation238_spill] sm:$0xff] }
 0x4b0   :  { %13572 = vmatprep.mubr.bf16.mxu1 %v12259_v21  ;;  %v12260_v21 = vcombine.low %v14001_v35, %v14002_v42  ;;  %v19940_v37 = vld [vmem:[#allocation12_spill] sm:$0xff]  ;;  %v14006_v35 = vld [vmem:[#allocation2 + $0x238] sm:$0xf] }
 0x4b1   :  { %v6694_v39 = vadd.f32 %v19936_v51, %v6084_v28  ;;  %v6695_v28 = vadd.f32 %v19940_v37, %v6085_v34  ;;  %v18294_v54 = vpop.f32.mrf.mxu0  ;;  %v14005_v51 = vld [vmem:[#allocation2 + $0x234] sm:$0xf]  ;;  %v19947_v34 = vld [vmem:[#allocation305_spill] sm:$0xff] }
 0x4b2   :  { %v12262_v42 = vcombine.low %v14005_v51, %v14006_v35  ;;  %v19948_v37 = vld [vmem:[#allocation244_spill] sm:$0xff]  ;;  %v19951_v35 = vld [vmem:[#allocation61_spill] sm:$0xff] }
 0x4b3   :  { %v18298_v19 = vpop.f32.mrf.mxu0 }
 0x4b7   :  { %v13402_v36 = vpop.f32.mrf.mxu1  ;;  %13573 = vmatmul.mubr.bf16.gmra.mxu1 %v12260_v21  ;;  %v19944_v21 = vld [vmem:[#allocation235_spill] sm:$0xff] }
 0x4b8   :  { %v18283_v56 = vadd.f32 %v13402_v36, %v6696_v55  ;;  %13576 = vmatprep.mubr.bf16.mxu1 %v12261_v32  ;;  %v4744_v32 = vadd.f32 %v19945_v41, %v19944_v21 }
 0x4b9   :  { %v7981_v6 = vpop.f32.mrf.mxu1 }
 0x4ba   :  { %19935 = vst [vmem:[#allocation342_spill] sm:$0xff] %v18283_v56  ;;  %v18288_v13 = vadd.f32 %v7981_v6, %v6694_v39  ;;  %v19942_v39 = vld [vmem:[#allocation43_spill] sm:$0xff]  ;;  %v19943_v6 = vld [vmem:[#allocation56_spill] sm:$0xff] }
 0x4bb   :  { %v13403_v20 = vpop.f32.mrf.mxu1  ;;  %v2676_v5 = vadd.f32 %v19943_v6, %v19942_v39  ;;  %v19954_v6 = vld [vmem:[#allocation141_spill] sm:$0xff] }
 0x4bc   :  { %19937 = vst [vmem:[#allocation169_spill] sm:$0xff] %v18288_v13  ;;  %v18291_v36 = vadd.f32 %v13403_v20, %v6697_v16  ;;  %v6090_v20 = vadd.f32 %v19947_v34, %v4744_v32  ;;  %v19952_v13 = vld [vmem:[#allocation236_spill] sm:$0xff]  ;;  %v19956_v32 = vld [vmem:[#allocation309_spill] sm:$0xff] }
 0x4bd   :  { %v7984_v55 = vpop.f32.mrf.mxu1  ;;  %v3330_v16 = vadd.f32 %v19946_v31, %v2676_v5  ;;  %v4745_v56 = vadd.f32 %v19952_v13, %v19951_v35  ;;  %v19960_v13 = vld [vmem:[#allocation11_spill] sm:$0xff]  ;;  %v19962_v35 = vld [vmem:[#allocation196_spill] sm:$0xff] }
 0x4be   :  { %19939 = vst [vmem:[#allocation191_spill] sm:$0xff] %v18291_v36  ;;  %v18296_v14 = vadd.f32 %v7984_v55, %v6695_v28  ;;  %v19949_v36 = vld [vmem:[#allocation29_spill] sm:$0xff]  ;;  %v18308_v55 = vpop.f32.mrf.mxu0 }
 0x4bf   :  { %13577 = vmatmul.mubr.bf16.gmra.mxu1 %v12262_v42  ;;  %v4742_v28 = vadd.f32 %v19949_v36, %v19948_v37  ;;  %v6091_v39 = vadd.f32 %v19953_v4, %v4745_v56  ;;  %v4743_v30 = vadd.f32 %v19954_v6, %v3330_v16  ;;  %v19955_v42 = vld [vmem:[#allocation98_spill] sm:$0xff]  ;;  %v19958_v36 = vld [vmem:[#allocation33_spill] sm:$0xff] }
 0x4c0   :  { %19941 = vst [vmem:[#allocation270_spill] sm:$0xff] %v18296_v14  ;;  %v19950_v14 = vld [vmem:[#allocation306_spill] sm:$0xff]  ;;  %v18315_v21 = vpop.f32.mrf.mxu0  ;;  %v6700_v5 = vadd.f32 %v19955_v42, %v6090_v20 }
 0x4c1   :  { %v6088_v51 = vadd.f32 %v19950_v14, %v4742_v28  ;;  %v6089_v31 = vadd.f32 %v19956_v32, %v4743_v30  ;;  %v6701_v4 = vadd.f32 %v19960_v13, %v6091_v39  ;;  %v19969_v13 = vld [vmem:[#allocation249_spill] sm:$0xff] }
 0x4c2   :  { %v18322_v14 = vpop.f32.mrf.mxu0 }
 0x4c3   :  { %v6698_v37 = vadd.f32 %v19958_v36, %v6088_v51  ;;  %v6699_v6 = vadd.f32 %v19962_v35, %v6089_v31  ;;  %v19966_v36 = vld [vmem:[#allocation145_spill] sm:$0xff]  ;;  %v19972_v35 = vld [vmem:[#allocation311_spill] sm:$0xff] }
 0x4c4   :  { %v18330_v42 = vpop.f32.mrf.mxu0 }
 0x4c6   :  { %v18336_v32 = vpop.f32.mrf.mxu0 }
 0x4cb   :  { %v13406_v41 = vpop.f32.mrf.mxu1 }
 0x4cc   :  { %v18319_v34 = vadd.f32 %v13406_v41, %v6700_v5  ;;  %v19964_v5 = vld [vmem:[#allocation124_spill] sm:$0xff]  ;;  %v19965_v41 = vld [vmem:[#allocation59_spill] sm:$0xff] }
 0x4cd   :  { %v7997_v8 = vpop.f32.mrf.mxu1  ;;  %v2700_v51 = vadd.f32 %v19965_v41, %v19964_v5  ;;  %v19975_v5 = vld [vmem:[#allocation312_spill] sm:$0xff] }
 0x4ce   :  { %19957 = vst [vmem:[#allocation212_spill] sm:$0xff] %v18319_v34  ;;  %v18324_v28 = vadd.f32 %v7997_v8, %v6698_v37  ;;  %v19967_v8 = vld [vmem:[#allocation60_spill] sm:$0xff] }
 0x4cf   :  { %v13407_v56 = vpop.f32.mrf.mxu1  ;;  %v2692_v37 = vadd.f32 %v19967_v8, %v19966_v36  ;;  %v19978_v8 = vld [vmem:[#allocation131_spill] sm:$0xff] }
 0x4d0   :  { %19959 = vst [vmem:[#allocation230_spill] sm:$0xff] %v18324_v28  ;;  %v18327_v16 = vadd.f32 %v13407_v56, %v6701_v4  ;;  %v19968_v28 = vld [vmem:[#allocation240_spill] sm:$0xff]  ;;  %v19970_v4 = vld [vmem:[#allocation142_spill] sm:$0xff] }
 0x4d1   :  { %v8000_v20 = vpop.f32.mrf.mxu1  ;;  %v3336_v39 = vadd.f32 %v19968_v28, %v2700_v51  ;;  %v4748_v56 = vadd.f32 %v19970_v4, %v19969_v13  ;;  %v19979_v51 = vld [vmem:[#allocation35_spill] sm:$0xff] }
 0x4d2   :  { %19961 = vst [vmem:[#allocation192_spill] sm:$0xff] %v18327_v16  ;;  %v18332_v30 = vadd.f32 %v8000_v20, %v6699_v6  ;;  %v19971_v16 = vld [vmem:[#allocation41_spill] sm:$0xff] }
 0x4d3   :  { %v3334_v31 = vadd.f32 %v19971_v16, %v2692_v37  ;;  %v6094_v34 = vadd.f32 %v19972_v35, %v4748_v56  ;;  %v19974_v6 = vld [vmem:[#allocation125_spill] sm:$0xff]  ;;  %v4749_v7 = vadd.f32 %v19976_v10, %v3336_v39  ;;  %v19980_v37 = vld [vmem:[#allocation315_spill] sm:$0xff] }
 0x4d4   :  { %19963 = vst [vmem:[#allocation232_spill] sm:$0xff] %v18332_v30  ;;  %v4746_v20 = vadd.f32 %v19974_v6, %v19973_v61  ;;  %v18347_v30 = vpop.f32.mrf.mxu0  ;;  %v19982_v61 = vld [vmem:[#allocation122_spill] sm:$0xff] }
 0x4d5   :  { %v6095_v36 = vadd.f32 %v19977_v45, %v4749_v7  ;;  %v4747_v28 = vadd.f32 %v19978_v8, %v3334_v31  ;;  %v6704_v23 = vadd.f32 %v19979_v51, %v6094_v34  ;;  %v19987_v34 = vld [vmem:[#allocation58_spill] sm:$0xff] }
 0x4d6   :  { %v6092_v41 = vadd.f32 %v19975_v5, %v4746_v20  ;;  %v18354_v13 = vpop.f32.mrf.mxu0  ;;  %v19984_v20 = vld [vmem:[#allocation57_spill] sm:$0xff] }
 0x4d7   :  { %v6093_v4 = vadd.f32 %v19980_v37, %v4747_v28  ;;  %v6705_v10 = vadd.f32 %v19984_v20, %v6095_v36  ;;  %v19989_v28 = vld [vmem:[#allocation146_spill] sm:$0xff]  ;;  %v19993_v37 = vld [vmem:[#allocation63_spill] sm:$0xff]  ;;  %v19996_v20 = vld [vmem:[#allocation64_spill] sm:$0xff] }
 0x4d8   :  { %v6702_v35 = vadd.f32 %v19982_v61, %v6092_v41  ;;  %v18363_v39 = vpop.f32.mrf.mxu0  ;;  %v19992_v41 = vld [vmem:[#allocation241_spill] sm:$0xff] }
 0x4d9   :  { %19985 = vst [vmem:[#allocation193_spill] sm:$0xff] %v18363_v39  ;;  %v6703_v31 = vadd.f32 %v19987_v34, %v6093_v4  ;;  %v2716_v61 = vadd.f32 %v19993_v37, %v19992_v41  ;;  %v19999_v4 = vld [vmem:[#allocation242_spill] sm:$0xff]  ;;  %v20005_v37 = vld [vmem:[#allocation133_spill] sm:$0xff] }
 0x4dd   :  { %v13410_v16 = vpop.f32.mrf.mxu1 }
 0x4de   :  { %v18357_v56 = vadd.f32 %v13410_v16, %v6704_v23  ;;  %v19990_v23 = vld [vmem:[#allocation62_spill] sm:$0xff]  ;;  %v18372_v16 = vpop.f32.mrf.mxu0 }
 0x4df   :  { %v8013_v6 = vpop.f32.mrf.mxu1  ;;  %v2705_v51 = vadd.f32 %v19990_v23, %v19989_v28  ;;  %19991 = vst [vmem:[#allocation218_spill] sm:$0xff] %v18372_v16  ;;  %v20002_v28 = vld [vmem:[#allocation317_spill] sm:$0xff] }
 0x4e0   :  { %19981 = vst [vmem:[#allocation173_spill] sm:$0xff] %v18357_v56  ;;  %v18360_v26 = vadd.f32 %v8013_v6, %v6702_v35  ;;  %v19994_v35 = vld [vmem:[#allocation106_spill] sm:$0xff]  ;;  %v19995_v6 = vld [vmem:[#allocation149_spill] sm:$0xff] }
 0x4e1   :  { %v13411_v45 = vpop.f32.mrf.mxu1  ;;  %v3337_v36 = vadd.f32 %v19994_v35, %v2705_v51  ;;  %v20003_v56 = vld [vmem:[#allocation233_spill] sm:$0xff] }
 0x4e2   :  { %19983 = vst [vmem:[#allocation272_spill] sm:$0xff] %v18360_v26  ;;  %v18365_v7 = vadd.f32 %v13411_v45, %v6705_v10  ;;  %v2708_v26 = vadd.f32 %v19996_v20, %v19995_v6  ;;  %v19997_v10 = vld [vmem:[#allocation188_spill] sm:$0xff] }
 0x4e3   :  { %v8016_v5 = vpop.f32.mrf.mxu1  ;;  %v3340_v45 = vadd.f32 %v19997_v10, %v2716_v61  ;;  %v4750_v11 = vadd.f32 %v20003_v56, %v3337_v36  ;;  %v20007_v6 = vld [vmem:[#allocation320_spill] sm:$0xff]  ;;  %v20008_v61 = vld [vmem:[#allocation135_spill] sm:$0xff] }
 0x4e4   :  { %19986 = vst [vmem:[#allocation194_spill] sm:$0xff] %v18365_v7  ;;  %v18368_v8 = vadd.f32 %v8016_v5, %v6703_v31  ;;  %v19998_v7 = vld [vmem:[#allocation256_spill] sm:$0xff]  ;;  %v18382_v31 = vpop.f32.mrf.mxu0  ;;  %v20001_v5 = vld [vmem:[#allocation94_spill] sm:$0xff]  ;;  %v20013_v56 = vld [vmem:[#allocation247_spill] sm:$0xff] }
 0x4e5   :  { %v4752_v34 = vadd.f32 %v19999_v4, %v19998_v7  ;;  %20000 = vst [vmem:[#allocation239_spill] sm:$0xff] %v18382_v31  ;;  %v6096_v41 = vadd.f32 %v20004_v0, %v4750_v11  ;;  %v4753_v51 = vadd.f32 %v20005_v37, %v3340_v45  ;;  %v20015_v45 = vld [vmem:[#allocation248_spill] sm:$0xff] }
 0x4e6   :  { %19988 = vst [vmem:[#allocation273_spill] sm:$0xff] %v18368_v8  ;;  %v3338_v8 = vadd.f32 %v20001_v5, %v2708_v26  ;;  %v18389_v35 = vpop.f32.mrf.mxu0 }
 0x4e7   :  { %v6098_v23 = vadd.f32 %v20002_v28, %v4752_v34  ;;  %20006 = vst [vmem:[#allocation198_spill] sm:$0xff] %v18389_v35  ;;  %v6099_v20 = vadd.f32 %v20007_v6, %v4753_v51  ;;  %v6706_v36 = vadd.f32 %v20013_v56, %v6096_v41  ;;  %v20019_v51 = vld [vmem:[#allocation151_spill] sm:$0xff]  ;;  %v20023_v41 = vld [vmem:[#allocation13_spill] sm:$0xff]  ;;  %v20024_v56 = vld [vmem:[#allocation108_spill] sm:$0xff] }
 0x4e8   :  { %v4751_v10 = vadd.f32 %v20008_v61, %v3338_v8  ;;  %v18395_v26 = vpop.f32.mrf.mxu0  ;;  %v20040_v35 = vld [vmem:[#allocation153_spill] sm:$0xff] }
 0x4e9   :  { %v6708_v7 = vadd.f32 %v20009_v17, %v6098_v23  ;;  %20011 = vst [vmem:[#allocation199_spill] sm:$0xff] %v18395_v26  ;;  %v6709_v5 = vadd.f32 %v20015_v45, %v6099_v20  ;;  %v20018_v17 = vld [vmem:[#allocation250_spill] sm:$0xff]  ;;  %v20037_v26 = vld [vmem:[#allocation69_spill] sm:$0xff] }
 0x4ea   :  { %v6097_v48 = vadd.f32 %v20010_v25, %v4751_v10  ;;  %v18403_v37 = vpop.f32.mrf.mxu0  ;;  %v20020_v25 = vld [vmem:[#allocation65_spill] sm:$0xff]  ;;  %v20026_v20 = vld [vmem:[#allocation114_spill] sm:$0xff] }
 0x4eb   :  { %20016 = vst [vmem:[#allocation213_spill] sm:$0xff] %v18403_v37  ;;  %v2729_v6 = vadd.f32 %v20020_v25, %v20019_v51  ;;  %v20032_v51 = vld [vmem:[#allocation140_spill] sm:$0xff]  ;;  %v20035_v37 = vld [vmem:[#allocation15_spill] sm:$0xff] }
 0x4ec   :  { %v13414_v4 = vpop.f32.mrf.mxu1  ;;  %v6707_v23 = vadd.f32 %v20018_v17, %v6097_v48  ;;  %v20030_v48 = vld [vmem:[#allocation186_spill] sm:$0xff]  ;;  %v20031_v17 = vld [vmem:[#allocation67_spill] sm:$0xff] }
 0x4ed   :  { %v18397_v34 = vadd.f32 %v13414_v4, %v6708_v7  ;;  %v20022_v7 = vld [vmem:[#allocation68_spill] sm:$0xff]  ;;  %v3343_v45 = vadd.f32 %v20026_v20, %v2729_v6  ;;  %v20039_v20 = vld [vmem:[#allocation34_spill] sm:$0xff] }
 0x4ee   :  { %v8029_v0 = vpop.f32.mrf.mxu1  ;;  %v2489_v4 = vadd.f32 %v20023_v41, %v20022_v7  ;;  %v20036_v41 = vld [vmem:[#allocation137_spill] sm:$0xff] }
 0x4ef   :  { %20012 = vst [vmem:[#allocation202_spill] sm:$0xff] %v18397_v34  ;;  %v18400_v11 = vadd.f32 %v8029_v0, %v6706_v36  ;;  %v20025_v36 = vld [vmem:[#allocation66_spill] sm:$0xff]  ;;  %v2732_v34 = vadd.f32 %v20031_v17, %v20030_v48  ;;  %v4756_v31 = vadd.f32 %v20040_v35, %v3343_v45  ;;  %v20043_v48 = vld [vmem:[#allocation144_spill] sm:$0xff]  ;;  %v20052_v45 = vld [vmem:[#allocation53_spill] sm:$0xff] }
 0x4f0   :  { %v13415_v28 = vpop.f32.mrf.mxu1  ;;  %v2721_v0 = vadd.f32 %v20025_v36, %v20024_v56  ;;  %v3283_v25 = vadd.f32 %v20032_v51, %v2489_v4  ;;  %v2724_v56 = vadd.f32 %v20037_v26, %v20036_v41  ;;  %v20038_v36 = vld [vmem:[#allocation143_spill] sm:$0xff] }
 0x4f1   :  { %20014 = vst [vmem:[#allocation46_spill] sm:$0xff] %v18400_v11  ;;  %v18405_v8 = vadd.f32 %v13415_v28, %v6709_v5  ;;  %v18417_v11 = vpop.f32.mrf.mxu0  ;;  %v20028_v5 = vld [vmem:[#allocation70_spill] sm:$0xff]  ;;  %v20048_v26 = vld [vmem:[#allocation155_spill] sm:$0xff] }
 0x4f2   :  { %v8032_v61 = vpop.f32.mrf.mxu1  ;;  %20027 = vst [vmem:[#allocation201_spill] sm:$0xff] %v18417_v11  ;;  %v20029_v28 = vld [vmem:[#allocation14_spill] sm:$0xff]  ;;  %v3344_v11 = vadd.f32 %v20039_v20, %v2732_v34  ;;  %v20051_v20 = vld [vmem:[#allocation147_spill] sm:$0xff] }
 0x4f3   :  { %20017 = vst [vmem:[#allocation214_spill] sm:$0xff] %v18405_v8  ;;  %v18410_v10 = vadd.f32 %v8032_v61, %v6707_v23  ;;  %v2481_v8 = vadd.f32 %v20029_v28, %v20028_v5  ;;  %v20033_v23 = vld [vmem:[#allocation195_spill] sm:$0xff]  ;;  %v20041_v5 = vld [vmem:[#allocation74_spill] sm:$0xff]  ;;  %v20042_v28 = vld [vmem:[#allocation16_spill] sm:$0xff]  ;;  %v18435_v4 = vpop.f32.mrf.mxu0 }
 0x4f4   :  { %v3341_v61 = vadd.f32 %v20033_v23, %v2721_v0  ;;  %v2484_v43 = vadd.f32 %v20042_v28, %v20041_v5  ;;  %20044 = vst [vmem:[#allocation275_spill] sm:$0xff] %v18435_v4  ;;  %v20045_v0 = vld [vmem:[#allocation119_spill] sm:$0xff]  ;;  %v20053_v5 = vld [vmem:[#allocation73_spill] sm:$0xff] }
 0x4f5   :  { %20021 = vst [vmem:[#allocation223_spill] sm:$0xff] %v18410_v10  ;;  %v20034_v10 = vld [vmem:[#allocation72_spill] sm:$0xff]  ;;  %v3281_v6 = vadd.f32 %v20038_v36, %v2481_v8  ;;  %v3342_v51 = vadd.f32 %v20045_v0, %v2724_v56  ;;  %v20046_v23 = vld [vmem:[#allocation71_spill] sm:$0xff]  ;;  %v20050_v36 = vld [vmem:[#allocation17_spill] sm:$0xff] }
 0x4f6   :  { %v2492_v7 = vadd.f32 %v20035_v37, %v20034_v10  ;;  %v4696_v37 = vadd.f32 %v20046_v23, %v3283_v25  ;;  %v20047_v10 = vld [vmem:[#allocation323_spill] sm:$0xff]  ;;  %v4754_v41 = vadd.f32 %v20048_v26, %v3341_v61  ;;  %v20049_v8 = vld [vmem:[#allocation76_spill] sm:$0xff]  ;;  %v3282_v35 = vadd.f32 %v20051_v20, %v2484_v43  ;;  %v20056_v56 = vld [vmem:[#allocation78_spill] sm:$0xff]  ;;  %v18452_v26 = vpop.f32.mrf.mxu0 }
 0x4f7   :  { %v6102_v16 = vadd.f32 %v20047_v10, %v4756_v31  ;;  %v2505_v34 = vadd.f32 %v20050_v36, %v20049_v8  ;;  %v4694_v28 = vadd.f32 %v20053_v5, %v3281_v6  ;;  %v20055_v4 = vld [vmem:[#allocation159_spill] sm:$0xff]  ;;  %v20057_v0 = vld [vmem:[#allocation18_spill] sm:$0xff]  ;;  %20060 = vst [vmem:[#allocation224_spill] sm:$0xff] %v18452_v26 }
 0x4f8   :  { %v3284_v17 = vadd.f32 %v20043_v48, %v2492_v7  ;;  %v6042_v39 = vadd.f32 %v20052_v45, %v4696_v37  ;;  %v20054_v7 = vld [vmem:[#allocation324_spill] sm:$0xff]  ;;  %v4757_v1 = vadd.f32 %v20055_v4, %v3344_v11  ;;  %v2497_v25 = vadd.f32 %v20057_v0, %v20056_v56  ;;  %v20058_v23 = vld [vmem:[#allocation150_spill] sm:$0xff]  ;;  %v20059_v10 = vld [vmem:[#allocation75_spill] sm:$0xff] }
 0x4f9   :  { %v6100_v48 = vadd.f32 %v20054_v7, %v4754_v41  ;;  %v3287_v31 = vadd.f32 %v20058_v23, %v2505_v34  ;;  %v20061_v8 = vld [vmem:[#allocation115_spill] sm:$0xff]  ;;  %v20062_v43 = vld [vmem:[#allocation326_spill] sm:$0xff]  ;;  %v20063_v37 = vld [vmem:[#allocation160_spill] sm:$0xff]  ;;  %v4695_v56 = vadd.f32 %v20067_v2, %v3282_v35 }
 0x4fa   :  { %v4697_v61 = vadd.f32 %v20059_v10, %v3284_v17  ;;  %v6040_v36 = vadd.f32 %v20061_v8, %v4694_v28  ;;  %v6103_v20 = vadd.f32 %v20062_v43, %v4757_v1  ;;  %v4755_v45 = vadd.f32 %v20063_v37, %v3342_v51  ;;  %v20064_v6 = vld [vmem:[#allocation251_spill] sm:$0xff]  ;;  %v20065_v41 = vld [vmem:[#allocation152_spill] sm:$0xff]  ;;  %v20066_v11 = vld [vmem:[#allocation54_spill] sm:$0xff] }
 0x4fb   :  { %v6712_v5 = vadd.f32 %v20064_v6, %v6102_v16  ;;  %v3285_v7 = vadd.f32 %v20065_v41, %v2497_v25  ;;  %v20068_v34 = vld [vmem:[#allocation327_spill] sm:$0xff]  ;;  %v20071_v28 = vld [vmem:[#allocation254_spill] sm:$0xff]  ;;  %v20073_v43 = vld [vmem:[#allocation20_spill] sm:$0xff]  ;;  %v18470_v41 = vpop.f32.mrf.mxu0 }
 0x4fc   :  { %v6043_v4 = vadd.f32 %v20066_v11, %v4697_v61  ;;  %v13418_v0 = vpop.f32.mrf.mxu1  ;;  %v6101_v23 = vadd.f32 %v20068_v34, %v4755_v45  ;;  %v20069_v17 = vld [vmem:[#allocation163_spill] sm:$0xff]  ;;  %v6710_v8 = vadd.f32 %v20071_v28, %v6100_v48  ;;  %v20072_v1 = vld [vmem:[#allocation82_spill] sm:$0xff]  ;;  %v20074_v37 = vld [vmem:[#allocation204_spill] sm:$0xff]  ;;  %20076 = vst [vmem:[#allocation276_spill] sm:$0xff] %v18470_v41 }
 0x4fd   :  { %v6652_v10 = vadd.f32 %v20069_v17, %v6042_v39  ;;  %v18463_v26 = vadd.f32 %v13418_v0, %v6712_v5  ;;  %v2500_v51 = vadd.f32 %v20073_v43, %v20072_v1  ;;  %v6041_v16 = vadd.f32 %v20074_v37, %v4695_v56  ;;  %v20075_v6 = vld [vmem:[#allocation79_spill] sm:$0xff]  ;;  %v20077_v2 = vld [vmem:[#allocation329_spill] sm:$0xff]  ;;  %v20078_v11 = vld [vmem:[#allocation164_spill] sm:$0xff] }
 0x4fe   :  { %v4700_v25 = vadd.f32 %v20075_v6, %v3287_v31  ;;  %v8045_v61 = vpop.f32.mrf.mxu1  ;;  %v6650_v45 = vadd.f32 %v20078_v11, %v6040_v36  ;;  %v20080_v39 = vld [vmem:[#allocation255_spill] sm:$0xff]  ;;  %v20083_v1 = vld [vmem:[#allocation81_spill] sm:$0xff]  ;;  %v20084_v37 = vld [vmem:[#allocation330_spill] sm:$0xff] }
 0x4ff   :  { %20070 = vst [vmem:[#allocation107_spill] sm:$0xff] %v18463_v26  ;;  %v8062_v35 = vadd.f32 %v20077_v2, %v6652_v10  ;;  %v18474_v34 = vadd.f32 %v8045_v61, %v6710_v8  ;;  %v6713_v5 = vadd.f32 %v20080_v39, %v6103_v20  ;;  %v20081_v0 = vld [vmem:[#allocation171_spill] sm:$0xff]  ;;  %v4698_v43 = vadd.f32 %v20083_v1, %v3285_v7  ;;  %v20085_v6 = vld [vmem:[#allocation168_spill] sm:$0xff]  ;;  %v20087_v10 = vld [vmem:[#allocation257_spill] sm:$0xff]  ;;  %v18486_v61 = vpop.f32.mrf.mxu0 }
 0x500   :  { %v3286_v48 = vadd.f32 %v20081_v0, %v2500_v51  ;;  %v20082_v17 = vld [vmem:[#allocation55_spill] sm:$0xff]  ;;  %v13419_v56 = vpop.f32.mrf.mxu1  ;;  %v8060_v31 = vadd.f32 %v20084_v37, %v6650_v45  ;;  %v6653_v26 = vadd.f32 %v20085_v6, %v6043_v4  ;;  %v6711_v2 = vadd.f32 %v20087_v10, %v6101_v23  ;;  %v20088_v36 = vld [vmem:[#allocation237_spill] sm:$0xff]  ;;  %v20089_v11 = vld [vmem:[#allocation332_spill] sm:$0xff] }
 0x501   :  { %20079 = vst [vmem:[#allocation203_spill] sm:$0xff] %v18474_v34  ;;  %v6046_v28 = vadd.f32 %v20082_v17, %v4700_v25  ;;  %v18482_v41 = vadd.f32 %v13419_v56, %v6713_v5  ;;  %v6044_v8 = vadd.f32 %v20088_v36, %v4698_v43  ;;  %v20090_v39 = vld [vmem:[#allocation170_spill] sm:$0xff]  ;;  %v20092_v45 = vld [vmem:[#allocation85_spill] sm:$0xff]  ;;  %v20095_v43 = vld [vmem:[#allocation260_spill] sm:$0xff] }
 0x502   :  { %v8048_v20 = vpop.f32.mrf.mxu1  ;;  %v8063_v51 = vadd.f32 %v20089_v11, %v6653_v26  ;;  %v6651_v25 = vadd.f32 %v20090_v39, %v6041_v16  ;;  %v20091_v7 = vld [vmem:[#allocation258_spill] sm:$0xff]  ;;  %v4699_v1 = vadd.f32 %v20092_v45, %v3286_v48  ;;  %v20093_v5 = vld [vmem:[#allocation333_spill] sm:$0xff]  ;;  %v9407_v10 = vadd.f32 %v20095_v43, %v8060_v31  ;;  %v20099_v16 = vld [vmem:[#allocation156_spill] sm:$0xff] }
 0x503   :  { %20086 = vst [vmem:[#allocation31_spill] sm:$0xff] %v18482_v41  ;;  %v18490_v0 = vadd.f32 %v8048_v20, %v6711_v2  ;;  %v9409_v17 = vadd.f32 %v20091_v7, %v8062_v35  ;;  %v20094_v37 = vld [vmem:[#allocation154_spill] sm:$0xff]  ;;  %v20097_v41 = vld [vmem:[#allocation24_spill] sm:$0xff]  ;;  %v6654_v2 = vadd.f32 %v20099_v16, %v6044_v8  ;;  %v18501_v20 = vpop.f32.mrf.mxu0  ;;  %v20100_v39 = vld [vmem:[#allocation335_spill] sm:$0xff] }
 0x504   :  { %v13518_v4 = vpop.f32.mrf.mxu1  ;;  %v8061_v56 = vadd.f32 %v20093_v5, %v6651_v25  ;;  %v6656_v23 = vadd.f32 %v20094_v37, %v6046_v28  ;;  %v20096_v36 = vld [vmem:[#allocation90_spill] sm:$0xff]  ;;  %v20101_v45 = vld [vmem:[#allocation261_spill] sm:$0xff] }
 0x505   :  { %v10019_v6 = vadd.f32 %v13518_v4, %v9409_v17  ;;  %v2516_v34 = vadd.f32 %v20097_v41, %v20096_v36  ;;  %v20098_v26 = vld [vmem:[#allocation246_spill] sm:$0xff]  ;;  %v9410_v25 = vadd.f32 %v20101_v45, %v8063_v51  ;;  %v20102_v5 = vld [vmem:[#allocation161_spill] sm:$0xff]  ;;  %v20103_v17 = vld [vmem:[#allocation336_spill] sm:$0xff]  ;;  %v18511_v16 = vpop.f32.mrf.mxu0 }
 0x506   :  { %v6045_v11 = vadd.f32 %v20098_v26, %v4699_v1  ;;  %v9762_v35 = vpop.f32.mrf.mxu1  ;;  %v8066_v48 = vadd.f32 %v20100_v39, %v6656_v23  ;;  %v8064_v4 = vadd.f32 %v20103_v17, %v6654_v2  ;;  %v20104_v43 = vld [vmem:[#allocation262_spill] sm:$0xff]  ;;  %v20106_v51 = vld [vmem:[#allocation263_spill] sm:$0xff] }
 0x507   :  { %v10017_v7 = vadd.f32 %v9762_v35, %v9407_v10  ;;  %v3290_v28 = vadd.f32 %v20102_v5, %v2516_v34  ;;  %v11429_v37 = vadd.f32 %v18212_v47, %v10019_v6  ;;  %v9408_v8 = vadd.f32 %v20104_v43, %v8061_v56  ;;  %v20105_v36 = vld [vmem:[#allocation158_spill] sm:$0xff]  ;;  %v20107_v34 = vld [vmem:[#allocation92_spill] sm:$0xff]  ;;  %v18522_v43 = vpop.f32.mrf.mxu0 }
 0x508   :  { %v13519_v31 = vpop.f32.mrf.mxu1  ;;  %v6655_v26 = vadd.f32 %v20105_v36, %v6045_v11  ;;  %v9413_v39 = vadd.f32 %v20106_v51, %v8066_v48  ;;  %v20108_v2 = vld [vmem:[#allocation338_spill] sm:$0xff]  ;;  %v20109_v6 = vld [vmem:[#allocation264_spill] sm:$0xff]  ;;  %v20113_v36 = vld [vmem:[#allocation265_spill] sm:$0xff] }
 0x509   :  { %v11427_v41 = vadd.f32 %v18220_v33, %v10017_v7  ;;  %v10020_v1 = vadd.f32 %v13519_v31, %v9410_v25  ;;  %v4703_v45 = vadd.f32 %v20107_v34, %v3290_v28  ;;  %v9411_v11 = vadd.f32 %v20109_v6, %v8064_v4  ;;  %v20110_v7 = vld [vmem:[#allocation103_spill] sm:$0xff]  ;;  %v20111_v25 = vld [vmem:[#allocation25_spill] sm:$0xff]  ;;  %v20118_v6 = vld [vmem:[#allocation120_spill] sm:$0xff] }
 0x50a   :  { %v9765_v23 = vpop.f32.mrf.mxu1  ;;  %v8065_v5 = vadd.f32 %v20108_v2, %v6655_v26  ;;  %v2532_v31 = vadd.f32 %v20111_v25, %v20110_v7  ;;  %v9414_v26 = vadd.f32 %v20113_v36, %v18050_v27  ;;  %v20117_v27 = vld [vmem:[#allocation267_spill] sm:$0xff]  ;;  %v20119_v7 = vld [vmem:[#allocation344_spill] sm:$0xff] }
 0x50b   :  { %v11491_v10 = vadd.f32 %v11429_v37, %v11427_v41  ;;  %v10018_v35 = vadd.f32 %v9765_v23, %v9408_v8  ;;  %v11430_v47 = vadd.f32 %v18224_v60, %v10020_v1  ;;  %v20112_v37 = vld [vmem:[#allocation252_spill] sm:$0xff]  ;;  %v20114_v23 = vld [vmem:[#allocation185_spill] sm:$0xff] }
 0x50c   :  { %v13522_v17 = vpop.f32.mrf.mxu1  ;;  %v6049_v41 = vadd.f32 %v20112_v37, %v4703_v45  ;;  %v3294_v60 = vadd.f32 %v20114_v23, %v2532_v31  ;;  %v18531_v45 = vpop.f32.mrf.mxu0  ;;  %v20120_v31 = vld [vmem:[#allocation268_spill] sm:$0xff] }
 0x50d   :  { %11523 = vst [vmem:[#allocation3] sm:$0xff] %v11491_v10  ;;  %v11428_v33 = vadd.f32 %v18230_v49, %v10018_v35  ;;  %v10023_v56 = vadd.f32 %v13522_v17, %v9413_v39  ;;  %v20115_v35 = vld [vmem:[#allocation266_spill] sm:$0xff]  ;;  %v20116_v39 = vld [vmem:[#allocation184_spill] sm:$0xff]  ;;  %v9415_v37 = vadd.f32 %v20120_v31, %v18064_v18 }
 0x50e   :  { %v9778_v48 = vpop.f32.mrf.mxu1  ;;  %v9412_v51 = vadd.f32 %v20115_v35, %v8065_v5  ;;  %v6659_v34 = vadd.f32 %v20116_v39, %v6049_v41  ;;  %v20121_v41 = vld [vmem:[#allocation259_spill] sm:$0xff]  ;;  %v20124_v39 = vld [vmem:[#allocation172_spill] sm:$0xff] }
 0x50f   :  { %v11492_v28 = vadd.f32 %v11430_v47, %v11428_v33  ;;  %v10021_v8 = vadd.f32 %v9778_v48, %v9411_v11  ;;  %v11433_v49 = vadd.f32 %v18241_v57, %v10023_v56  ;;  %v9417_v33 = vadd.f32 %v20117_v27, %v18056_v38 }
 0x510   :  { %v13523_v1 = vpop.f32.mrf.mxu1  ;;  %v4707_v11 = vadd.f32 %v20118_v6, %v3294_v60  ;;  %v8069_v25 = vadd.f32 %v20119_v7, %v6659_v34 }
 0x511   :  { %11524 = vst [vmem:[#allocation3 + $0x8] sm:$0xff] %v11492_v28  ;;  %v11431_v4 = vadd.f32 %v18247_v44, %v10021_v8  ;;  %v10024_v10 = vadd.f32 %v13523_v1, %v9414_v26  ;;  %v18542_v28 = vpop.f32.mrf.mxu0  ;;  %v20122_v26 = vld [vmem:[#allocation269_spill] sm:$0xff] }
 0x512   :  { %v9781_v2 = vpop.f32.mrf.mxu1  ;;  %v6053_v48 = vadd.f32 %v20121_v41, %v4707_v11  ;;  %v9418_v23 = vadd.f32 %v20122_v26, %v18068_v62 }
 0x513   :  { %v11493_v17 = vadd.f32 %v11433_v49, %v11431_v4  ;;  %v10022_v47 = vadd.f32 %v9781_v2, %v9412_v51  ;;  %v11434_v44 = vadd.f32 %v18255_v12, %v10024_v10  ;;  %v18549_v12 = vld [vmem:[%s18784_s5] ss:$0 sm:$0xff]  ;;  %v20123_v49 = vld [vmem:[#allocation271_spill] sm:$0xff]  ;;  %v18555_v62 = vpop.f32.mrf.mxu0  ;;  %s14055_s5 = smov [#allocation7]  }
 0x514   :  { %v13526_v57 = vpop.f32.mrf.mxu1  ;;  %v9416_v18 = vadd.f32 %v20123_v49, %v8069_v25  ;;  %v6663_v34 = vadd.f32 %v20124_v39, %v6053_v48  ;;  %s11678_s26 = sshll.u32 %s14055_s5, 4  ;;  %s11679_s26 = int_to_ptr.vmem [resolvable:$true] %s11678_s26 }
 0x515   :  { %11525 = vst [vmem:[#allocation3 + $0x10] sm:$0xff] %v11493_v17  ;;  %v11432_v5 = vadd.f32 %v18262_v63, %v10022_v47  ;;  %v10027_v56 = vadd.f32 %v13526_v57, %v9417_v33  ;;  %v20125_v33 = vld [vmem:[#allocation274_spill] sm:$0xff]  ;;  %v20126_v57 = vld [vmem:[#allocation277_spill] sm:$0xff]  ;;  %s14027_s27 = scalar_lea.vmem %s11679_s26, 2048  ;;  %p14032_p6 = scmp.lt.s32.totalorder %s11679_s26, %s11679_s26 }
 0x516   :  { %v9794_v8 = vpop.f32.mrf.mxu1  ;;  %v9421_v6 = vadd.f32 %v20125_v33, %v18076_v40  ;;  %v8073_v11 = vadd.f32 %v17940_v58, %v6663_v34  ;;  %v20127_v40 = vld [vmem:[#allocation280_spill] sm:$0xff]  ;;  %p14028_p5 = scmp.ne.s32.totalorder %s11679_s26, %s14027_s27  ;;  %p14033_p7 = scmp.lt.s32.totalorder %s14027_s27, %s14027_s27 }
 0x517   :  { %v11494_v38 = vadd.f32 %v11434_v44, %v11432_v5  ;;  %v10025_v36 = vadd.f32 %v9794_v8, %v9415_v37  ;;  %v11437_v10 = vadd.f32 %v18268_v15, %v10027_v56  ;;  %v9419_v44 = vadd.f32 %v20126_v57, %v18082_v22  ;;  %v18565_v5 = vpop.f32.mrf.mxu0 }
 0x518   :  { %v11555_v60 = vld [vmem:[#allocation3] ss:$2 sm:$0xff]  ;;  %v11587_v1 = vld [vmem:[#allocation3 + $0x1] ss:$2 sm:$0xff]  ;;  %v13527_v63 = vpop.f32.mrf.mxu1  ;;  %v9422_v41 = vadd.f32 %v20127_v40, %v18085_v24  ;;  %p14034_p8 = por %p14033_p7, %p14032_p6 }
 0x519   :  { %v11618_v4 = vadd.f32 %v11587_v1, %v11555_v60  ;;  %11526 = vst [vmem:[#allocation3 + $0x18] sm:$0xff] %v11494_v38  ;;  %v11435_v35 = vadd.f32 %v18277_v3, %v10025_v36  ;;  %v10028_v51 = vadd.f32 %v13527_v63, %v9418_v23  ;;  %v20128_v38 = vld [vmem:[#allocation283_spill] sm:$0xff]  ;;  %v18572_v23 = vpop.f32.mrf.mxu0  ;;  %v20129_v24 = vld [vmem:[#allocation286_spill] sm:$0xff] }
 0x51a   :  { %v9797_v2 = vpop.f32.mrf.mxu1  ;;  %v9420_v36 = vadd.f32 %v20128_v38, %v8073_v11  ;;  %v20132_v11 = vld [vmem:[#allocation295_spill] sm:$0xff]  ;;  %p14035_p9 = pnand %p14034_p8, %p14028_p5 }
 0x51b   :  { %v11641_v17 = vadd.f32 %v18549_v12, %v11618_v4  ;;  %v11495_v47 = vadd.f32 %v11437_v10, %v11435_v35  ;;  %v10026_v27 = vadd.f32 %v9797_v2, %v9416_v18  ;;  %v11438_v3 = vadd.f32 %v18286_v53, %v10028_v51  ;;  %v18581_v39 = vpop.f32.mrf.mxu0 }
 0x51c   :  { %v13530_v7 = vpop.f32.mrf.mxu1  ;;  %v9425_v18 = vadd.f32 %v20129_v24, %v18092_v52  ;;  %v20141_v24 = vld [vmem:[#allocation307_spill] sm:$0xff] }
 0x51d   :  { %11657 = vst [vmem:[#allocation7] sm:$0xff] %v11641_v17  ;;  %11527 = vst [vmem:[#allocation3 + $0x20] sm:$0xff] %v11495_v47  ;;  %v11436_v15 = vadd.f32 %v18294_v54, %v10026_v27  ;;  %v10031_v25 = vadd.f32 %v13530_v7, %v9421_v6  ;;  %v20131_v47 = vld [vmem:[#allocation292_spill] sm:$0xff] }
 0x51e   :  { %v9810_v56 = vpop.f32.mrf.mxu1  ;;  %v9426_v27 = vadd.f32 %v20131_v47, %v18104_v29 }
 0x51f   :  { %v11496_v31 = vadd.f32 %v11438_v3, %v11436_v15  ;;  %v10029_v37 = vadd.f32 %v9810_v56, %v9419_v44  ;;  %v11441_v54 = vadd.f32 %v18298_v19, %v10031_v25  ;;  %v18589_v15 = vpop.f32.mrf.mxu0  ;;  %v20133_v56 = vld [vmem:[#allocation298_spill] sm:$0xff] }
 0x520   :  { %v11557_v58 = vld [vmem:[#allocation3 + $0x10] ss:$2 sm:$0xff]  ;;  %v11589_v48 = vld [vmem:[#allocation3 + $0x11] ss:$2 sm:$0xff]  ;;  %v13531_v8 = vpop.f32.mrf.mxu1 }
 0x521   :  { %v11619_v53 = vadd.f32 %v11589_v48, %v11557_v58  ;;  %11528 = vst [vmem:[#allocation3 + $0x28] sm:$0xff] %v11496_v31  ;;  %v11439_v26 = vadd.f32 %v18308_v55, %v10029_v37  ;;  %v10032_v22 = vadd.f32 %v13531_v8, %v9422_v41  ;;  %v20130_v55 = vld [vmem:[#allocation289_spill] sm:$0xff]  ;;  %v9429_v31 = vadd.f32 %v20133_v56, %v18112_v50  ;;  %v20136_v48 = vld [vmem:[#allocation36_spill] sm:$0xff]  ;;  %v18600_v38 = vpop.f32.mrf.mxu0  ;;  %v20137_v50 = vld [vmem:[#allocation23_spill] sm:$0xff] }
 0x522   :  { %v9813_v60 = vpop.f32.mrf.mxu1  ;;  %v9423_v51 = vadd.f32 %v20130_v55, %v18100_v9  ;;  %v20135_v58 = vld [vmem:[#allocation93_spill] sm:$0xff]  ;;  %v20151_v56 = vld [vmem:[#allocation116_spill] sm:$0xff] }
 0x523   :  { %v11642_v1 = vadd.f32 %v18549_v12, %v11619_v53  ;;  %v11497_v63 = vadd.f32 %v11441_v54, %v11439_v26  ;;  %v10030_v49 = vadd.f32 %v9813_v60, %v9420_v36  ;;  %v11442_v10 = vadd.f32 %v18315_v21, %v10032_v22  ;;  %v20138_v26 = vld [vmem:[#allocation304_spill] sm:$0xff]  ;;  %v20139_v60 = vld [vmem:[#allocation226_spill] sm:$0xff] }
 0x524   :  { %v13534_v4 = vpop.f32.mrf.mxu1  ;;  %v9424_v21 = vadd.f32 %v20132_v11, %v18107_v46  ;;  %v2596_v8 = vadd.f32 %v20136_v48, %v20135_v58  ;;  %v9430_v22 = vadd.f32 %v20138_v26, %v20137_v50  ;;  %v20154_v48 = vld [vmem:[#allocation28_spill] sm:$0xff] }
 0x525   :  { %11658 = vst [vmem:[#allocation7 + $0x8] sm:$0xff] %v11642_v1  ;;  %11529 = vst [vmem:[#allocation3 + $0x30] sm:$0xff] %v11497_v63  ;;  %v11440_v19 = vadd.f32 %v18322_v14, %v10030_v49  ;;  %v10035_v35 = vadd.f32 %v13534_v4, %v9425_v18  ;;  %v20140_v49 = vld [vmem:[#allocation139_spill] sm:$0xff]  ;;  %v20142_v4 = vld [vmem:[#allocation193_spill] sm:$0xff] }
 0x526   :  { %v9826_v34 = vpop.f32.mrf.mxu1  ;;  %v3310_v1 = vadd.f32 %v20139_v60, %v2596_v8  ;;  %v9428_v18 = vadd.f32 %v20141_v24, %v20140_v49  ;;  %v20155_v8 = vld [vmem:[#allocation316_spill] sm:$0xff]  ;;  %v20160_v24 = vld [vmem:[#allocation213_spill] sm:$0xff] }
 0x527   :  { %v11498_v2 = vadd.f32 %v11442_v10, %v11440_v19  ;;  %v10033_v17 = vadd.f32 %v9826_v34, %v9423_v51  ;;  %v11445_v14 = vadd.f32 %v18330_v42, %v10035_v35  ;;  %v20143_v19 = vld [vmem:[#allocation218_spill] sm:$0xff]  ;;  %v18609_v51 = vpop.f32.mrf.mxu0  ;;  %v20157_v60 = vld [vmem:[#allocation32_spill] sm:$0xff] }
 0x528   :  { %v11559_v52 = vld [vmem:[#allocation3 + $0x20] ss:$2 sm:$0xff]  ;;  %v11591_v33 = vld [vmem:[#allocation3 + $0x21] ss:$2 sm:$0xff]  ;;  %v13535_v6 = vpop.f32.mrf.mxu1 }
 0x529   :  { %v11620_v7 = vadd.f32 %v11591_v33, %v11559_v52  ;;  %11530 = vst [vmem:[#allocation3 + $0x38] sm:$0xff] %v11498_v2  ;;  %v11443_v9 = vadd.f32 %v18336_v32, %v10033_v17  ;;  %v10036_v3 = vadd.f32 %v13535_v6, %v9426_v27  ;;  %v20134_v32 = vld [vmem:[#allocation301_spill] sm:$0xff]  ;;  %v20144_v27 = vld [vmem:[#allocation26_spill] sm:$0xff]  ;;  %v20146_v6 = vld [vmem:[#allocation243_spill] sm:$0xff] }
 0x52a   :  { %v9829_v25 = vpop.f32.mrf.mxu1  ;;  %v9427_v41 = vadd.f32 %v20134_v32, %v18119_v59  ;;  %v20145_v52 = vld [vmem:[#allocation310_spill] sm:$0xff]  ;;  %v4723_v11 = vadd.f32 %v20146_v6, %v3310_v1  ;;  %v20158_v1 = vld [vmem:[#allocation319_spill] sm:$0xff] }
 0x52b   :  { %v11643_v57 = vadd.f32 %v18549_v12, %v11620_v7  ;;  %v11499_v44 = vadd.f32 %v11445_v14, %v11443_v9  ;;  %v10034_v29 = vadd.f32 %v9829_v25, %v9424_v21  ;;  %v11446_v46 = vadd.f32 %v18347_v30, %v10036_v3  ;;  %v20147_v7 = vld [vmem:[#allocation239_spill] sm:$0xff]  ;;  %v20148_v9 = vld [vmem:[#allocation198_spill] sm:$0xff] }
 0x52c   :  { %v13538_v37 = vpop.f32.mrf.mxu1  ;;  %v9433_v33 = vadd.f32 %v20145_v52, %v20144_v27  ;;  %v20164_v52 = vld [vmem:[#allocation101_spill] sm:$0xff]  ;;  %v20165_v6 = vld [vmem:[#allocation138_spill] sm:$0xff] }
 0x52d   :  { %11659 = vst [vmem:[#allocation7 + $0x10] sm:$0xff] %v11643_v57  ;;  %11531 = vst [vmem:[#allocation3 + $0x40] sm:$0xff] %v11499_v44  ;;  %v11444_v42 = vadd.f32 %v18354_v13, %v10034_v29  ;;  %v10039_v40 = vadd.f32 %v13538_v37, %v9429_v31  ;;  %v20149_v57 = vld [vmem:[#allocation180_spill] sm:$0xff]  ;;  %v20150_v44 = vld [vmem:[#allocation313_spill] sm:$0xff] }
 0x52e   :  { %v9842_v36 = vpop.f32.mrf.mxu1  ;;  %v9431_v29 = vadd.f32 %v20150_v44, %v20149_v57  ;;  %v20152_v31 = vld [vmem:[#allocation40_spill] sm:$0xff]  ;;  %v20168_v57 = vld [vmem:[#allocation91_spill] sm:$0xff]  ;;  %v20169_v44 = vld [vmem:[#allocation325_spill] sm:$0xff] }
 0x52f   :  { %v11500_v53 = vadd.f32 %v11446_v46, %v11444_v42  ;;  %v10037_v54 = vadd.f32 %v9842_v36, %v9427_v41  ;;  %v11449_v10 = vadd.f32 %v20142_v4, %v10039_v40  ;;  %v2612_v37 = vadd.f32 %v20152_v31, %v20151_v56  ;;  %v20153_v46 = vld [vmem:[#allocation279_spill] sm:$0xff]  ;;  %v18622_v40 = vpop.f32.mrf.mxu0  ;;  %v20170_v56 = vld [vmem:[#allocation205_spill] sm:$0xff]  ;;  %v20171_v31 = vld [vmem:[#allocation44_spill] sm:$0xff] }
 0x530   :  { %v11561_v30 = vld [vmem:[#allocation3 + $0x30] ss:$2 sm:$0xff]  ;;  %v11593_v63 = vld [vmem:[#allocation3 + $0x31] ss:$2 sm:$0xff]  ;;  %v13539_v13 = vpop.f32.mrf.mxu1  ;;  %v6069_v42 = vadd.f32 %v20153_v46, %v4723_v11  ;;  %v9434_v36 = vadd.f32 %v20155_v8, %v20154_v48  ;;  %v20161_v4 = vld [vmem:[#allocation211_spill] sm:$0xff] }
 0x531   :  { %v11621_v59 = vadd.f32 %v11593_v63, %v11561_v30  ;;  %11532 = vst [vmem:[#allocation3 + $0x48] sm:$0xff] %v11500_v53  ;;  %v11447_v35 = vadd.f32 %v20143_v19, %v10037_v54  ;;  %v10040_v55 = vadd.f32 %v13539_v13, %v9430_v22  ;;  %v20156_v53 = vld [vmem:[#allocation126_spill] sm:$0xff]  ;;  %v9432_v30 = vadd.f32 %v20158_v1, %v20157_v60  ;;  %v20159_v13 = vld [vmem:[#allocation199_spill] sm:$0xff]  ;;  %v18632_v19 = vpop.f32.mrf.mxu0  ;;  %v20172_v46 = vld [vmem:[#allocation285_spill] sm:$0xff] }
 0x532   :  { %v9845_v34 = vpop.f32.mrf.mxu1  ;;  %v3314_v54 = vadd.f32 %v20156_v53, %v2612_v37  ;;  %v2628_v37 = vadd.f32 %v20171_v31, %v20170_v56  ;;  %v20173_v8 = vld [vmem:[#allocation96_spill] sm:$0xff]  ;;  %v20176_v1 = vld [vmem:[#allocation331_spill] sm:$0xff] }
 0x533   :  { %v11644_v2 = vadd.f32 %v18549_v12, %v11621_v59  ;;  %v11501_v17 = vadd.f32 %v11449_v10, %v11447_v35  ;;  %v10038_v47 = vadd.f32 %v9845_v34, %v9428_v18  ;;  %v11450_v14 = vadd.f32 %v20147_v7, %v10040_v55  ;;  %v20166_v7 = vld [vmem:[#allocation201_spill] sm:$0xff] }
 0x534   :  { %v13542_v21 = vpop.f32.mrf.mxu1  ;;  %v6679_v10 = vadd.f32 %v20161_v4, %v6069_v42  ;;  %v20179_v4 = vld [vmem:[#allocation221_spill] sm:$0xff] }
 0x535   :  { %11660 = vst [vmem:[#allocation7 + $0x18] sm:$0xff] %v11644_v2  ;;  %11533 = vst [vmem:[#allocation3 + $0x50] sm:$0xff] %v11501_v17  ;;  %v11448_v3 = vadd.f32 %v20148_v9, %v10038_v47  ;;  %v10043_v25 = vadd.f32 %v13542_v21, %v9433_v33  ;;  %v20162_v17 = vld [vmem:[#allocation87_spill] sm:$0xff]  ;;  %v20163_v47 = vld [vmem:[#allocation322_spill] sm:$0xff]  ;;  %v4727_v33 = vadd.f32 %v20164_v52, %v3314_v54 }
 0x536   :  { %v9858_v32 = vpop.f32.mrf.mxu1  ;;  %v9437_v27 = vadd.f32 %v20163_v47, %v20162_v17  ;;  %v8089_v11 = vadd.f32 %v20165_v6, %v6679_v10  ;;  %v20167_v9 = vld [vmem:[#allocation275_spill] sm:$0xff]  ;;  %v20180_v47 = vld [vmem:[#allocation157_spill] sm:$0xff] }
 0x537   :  { %v11502_v41 = vadd.f32 %v11450_v14, %v11448_v3  ;;  %v10041_v58 = vadd.f32 %v9858_v32, %v9431_v29  ;;  %v11453_v49 = vadd.f32 %v20159_v13, %v10043_v25  ;;  %v9435_v29 = vadd.f32 %v20169_v44, %v20168_v57  ;;  %v18646_v32 = vpop.f32.mrf.mxu0  ;;  %v20175_v54 = vld [vmem:[#allocation219_spill] sm:$0xff]  ;;  %v20177_v13 = vld [vmem:[#allocation224_spill] sm:$0xff]  ;;  %v20185_v57 = vld [vmem:[#allocation337_spill] sm:$0xff] }
 0x538   :  { %v11563_v50 = vld [vmem:[#allocation3 + $0x40] ss:$2 sm:$0xff]  ;;  %v11595_v26 = vld [vmem:[#allocation3 + $0x41] ss:$2 sm:$0xff]  ;;  %v13543_v22 = vpop.f32.mrf.mxu1  ;;  %v6073_v42 = vadd.f32 %v20172_v46, %v4727_v33 }
 0x539   :  { %v11622_v63 = vadd.f32 %v11595_v26, %v11563_v50  ;;  %11534 = vst [vmem:[#allocation3 + $0x58] sm:$0xff] %v11502_v41  ;;  %v11451_v18 = vadd.f32 %v20160_v24, %v10041_v58  ;;  %v10044_v59 = vadd.f32 %v13543_v22, %v9434_v36  ;;  %v20174_v36 = vld [vmem:[#allocation328_spill] sm:$0xff]  ;;  %v3318_v50 = vadd.f32 %v20175_v54, %v2628_v37  ;;  %v20182_v33 = vld [vmem:[#allocation123_spill] sm:$0xff] }
 0x53a   :  { %v9861_v35 = vpop.f32.mrf.mxu1  ;;  %v9438_v53 = vadd.f32 %v20174_v36, %v20173_v8  ;;  %v20178_v24 = vld [vmem:[#allocation276_spill] sm:$0xff]  ;;  %v6683_v10 = vadd.f32 %v20179_v4, %v6073_v42 }
 0x53b   :  { %v11645_v55 = vadd.f32 %v18549_v12, %v11622_v63  ;;  %v11503_v34 = vadd.f32 %v11453_v49, %v11451_v18  ;;  %v10042_v2 = vadd.f32 %v9861_v35, %v9432_v30  ;;  %v11454_v14 = vadd.f32 %v20166_v7, %v10044_v59  ;;  %v18655_v35 = vpop.f32.mrf.mxu0 }
 0x53c   :  { %v13546_v21 = vpop.f32.mrf.mxu1  ;;  %v9436_v30 = vadd.f32 %v20176_v1, %v8089_v11  ;;  %v4731_v6 = vadd.f32 %v20182_v33, %v3318_v50  ;;  %v20183_v11 = vld [vmem:[#allocation197_spill] sm:$0xff] }
 0x53d   :  { %11661 = vst [vmem:[#allocation7 + $0x20] sm:$0xff] %v11645_v55  ;;  %11535 = vst [vmem:[#allocation3 + $0x60] sm:$0xff] %v11503_v34  ;;  %v11452_v3 = vadd.f32 %v20167_v9, %v10042_v2  ;;  %v10047_v25 = vadd.f32 %v13546_v21, %v9437_v27  ;;  %v20181_v27 = vld [vmem:[#allocation334_spill] sm:$0xff]  ;;  %v8093_v21 = vadd.f32 %v20183_v11, %v6683_v10  ;;  %v18667_v31 = vpop.f32.mrf.mxu0  ;;  %v20193_v10 = vld [vmem:[#allocation183_spill] sm:$0xff] }
 0x53e   :  { %v9874_v41 = vpop.f32.mrf.mxu1  ;;  %v9441_v52 = vadd.f32 %v20181_v27, %v20180_v47  ;;  %v20195_v47 = vld [vmem:[#allocation343_spill] sm:$0xff] }
 0x53f   :  { %v11504_v58 = vadd.f32 %v11454_v14, %v11452_v3  ;;  %v10045_v48 = vadd.f32 %v9874_v41, %v9435_v29  ;;  %v11457_v49 = vadd.f32 %v20177_v13, %v10047_v25  ;;  %v20184_v25 = vld [vmem:[#allocation178_spill] sm:$0xff]  ;;  %v20186_v29 = vld [vmem:[#allocation291_spill] sm:$0xff] }
 0x540   :  { %v11565_v26 = vld [vmem:[#allocation3 + $0x50] ss:$2 sm:$0xff]  ;;  %v11597_v22 = vld [vmem:[#allocation3 + $0x51] ss:$2 sm:$0xff]  ;;  %v13547_v60 = vpop.f32.mrf.mxu1  ;;  %v9439_v44 = vadd.f32 %v20185_v57, %v20184_v25  ;;  %v6077_v56 = vadd.f32 %v20186_v29, %v4731_v6  ;;  %v20187_v41 = vld [vmem:[#allocation179_spill] sm:$0xff] }
 0x541   :  { %v11623_v63 = vadd.f32 %v11597_v22, %v11565_v26  ;;  %11536 = vst [vmem:[#allocation3 + $0x68] sm:$0xff] %v11504_v58  ;;  %v11455_v18 = vadd.f32 %v20178_v24, %v10045_v48  ;;  %v10048_v59 = vadd.f32 %v13547_v60, %v9438_v53  ;;  %v20188_v58 = vld [vmem:[#allocation339_spill] sm:$0xff]  ;;  %v20190_v60 = vld [vmem:[#allocation234_spill] sm:$0xff] }
 0x542   :  { %v9877_v55 = vpop.f32.mrf.mxu1  ;;  %v9442_v48 = vadd.f32 %v20188_v58, %v20187_v41  ;;  %v6687_v1 = vadd.f32 %v20190_v60, %v6077_v56  ;;  %v20198_v57 = vld [vmem:[#allocation346_spill] sm:$0xff] }
 0x543   :  { %v11646_v34 = vadd.f32 %v18549_v12, %v11623_v63  ;;  %v11505_v2 = vadd.f32 %v11457_v49, %v11455_v18  ;;  %v10046_v17 = vadd.f32 %v9877_v55, %v9436_v30  ;;  %v11458_v14 = vadd.f32 %v18486_v61, %v10048_v59  ;;  %v20189_v61 = vld [vmem:[#allocation340_spill] sm:$0xff]  ;;  %v18675_v30 = vpop.f32.mrf.mxu0  ;;  %v20192_v59 = vld [vmem:[#allocation341_spill] sm:$0xff] }
 0x544   :  { %v13550_v7 = vpop.f32.mrf.mxu1  ;;  %v9440_v54 = vadd.f32 %v20189_v61, %v8093_v21  ;;  %v20191_v18 = vld [vmem:[#allocation200_spill] sm:$0xff]  ;;  %v8097_v55 = vadd.f32 %v20193_v10, %v6687_v1  ;;  %v20196_v21 = vld [vmem:[#allocation182_spill] sm:$0xff] }
 0x545   :  { %11662 = vst [vmem:[#allocation7 + $0x28] sm:$0xff] %v11646_v34  ;;  %11537 = vst [vmem:[#allocation3 + $0x70] sm:$0xff] %v11505_v2  ;;  %v11456_v9 = vadd.f32 %v18501_v20, %v10046_v17  ;;  %v10051_v3 = vadd.f32 %v13550_v7, %v9441_v52  ;;  %v9445_v4 = vadd.f32 %v20192_v59, %v20191_v18  ;;  %v20194_v17 = vld [vmem:[#allocation209_spill] sm:$0xff]  ;;  %v18685_v52 = vpop.f32.mrf.mxu0  ;;  %v20206_v10 = vld [vmem:[#allocation350_spill] sm:$0xff] }
 0x546   :  { %v9890_v37 = vpop.f32.mrf.mxu1  ;;  %v9443_v27 = vadd.f32 %v20195_v47, %v20194_v17  ;;  %v20197_v7 = vld [vmem:[#allocation345_spill] sm:$0xff] }
 0x547   :  { %v11506_v46 = vadd.f32 %v11458_v14, %v11456_v9  ;;  %v10049_v42 = vadd.f32 %v9890_v37, %v9439_v44  ;;  %v11461_v50 = vadd.f32 %v18511_v16, %v10051_v3  ;;  %v9446_v14 = vadd.f32 %v20197_v7, %v20196_v21  ;;  %v18692_v37 = vpop.f32.mrf.mxu0 }
 0x548   :  { %v11567_v8 = vld [vmem:[#allocation3 + $0x60] ss:$2 sm:$0xff]  ;;  %v11599_v36 = vld [vmem:[#allocation3 + $0x61] ss:$2 sm:$0xff]  ;;  %v13551_v53 = vpop.f32.mrf.mxu1  ;;  %v9444_v44 = vadd.f32 %v20198_v57, %v8097_v55 }
 0x549   :  { %v11624_v20 = vadd.f32 %v11599_v36, %v11567_v8  ;;  %11538 = vst [vmem:[#allocation3 + $0x78] sm:$0xff] %v11506_v46  ;;  %v11459_v26 = vadd.f32 %v18522_v43, %v10049_v42  ;;  %v10052_v22 = vadd.f32 %v13551_v53, %v9442_v48  ;;  %v20199_v48 = vld [vmem:[#allocation162_spill] sm:$0xff]  ;;  %v20200_v8 = vld [vmem:[#allocation347_spill] sm:$0xff] }
 0x54a   :  { %v9893_v63 = vpop.f32.mrf.mxu1  ;;  %v9449_v36 = vadd.f32 %v20200_v8, %v20199_v48  ;;  %v20214_v48 = vld [vmem:[#allocation19_spill] sm:$0xff] }
 0x54b   :  { %v11647_v13 = vadd.f32 %v18549_v12, %v11624_v20  ;;  %v11507_v49 = vadd.f32 %v11461_v50, %v11459_v26  ;;  %v10050_v24 = vadd.f32 %v9893_v63, %v9440_v54  ;;  %v11462_v16 = vadd.f32 %v18531_v45, %v10052_v22  ;;  %v20202_v20 = vld [vmem:[#allocation348_spill] sm:$0xff]  ;;  %v18701_v26 = vpop.f32.mrf.mxu0 }
 0x54c   :  { %v13554_v34 = vpop.f32.mrf.mxu1  ;;  %v20203_v63 = vld [vmem:[#allocation216_spill] sm:$0xff] }
 0x54d   :  { %11663 = vst [vmem:[#allocation7 + $0x30] sm:$0xff] %v11647_v13  ;;  %11539 = vst [vmem:[#allocation3 + $0x80] sm:$0xff] %v11507_v49  ;;  %v11460_v43 = vadd.f32 %v18542_v28, %v10050_v24  ;;  %v10055_v2 = vadd.f32 %v13554_v34, %v9445_v4  ;;  %v20204_v13 = vld [vmem:[#allocation349_spill] sm:$0xff] }
 0x54e   :  { %v9906_v33 = vpop.f32.mrf.mxu1  ;;  %v9450_v49 = vadd.f32 %v20204_v13, %v20203_v63  ;;  %v20205_v4 = vld [vmem:[#allocation165_spill] sm:$0xff] }
 0x54f   :  { %v11508_v6 = vadd.f32 %v11462_v16, %v11460_v43  ;;  %v10053_v11 = vadd.f32 %v9906_v33, %v9443_v27  ;;  %v11465_v28 = vadd.f32 %v18555_v62, %v10055_v2  ;;  %v18709_v43 = vpop.f32.mrf.mxu0  ;;  %v20207_v33 = vld [vmem:[#allocation342_spill] sm:$0xff] }
 0x550   :  { %v11569_v9 = vld [vmem:[#allocation3 + $0x70] ss:$2 sm:$0xff]  ;;  %v11601_v3 = vld [vmem:[#allocation3 + $0x71] ss:$2 sm:$0xff]  ;;  %v13555_v25 = vpop.f32.mrf.mxu1 }
 0x551   :  { %v11625_v45 = vadd.f32 %v11601_v3, %v11569_v9  ;;  %11540 = vst [vmem:[#allocation3 + $0x88] sm:$0xff] %v11508_v6  ;;  %v11463_v29 = vadd.f32 %v18565_v5, %v10053_v11  ;;  %v10056_v56 = vadd.f32 %v13555_v25, %v9446_v14  ;;  %v20201_v5 = vld [vmem:[#allocation45_spill] sm:$0xff]  ;;  %v20208_v6 = vld [vmem:[#allocation351_spill] sm:$0xff]  ;;  %v20210_v9 = vld [vmem:[#allocation352_spill] sm:$0xff]  ;;  %v18718_v25 = vpop.f32.mrf.mxu0 }
 0x552   :  { %v9909_v46 = vpop.f32.mrf.mxu1  ;;  %v9447_v50 = vadd.f32 %v20202_v20, %v20201_v5  ;;  %v9453_v11 = vadd.f32 %v20208_v6, %v20207_v33 }
 0x553   :  { %v11648_v42 = vadd.f32 %v18549_v12, %v11625_v45  ;;  %v11509_v41 = vadd.f32 %v11465_v28, %v11463_v29  ;;  %v10054_v58 = vadd.f32 %v9909_v46, %v9444_v44  ;;  %v11466_v61 = vadd.f32 %v18572_v23, %v10056_v56  ;;  %v20211_v28 = vld [vmem:[#allocation191_spill] sm:$0xff]  ;;  %v20212_v29 = vld [vmem:[#allocation80_spill] sm:$0xff] }
 0x554   :  { %v9448_v23 = vadd.f32 %v20206_v10, %v20205_v4  ;;  %v9454_v56 = vadd.f32 %v20212_v29, %v20211_v28  ;;  %v20225_v28 = vld [vmem:[#allocation272_spill] sm:$0xff] }
 0x555   :  { %11664 = vst [vmem:[#allocation7 + $0x38] sm:$0xff] %v11648_v42  ;;  %11541 = vst [vmem:[#allocation3 + $0x90] sm:$0xff] %v11509_v41  ;;  %v11464_v62 = vadd.f32 %v18581_v39, %v10054_v58  ;;  %v20213_v58 = vld [vmem:[#allocation270_spill] sm:$0xff] }
 0x557   :  { %v13558_v53 = vpop.f32.mrf.mxu1  ;;  %v11510_v60 = vadd.f32 %v11466_v61, %v11464_v62  ;;  %v18726_v61 = vpop.f32.mrf.mxu0 }
 0x558   :  { %v10059_v54 = vadd.f32 %v13558_v53, %v9449_v36  ;;  %v11571_v24 = vld [vmem:[#allocation3 + $0x80] ss:$2 sm:$0xff]  ;;  %v11603_v18 = vld [vmem:[#allocation3 + $0x81] ss:$2 sm:$0xff] }
 0x559   :  { %v9922_v22 = vpop.f32.mrf.mxu1  ;;  %v11626_v55 = vadd.f32 %v11603_v18, %v11571_v24  ;;  %11542 = vst [vmem:[#allocation3 + $0x98] sm:$0xff] %v11510_v60  ;;  %v11383_v18 = vpop.f32.mrf.mxu0 }
 0x55a   :  { %v10057_v1 = vadd.f32 %v9922_v22, %v9447_v50  ;;  %v11469_v39 = vadd.f32 %v18589_v15, %v10059_v54  ;;  %v20215_v50 = vld [vmem:[#allocation212_spill] sm:$0xff] }
 0x55b   :  { %v13559_v59 = vpop.f32.mrf.mxu1  ;;  %v11649_v17 = vadd.f32 %v18549_v12, %v11626_v55  ;;  %v20216_v22 = vld [vmem:[#allocation84_spill] sm:$0xff]  ;;  %v20220_v55 = vld [vmem:[#allocation86_spill] sm:$0xff] }
 0x55c   :  { %v11467_v34 = vadd.f32 %v18600_v38, %v10057_v1  ;;  %v10060_v16 = vadd.f32 %v13559_v59, %v9450_v49  ;;  %v20209_v38 = vld [vmem:[#allocation169_spill] sm:$0xff]  ;;  %v9457_v60 = vadd.f32 %v20216_v22, %v20215_v50 }
 0x55d   :  { %v9925_v2 = vpop.f32.mrf.mxu1  ;;  %11665 = vst [vmem:[#allocation7 + $0x40] sm:$0xff] %v11649_v17  ;;  %v9451_v3 = vadd.f32 %v20210_v9, %v20209_v38  ;;  %v20218_v49 = vld [vmem:[#allocation21_spill] sm:$0xff]  ;;  %v20221_v17 = vld [vmem:[#allocation232_spill] sm:$0xff] }
 0x55e   :  { %v11511_v47 = vadd.f32 %v11469_v39, %v11467_v34  ;;  %v10058_v27 = vadd.f32 %v9925_v2, %v9448_v23  ;;  %v11470_v7 = vadd.f32 %v18609_v51, %v10060_v16  ;;  %v9452_v51 = vadd.f32 %v20214_v48, %v20213_v58  ;;  %v20219_v23 = vld [vmem:[#allocation192_spill] sm:$0xff]  ;;  %v20223_v38 = vld [vmem:[#allocation173_spill] sm:$0xff]  ;;  %v20227_v58 = vld [vmem:[#allocation194_spill] sm:$0xff] }
 0x55f   :  { %v13562_v21 = vpop.f32.mrf.mxu1  ;;  %v9458_v39 = vadd.f32 %v20220_v55, %v20219_v23  ;;  %v20224_v9 = vld [vmem:[#allocation88_spill] sm:$0xff]  ;;  %v20228_v48 = vld [vmem:[#allocation83_spill] sm:$0xff] }
 0x560   :  { %11543 = vst [vmem:[#allocation3 + $0xa0] sm:$0xff] %v11511_v47  ;;  %v11468_v15 = vadd.f32 %v18622_v40, %v10058_v27  ;;  %v10063_v14 = vadd.f32 %v13562_v21, %v9453_v11  ;;  %v11573_v46 = vld [vmem:[#allocation3 + $0x90] ss:$2 sm:$0xff]  ;;  %v11605_v42 = vld [vmem:[#allocation3 + $0x91] ss:$2 sm:$0xff]  ;;  %v20222_v47 = vld [vmem:[#allocation22_spill] sm:$0xff]  ;;  %v13654_v11 = vpop.f32.mrf.mxu0 }
 0x561   :  { %v9938_v57 = vpop.f32.mrf.mxu1  ;;  %v11627_v8 = vadd.f32 %v11605_v42, %v11573_v46  ;;  %v9456_v27 = vadd.f32 %v20222_v47, %v20221_v17 }
 0x562   :  { %v11512_v44 = vadd.f32 %v11470_v7, %v11468_v15  ;;  %v10061_v45 = vadd.f32 %v9938_v57, %v9451_v3  ;;  %v11473_v40 = vadd.f32 %v18632_v19, %v10063_v14  ;;  %v9461_v3 = vadd.f32 %v20224_v9, %v20223_v38 }
 0x563   :  { %v13563_v41 = vpop.f32.mrf.mxu1  ;;  %v11650_v54 = vadd.f32 %v18549_v12, %v11627_v8 }
 0x564   :  { %11544 = vst [vmem:[#allocation3 + $0xa8] sm:$0xff] %v11512_v44  ;;  %v11471_v36 = vadd.f32 %v18646_v32, %v10061_v45  ;;  %v10064_v53 = vadd.f32 %v13563_v41, %v9454_v56  ;;  %v20217_v32 = vld [vmem:[#allocation230_spill] sm:$0xff]  ;;  %v11396_v56 = vpop.f32.mrf.mxu0 }
 0x565   :  { %v9941_v62 = vpop.f32.mrf.mxu1  ;;  %11666 = vst [vmem:[#allocation7 + $0x48] sm:$0xff] %v11650_v54  ;;  %v9455_v24 = vadd.f32 %v20218_v49, %v20217_v32 }
 0x566   :  { %v11513_v5 = vadd.f32 %v11473_v40, %v11471_v36  ;;  %v10062_v20 = vadd.f32 %v9941_v62, %v9452_v51  ;;  %v11474_v63 = vadd.f32 %v18655_v35, %v10064_v53  ;;  %v9462_v51 = vadd.f32 %v20228_v48, %v20227_v58  ;;  %v20229_v53 = vld [vmem:[#allocation273_spill] sm:$0xff]  ;;  %v13655_v50 = vpop.f32.mrf.mxu0 }
 0x567   :  { %v13566_v1 = vpop.f32.mrf.mxu1  ;;  %v20230_v62 = vld [vmem:[#allocation89_spill] sm:$0xff] }
 0x568   :  { %11545 = vst [vmem:[#allocation3 + $0xb0] sm:$0xff] %v11513_v5  ;;  %v11472_v19 = vadd.f32 %v18667_v31, %v10062_v20  ;;  %v10067_v13 = vadd.f32 %v13566_v1, %v9457_v60  ;;  %v9460_v54 = vadd.f32 %v20230_v62, %v20229_v53  ;;  %v11399_v23 = vpop.f32.mrf.mxu0 }
 0x569   :  { %v9954_v59 = vpop.f32.mrf.mxu1 }
 0x56a   :  { %v11514_v4 = vadd.f32 %v11474_v63, %v11472_v19  ;;  %v10065_v10 = vadd.f32 %v9954_v59, %v9455_v24  ;;  %v11477_v31 = vadd.f32 %v18675_v30, %v10067_v13  ;;  %v20231_v19 = vld [vmem:[#allocation202_spill] sm:$0xff] }
 0x56b   :  { %v11575_v34 = vld [vmem:[#allocation3 + $0xa0] ss:$2 sm:$0xff]  ;;  %v11607_v16 = vld [vmem:[#allocation3 + $0xa1] ss:$2 sm:$0xff]  ;;  %v13567_v2 = vpop.f32.mrf.mxu1 }
 0x56c   :  { %v11628_v35 = vadd.f32 %v11607_v16, %v11575_v34  ;;  %11546 = vst [vmem:[#allocation3 + $0xb8] sm:$0xff] %v11514_v4  ;;  %v11475_v33 = vadd.f32 %v18685_v52, %v10065_v10  ;;  %v10068_v6 = vadd.f32 %v13567_v2, %v9458_v39  ;;  %v20226_v52 = vld [vmem:[#allocation217_spill] sm:$0xff]  ;;  %v20232_v13 = vld [vmem:[#allocation102_spill] sm:$0xff]  ;;  %v20234_v10 = vld [vmem:[#allocation111_spill] sm:$0xff] }
 0x56d   :  { %v9957_v21 = vpop.f32.mrf.mxu1  ;;  %v9459_v29 = vadd.f32 %v20226_v52, %v20225_v28  ;;  %v9465_v32 = vadd.f32 %v20232_v13, %v20231_v19  ;;  %v20235_v16 = vld [vmem:[#allocation214_spill] sm:$0xff]  ;;  %v20236_v2 = vld [vmem:[#allocation129_spill] sm:$0xff] }
 0x56e   :  { %v11651_v7 = vadd.f32 %v18549_v12, %v11628_v35  ;;  %v11515_v15 = vadd.f32 %v11477_v31, %v11475_v33  ;;  %v10066_v14 = vadd.f32 %v9957_v21, %v9456_v27  ;;  %v11478_v44 = vadd.f32 %v18692_v37, %v10068_v6  ;;  %v13658_v31 = vpop.f32.mrf.mxu0  ;;  %v20237_v33 = vld [vmem:[#allocation223_spill] sm:$0xff]  ;;  %v20238_v6 = vld [vmem:[#allocation148_spill] sm:$0xff] }
 0x56f   :  { %v13570_v57 = vpop.f32.mrf.mxu1  ;;  %v9466_v17 = vadd.f32 %v20236_v2, %v20235_v16  ;;  %v9464_v21 = vadd.f32 %v20238_v6, %v20237_v33 }
 0x570   :  { %11667 = vst [vmem:[#allocation7 + $0x50] sm:$0xff] %v11651_v7  ;;  %11547 = vst [vmem:[#allocation3 + $0xc0] sm:$0xff] %v11515_v15  ;;  %v11476_v45 = vadd.f32 %v18701_v26, %v10066_v14  ;;  %v10071_v30 = vadd.f32 %v13570_v57, %v9461_v3  ;;  %v20239_v57 = vld [vmem:[#allocation107_spill] sm:$0xff] }
 0x571   :  { %v9970_v46 = vpop.f32.mrf.mxu1 }
 0x572   :  { %v11516_v42 = vadd.f32 %v11478_v44, %v11476_v45  ;;  %v10069_v41 = vadd.f32 %v9970_v46, %v9459_v29  ;;  %v11481_v26 = vadd.f32 %v18709_v43, %v10071_v30  ;;  %v20233_v43 = vld [vmem:[#allocation46_spill] sm:$0xff]  ;;  %v11412_v30 = vpop.f32.mrf.mxu0 }
 0x573   :  { %v11577_v8 = vld [vmem:[#allocation3 + $0xb0] ss:$2 sm:$0xff]  ;;  %v11609_v40 = vld [vmem:[#allocation3 + $0xb1] ss:$2 sm:$0xff]  ;;  %v13571_v36 = vpop.f32.mrf.mxu1  ;;  %v20240_v44 = vld [vmem:[#allocation166_spill] sm:$0xff] }
 0x574   :  { %v11629_v37 = vadd.f32 %v11609_v40, %v11577_v8  ;;  %11548 = vst [vmem:[#allocation3 + $0xc8] sm:$0xff] %v11516_v42  ;;  %v11479_v5 = vadd.f32 %v18718_v25, %v10069_v41  ;;  %v10072_v20 = vadd.f32 %v13571_v36, %v9462_v51  ;;  %v9463_v25 = vadd.f32 %v20234_v10, %v20233_v43  ;;  %v20241_v42 = vld [vmem:[#allocation203_spill] sm:$0xff]  ;;  %v20242_v41 = vld [vmem:[#allocation181_spill] sm:$0xff]  ;;  %v20244_v8 = vld [vmem:[#allocation190_spill] sm:$0xff]  ;;  %v13659_v62 = vpop.f32.mrf.mxu0 }
 0x575   :  { %v9973_v22 = vpop.f32.mrf.mxu1  ;;  %v9469_v45 = vadd.f32 %v20240_v44, %v20239_v57  ;;  %v20243_v51 = vld [vmem:[#allocation31_spill] sm:$0xff] }
 0x576   :  { %v11652_v60 = vadd.f32 %v18549_v12, %v11629_v37  ;;  %v11517_v1 = vadd.f32 %v11481_v26, %v11479_v5  ;;  %v10070_v63 = vadd.f32 %v9973_v22, %v9460_v54  ;;  %v11482_v24 = vadd.f32 %v18726_v61, %v10072_v20  ;;  %v20245_v37 = vld [vmem:[#allocation174_spill] sm:$0xff]  ;;  %v11415_v13 = vpop.f32.mrf.mxu0 }
 0x577   :  { %v13574_v49 = vpop.f32.mrf.mxu1  ;;  %v9470_v40 = vadd.f32 %v20244_v8, %v20243_v51  ;;  %v9468_v26 = vadd.f32 %v20245_v37, %v18490_v0 }
 0x578   :  { %11668 = vst [vmem:[#allocation7 + $0x58] sm:$0xff] %v11652_v60  ;;  %11549 = vst [vmem:[#allocation3 + $0xd0] sm:$0xff] %v11517_v1  ;;  %v11480_v59 = vadd.f32 %v11383_v18, %v10070_v63  ;;  %v10075_v4 = vadd.f32 %v13574_v49, %v9465_v32 }
 0x579   :  { %v9986_v55 = vpop.f32.mrf.mxu1 }
 0x57a   :  { %v11518_v39 = vadd.f32 %v11482_v24, %v11480_v59  ;;  %v10073_v34 = vadd.f32 %v9986_v55, %v9463_v25  ;;  %v11485_v18 = vadd.f32 %v13654_v11, %v10075_v4  ;;  %v9467_v11 = vadd.f32 %v20242_v41, %v20241_v42 }
 0x57b   :  { %v11579_v47 = vld [vmem:[#allocation3 + $0xc0] ss:$2 sm:$0xff]  ;;  %v11611_v27 = vld [vmem:[#allocation3 + $0xc1] ss:$2 sm:$0xff]  ;;  %v13575_v35 = vpop.f32.mrf.mxu1 }
 0x57c   :  { %v11630_v61 = vadd.f32 %v11611_v27, %v11579_v47  ;;  %11550 = vst [vmem:[#allocation3 + $0xd8] sm:$0xff] %v11518_v39  ;;  %v11483_v7 = vadd.f32 %v11396_v56, %v10073_v34  ;;  %v10076_v15 = vadd.f32 %v13575_v35, %v9466_v17 }
 0x57d   :  { %v9989_v14 = vpop.f32.mrf.mxu1 }
 0x57e   :  { %v11653_v38 = vadd.f32 %v18549_v12, %v11630_v61  ;;  %v11519_v9 = vadd.f32 %v11485_v18, %v11483_v7  ;;  %v10074_v3 = vadd.f32 %v9989_v14, %v9464_v21  ;;  %v11486_v52 = vadd.f32 %v13655_v50, %v10076_v15 }
 0x57f   :  { %v13578_v28 = vpop.f32.mrf.mxu1 }
 0x580   :  { %11669 = vst [vmem:[#allocation7 + $0x60] sm:$0xff] %v11653_v38  ;;  %11551 = vst [vmem:[#allocation3 + $0xe0] sm:$0xff] %v11519_v9  ;;  %v11484_v29 = vadd.f32 %v11399_v23, %v10074_v3  ;;  %v10079_v46 = vadd.f32 %v13578_v28, %v9469_v45 }
 0x581   :  { %v10002_v56 = vpop.f32.mrf.mxu1 }
 0x582   :  { %v11520_v58 = vadd.f32 %v11486_v52, %v11484_v29  ;;  %v10077_v48 = vadd.f32 %v10002_v56, %v9467_v11  ;;  %v11489_v20 = vadd.f32 %v13658_v31, %v10079_v46 }
 0x583   :  { %v11581_v36 = vld [vmem:[#allocation3 + $0xd0] ss:$2 sm:$0xff]  ;;  %v11613_v53 = vld [vmem:[#allocation3 + $0xd1] ss:$2 sm:$0xff]  ;;  %v13579_v54 = vpop.f32.mrf.mxu1 }
 0x584   :  { %v11631_v5 = vadd.f32 %v11613_v53, %v11581_v36  ;;  %11552 = vst [vmem:[#allocation3 + $0xe8] sm:$0xff] %v11520_v58  ;;  %v11487_v50 = vadd.f32 %v11412_v30, %v10077_v48  ;;  %v10080_v22 = vadd.f32 %v13579_v54, %v9470_v40 }
 0x585   :  { %v10005_v60 = vpop.f32.mrf.mxu1 }
 0x586   :  { %v11654_v1 = vadd.f32 %v18549_v12, %v11631_v5  ;;  %v11521_v63 = vadd.f32 %v11489_v20, %v11487_v50  ;;  %v10078_v19 = vadd.f32 %v10005_v60, %v9468_v26  ;;  %v11490_v32 = vadd.f32 %v13659_v62, %v10080_v22 }
 0x588   :  { %11670 = vst [vmem:[#allocation7 + $0x68] sm:$0xff] %v11654_v1  ;;  %11553 = vst [vmem:[#allocation3 + $0xf0] sm:$0xff] %v11521_v63  ;;  %v11488_v49 = vadd.f32 %v11415_v13, %v10078_v19 }
 0x58a   :  { %v11522_v24 = vadd.f32 %v11490_v32, %v11488_v49 }
 0x58b   :  { %v11583_v59 = vld [vmem:[#allocation3 + $0xe0] ss:$2 sm:$0xff]  ;;  %v11615_v4 = vld [vmem:[#allocation3 + $0xe1] ss:$2 sm:$0xff] }
 0x58c   :  { %v11632_v43 = vadd.f32 %v11615_v4, %v11583_v59  ;;  %11554 = vst [vmem:[#allocation3 + $0xf8] sm:$0xff] %v11522_v24 }
 0x58e   :  { %v11655_v0 = vadd.f32 %v18549_v12, %v11632_v43 }
 0x590   :  { %11671 = vst [vmem:[#allocation7 + $0x70] sm:$0xff] %v11655_v0 }
 0x593   :  { %v11585_v10 = vld [vmem:[#allocation3 + $0xf0] ss:$2 sm:$0xff]  ;;  %v11617_v25 = vld [vmem:[#allocation3 + $0xf1] ss:$2 sm:$0xff] }
 0x594   :  { %v11633_v23 = vadd.f32 %v11617_v25, %v11585_v10 }
 0x596   :  { %v11656_v55 = vadd.f32 %v18549_v12, %v11633_v23 }
 0x598   :  { %11672 = vst [vmem:[#allocation7 + $0x78] sm:$0xff] %v11656_v55 }
 0x599   :  { %14038 = shalt.err (!%p14035_p9)
}
 0x59a   :  { %s14056_s28 = smov 128   ;;  %s14057_s29 = smov 8  }
 0x59b   :  { %11684 = dma.vmem_to_hbm [thread:$0]  %s11679_s26, 2048, %s18785_s6, [#allocation6], %s14056_s28, %s14056_s28, %s14057_s29  }
 0x59c   :  { %14049 = dma.done.wait [#allocation6], 2048  }
 0x59d   :  { %14050 = vsyncadd [#allocation6], 4294965248 }
 0x59e   :  { %11688 = vsyncpa [#allocation5], 1 }
 0x59f   :  { %11689 = vsyncpa [#allocation6], 1 }

</bundles_post_ra>
